<compile_context>
chip_gen: v7x
topology: tpu7x:2x2x1
jax: 0.10.0
libtpu: 0.0.40
codegen_flags: <defaults>
</compile_context>

<pallas_src>
import functools
import math

import jax
import jax.numpy as jnp
import numpy as np
from jax.experimental import pallas as pl
from jax.experimental.pallas import tpu as pltpu


def _layernorm(x, w, b, eps=1e-5):
    # one-pass variance (E[x^2] - mu^2): half the cross-lane reductions of the
    # two-pass form; matches torch.nn.LayerNorm (biased variance, eps=1e-5).
    mu = jnp.mean(x, axis=-1, keepdims=True)
    ms = jnp.mean(x * x, axis=-1, keepdims=True)
    var = ms - mu * mu
    return (x - mu) * jax.lax.rsqrt(var + eps) * w + b


def image_encoder_kernel(
    x_ref, wproj_ref, bproj_ref, pe_ref,
    wqkv_ref, bqkv_ref, wa_ref, w1_ref, b1_ref, w2_ref, vec_ref,
    out_ref,
    *, num_layers, num_heads, seq_len):
    R, C = x_ref.shape              # R = batch_block * S rows, features on lanes
    D = wproj_ref.shape[1]
    H = num_heads
    Dh = D // H
    S = seq_len
    Bb = R // S
    scale = 1.0 / math.sqrt(Dh)
    cdt = wproj_ref.dtype           # MXU feed dtype (bf16); accumulation stays f32

    # projection of backbone features + positional encoding (dropout == identity)
    h = jnp.dot(x_ref[...], wproj_ref[...],
                preferred_element_type=jnp.float32) + bproj_ref[...]
    h = h + pe_ref[...]                                  # (R, D) f32 residual stream

    for l in range(num_layers):                          # all layers VMEM-resident
        vl = vec_ref[l]                                  # (6, D) packed per-layer vectors
        ba, b2 = vl[0:1], vl[1:2]
        ln1w, ln1b = vl[2:3], vl[3:4]
        ln2w, ln2b = vl[4:5], vl[5:6]
        wal = wa_ref[l]                                  # (D, D)

        hb = h.astype(cdt)

        # ---- MultiHeadAttention (self attention) ----
        # fused QKV: one (R, D) x (D, 3D) matmul; q/k/v are 128-aligned lane slices
        qkv = jnp.dot(hb, wqkv_ref[l],
                      preferred_element_type=jnp.float32) + bqkv_ref[l]
        q = qkv[:, 0:D]
        k = qkv[:, D:2 * D]
        v = qkv[:, 2 * D:3 * D]

        # per-head attention, batched over the images in the block; the output
        # projection A is folded into the head loop so every MXU output is a
        # lane-dense (R, D) tile and no head-assembly scratch is needed.
        acc = None
        for hh in range(H):
            sl = slice(hh * Dh, (hh + 1) * Dh)
            qh = q[:, sl].reshape(Bb, S, Dh).astype(cdt)
            kh = k[:, sl].reshape(Bb, S, Dh).astype(cdt)
            vh = v[:, sl].reshape(Bb, S, Dh).astype(cdt)
            att = jnp.einsum("bqd,bkd->bqk", qh, kh,
                             preferred_element_type=jnp.float32) * scale
            att = att - jnp.max(att, axis=-1, keepdims=True)
            p = jnp.exp(att)
            p = p * pl.reciprocal(jnp.sum(p, axis=-1, keepdims=True), approx=True)
            yh = jnp.einsum("bqk,bkd->bqd", p.astype(cdt), vh,
                            preferred_element_type=jnp.float32)    # (Bb, S, Dh)
            part = jnp.dot(yh.reshape(R, Dh).astype(cdt), wal[sl, :],
                           preferred_element_type=jnp.float32)     # (R, D)
            acc = part if acc is None else acc + part
        attn_out = acc + ba

        # residual + LayerNorm1 (f32)
        h = _layernorm(h + attn_out, ln1w, ln1b)

        # ---- feed-forward (FF lane dim padded to multiple of 128 in wrapper) ----
        ff = jnp.dot(h.astype(cdt), w1_ref[l],
                     preferred_element_type=jnp.float32) + b1_ref[l]
        ff = jnp.maximum(ff, 0.0)
        ff = jnp.dot(ff.astype(cdt), w2_ref[l],
                     preferred_element_type=jnp.float32) + b2

        # residual + LayerNorm2 (f32)
        h = _layernorm(h + ff, ln2w, ln2b)

    out_ref[...] = h.astype(out_ref.dtype)


def _pick_batch_block(N, S, target_rows=256):
    """Largest divisor of N with Bb*S <= target_rows, preferring NB = N/Bb >= 2
    so the 'parallel' grid axis can be sharded across both v7x TensorCores."""
    divs = sorted([d for d in range(1, N + 1) if N % d == 0], reverse=True)
    for d in divs:
        if d * S <= target_rows and N // d >= 2:
            return d
    for d in divs:
        if d * S <= target_rows:
            return d
    return 1


def image_encoder_forward(features, params, *, num_layers, num_heads,
                          batch_block=None, mxu_dtype=jnp.bfloat16):
    N, S, C = features.shape
    D = params["wproj"].shape[1]
    L = num_layers
    assert D % num_heads == 0, "embed dim must be divisible by num_heads"
    assert params["pe"].shape[0] >= S, "positional encoding shorter than sequence"

    if batch_block is None:
        batch_block = _pick_batch_block(N, S)
    assert N % batch_block == 0
    Bb = batch_block
    NB = N // Bb
    R = Bb * S

    # Pad dim_feedforward to a lane-dense multiple of 128 (exact: padded lanes are
    # ReLU(0 + 0) = 0 and multiply zero rows of w2).
    FF = params["w1"].shape[-1]
    FFp = ((FF + 127) // 128) * 128
    w1, b1, w2 = params["w1"], params["b1"], params["w2"]
    if FFp != FF:
        w1 = jnp.pad(w1, ((0, 0), (0, 0), (0, FFp - FF)))
        b1 = jnp.pad(b1, ((0, 0), (0, 0), (0, FFp - FF)))
        w2 = jnp.pad(w2, ((0, 0), (0, FFp - FF), (0, 0)))

    cast = lambda a: a.astype(mxu_dtype)

    # Fuse QKV weights/biases; pack per-layer (1, D) vectors into one slab.
    wqkv = jnp.concatenate([params["wq"], params["wk"], params["wv"]], axis=-1)   # (L, D, 3D)
    bqkv = jnp.concatenate([params["bq"], params["bk"], params["bv"]], axis=-1)   # (L, 1, 3D)
    vecs = jnp.concatenate([params["ba"], params["b2"],
                            params["ln1w"], params["ln1b"],
                            params["ln2w"], params["ln2b"]], axis=1)              # (L, 6, D)

    # Input rows flattened and fed in bf16 (kernel casts to bf16 anyway); biases,
    # LayerNorm params and the PE stay f32 for the VPU/EUP path.
    x2d = features.reshape(N * S, C).astype(mxu_dtype)
    pe_tiled = jnp.tile(params["pe"][:S], (Bb, 1))        # (R, D), f32

    args = [
        x2d,
        cast(params["wproj"]), params["bproj"], pe_tiled,
        cast(wqkv), bqkv, cast(params["wa"]),
        cast(w1), b1, cast(w2), vecs,
    ]

    def const_spec(a):
        # Constant block index -> DMA'd once; resident for the whole call.
        nd = a.ndim
        return pl.BlockSpec(a.shape, lambda n: (0,) * nd)

    in_specs = [pl.BlockSpec((R, C), lambda n: (n, 0))]
    in_specs += [const_spec(a) for a in args[1:]]
    out_specs = pl.BlockSpec((R, D), lambda n: (n, 0))

    kernel = functools.partial(image_encoder_kernel, num_layers=L,
                               num_heads=num_heads, seq_len=S)

    flops = (2 * N * S * C * D
             + L * (N * S * (8 * D * D + 4 * D * FFp) + 4 * N * S * S * D))
    transcendentals = L * N * num_heads * S * S + 4 * L * N * S
    bytes_accessed = int(sum(int(a.nbytes) for a in args) + N * S * D * 4)

    out2d = pl.pallas_call(
        kernel,
        out_shape=jax.ShapeDtypeStruct((N * S, D), jnp.float32),
        grid_spec=pltpu.PrefetchScalarGridSpec(
            num_scalar_prefetch=0,
            grid=(NB,),                                   # image blocks only
            in_specs=in_specs,
            out_specs=out_specs,
        ),
        compiler_params=pltpu.CompilerParams(
            dimension_semantics=("parallel",),
            # Actual VMEM need here is ~1 MiB (resident weights + one block);
            # 32 MiB is a safe explicit ceiling on every generation incl. v7x's
            # 64 MiB physical VMEM. Raise toward 64-96 MiB on v5e/v6e if D/FF/L scale up.
            vmem_limit_bytes=32 * 1024 * 1024,
        ),
        cost_estimate=pl.CostEstimate(
            flops=int(flops),
            transcendentals=int(transcendentals),
            bytes_accessed=bytes_accessed,
        ),
    )(*args)
    return out2d.reshape(N, S, D)


# ------------------------- parameter construction -------------------------

def make_positional_encoding(max_len, embed_dim):
    pos = jnp.arange(max_len, dtype=jnp.float32)[:, None]
    even = jnp.arange(0, embed_dim, 2, dtype=jnp.float32)
    coef = jnp.exp(-math.log(10000.0) * even / embed_dim)
    ang = pos * coef                                        # (max_len, D/2)
    pe = jnp.zeros((max_len, embed_dim), dtype=jnp.float32)
    pe = pe.at[:, 0::2].set(jnp.sin(ang))
    pe = pe.at[:, 1::2].set(jnp.cos(ang))
    return pe


def make_params(key, *, cin, D, FF, num_layers, max_len):
    ks = jax.random.split(key, 8)
    nrm = lambda k, shape: 0.02 * jax.random.normal(k, shape, dtype=jnp.float32)
    L = num_layers
    return {
        # Linear weights stored as (in, out) so that y = x @ W + b
        "wproj": nrm(ks[0], (cin, D)),
        "bproj": jnp.zeros((1, D), jnp.float32),
        "pe": make_positional_encoding(max_len, D),
        "wq": nrm(ks[1], (L, D, D)), "bq": jnp.zeros((L, 1, D), jnp.float32),
        "wk": nrm(ks[2], (L, D, D)), "bk": jnp.zeros((L, 1, D), jnp.float32),
        "wv": nrm(ks[3], (L, D, D)), "bv": jnp.zeros((L, 1, D), jnp.float32),
        "wa": nrm(ks[4], (L, D, D)), "ba": jnp.zeros((L, 1, D), jnp.float32),
        "w1": nrm(ks[5], (L, D, FF)), "b1": jnp.zeros((L, 1, FF), jnp.float32),
        "w2": nrm(ks[6], (L, FF, D)), "b2": jnp.zeros((L, 1, D), jnp.float32),
        "ln1w": jnp.ones((L, 1, D), jnp.float32),
        "ln1b": jnp.zeros((L, 1, D), jnp.float32),
        "ln2w": jnp.ones((L, 1, D), jnp.float32),
        "ln2b": jnp.zeros((L, 1, D), jnp.float32),
    }


# ------------------------- pure-JAX reference (f32) -------------------------

def ref_forward(features, p, *, num_layers, num_heads):
    N, S, C = features.shape
    D = p["wproj"].shape[1]
    Dh = D // num_heads

    h = features @ p["wproj"] + p["bproj"]
    h = h + p["pe"][:S][None]

    def layernorm(x, w, b, eps=1e-5):
        mu = jnp.mean(x, axis=-1, keepdims=True)
        var = jnp.mean((x - mu) ** 2, axis=-1, keepdims=True)
        return (x - mu) / jnp.sqrt(var + eps) * w + b

    for l in range(num_layers):
        q = (h @ p["wq"][l] + p["bq"][l]).reshape(N, S, num_heads, Dh)
        k = (h @ p["wk"][l] + p["bk"][l]).reshape(N, S, num_heads, Dh)
        v = (h @ p["wv"][l] + p["bv"][l]).reshape(N, S, num_heads, Dh)
        att = jnp.einsum("nqhd,nkhd->nhqk", q, k) / math.sqrt(Dh)
        att = jax.nn.softmax(att, axis=-1)
        y = jnp.einsum("nhqk,nkhd->nqhd", att, v).reshape(N, S, D)
        attn_out = y @ p["wa"][l] + p["ba"][l]
        h = layernorm(h + attn_out, p["ln1w"][l], p["ln1b"][l])
        ff = jnp.maximum(h @ p["w1"][l] + p["b1"][l], 0.0)
        ff = ff @ p["w2"][l] + p["b2"][l]
        h = layernorm(h + ff, p["ln2w"][l], p["ln2b"][l])
    return h


if __name__ == "__main__":
    N, S = 8, 16           # batch, sequence length (flattened spatial positions)
    CIN = 512              # proj input dim fixed by nn.Linear(512, wordvec_dim)
    D = 128                # wordvec_dim (lane-dense: multiple of 128, divisible by H)
    H = 4                  # num_heads  -> Dh = 32
    L = 2                  # num_layers
    FF = 200               # dim_feedforward (module default; padded to 256 in wrapper)

    key = jax.random.PRNGKey(0)
    k_feat, k_param = jax.random.split(key)
    features = jax.random.normal(k_feat, (N, S, CIN), dtype=jnp.float32)
    params = make_params(k_param, cin=CIN, D=D, FF=FF, num_layers=L, max_len=64)

    out = image_encoder_forward(features, params, num_layers=L, num_heads=H)
    out = jax.block_until_ready(out)

    ref = jax.block_until_ready(ref_forward(features, params, num_layers=L, num_heads=H))

    assert out.shape == (N, S, D), out.shape
    # bf16 MXU feeds (f32 accumulation) + approx reciprocal vs f32 reference.
    np.testing.assert_allclose(np.asarray(out), np.asarray(ref), rtol=5e-2, atol=5e-2)
    print("KERNEL_OK")
</pallas_src>

<mosaic_0001>
module attributes {stable_mosaic.version = 11 : i64} {
  func.func @image_encoder_kernel(%arg0: i32, %arg1: memref<64x512xbf16, #tpu.memory_space<vmem>>, %arg2: memref<512x128xbf16, #tpu.memory_space<vmem>>, %arg3: memref<1x128xf32, #tpu.memory_space<vmem>>, %arg4: memref<64x128xf32, #tpu.memory_space<vmem>>, %arg5: memref<2x128x384xbf16, #tpu.memory_space<vmem>>, %arg6: memref<2x1x384xf32, #tpu.memory_space<vmem>>, %arg7: memref<2x128x128xbf16, #tpu.memory_space<vmem>>, %arg8: memref<2x128x256xbf16, #tpu.memory_space<vmem>>, %arg9: memref<2x1x256xf32, #tpu.memory_space<vmem>>, %arg10: memref<2x256x128xbf16, #tpu.memory_space<vmem>>, %arg11: memref<2x6x128xf32, #tpu.memory_space<vmem>>, %arg12: memref<64x128xf32, #tpu.memory_space<vmem>>) attributes {dimension_semantics = [#tpu.dimension_semantics<parallel>], iteration_bounds = array<i64: 2>, scalar_prefetch = 0 : i64, scratch_operands = 0 : i64, tpu.core_type = #tpu.core_type<tc>, window_params = [{transform_indices = @transform_0, window_bounds = array<i64: 64, 512>}, {pipeline_mode = #tpu.pipeline_mode<synchronous>, transform_indices = @transform_1, window_bounds = array<i64: 512, 128>}, {pipeline_mode = #tpu.pipeline_mode<synchronous>, transform_indices = @transform_2, window_bounds = array<i64: 1, 128>}, {pipeline_mode = #tpu.pipeline_mode<synchronous>, transform_indices = @transform_3, window_bounds = array<i64: 64, 128>}, {pipeline_mode = #tpu.pipeline_mode<synchronous>, transform_indices = @transform_4, window_bounds = array<i64: 2, 128, 384>}, {pipeline_mode = #tpu.pipeline_mode<synchronous>, transform_indices = @transform_5, window_bounds = array<i64: 2, 1, 384>}, {pipeline_mode = #tpu.pipeline_mode<synchronous>, transform_indices = @transform_6, window_bounds = array<i64: 2, 128, 128>}, {pipeline_mode = #tpu.pipeline_mode<synchronous>, transform_indices = @transform_7, window_bounds = array<i64: 2, 128, 256>}, {pipeline_mode = #tpu.pipeline_mode<synchronous>, transform_indices = @transform_8, window_bounds = array<i64: 2, 1, 256>}, {pipeline_mode = #tpu.pipeline_mode<synchronous>, transform_indices = @transform_9, window_bounds = array<i64: 2, 256, 128>}, {pipeline_mode = #tpu.pipeline_mode<synchronous>, transform_indices = @transform_10, window_bounds = array<i64: 2, 6, 128>}, {transform_indices = @transform_11, window_bounds = array<i64: 64, 128>}]} {
    %c0 = arith.constant 0 : index
    %c0_0 = arith.constant 0 : index
    %0 = vector.load %arg1[%c0, %c0_0] : memref<64x512xbf16, #tpu.memory_space<vmem>>, vector<64x512xbf16>
    %c0_1 = arith.constant 0 : index
    %c0_2 = arith.constant 0 : index
    %1 = vector.load %arg2[%c0_1, %c0_2] : memref<512x128xbf16, #tpu.memory_space<vmem>>, vector<512x128xbf16>
    %cst = arith.constant dense<0.000000e+00> : vector<64x128xf32>
    %2 = tpu.matmul %0, %1, %cst {dimension_numbers = #tpu.dot_dimension_numbers<[1], [0], [0], [1], [0, 0, 1, 1], [], []>} : vector<64x512xbf16>, vector<512x128xbf16>, vector<64x128xf32> -> vector<64x128xf32>
    %c0_3 = arith.constant 0 : index
    %c0_4 = arith.constant 0 : index
    %3 = vector.load %arg3[%c0_3, %c0_4] : memref<1x128xf32, #tpu.memory_space<vmem>>, vector<1x128xf32>
    %4 = vector.broadcast %3 : vector<1x128xf32> to vector<64x128xf32>
    %5 = arith.addf %2, %4 : vector<64x128xf32>
    %c0_5 = arith.constant 0 : index
    %c0_6 = arith.constant 0 : index
    %6 = vector.load %arg4[%c0_5, %c0_6] : memref<64x128xf32, #tpu.memory_space<vmem>>, vector<64x128xf32>
    %7 = arith.addf %5, %6 : vector<64x128xf32>
    %c0_7 = arith.constant 0 : index
    %c0_8 = arith.constant 0 : index
    %c0_9 = arith.constant 0 : index
    %8 = vector.load %arg11[%c0_7, %c0_8, %c0_9] : memref<2x6x128xf32, #tpu.memory_space<vmem>>, vector<1x6x128xf32>
    %9 = vector.shape_cast %8 : vector<1x6x128xf32> to vector<6x128xf32>
    %10 = vector.extract_strided_slice %9 {offsets = [0, 0], sizes = [1, 128], strides = [1, 1]} : vector<6x128xf32> to vector<1x128xf32>
    %11 = vector.extract_strided_slice %9 {offsets = [1, 0], sizes = [1, 128], strides = [1, 1]} : vector<6x128xf32> to vector<1x128xf32>
    %12 = vector.extract_strided_slice %9 {offsets = [2, 0], sizes = [1, 128], strides = [1, 1]} : vector<6x128xf32> to vector<1x128xf32>
    %13 = vector.extract_strided_slice %9 {offsets = [3, 0], sizes = [1, 128], strides = [1, 1]} : vector<6x128xf32> to vector<1x128xf32>
    %14 = vector.extract_strided_slice %9 {offsets = [4, 0], sizes = [1, 128], strides = [1, 1]} : vector<6x128xf32> to vector<1x128xf32>
    %15 = vector.extract_strided_slice %9 {offsets = [5, 0], sizes = [1, 128], strides = [1, 1]} : vector<6x128xf32> to vector<1x128xf32>
    %c0_10 = arith.constant 0 : index
    %c0_11 = arith.constant 0 : index
    %c0_12 = arith.constant 0 : index
    %16 = vector.load %arg7[%c0_10, %c0_11, %c0_12] : memref<2x128x128xbf16, #tpu.memory_space<vmem>>, vector<1x128x128xbf16>
    %17 = vector.shape_cast %16 : vector<1x128x128xbf16> to vector<128x128xbf16>
    %18 = arith.truncf %7 : vector<64x128xf32> to vector<64x128xbf16>
    %c0_13 = arith.constant 0 : index
    %c0_14 = arith.constant 0 : index
    %c0_15 = arith.constant 0 : index
    %19 = vector.load %arg5[%c0_13, %c0_14, %c0_15] : memref<2x128x384xbf16, #tpu.memory_space<vmem>>, vector<1x128x384xbf16>
    %20 = vector.shape_cast %19 : vector<1x128x384xbf16> to vector<128x384xbf16>
    %cst_16 = arith.constant dense<0.000000e+00> : vector<64x384xf32>
    %21 = tpu.matmul %18, %20, %cst_16 {dimension_numbers = #tpu.dot_dimension_numbers<[1], [0], [0], [1], [0, 0, 1, 1], [], []>} : vector<64x128xbf16>, vector<128x384xbf16>, vector<64x384xf32> -> vector<64x384xf32>
    %c0_17 = arith.constant 0 : index
    %c0_18 = arith.constant 0 : index
    %c0_19 = arith.constant 0 : index
    %22 = vector.load %arg6[%c0_17, %c0_18, %c0_19] : memref<2x1x384xf32, #tpu.memory_space<vmem>>, vector<1x1x384xf32>
    %23 = vector.shape_cast %22 : vector<1x1x384xf32> to vector<1x384xf32>
    %24 = vector.broadcast %23 : vector<1x384xf32> to vector<64x384xf32>
    %25 = arith.addf %21, %24 : vector<64x384xf32>
    %26 = vector.extract_strided_slice %25 {offsets = [0, 0], sizes = [64, 128], strides = [1, 1]} : vector<64x384xf32> to vector<64x128xf32>
    %27 = vector.extract_strided_slice %25 {offsets = [0, 128], sizes = [64, 128], strides = [1, 1]} : vector<64x384xf32> to vector<64x128xf32>
    %28 = vector.extract_strided_slice %25 {offsets = [0, 256], sizes = [64, 128], strides = [1, 1]} : vector<64x384xf32> to vector<64x128xf32>
    %29 = vector.extract_strided_slice %26 {offsets = [0, 0], sizes = [64, 32], strides = [1, 1]} : vector<64x128xf32> to vector<64x32xf32>
    %30 = vector.shape_cast %29 : vector<64x32xf32> to vector<4x16x32xf32>
    %31 = arith.truncf %30 : vector<4x16x32xf32> to vector<4x16x32xbf16>
    %32 = vector.extract_strided_slice %27 {offsets = [0, 0], sizes = [64, 32], strides = [1, 1]} : vector<64x128xf32> to vector<64x32xf32>
    %33 = vector.shape_cast %32 : vector<64x32xf32> to vector<4x16x32xf32>
    %34 = arith.truncf %33 : vector<4x16x32xf32> to vector<4x16x32xbf16>
    %35 = vector.extract_strided_slice %28 {offsets = [0, 0], sizes = [64, 32], strides = [1, 1]} : vector<64x128xf32> to vector<64x32xf32>
    %36 = vector.shape_cast %35 : vector<64x32xf32> to vector<4x16x32xf32>
    %37 = arith.truncf %36 : vector<4x16x32xf32> to vector<4x16x32xbf16>
    "tpu.trace_start"() <{level = 10 : i32, message = "bqd,bkd->bqk"}> : () -> ()
    %cst_20 = arith.constant dense<0.000000e+00> : vector<4x16x16xf32>
    %38 = tpu.matmul %31, %34, %cst_20 {dimension_numbers = #tpu.dot_dimension_numbers<[2], [2], [1], [1], [0, 0, 0, 1, 1, 1], [0], [0]>} : vector<4x16x32xbf16>, vector<4x16x32xbf16>, vector<4x16x16xf32> -> vector<4x16x16xf32>
    "tpu.trace_stop"() : () -> ()
    %cst_21 = arith.constant 0.176776692 : f32
    %39 = vector.broadcast %cst_21 : f32 to vector<4x16x16xf32>
    %40 = arith.mulf %38, %39 : vector<4x16x16xf32>
    %cst_22 = arith.constant dense<0xFF800000> : vector<4x16xf32>
    %41 = vector.multi_reduction <maximumf>, %40, %cst_22 [2] : vector<4x16x16xf32> to vector<4x16xf32>
    %42 = vector.shape_cast %41 : vector<4x16xf32> to vector<4x16x1xf32>
    %43 = vector.broadcast %42 : vector<4x16x1xf32> to vector<4x16x16xf32>
    %44 = arith.subf %40, %43 : vector<4x16x16xf32>
    %45 = math.exp %44 : vector<4x16x16xf32>
    %cst_23 = arith.constant dense<0.000000e+00> : vector<4x16xf32>
    %46 = vector.multi_reduction <add>, %45, %cst_23 [2] : vector<4x16x16xf32> to vector<4x16xf32>
    %47 = vector.shape_cast %46 : vector<4x16xf32> to vector<4x16x1xf32>
    %48 = tpu.reciprocal %47 {approx = true} : vector<4x16x1xf32> -> vector<4x16x1xf32>
    %49 = vector.broadcast %48 : vector<4x16x1xf32> to vector<4x16x16xf32>
    %50 = arith.mulf %45, %49 : vector<4x16x16xf32>
    %51 = arith.truncf %50 : vector<4x16x16xf32> to vector<4x16x16xbf16>
    "tpu.trace_start"() <{level = 10 : i32, message = "bqk,bkd->bqd"}> : () -> ()
    %cst_24 = arith.constant dense<0.000000e+00> : vector<4x16x32xf32>
    %52 = tpu.matmul %51, %37, %cst_24 {dimension_numbers = #tpu.dot_dimension_numbers<[2], [1], [1], [2], [0, 0, 0, 1, 1, 2], [0], [0]>} : vector<4x16x16xbf16>, vector<4x16x32xbf16>, vector<4x16x32xf32> -> vector<4x16x32xf32>
    "tpu.trace_stop"() : () -> ()
    %53 = vector.shape_cast %52 : vector<4x16x32xf32> to vector<64x32xf32>
    %54 = arith.truncf %53 : vector<64x32xf32> to vector<64x32xbf16>
    %55 = vector.extract_strided_slice %17 {offsets = [0, 0], sizes = [32, 128], strides = [1, 1]} : vector<128x128xbf16> to vector<32x128xbf16>
    %cst_25 = arith.constant dense<0.000000e+00> : vector<64x128xf32>
    %56 = tpu.matmul %54, %55, %cst_25 {dimension_numbers = #tpu.dot_dimension_numbers<[1], [0], [0], [1], [0, 0, 1, 1], [], []>} : vector<64x32xbf16>, vector<32x128xbf16>, vector<64x128xf32> -> vector<64x128xf32>
    %57 = vector.extract_strided_slice %26 {offsets = [0, 32], sizes = [64, 32], strides = [1, 1]} : vector<64x128xf32> to vector<64x32xf32>
    %58 = vector.shape_cast %57 : vector<64x32xf32> to vector<4x16x32xf32>
    %59 = arith.truncf %58 : vector<4x16x32xf32> to vector<4x16x32xbf16>
    %60 = vector.extract_strided_slice %27 {offsets = [0, 32], sizes = [64, 32], strides = [1, 1]} : vector<64x128xf32> to vector<64x32xf32>
    %61 = vector.shape_cast %60 : vector<64x32xf32> to vector<4x16x32xf32>
    %62 = arith.truncf %61 : vector<4x16x32xf32> to vector<4x16x32xbf16>
    %63 = vector.extract_strided_slice %28 {offsets = [0, 32], sizes = [64, 32], strides = [1, 1]} : vector<64x128xf32> to vector<64x32xf32>
    %64 = vector.shape_cast %63 : vector<64x32xf32> to vector<4x16x32xf32>
    %65 = arith.truncf %64 : vector<4x16x32xf32> to vector<4x16x32xbf16>
    "tpu.trace_start"() <{level = 10 : i32, message = "bqd,bkd->bqk"}> : () -> ()
    %cst_26 = arith.constant dense<0.000000e+00> : vector<4x16x16xf32>
    %66 = tpu.matmul %59, %62, %cst_26 {dimension_numbers = #tpu.dot_dimension_numbers<[2], [2], [1], [1], [0, 0, 0, 1, 1, 1], [0], [0]>} : vector<4x16x32xbf16>, vector<4x16x32xbf16>, vector<4x16x16xf32> -> vector<4x16x16xf32>
    "tpu.trace_stop"() : () -> ()
    %cst_27 = arith.constant 0.176776692 : f32
    %67 = vector.broadcast %cst_27 : f32 to vector<4x16x16xf32>
    %68 = arith.mulf %66, %67 : vector<4x16x16xf32>
    %cst_28 = arith.constant dense<0xFF800000> : vector<4x16xf32>
    %69 = vector.multi_reduction <maximumf>, %68, %cst_28 [2] : vector<4x16x16xf32> to vector<4x16xf32>
    %70 = vector.shape_cast %69 : vector<4x16xf32> to vector<4x16x1xf32>
    %71 = vector.broadcast %70 : vector<4x16x1xf32> to vector<4x16x16xf32>
    %72 = arith.subf %68, %71 : vector<4x16x16xf32>
    %73 = math.exp %72 : vector<4x16x16xf32>
    %cst_29 = arith.constant dense<0.000000e+00> : vector<4x16xf32>
    %74 = vector.multi_reduction <add>, %73, %cst_29 [2] : vector<4x16x16xf32> to vector<4x16xf32>
    %75 = vector.shape_cast %74 : vector<4x16xf32> to vector<4x16x1xf32>
    %76 = tpu.reciprocal %75 {approx = true} : vector<4x16x1xf32> -> vector<4x16x1xf32>
    %77 = vector.broadcast %76 : vector<4x16x1xf32> to vector<4x16x16xf32>
    %78 = arith.mulf %73, %77 : vector<4x16x16xf32>
    %79 = arith.truncf %78 : vector<4x16x16xf32> to vector<4x16x16xbf16>
    "tpu.trace_start"() <{level = 10 : i32, message = "bqk,bkd->bqd"}> : () -> ()
    %cst_30 = arith.constant dense<0.000000e+00> : vector<4x16x32xf32>
    %80 = tpu.matmul %79, %65, %cst_30 {dimension_numbers = #tpu.dot_dimension_numbers<[2], [1], [1], [2], [0, 0, 0, 1, 1, 2], [0], [0]>} : vector<4x16x16xbf16>, vector<4x16x32xbf16>, vector<4x16x32xf32> -> vector<4x16x32xf32>
    "tpu.trace_stop"() : () -> ()
    %81 = vector.shape_cast %80 : vector<4x16x32xf32> to vector<64x32xf32>
    %82 = arith.truncf %81 : vector<64x32xf32> to vector<64x32xbf16>
    %83 = vector.extract_strided_slice %17 {offsets = [32, 0], sizes = [32, 128], strides = [1, 1]} : vector<128x128xbf16> to vector<32x128xbf16>
    %cst_31 = arith.constant dense<0.000000e+00> : vector<64x128xf32>
    %84 = tpu.matmul %82, %83, %cst_31 {dimension_numbers = #tpu.dot_dimension_numbers<[1], [0], [0], [1], [0, 0, 1, 1], [], []>} : vector<64x32xbf16>, vector<32x128xbf16>, vector<64x128xf32> -> vector<64x128xf32>
    %85 = arith.addf %56, %84 : vector<64x128xf32>
    %86 = vector.extract_strided_slice %26 {offsets = [0, 64], sizes = [64, 32], strides = [1, 1]} : vector<64x128xf32> to vector<64x32xf32>
    %87 = vector.shape_cast %86 : vector<64x32xf32> to vector<4x16x32xf32>
    %88 = arith.truncf %87 : vector<4x16x32xf32> to vector<4x16x32xbf16>
    %89 = vector.extract_strided_slice %27 {offsets = [0, 64], sizes = [64, 32], strides = [1, 1]} : vector<64x128xf32> to vector<64x32xf32>
    %90 = vector.shape_cast %89 : vector<64x32xf32> to vector<4x16x32xf32>
    %91 = arith.truncf %90 : vector<4x16x32xf32> to vector<4x16x32xbf16>
    %92 = vector.extract_strided_slice %28 {offsets = [0, 64], sizes = [64, 32], strides = [1, 1]} : vector<64x128xf32> to vector<64x32xf32>
    %93 = vector.shape_cast %92 : vector<64x32xf32> to vector<4x16x32xf32>
    %94 = arith.truncf %93 : vector<4x16x32xf32> to vector<4x16x32xbf16>
    "tpu.trace_start"() <{level = 10 : i32, message = "bqd,bkd->bqk"}> : () -> ()
    %cst_32 = arith.constant dense<0.000000e+00> : vector<4x16x16xf32>
    %95 = tpu.matmul %88, %91, %cst_32 {dimension_numbers = #tpu.dot_dimension_numbers<[2], [2], [1], [1], [0, 0, 0, 1, 1, 1], [0], [0]>} : vector<4x16x32xbf16>, vector<4x16x32xbf16>, vector<4x16x16xf32> -> vector<4x16x16xf32>
    "tpu.trace_stop"() : () -> ()
    %cst_33 = arith.constant 0.176776692 : f32
    %96 = vector.broadcast %cst_33 : f32 to vector<4x16x16xf32>
    %97 = arith.mulf %95, %96 : vector<4x16x16xf32>
    %cst_34 = arith.constant dense<0xFF800000> : vector<4x16xf32>
    %98 = vector.multi_reduction <maximumf>, %97, %cst_34 [2] : vector<4x16x16xf32> to vector<4x16xf32>
    %99 = vector.shape_cast %98 : vector<4x16xf32> to vector<4x16x1xf32>
    %100 = vector.broadcast %99 : vector<4x16x1xf32> to vector<4x16x16xf32>
    %101 = arith.subf %97, %100 : vector<4x16x16xf32>
    %102 = math.exp %101 : vector<4x16x16xf32>
    %cst_35 = arith.constant dense<0.000000e+00> : vector<4x16xf32>
    %103 = vector.multi_reduction <add>, %102, %cst_35 [2] : vector<4x16x16xf32> to vector<4x16xf32>
    %104 = vector.shape_cast %103 : vector<4x16xf32> to vector<4x16x1xf32>
    %105 = tpu.reciprocal %104 {approx = true} : vector<4x16x1xf32> -> vector<4x16x1xf32>
    %106 = vector.broadcast %105 : vector<4x16x1xf32> to vector<4x16x16xf32>
    %107 = arith.mulf %102, %106 : vector<4x16x16xf32>
    %108 = arith.truncf %107 : vector<4x16x16xf32> to vector<4x16x16xbf16>
    "tpu.trace_start"() <{level = 10 : i32, message = "bqk,bkd->bqd"}> : () -> ()
    %cst_36 = arith.constant dense<0.000000e+00> : vector<4x16x32xf32>
    %109 = tpu.matmul %108, %94, %cst_36 {dimension_numbers = #tpu.dot_dimension_numbers<[2], [1], [1], [2], [0, 0, 0, 1, 1, 2], [0], [0]>} : vector<4x16x16xbf16>, vector<4x16x32xbf16>, vector<4x16x32xf32> -> vector<4x16x32xf32>
    "tpu.trace_stop"() : () -> ()
    %110 = vector.shape_cast %109 : vector<4x16x32xf32> to vector<64x32xf32>
    %111 = arith.truncf %110 : vector<64x32xf32> to vector<64x32xbf16>
    %112 = vector.extract_strided_slice %17 {offsets = [64, 0], sizes = [32, 128], strides = [1, 1]} : vector<128x128xbf16> to vector<32x128xbf16>
    %cst_37 = arith.constant dense<0.000000e+00> : vector<64x128xf32>
    %113 = tpu.matmul %111, %112, %cst_37 {dimension_numbers = #tpu.dot_dimension_numbers<[1], [0], [0], [1], [0, 0, 1, 1], [], []>} : vector<64x32xbf16>, vector<32x128xbf16>, vector<64x128xf32> -> vector<64x128xf32>
    %114 = arith.addf %85, %113 : vector<64x128xf32>
    %115 = vector.extract_strided_slice %26 {offsets = [0, 96], sizes = [64, 32], strides = [1, 1]} : vector<64x128xf32> to vector<64x32xf32>
    %116 = vector.shape_cast %115 : vector<64x32xf32> to vector<4x16x32xf32>
    %117 = arith.truncf %116 : vector<4x16x32xf32> to vector<4x16x32xbf16>
    %118 = vector.extract_strided_slice %27 {offsets = [0, 96], sizes = [64, 32], strides = [1, 1]} : vector<64x128xf32> to vector<64x32xf32>
    %119 = vector.shape_cast %118 : vector<64x32xf32> to vector<4x16x32xf32>
    %120 = arith.truncf %119 : vector<4x16x32xf32> to vector<4x16x32xbf16>
    %121 = vector.extract_strided_slice %28 {offsets = [0, 96], sizes = [64, 32], strides = [1, 1]} : vector<64x128xf32> to vector<64x32xf32>
    %122 = vector.shape_cast %121 : vector<64x32xf32> to vector<4x16x32xf32>
    %123 = arith.truncf %122 : vector<4x16x32xf32> to vector<4x16x32xbf16>
    "tpu.trace_start"() <{level = 10 : i32, message = "bqd,bkd->bqk"}> : () -> ()
    %cst_38 = arith.constant dense<0.000000e+00> : vector<4x16x16xf32>
    %124 = tpu.matmul %117, %120, %cst_38 {dimension_numbers = #tpu.dot_dimension_numbers<[2], [2], [1], [1], [0, 0, 0, 1, 1, 1], [0], [0]>} : vector<4x16x32xbf16>, vector<4x16x32xbf16>, vector<4x16x16xf32> -> vector<4x16x16xf32>
    "tpu.trace_stop"() : () -> ()
    %cst_39 = arith.constant 0.176776692 : f32
    %125 = vector.broadcast %cst_39 : f32 to vector<4x16x16xf32>
    %126 = arith.mulf %124, %125 : vector<4x16x16xf32>
    %cst_40 = arith.constant dense<0xFF800000> : vector<4x16xf32>
    %127 = vector.multi_reduction <maximumf>, %126, %cst_40 [2] : vector<4x16x16xf32> to vector<4x16xf32>
    %128 = vector.shape_cast %127 : vector<4x16xf32> to vector<4x16x1xf32>
    %129 = vector.broadcast %128 : vector<4x16x1xf32> to vector<4x16x16xf32>
    %130 = arith.subf %126, %129 : vector<4x16x16xf32>
    %131 = math.exp %130 : vector<4x16x16xf32>
    %cst_41 = arith.constant dense<0.000000e+00> : vector<4x16xf32>
    %132 = vector.multi_reduction <add>, %131, %cst_41 [2] : vector<4x16x16xf32> to vector<4x16xf32>
    %133 = vector.shape_cast %132 : vector<4x16xf32> to vector<4x16x1xf32>
    %134 = tpu.reciprocal %133 {approx = true} : vector<4x16x1xf32> -> vector<4x16x1xf32>
    %135 = vector.broadcast %134 : vector<4x16x1xf32> to vector<4x16x16xf32>
    %136 = arith.mulf %131, %135 : vector<4x16x16xf32>
    %137 = arith.truncf %136 : vector<4x16x16xf32> to vector<4x16x16xbf16>
    "tpu.trace_start"() <{level = 10 : i32, message = "bqk,bkd->bqd"}> : () -> ()
    %cst_42 = arith.constant dense<0.000000e+00> : vector<4x16x32xf32>
    %138 = tpu.matmul %137, %123, %cst_42 {dimension_numbers = #tpu.dot_dimension_numbers<[2], [1], [1], [2], [0, 0, 0, 1, 1, 2], [0], [0]>} : vector<4x16x16xbf16>, vector<4x16x32xbf16>, vector<4x16x32xf32> -> vector<4x16x32xf32>
    "tpu.trace_stop"() : () -> ()
    %139 = vector.shape_cast %138 : vector<4x16x32xf32> to vector<64x32xf32>
    %140 = arith.truncf %139 : vector<64x32xf32> to vector<64x32xbf16>
    %141 = vector.extract_strided_slice %17 {offsets = [96, 0], sizes = [32, 128], strides = [1, 1]} : vector<128x128xbf16> to vector<32x128xbf16>
    %cst_43 = arith.constant dense<0.000000e+00> : vector<64x128xf32>
    %142 = tpu.matmul %140, %141, %cst_43 {dimension_numbers = #tpu.dot_dimension_numbers<[1], [0], [0], [1], [0, 0, 1, 1], [], []>} : vector<64x32xbf16>, vector<32x128xbf16>, vector<64x128xf32> -> vector<64x128xf32>
    %143 = arith.addf %114, %142 : vector<64x128xf32>
    %144 = vector.broadcast %10 : vector<1x128xf32> to vector<64x128xf32>
    %145 = arith.addf %143, %144 : vector<64x128xf32>
    %146 = arith.addf %7, %145 : vector<64x128xf32>
    %cst_44 = arith.constant dense<0.000000e+00> : vector<64xf32>
    %147 = vector.multi_reduction <add>, %146, %cst_44 [1] : vector<64x128xf32> to vector<64xf32>
    %148 = vector.shape_cast %147 : vector<64xf32> to vector<64x1xf32>
    %cst_45 = arith.constant 1.280000e+02 : f32
    %149 = vector.broadcast %cst_45 : f32 to vector<64x1xf32>
    %150 = arith.divf %148, %149 : vector<64x1xf32>
    %151 = arith.mulf %146, %146 : vector<64x128xf32>
    %cst_46 = arith.constant dense<0.000000e+00> : vector<64xf32>
    %152 = vector.multi_reduction <add>, %151, %cst_46 [1] : vector<64x128xf32> to vector<64xf32>
    %153 = vector.shape_cast %152 : vector<64xf32> to vector<64x1xf32>
    %cst_47 = arith.constant 1.280000e+02 : f32
    %154 = vector.broadcast %cst_47 : f32 to vector<64x1xf32>
    %155 = arith.divf %153, %154 : vector<64x1xf32>
    %156 = arith.mulf %150, %150 : vector<64x1xf32>
    %157 = arith.subf %155, %156 : vector<64x1xf32>
    %158 = vector.broadcast %150 : vector<64x1xf32> to vector<64x128xf32>
    %159 = arith.subf %146, %158 : vector<64x128xf32>
    %cst_48 = arith.constant 9.99999974E-6 : f32
    %160 = vector.broadcast %cst_48 : f32 to vector<64x1xf32>
    %161 = arith.addf %157, %160 : vector<64x1xf32>
    %162 = math.rsqrt %161 : vector<64x1xf32>
    %163 = vector.broadcast %162 : vector<64x1xf32> to vector<64x128xf32>
    %164 = arith.mulf %159, %163 : vector<64x128xf32>
    %165 = vector.broadcast %12 : vector<1x128xf32> to vector<64x128xf32>
    %166 = arith.mulf %164, %165 : vector<64x128xf32>
    %167 = vector.broadcast %13 : vector<1x128xf32> to vector<64x128xf32>
    %168 = arith.addf %166, %167 : vector<64x128xf32>
    %169 = arith.truncf %168 : vector<64x128xf32> to vector<64x128xbf16>
    %c0_49 = arith.constant 0 : index
    %c0_50 = arith.constant 0 : index
    %c0_51 = arith.constant 0 : index
    %170 = vector.load %arg8[%c0_49, %c0_50, %c0_51] : memref<2x128x256xbf16, #tpu.memory_space<vmem>>, vector<1x128x256xbf16>
    %171 = vector.shape_cast %170 : vector<1x128x256xbf16> to vector<128x256xbf16>
    %cst_52 = arith.constant dense<0.000000e+00> : vector<64x256xf32>
    %172 = tpu.matmul %169, %171, %cst_52 {dimension_numbers = #tpu.dot_dimension_numbers<[1], [0], [0], [1], [0, 0, 1, 1], [], []>} : vector<64x128xbf16>, vector<128x256xbf16>, vector<64x256xf32> -> vector<64x256xf32>
    %c0_53 = arith.constant 0 : index
    %c0_54 = arith.constant 0 : index
    %c0_55 = arith.constant 0 : index
    %173 = vector.load %arg9[%c0_53, %c0_54, %c0_55] : memref<2x1x256xf32, #tpu.memory_space<vmem>>, vector<1x1x256xf32>
    %174 = vector.shape_cast %173 : vector<1x1x256xf32> to vector<1x256xf32>
    %175 = vector.broadcast %174 : vector<1x256xf32> to vector<64x256xf32>
    %176 = arith.addf %172, %175 : vector<64x256xf32>
    %cst_56 = arith.constant 0.000000e+00 : f32
    %177 = vector.broadcast %cst_56 : f32 to vector<64x256xf32>
    %178 = arith.maximumf %176, %177 : vector<64x256xf32>
    %179 = arith.truncf %178 : vector<64x256xf32> to vector<64x256xbf16>
    %c0_57 = arith.constant 0 : index
    %c0_58 = arith.constant 0 : index
    %c0_59 = arith.constant 0 : index
    %180 = vector.load %arg10[%c0_57, %c0_58, %c0_59] : memref<2x256x128xbf16, #tpu.memory_space<vmem>>, vector<1x256x128xbf16>
    %181 = vector.shape_cast %180 : vector<1x256x128xbf16> to vector<256x128xbf16>
    %cst_60 = arith.constant dense<0.000000e+00> : vector<64x128xf32>
    %182 = tpu.matmul %179, %181, %cst_60 {dimension_numbers = #tpu.dot_dimension_numbers<[1], [0], [0], [1], [0, 0, 1, 1], [], []>} : vector<64x256xbf16>, vector<256x128xbf16>, vector<64x128xf32> -> vector<64x128xf32>
    %183 = vector.broadcast %11 : vector<1x128xf32> to vector<64x128xf32>
    %184 = arith.addf %182, %183 : vector<64x128xf32>
    %185 = arith.addf %168, %184 : vector<64x128xf32>
    %cst_61 = arith.constant dense<0.000000e+00> : vector<64xf32>
    %186 = vector.multi_reduction <add>, %185, %cst_61 [1] : vector<64x128xf32> to vector<64xf32>
    %187 = vector.shape_cast %186 : vector<64xf32> to vector<64x1xf32>
    %cst_62 = arith.constant 1.280000e+02 : f32
    %188 = vector.broadcast %cst_62 : f32 to vector<64x1xf32>
    %189 = arith.divf %187, %188 : vector<64x1xf32>
    %190 = arith.mulf %185, %185 : vector<64x128xf32>
    %cst_63 = arith.constant dense<0.000000e+00> : vector<64xf32>
    %191 = vector.multi_reduction <add>, %190, %cst_63 [1] : vector<64x128xf32> to vector<64xf32>
    %192 = vector.shape_cast %191 : vector<64xf32> to vector<64x1xf32>
    %cst_64 = arith.constant 1.280000e+02 : f32
    %193 = vector.broadcast %cst_64 : f32 to vector<64x1xf32>
    %194 = arith.divf %192, %193 : vector<64x1xf32>
    %195 = arith.mulf %189, %189 : vector<64x1xf32>
    %196 = arith.subf %194, %195 : vector<64x1xf32>
    %197 = vector.broadcast %189 : vector<64x1xf32> to vector<64x128xf32>
    %198 = arith.subf %185, %197 : vector<64x128xf32>
    %cst_65 = arith.constant 9.99999974E-6 : f32
    %199 = vector.broadcast %cst_65 : f32 to vector<64x1xf32>
    %200 = arith.addf %196, %199 : vector<64x1xf32>
    %201 = math.rsqrt %200 : vector<64x1xf32>
    %202 = vector.broadcast %201 : vector<64x1xf32> to vector<64x128xf32>
    %203 = arith.mulf %198, %202 : vector<64x128xf32>
    %204 = vector.broadcast %14 : vector<1x128xf32> to vector<64x128xf32>
    %205 = arith.mulf %203, %204 : vector<64x128xf32>
    %206 = vector.broadcast %15 : vector<1x128xf32> to vector<64x128xf32>
    %207 = arith.addf %205, %206 : vector<64x128xf32>
    %c1 = arith.constant 1 : index
    %c0_66 = arith.constant 0 : index
    %c0_67 = arith.constant 0 : index
    %208 = vector.load %arg11[%c1, %c0_66, %c0_67] : memref<2x6x128xf32, #tpu.memory_space<vmem>>, vector<1x6x128xf32>
    %209 = vector.shape_cast %208 : vector<1x6x128xf32> to vector<6x128xf32>
    %210 = vector.extract_strided_slice %209 {offsets = [0, 0], sizes = [1, 128], strides = [1, 1]} : vector<6x128xf32> to vector<1x128xf32>
    %211 = vector.extract_strided_slice %209 {offsets = [1, 0], sizes = [1, 128], strides = [1, 1]} : vector<6x128xf32> to vector<1x128xf32>
    %212 = vector.extract_strided_slice %209 {offsets = [2, 0], sizes = [1, 128], strides = [1, 1]} : vector<6x128xf32> to vector<1x128xf32>
    %213 = vector.extract_strided_slice %209 {offsets = [3, 0], sizes = [1, 128], strides = [1, 1]} : vector<6x128xf32> to vector<1x128xf32>
    %214 = vector.extract_strided_slice %209 {offsets = [4, 0], sizes = [1, 128], strides = [1, 1]} : vector<6x128xf32> to vector<1x128xf32>
    %215 = vector.extract_strided_slice %209 {offsets = [5, 0], sizes = [1, 128], strides = [1, 1]} : vector<6x128xf32> to vector<1x128xf32>
    %c1_68 = arith.constant 1 : index
    %c0_69 = arith.constant 0 : index
    %c0_70 = arith.constant 0 : index
    %216 = vector.load %arg7[%c1_68, %c0_69, %c0_70] : memref<2x128x128xbf16, #tpu.memory_space<vmem>>, vector<1x128x128xbf16>
    %217 = vector.shape_cast %216 : vector<1x128x128xbf16> to vector<128x128xbf16>
    %218 = arith.truncf %207 : vector<64x128xf32> to vector<64x128xbf16>
    %c1_71 = arith.constant 1 : index
    %c0_72 = arith.constant 0 : index
    %c0_73 = arith.constant 0 : index
    %219 = vector.load %arg5[%c1_71, %c0_72, %c0_73] : memref<2x128x384xbf16, #tpu.memory_space<vmem>>, vector<1x128x384xbf16>
    %220 = vector.shape_cast %219 : vector<1x128x384xbf16> to vector<128x384xbf16>
    %cst_74 = arith.constant dense<0.000000e+00> : vector<64x384xf32>
    %221 = tpu.matmul %218, %220, %cst_74 {dimension_numbers = #tpu.dot_dimension_numbers<[1], [0], [0], [1], [0, 0, 1, 1], [], []>} : vector<64x128xbf16>, vector<128x384xbf16>, vector<64x384xf32> -> vector<64x384xf32>
    %c1_75 = arith.constant 1 : index
    %c0_76 = arith.constant 0 : index
    %c0_77 = arith.constant 0 : index
    %222 = vector.load %arg6[%c1_75, %c0_76, %c0_77] : memref<2x1x384xf32, #tpu.memory_space<vmem>>, vector<1x1x384xf32>
    %223 = vector.shape_cast %222 : vector<1x1x384xf32> to vector<1x384xf32>
    %224 = vector.broadcast %223 : vector<1x384xf32> to vector<64x384xf32>
    %225 = arith.addf %221, %224 : vector<64x384xf32>
    %226 = vector.extract_strided_slice %225 {offsets = [0, 0], sizes = [64, 128], strides = [1, 1]} : vector<64x384xf32> to vector<64x128xf32>
    %227 = vector.extract_strided_slice %225 {offsets = [0, 128], sizes = [64, 128], strides = [1, 1]} : vector<64x384xf32> to vector<64x128xf32>
    %228 = vector.extract_strided_slice %225 {offsets = [0, 256], sizes = [64, 128], strides = [1, 1]} : vector<64x384xf32> to vector<64x128xf32>
    %229 = vector.extract_strided_slice %226 {offsets = [0, 0], sizes = [64, 32], strides = [1, 1]} : vector<64x128xf32> to vector<64x32xf32>
    %230 = vector.shape_cast %229 : vector<64x32xf32> to vector<4x16x32xf32>
    %231 = arith.truncf %230 : vector<4x16x32xf32> to vector<4x16x32xbf16>
    %232 = vector.extract_strided_slice %227 {offsets = [0, 0], sizes = [64, 32], strides = [1, 1]} : vector<64x128xf32> to vector<64x32xf32>
    %233 = vector.shape_cast %232 : vector<64x32xf32> to vector<4x16x32xf32>
    %234 = arith.truncf %233 : vector<4x16x32xf32> to vector<4x16x32xbf16>
    %235 = vector.extract_strided_slice %228 {offsets = [0, 0], sizes = [64, 32], strides = [1, 1]} : vector<64x128xf32> to vector<64x32xf32>
    %236 = vector.shape_cast %235 : vector<64x32xf32> to vector<4x16x32xf32>
    %237 = arith.truncf %236 : vector<4x16x32xf32> to vector<4x16x32xbf16>
    "tpu.trace_start"() <{level = 10 : i32, message = "bqd,bkd->bqk"}> : () -> ()
    %cst_78 = arith.constant dense<0.000000e+00> : vector<4x16x16xf32>
    %238 = tpu.matmul %231, %234, %cst_78 {dimension_numbers = #tpu.dot_dimension_numbers<[2], [2], [1], [1], [0, 0, 0, 1, 1, 1], [0], [0]>} : vector<4x16x32xbf16>, vector<4x16x32xbf16>, vector<4x16x16xf32> -> vector<4x16x16xf32>
    "tpu.trace_stop"() : () -> ()
    %cst_79 = arith.constant 0.176776692 : f32
    %239 = vector.broadcast %cst_79 : f32 to vector<4x16x16xf32>
    %240 = arith.mulf %238, %239 : vector<4x16x16xf32>
    %cst_80 = arith.constant dense<0xFF800000> : vector<4x16xf32>
    %241 = vector.multi_reduction <maximumf>, %240, %cst_80 [2] : vector<4x16x16xf32> to vector<4x16xf32>
    %242 = vector.shape_cast %241 : vector<4x16xf32> to vector<4x16x1xf32>
    %243 = vector.broadcast %242 : vector<4x16x1xf32> to vector<4x16x16xf32>
    %244 = arith.subf %240, %243 : vector<4x16x16xf32>
    %245 = math.exp %244 : vector<4x16x16xf32>
    %cst_81 = arith.constant dense<0.000000e+00> : vector<4x16xf32>
    %246 = vector.multi_reduction <add>, %245, %cst_81 [2] : vector<4x16x16xf32> to vector<4x16xf32>
    %247 = vector.shape_cast %246 : vector<4x16xf32> to vector<4x16x1xf32>
    %248 = tpu.reciprocal %247 {approx = true} : vector<4x16x1xf32> -> vector<4x16x1xf32>
    %249 = vector.broadcast %248 : vector<4x16x1xf32> to vector<4x16x16xf32>
    %250 = arith.mulf %245, %249 : vector<4x16x16xf32>
    %251 = arith.truncf %250 : vector<4x16x16xf32> to vector<4x16x16xbf16>
    "tpu.trace_start"() <{level = 10 : i32, message = "bqk,bkd->bqd"}> : () -> ()
    %cst_82 = arith.constant dense<0.000000e+00> : vector<4x16x32xf32>
    %252 = tpu.matmul %251, %237, %cst_82 {dimension_numbers = #tpu.dot_dimension_numbers<[2], [1], [1], [2], [0, 0, 0, 1, 1, 2], [0], [0]>} : vector<4x16x16xbf16>, vector<4x16x32xbf16>, vector<4x16x32xf32> -> vector<4x16x32xf32>
    "tpu.trace_stop"() : () -> ()
    %253 = vector.shape_cast %252 : vector<4x16x32xf32> to vector<64x32xf32>
    %254 = arith.truncf %253 : vector<64x32xf32> to vector<64x32xbf16>
    %255 = vector.extract_strided_slice %217 {offsets = [0, 0], sizes = [32, 128], strides = [1, 1]} : vector<128x128xbf16> to vector<32x128xbf16>
    %cst_83 = arith.constant dense<0.000000e+00> : vector<64x128xf32>
    %256 = tpu.matmul %254, %255, %cst_83 {dimension_numbers = #tpu.dot_dimension_numbers<[1], [0], [0], [1], [0, 0, 1, 1], [], []>} : vector<64x32xbf16>, vector<32x128xbf16>, vector<64x128xf32> -> vector<64x128xf32>
    %257 = vector.extract_strided_slice %226 {offsets = [0, 32], sizes = [64, 32], strides = [1, 1]} : vector<64x128xf32> to vector<64x32xf32>
    %258 = vector.shape_cast %257 : vector<64x32xf32> to vector<4x16x32xf32>
    %259 = arith.truncf %258 : vector<4x16x32xf32> to vector<4x16x32xbf16>
    %260 = vector.extract_strided_slice %227 {offsets = [0, 32], sizes = [64, 32], strides = [1, 1]} : vector<64x128xf32> to vector<64x32xf32>
    %261 = vector.shape_cast %260 : vector<64x32xf32> to vector<4x16x32xf32>
    %262 = arith.truncf %261 : vector<4x16x32xf32> to vector<4x16x32xbf16>
    %263 = vector.extract_strided_slice %228 {offsets = [0, 32], sizes = [64, 32], strides = [1, 1]} : vector<64x128xf32> to vector<64x32xf32>
    %264 = vector.shape_cast %263 : vector<64x32xf32> to vector<4x16x32xf32>
    %265 = arith.truncf %264 : vector<4x16x32xf32> to vector<4x16x32xbf16>
    "tpu.trace_start"() <{level = 10 : i32, message = "bqd,bkd->bqk"}> : () -> ()
    %cst_84 = arith.constant dense<0.000000e+00> : vector<4x16x16xf32>
    %266 = tpu.matmul %259, %262, %cst_84 {dimension_numbers = #tpu.dot_dimension_numbers<[2], [2], [1], [1], [0, 0, 0, 1, 1, 1], [0], [0]>} : vector<4x16x32xbf16>, vector<4x16x32xbf16>, vector<4x16x16xf32> -> vector<4x16x16xf32>
    "tpu.trace_stop"() : () -> ()
    %cst_85 = arith.constant 0.176776692 : f32
    %267 = vector.broadcast %cst_85 : f32 to vector<4x16x16xf32>
    %268 = arith.mulf %266, %267 : vector<4x16x16xf32>
    %cst_86 = arith.constant dense<0xFF800000> : vector<4x16xf32>
    %269 = vector.multi_reduction <maximumf>, %268, %cst_86 [2] : vector<4x16x16xf32> to vector<4x16xf32>
    %270 = vector.shape_cast %269 : vector<4x16xf32> to vector<4x16x1xf32>
    %271 = vector.broadcast %270 : vector<4x16x1xf32> to vector<4x16x16xf32>
    %272 = arith.subf %268, %271 : vector<4x16x16xf32>
    %273 = math.exp %272 : vector<4x16x16xf32>
    %cst_87 = arith.constant dense<0.000000e+00> : vector<4x16xf32>
    %274 = vector.multi_reduction <add>, %273, %cst_87 [2] : vector<4x16x16xf32> to vector<4x16xf32>
    %275 = vector.shape_cast %274 : vector<4x16xf32> to vector<4x16x1xf32>
    %276 = tpu.reciprocal %275 {approx = true} : vector<4x16x1xf32> -> vector<4x16x1xf32>
    %277 = vector.broadcast %276 : vector<4x16x1xf32> to vector<4x16x16xf32>
    %278 = arith.mulf %273, %277 : vector<4x16x16xf32>
    %279 = arith.truncf %278 : vector<4x16x16xf32> to vector<4x16x16xbf16>
    "tpu.trace_start"() <{level = 10 : i32, message = "bqk,bkd->bqd"}> : () -> ()
    %cst_88 = arith.constant dense<0.000000e+00> : vector<4x16x32xf32>
    %280 = tpu.matmul %279, %265, %cst_88 {dimension_numbers = #tpu.dot_dimension_numbers<[2], [1], [1], [2], [0, 0, 0, 1, 1, 2], [0], [0]>} : vector<4x16x16xbf16>, vector<4x16x32xbf16>, vector<4x16x32xf32> -> vector<4x16x32xf32>
    "tpu.trace_stop"() : () -> ()
    %281 = vector.shape_cast %280 : vector<4x16x32xf32> to vector<64x32xf32>
    %282 = arith.truncf %281 : vector<64x32xf32> to vector<64x32xbf16>
    %283 = vector.extract_strided_slice %217 {offsets = [32, 0], sizes = [32, 128], strides = [1, 1]} : vector<128x128xbf16> to vector<32x128xbf16>
    %cst_89 = arith.constant dense<0.000000e+00> : vector<64x128xf32>
    %284 = tpu.matmul %282, %283, %cst_89 {dimension_numbers = #tpu.dot_dimension_numbers<[1], [0], [0], [1], [0, 0, 1, 1], [], []>} : vector<64x32xbf16>, vector<32x128xbf16>, vector<64x128xf32> -> vector<64x128xf32>
    %285 = arith.addf %256, %284 : vector<64x128xf32>
    %286 = vector.extract_strided_slice %226 {offsets = [0, 64], sizes = [64, 32], strides = [1, 1]} : vector<64x128xf32> to vector<64x32xf32>
    %287 = vector.shape_cast %286 : vector<64x32xf32> to vector<4x16x32xf32>
    %288 = arith.truncf %287 : vector<4x16x32xf32> to vector<4x16x32xbf16>
    %289 = vector.extract_strided_slice %227 {offsets = [0, 64], sizes = [64, 32], strides = [1, 1]} : vector<64x128xf32> to vector<64x32xf32>
    %290 = vector.shape_cast %289 : vector<64x32xf32> to vector<4x16x32xf32>
    %291 = arith.truncf %290 : vector<4x16x32xf32> to vector<4x16x32xbf16>
    %292 = vector.extract_strided_slice %228 {offsets = [0, 64], sizes = [64, 32], strides = [1, 1]} : vector<64x128xf32> to vector<64x32xf32>
    %293 = vector.shape_cast %292 : vector<64x32xf32> to vector<4x16x32xf32>
    %294 = arith.truncf %293 : vector<4x16x32xf32> to vector<4x16x32xbf16>
    "tpu.trace_start"() <{level = 10 : i32, message = "bqd,bkd->bqk"}> : () -> ()
    %cst_90 = arith.constant dense<0.000000e+00> : vector<4x16x16xf32>
    %295 = tpu.matmul %288, %291, %cst_90 {dimension_numbers = #tpu.dot_dimension_numbers<[2], [2], [1], [1], [0, 0, 0, 1, 1, 1], [0], [0]>} : vector<4x16x32xbf16>, vector<4x16x32xbf16>, vector<4x16x16xf32> -> vector<4x16x16xf32>
    "tpu.trace_stop"() : () -> ()
    %cst_91 = arith.constant 0.176776692 : f32
    %296 = vector.broadcast %cst_91 : f32 to vector<4x16x16xf32>
    %297 = arith.mulf %295, %296 : vector<4x16x16xf32>
    %cst_92 = arith.constant dense<0xFF800000> : vector<4x16xf32>
    %298 = vector.multi_reduction <maximumf>, %297, %cst_92 [2] : vector<4x16x16xf32> to vector<4x16xf32>
    %299 = vector.shape_cast %298 : vector<4x16xf32> to vector<4x16x1xf32>
    %300 = vector.broadcast %299 : vector<4x16x1xf32> to vector<4x16x16xf32>
    %301 = arith.subf %297, %300 : vector<4x16x16xf32>
    %302 = math.exp %301 : vector<4x16x16xf32>
    %cst_93 = arith.constant dense<0.000000e+00> : vector<4x16xf32>
    %303 = vector.multi_reduction <add>, %302, %cst_93 [2] : vector<4x16x16xf32> to vector<4x16xf32>
    %304 = vector.shape_cast %303 : vector<4x16xf32> to vector<4x16x1xf32>
    %305 = tpu.reciprocal %304 {approx = true} : vector<4x16x1xf32> -> vector<4x16x1xf32>
    %306 = vector.broadcast %305 : vector<4x16x1xf32> to vector<4x16x16xf32>
    %307 = arith.mulf %302, %306 : vector<4x16x16xf32>
    %308 = arith.truncf %307 : vector<4x16x16xf32> to vector<4x16x16xbf16>
    "tpu.trace_start"() <{level = 10 : i32, message = "bqk,bkd->bqd"}> : () -> ()
    %cst_94 = arith.constant dense<0.000000e+00> : vector<4x16x32xf32>
    %309 = tpu.matmul %308, %294, %cst_94 {dimension_numbers = #tpu.dot_dimension_numbers<[2], [1], [1], [2], [0, 0, 0, 1, 1, 2], [0], [0]>} : vector<4x16x16xbf16>, vector<4x16x32xbf16>, vector<4x16x32xf32> -> vector<4x16x32xf32>
    "tpu.trace_stop"() : () -> ()
    %310 = vector.shape_cast %309 : vector<4x16x32xf32> to vector<64x32xf32>
    %311 = arith.truncf %310 : vector<64x32xf32> to vector<64x32xbf16>
    %312 = vector.extract_strided_slice %217 {offsets = [64, 0], sizes = [32, 128], strides = [1, 1]} : vector<128x128xbf16> to vector<32x128xbf16>
    %cst_95 = arith.constant dense<0.000000e+00> : vector<64x128xf32>
    %313 = tpu.matmul %311, %312, %cst_95 {dimension_numbers = #tpu.dot_dimension_numbers<[1], [0], [0], [1], [0, 0, 1, 1], [], []>} : vector<64x32xbf16>, vector<32x128xbf16>, vector<64x128xf32> -> vector<64x128xf32>
    %314 = arith.addf %285, %313 : vector<64x128xf32>
    %315 = vector.extract_strided_slice %226 {offsets = [0, 96], sizes = [64, 32], strides = [1, 1]} : vector<64x128xf32> to vector<64x32xf32>
    %316 = vector.shape_cast %315 : vector<64x32xf32> to vector<4x16x32xf32>
    %317 = arith.truncf %316 : vector<4x16x32xf32> to vector<4x16x32xbf16>
    %318 = vector.extract_strided_slice %227 {offsets = [0, 96], sizes = [64, 32], strides = [1, 1]} : vector<64x128xf32> to vector<64x32xf32>
    %319 = vector.shape_cast %318 : vector<64x32xf32> to vector<4x16x32xf32>
    %320 = arith.truncf %319 : vector<4x16x32xf32> to vector<4x16x32xbf16>
    %321 = vector.extract_strided_slice %228 {offsets = [0, 96], sizes = [64, 32], strides = [1, 1]} : vector<64x128xf32> to vector<64x32xf32>
    %322 = vector.shape_cast %321 : vector<64x32xf32> to vector<4x16x32xf32>
    %323 = arith.truncf %322 : vector<4x16x32xf32> to vector<4x16x32xbf16>
    "tpu.trace_start"() <{level = 10 : i32, message = "bqd,bkd->bqk"}> : () -> ()
    %cst_96 = arith.constant dense<0.000000e+00> : vector<4x16x16xf32>
    %324 = tpu.matmul %317, %320, %cst_96 {dimension_numbers = #tpu.dot_dimension_numbers<[2], [2], [1], [1], [0, 0, 0, 1, 1, 1], [0], [0]>} : vector<4x16x32xbf16>, vector<4x16x32xbf16>, vector<4x16x16xf32> -> vector<4x16x16xf32>
    "tpu.trace_stop"() : () -> ()
    %cst_97 = arith.constant 0.176776692 : f32
    %325 = vector.broadcast %cst_97 : f32 to vector<4x16x16xf32>
    %326 = arith.mulf %324, %325 : vector<4x16x16xf32>
    %cst_98 = arith.constant dense<0xFF800000> : vector<4x16xf32>
    %327 = vector.multi_reduction <maximumf>, %326, %cst_98 [2] : vector<4x16x16xf32> to vector<4x16xf32>
    %328 = vector.shape_cast %327 : vector<4x16xf32> to vector<4x16x1xf32>
    %329 = vector.broadcast %328 : vector<4x16x1xf32> to vector<4x16x16xf32>
    %330 = arith.subf %326, %329 : vector<4x16x16xf32>
    %331 = math.exp %330 : vector<4x16x16xf32>
    %cst_99 = arith.constant dense<0.000000e+00> : vector<4x16xf32>
    %332 = vector.multi_reduction <add>, %331, %cst_99 [2] : vector<4x16x16xf32> to vector<4x16xf32>
    %333 = vector.shape_cast %332 : vector<4x16xf32> to vector<4x16x1xf32>
    %334 = tpu.reciprocal %333 {approx = true} : vector<4x16x1xf32> -> vector<4x16x1xf32>
    %335 = vector.broadcast %334 : vector<4x16x1xf32> to vector<4x16x16xf32>
    %336 = arith.mulf %331, %335 : vector<4x16x16xf32>
    %337 = arith.truncf %336 : vector<4x16x16xf32> to vector<4x16x16xbf16>
    "tpu.trace_start"() <{level = 10 : i32, message = "bqk,bkd->bqd"}> : () -> ()
    %cst_100 = arith.constant dense<0.000000e+00> : vector<4x16x32xf32>
    %338 = tpu.matmul %337, %323, %cst_100 {dimension_numbers = #tpu.dot_dimension_numbers<[2], [1], [1], [2], [0, 0, 0, 1, 1, 2], [0], [0]>} : vector<4x16x16xbf16>, vector<4x16x32xbf16>, vector<4x16x32xf32> -> vector<4x16x32xf32>
    "tpu.trace_stop"() : () -> ()
    %339 = vector.shape_cast %338 : vector<4x16x32xf32> to vector<64x32xf32>
    %340 = arith.truncf %339 : vector<64x32xf32> to vector<64x32xbf16>
    %341 = vector.extract_strided_slice %217 {offsets = [96, 0], sizes = [32, 128], strides = [1, 1]} : vector<128x128xbf16> to vector<32x128xbf16>
    %cst_101 = arith.constant dense<0.000000e+00> : vector<64x128xf32>
    %342 = tpu.matmul %340, %341, %cst_101 {dimension_numbers = #tpu.dot_dimension_numbers<[1], [0], [0], [1], [0, 0, 1, 1], [], []>} : vector<64x32xbf16>, vector<32x128xbf16>, vector<64x128xf32> -> vector<64x128xf32>
    %343 = arith.addf %314, %342 : vector<64x128xf32>
    %344 = vector.broadcast %210 : vector<1x128xf32> to vector<64x128xf32>
    %345 = arith.addf %343, %344 : vector<64x128xf32>
    %346 = arith.addf %207, %345 : vector<64x128xf32>
    %cst_102 = arith.constant dense<0.000000e+00> : vector<64xf32>
    %347 = vector.multi_reduction <add>, %346, %cst_102 [1] : vector<64x128xf32> to vector<64xf32>
    %348 = vector.shape_cast %347 : vector<64xf32> to vector<64x1xf32>
    %cst_103 = arith.constant 1.280000e+02 : f32
    %349 = vector.broadcast %cst_103 : f32 to vector<64x1xf32>
    %350 = arith.divf %348, %349 : vector<64x1xf32>
    %351 = arith.mulf %346, %346 : vector<64x128xf32>
    %cst_104 = arith.constant dense<0.000000e+00> : vector<64xf32>
    %352 = vector.multi_reduction <add>, %351, %cst_104 [1] : vector<64x128xf32> to vector<64xf32>
    %353 = vector.shape_cast %352 : vector<64xf32> to vector<64x1xf32>
    %cst_105 = arith.constant 1.280000e+02 : f32
    %354 = vector.broadcast %cst_105 : f32 to vector<64x1xf32>
    %355 = arith.divf %353, %354 : vector<64x1xf32>
    %356 = arith.mulf %350, %350 : vector<64x1xf32>
    %357 = arith.subf %355, %356 : vector<64x1xf32>
    %358 = vector.broadcast %350 : vector<64x1xf32> to vector<64x128xf32>
    %359 = arith.subf %346, %358 : vector<64x128xf32>
    %cst_106 = arith.constant 9.99999974E-6 : f32
    %360 = vector.broadcast %cst_106 : f32 to vector<64x1xf32>
    %361 = arith.addf %357, %360 : vector<64x1xf32>
    %362 = math.rsqrt %361 : vector<64x1xf32>
    %363 = vector.broadcast %362 : vector<64x1xf32> to vector<64x128xf32>
    %364 = arith.mulf %359, %363 : vector<64x128xf32>
    %365 = vector.broadcast %212 : vector<1x128xf32> to vector<64x128xf32>
    %366 = arith.mulf %364, %365 : vector<64x128xf32>
    %367 = vector.broadcast %213 : vector<1x128xf32> to vector<64x128xf32>
    %368 = arith.addf %366, %367 : vector<64x128xf32>
    %369 = arith.truncf %368 : vector<64x128xf32> to vector<64x128xbf16>
    %c1_107 = arith.constant 1 : index
    %c0_108 = arith.constant 0 : index
    %c0_109 = arith.constant 0 : index
    %370 = vector.load %arg8[%c1_107, %c0_108, %c0_109] : memref<2x128x256xbf16, #tpu.memory_space<vmem>>, vector<1x128x256xbf16>
    %371 = vector.shape_cast %370 : vector<1x128x256xbf16> to vector<128x256xbf16>
    %cst_110 = arith.constant dense<0.000000e+00> : vector<64x256xf32>
    %372 = tpu.matmul %369, %371, %cst_110 {dimension_numbers = #tpu.dot_dimension_numbers<[1], [0], [0], [1], [0, 0, 1, 1], [], []>} : vector<64x128xbf16>, vector<128x256xbf16>, vector<64x256xf32> -> vector<64x256xf32>
    %c1_111 = arith.constant 1 : index
    %c0_112 = arith.constant 0 : index
    %c0_113 = arith.constant 0 : index
    %373 = vector.load %arg9[%c1_111, %c0_112, %c0_113] : memref<2x1x256xf32, #tpu.memory_space<vmem>>, vector<1x1x256xf32>
    %374 = vector.shape_cast %373 : vector<1x1x256xf32> to vector<1x256xf32>
    %375 = vector.broadcast %374 : vector<1x256xf32> to vector<64x256xf32>
    %376 = arith.addf %372, %375 : vector<64x256xf32>
    %cst_114 = arith.constant 0.000000e+00 : f32
    %377 = vector.broadcast %cst_114 : f32 to vector<64x256xf32>
    %378 = arith.maximumf %376, %377 : vector<64x256xf32>
    %379 = arith.truncf %378 : vector<64x256xf32> to vector<64x256xbf16>
    %c1_115 = arith.constant 1 : index
    %c0_116 = arith.constant 0 : index
    %c0_117 = arith.constant 0 : index
    %380 = vector.load %arg10[%c1_115, %c0_116, %c0_117] : memref<2x256x128xbf16, #tpu.memory_space<vmem>>, vector<1x256x128xbf16>
    %381 = vector.shape_cast %380 : vector<1x256x128xbf16> to vector<256x128xbf16>
    %cst_118 = arith.constant dense<0.000000e+00> : vector<64x128xf32>
    %382 = tpu.matmul %379, %381, %cst_118 {dimension_numbers = #tpu.dot_dimension_numbers<[1], [0], [0], [1], [0, 0, 1, 1], [], []>} : vector<64x256xbf16>, vector<256x128xbf16>, vector<64x128xf32> -> vector<64x128xf32>
    %383 = vector.broadcast %211 : vector<1x128xf32> to vector<64x128xf32>
    %384 = arith.addf %382, %383 : vector<64x128xf32>
    %385 = arith.addf %368, %384 : vector<64x128xf32>
    %cst_119 = arith.constant dense<0.000000e+00> : vector<64xf32>
    %386 = vector.multi_reduction <add>, %385, %cst_119 [1] : vector<64x128xf32> to vector<64xf32>
    %387 = vector.shape_cast %386 : vector<64xf32> to vector<64x1xf32>
    %cst_120 = arith.constant 1.280000e+02 : f32
    %388 = vector.broadcast %cst_120 : f32 to vector<64x1xf32>
    %389 = arith.divf %387, %388 : vector<64x1xf32>
    %390 = arith.mulf %385, %385 : vector<64x128xf32>
    %cst_121 = arith.constant dense<0.000000e+00> : vector<64xf32>
    %391 = vector.multi_reduction <add>, %390, %cst_121 [1] : vector<64x128xf32> to vector<64xf32>
    %392 = vector.shape_cast %391 : vector<64xf32> to vector<64x1xf32>
    %cst_122 = arith.constant 1.280000e+02 : f32
    %393 = vector.broadcast %cst_122 : f32 to vector<64x1xf32>
    %394 = arith.divf %392, %393 : vector<64x1xf32>
    %395 = arith.mulf %389, %389 : vector<64x1xf32>
    %396 = arith.subf %394, %395 : vector<64x1xf32>
    %397 = vector.broadcast %389 : vector<64x1xf32> to vector<64x128xf32>
    %398 = arith.subf %385, %397 : vector<64x128xf32>
    %cst_123 = arith.constant 9.99999974E-6 : f32
    %399 = vector.broadcast %cst_123 : f32 to vector<64x1xf32>
    %400 = arith.addf %396, %399 : vector<64x1xf32>
    %401 = math.rsqrt %400 : vector<64x1xf32>
    %402 = vector.broadcast %401 : vector<64x1xf32> to vector<64x128xf32>
    %403 = arith.mulf %398, %402 : vector<64x128xf32>
    %404 = vector.broadcast %214 : vector<1x128xf32> to vector<64x128xf32>
    %405 = arith.mulf %403, %404 : vector<64x128xf32>
    %406 = vector.broadcast %215 : vector<1x128xf32> to vector<64x128xf32>
    %407 = arith.addf %405, %406 : vector<64x128xf32>
    %c0_124 = arith.constant 0 : index
    %c0_125 = arith.constant 0 : index
    %408 = vector.load %arg12[%c0_124, %c0_125] : memref<64x128xf32, #tpu.memory_space<vmem>>, vector<64x128xf32>
    tpu.vector_store %arg12[%c0_124, %c0_125], %407 {strides = array<i32>} : memref<64x128xf32, #tpu.memory_space<vmem>>, vector<64x128xf32>,
    return
  }
  func.func @transform_0(%arg0: i32) -> (i32, i32) {
    %c0_i32 = arith.constant 0 : i32
    %c0_i32_0 = arith.constant 0 : i32
    return %arg0, %c0_i32 : i32, i32
  }
  func.func @transform_1(%arg0: i32) -> (i32, i32) {
    %c0_i32 = arith.constant 0 : i32
    %c0_i32_0 = arith.constant 0 : i32
    %c0_i32_1 = arith.constant 0 : i32
    return %c0_i32, %c0_i32_0 : i32, i32
  }
  func.func @transform_2(%arg0: i32) -> (i32, i32) {
    %c0_i32 = arith.constant 0 : i32
    %c0_i32_0 = arith.constant 0 : i32
    %c0_i32_1 = arith.constant 0 : i32
    return %c0_i32, %c0_i32_0 : i32, i32
  }
  func.func @transform_3(%arg0: i32) -> (i32, i32) {
    %c0_i32 = arith.constant 0 : i32
    %c0_i32_0 = arith.constant 0 : i32
    %c0_i32_1 = arith.constant 0 : i32
    return %c0_i32, %c0_i32_0 : i32, i32
  }
  func.func @transform_4(%arg0: i32) -> (i32, i32, i32) {
    %c0_i32 = arith.constant 0 : i32
    %c0_i32_0 = arith.constant 0 : i32
    %c0_i32_1 = arith.constant 0 : i32
    %c0_i32_2 = arith.constant 0 : i32
    return %c0_i32, %c0_i32_0, %c0_i32_1 : i32, i32, i32
  }
  func.func @transform_5(%arg0: i32) -> (i32, i32, i32) {
    %c0_i32 = arith.constant 0 : i32
    %c0_i32_0 = arith.constant 0 : i32
    %c0_i32_1 = arith.constant 0 : i32
    %c0_i32_2 = arith.constant 0 : i32
    return %c0_i32, %c0_i32_0, %c0_i32_1 : i32, i32, i32
  }
  func.func @transform_6(%arg0: i32) -> (i32, i32, i32) {
    %c0_i32 = arith.constant 0 : i32
    %c0_i32_0 = arith.constant 0 : i32
    %c0_i32_1 = arith.constant 0 : i32
    %c0_i32_2 = arith.constant 0 : i32
    return %c0_i32, %c0_i32_0, %c0_i32_1 : i32, i32, i32
  }
  func.func @transform_7(%arg0: i32) -> (i32, i32, i32) {
    %c0_i32 = arith.constant 0 : i32
    %c0_i32_0 = arith.constant 0 : i32
    %c0_i32_1 = arith.constant 0 : i32
    %c0_i32_2 = arith.constant 0 : i32
    return %c0_i32, %c0_i32_0, %c0_i32_1 : i32, i32, i32
  }
  func.func @transform_8(%arg0: i32) -> (i32, i32, i32) {
    %c0_i32 = arith.constant 0 : i32
    %c0_i32_0 = arith.constant 0 : i32
    %c0_i32_1 = arith.constant 0 : i32
    %c0_i32_2 = arith.constant 0 : i32
    return %c0_i32, %c0_i32_0, %c0_i32_1 : i32, i32, i32
  }
  func.func @transform_9(%arg0: i32) -> (i32, i32, i32) {
    %c0_i32 = arith.constant 0 : i32
    %c0_i32_0 = arith.constant 0 : i32
    %c0_i32_1 = arith.constant 0 : i32
    %c0_i32_2 = arith.constant 0 : i32
    return %c0_i32, %c0_i32_0, %c0_i32_1 : i32, i32, i32
  }
  func.func @transform_10(%arg0: i32) -> (i32, i32, i32) {
    %c0_i32 = arith.constant 0 : i32
    %c0_i32_0 = arith.constant 0 : i32
    %c0_i32_1 = arith.constant 0 : i32
    %c0_i32_2 = arith.constant 0 : i32
    return %c0_i32, %c0_i32_0, %c0_i32_1 : i32, i32, i32
  }
  func.func @transform_11(%arg0: i32) -> (i32, i32) {
    %c0_i32 = arith.constant 0 : i32
    %c0_i32_0 = arith.constant 0 : i32
    return %arg0, %c0_i32 : i32, i32
  }
}

</mosaic_0001>

<bundles_post_ra>
// kernel: tpu_custom_call.1
= control target key start
LH: loop header
LB: loop body
LE: loop exit
PB: predicated region body
PF: predicated region fallthrough
CT: control target
= control target key end

     0   :  { %s12074_s0 = inlined_call_operand.hbm [shape: bf16[128,512], index: 0, kind: input, shape index: {}]   ;;  %s12075_s1 = inlined_call_operand.hbm [shape: bf16[512,128], index: 1, kind: input, shape index: {}]   ;;  %s12076_s2 = inlined_call_operand.vmem [shape: f32[1,128], index: 2, kind: input, shape index: {}]   ;;  %s12077_s3 = inlined_call_operand.hbm [shape: f32[64,128], index: 3, kind: input, shape index: {}]   ;;  %s12078_s4 = inlined_call_operand.hbm [shape: bf16[2,128,384], index: 4, kind: input, shape index: {}]   ;;  %s12079_s5 = inlined_call_operand.vmem [shape: f32[2,1,384], index: 5, kind: input, shape index: {}]   ;;  %s12080_s6 = inlined_call_operand.hbm [shape: bf16[2,128,128], index: 6, kind: input, shape index: {}]   ;;  %s12081_s7 = inlined_call_operand.hbm [shape: bf16[2,128,256], index: 7, kind: input, shape index: {}]   ;;  %s12082_s8 = inlined_call_operand.vmem [shape: f32[2,1,256], index: 8, kind: input, shape index: {}]   ;;  %s12083_s9 = inlined_call_operand.hbm [shape: bf16[2,256,128], index: 9, kind: input, shape index: {}]   ;;  %s12084_s10 = inlined_call_operand.vmem [shape: f32[2,6,128], index: 10, kind: input, shape index: {}]   ;;  %s12085_s11 = inlined_call_operand.hbm [shape: f32[128,128], index: 11, kind: output, shape index: {}]  }
   0x1   :  { %12100 = sst [smem:[#allocation20_spill]] %s12075_s1 }
   0x2   :  { %12101 = sst [smem:[#allocation21_spill]] %s12082_s8 }
   0x3   :  { %12102 = sst [smem:[#allocation22_spill]] %s12085_s11 }
   0x4   :  { %16 = vsyncpa [#allocation3], 0 }
   0x5   :  { %18 = vsyncpa [#allocation3 + $0x1], 0 }
   0x6   :  { %19 = vsyncpa [#allocation6], 0 }
   0x7   :  { %20 = vsyncpa [#allocation9], 0 }
   0x8   :  { %21 = vsyncpa [#allocation12], 0 }
   0x9   :  { %22 = vsyncpa [#allocation4], 0 }
   0xa   :  { %24 = vsyncpa [#allocation4 + $0x1], 0  ;;  %s10182_s17 = smov 0   ;;  %s10184_s18 = smov 0  }
   0xb   :  { %s10186_s19 = smov 0   ;;  %s10188_s20 = smov 0  }
   0xc LB: > { %s10098_s21 = smov [#allocation5]   ;;  %s10203_s23 = sadd.s32 4294967295, %s10096_s20   ;;  %s10096_s20 = sphi %s10188_s20, %s12139_s20   ;;  %s10092_s19 = sphi %s10186_s19, %s12138_s19   ;;  %s10088_s18 = sphi %s10184_s18, %s12137_s18   ;;  %s10084_s17 = sphi %s10182_s17, %s12136_s17  }
   0xd   : > { %s309_s22 = sshll.u32 %s10098_s21, 4  ;;  %p7920_p0 = scmp.ge.s32.totalorder %s10096_s20, 1  ;;  %s10208_s22 = int_to_ptr.vmem [resolvable:$true] %s309_s22 }
   0xe   : > { %p12092_p1 = scmp.eq.s32.totalorder %s10203_s23, 0  ;;  %p297_p2 = scmp.lt.s32.totalorder %s10096_s20, 3 }
   0xf   : > { %s10099_s25 = smov [#allocation8]   ;;  %s12105_s1 = sld [smem:[#allocation20_spill]] }
  0x10   : > { %p10210_p3 = pnand %p7920_p0, %p297_p2  ;;  %s338_s26 = sshll.u32 %s10099_s25, 4  ;;  %s10223_s26 = int_to_ptr.vmem [resolvable:$true] %s338_s26 }
  0x12   : > { %s12103_s24 = scalar_select %p10210_p3, 1, 0 }
  0x13   : > { %p9189_p5 = pneg %p10210_p3 }
  0x15   : > { %p10219_p6 = pnand %p9189_p5, %p12092_p1  ;;  %s9820_s30 = scalar_lea.hbm %s12105_s1, 4096 }
  0x16   : > { %p9821_p7 = scmp.ne.s32.totalorder %s12105_s1, %s9820_s30  ;;  %p9827_p11 = scmp.lt.u32.totalorder %s9820_s30, %s12105_s1 }
  0x17   : > { %p10233_p8 = pneg %p10219_p6 }
  0x19   : > { %p9823_p9 = pnand %p10233_p8, %p9821_p7 }
  0x1b   : > { %p9824_p10 = pneg %p9823_p9 }
  0x1d   : > { %p9829_p12 = pnand %p9827_p11, %p9824_p10 }
  0x1f   : > { %9832 = shalt.err (!%p9829_p12)
}
  0x20   : > { %s9833_s21 = scalar_lea.vmem %s10208_s22, 4096  ;;  %p9841_p5 = scmp.lt.s32.totalorder %s10208_s22, %s10208_s22 }
  0x21   : > { %p9834_p13 = scmp.ne.s32.totalorder %s10208_s22, %s9833_s21  ;;  %p9842_p4 = scmp.lt.s32.totalorder %s9833_s21, %s9833_s21 }
  0x23   : > { %p9836_p0 = pnand %p9834_p13, %p10233_p8  ;;  %p9843_p7 = por %p9842_p4, %p9841_p5 }
  0x25   : > { %p9837_p2 = pneg %p9836_p0 }
  0x27   : > { %p9844_p9 = pnand %p9843_p7, %p9837_p2 }
  0x29   : > { %9847 = shalt.err (!%p9844_p9)
}
  0x2a   : > { %s12088_s25 = smov 64   ;;  %s12090_s28 = smov 4  }
  0x2b   : > { %9192 = dma.hbm_to_vmem [thread:$0]  (!%p10219_p6), %s12105_s1, 4096, %s10208_s22, [#allocation6], %s12088_s25, %s12088_s25, %s12090_s28  }
  0x2c   : > { %s9848_s15 = scalar_lea.hbm %s12078_s4, 6144 }
  0x2d   : > { %p9849_p4 = scmp.ne.s32.totalorder %s12078_s4, %s9848_s15  ;;  %p9855_p12 = scmp.lt.u32.totalorder %s9848_s15, %s12078_s4 }
  0x2f   : > { %p9851_p10 = pnand %p9849_p4, %p10233_p8 }
  0x31   : > { %p9852_p11 = pneg %p9851_p10 }
  0x33   : > { %p9857_p13 = pnand %p9855_p12, %p9852_p11 }
  0x35   : > { %9860 = shalt.err (!%p9857_p13)
}
  0x36   : > { %s9861_s22 = scalar_lea.vmem %s10223_s26, 6144  ;;  %p9869_p7 = scmp.lt.s32.totalorder %s10223_s26, %s10223_s26 }
  0x37   : > { %p9862_p0 = scmp.ne.s32.totalorder %s10223_s26, %s9861_s22  ;;  %p9870_p9 = scmp.lt.s32.totalorder %s9861_s22, %s9861_s22 }
  0x39   : > { %p9864_p2 = pnand %p9862_p0, %p10233_p8  ;;  %p9871_p4 = por %p9870_p9, %p9869_p7 }
  0x3b   : > { %p9865_p5 = pneg %p9864_p2 }
  0x3d   : > { %p9872_p10 = pnand %p9871_p4, %p9865_p5 }
  0x3f   : > { %9875 = shalt.err (!%p9872_p10)
}
  0x40   : > { %s10102_s29 = smov 192   ;;  %s10103_s8 = smov 12  }
  0x41   : > { %9198 = dma.hbm_to_vmem [thread:$0]  (!%p10219_p6), %s12078_s4, 6144, %s10223_s26, [#allocation9], %s10102_s29, %s10102_s29, %s10103_s8  }
  0x42   : > { %s10104_s12 = smov [#allocation11]   ;;  %s10105_s15 = smov [#allocation7]  }
  0x43   : > { %s367_s13 = sshll.u32 %s10104_s12, 4  ;;  %s325_s16 = sshll.u32 %s10105_s15, 4  ;;  %s368_s13 = int_to_ptr.vmem [resolvable:$true] %s367_s13  ;;  %s10280_s16 = int_to_ptr.vmem [resolvable:$true] %s325_s16 }
  0x44   : > { %s9876_s25 = scalar_lea.hbm %s12081_s7, 4096 }
  0x45   : > { %p9877_p11 = scmp.ne.s32.totalorder %s12081_s7, %s9876_s25  ;;  %p9883_p0 = scmp.lt.u32.totalorder %s9876_s25, %s12081_s7 }
  0x47   : > { %p9879_p12 = pnand %p9877_p11, %p10233_p8 }
  0x49   : > { %p9880_p13 = pneg %p9879_p12 }
  0x4b   : > { %p9885_p2 = pnand %p9883_p0, %p9880_p13 }
  0x4d   : > { %9888 = shalt.err (!%p9885_p2)
}
  0x4e   : > { %s9889_s29 = scalar_lea.vmem %s368_s13, 4096  ;;  %p9897_p4 = scmp.lt.s32.totalorder %s368_s13, %s368_s13 }
  0x4f   : > { %p9890_p5 = scmp.ne.s32.totalorder %s368_s13, %s9889_s29  ;;  %p9898_p10 = scmp.lt.s32.totalorder %s9889_s29, %s9889_s29 }
  0x51   : > { %p9892_p7 = pnand %p9890_p5, %p10233_p8  ;;  %p9899_p1 = por %p9898_p10, %p9897_p4 }
  0x53   : > { %p9893_p9 = pneg %p9892_p7 }
  0x55   : > { %p9900_p3 = pnand %p9899_p1, %p9893_p9 }
  0x57   : > { %9903 = shalt.err (!%p9900_p3)
}
  0x58   : > { %s10106_s1 = smov 128   ;;  %s10107_s28 = smov 8  }
  0x59   : > { %9204 = dma.hbm_to_vmem [thread:$0]  (!%p10219_p6), %s12081_s7, 4096, %s368_s13, [#allocation12], %s10106_s1, %s10106_s1, %s10107_s28  }
  0x5a   : > { %s9904_s15 = scalar_lea.hbm %s12077_s3, 1024 }
  0x5b   : > { %p9905_p11 = scmp.ne.s32.totalorder %s12077_s3, %s9904_s15  ;;  %p9911_p12 = scmp.lt.u32.totalorder %s9904_s15, %s12077_s3 }
  0x5d   : > { %p9907_p1 = pnand %p9905_p11, %p10233_p8 }
  0x5f   : > { %p9908_p3 = pneg %p9907_p1 }
  0x61   : > { %p9913_p13 = pnand %p9911_p12, %p9908_p3 }
  0x63   : > { %9916 = shalt.err (!%p9913_p13)
}
  0x64   : > { %s9917_s13 = scalar_lea.vmem %s10280_s16, 1024  ;;  %p9925_p7 = scmp.lt.s32.totalorder %s10280_s16, %s10280_s16 }
  0x65   : > { %p9918_p0 = scmp.ne.s32.totalorder %s10280_s16, %s9917_s13  ;;  %p9926_p9 = scmp.lt.s32.totalorder %s9917_s13, %s9917_s13 }
  0x67   : > { %p9920_p2 = pnand %p9918_p0, %p10233_p8  ;;  %p9927_p4 = por %p9926_p9, %p9925_p7 }
  0x69   : > { %p9921_p5 = pneg %p9920_p2 }
  0x6b   : > { %p9928_p10 = pnand %p9927_p4, %p9921_p5 }
  0x6d   : > { %9931 = shalt.err (!%p9928_p10)
}
  0x6e   : > { %9195 = dma.hbm_to_vmem [thread:$0]  (!%p10219_p6), %s12077_s3, 1024, %s10280_s16, [#allocation6], %s10106_s1, %s10106_s1, %s10107_s28  }
  0x6f   : > { %s10108_s25 = smov [#allocation10]   ;;  %s10109_s12 = smov [#allocation13]  }
  0x70   : > { %s354_s30 = sshll.u32 %s10108_s25, 4  ;;  %s383_s15 = sshll.u32 %s10109_s12, 4  ;;  %s355_s30 = int_to_ptr.vmem [resolvable:$true] %s354_s30  ;;  %s10323_s15 = int_to_ptr.vmem [resolvable:$true] %s383_s15 }
  0x71   : > { %s9932_s11 = scalar_lea.hbm %s12080_s6, 2048 }
  0x72   : > { %p9933_p11 = scmp.ne.s32.totalorder %s12080_s6, %s9932_s11  ;;  %p9939_p12 = scmp.lt.u32.totalorder %s9932_s11, %s12080_s6 }
  0x74   : > { %p9935_p1 = pnand %p9933_p11, %p10233_p8 }
  0x76   : > { %p9936_p3 = pneg %p9935_p1 }
  0x78   : > { %p9941_p13 = pnand %p9939_p12, %p9936_p3 }
  0x7a   : > { %9944 = shalt.err (!%p9941_p13)
}
  0x7b   : > { %s9945_s1 = scalar_lea.vmem %s355_s30, 2048  ;;  %p9953_p7 = scmp.lt.s32.totalorder %s355_s30, %s355_s30 }
  0x7c   : > { %p9946_p0 = scmp.ne.s32.totalorder %s355_s30, %s9945_s1  ;;  %p9954_p9 = scmp.lt.s32.totalorder %s9945_s1, %s9945_s1 }
  0x7e   : > { %p9948_p2 = pnand %p9946_p0, %p10233_p8  ;;  %p9955_p4 = por %p9954_p9, %p9953_p7 }
  0x80   : > { %p9949_p5 = pneg %p9948_p2 }
  0x82   : > { %p9956_p10 = pnand %p9955_p4, %p9949_p5 }
  0x84   : > { %9959 = shalt.err (!%p9956_p10)
}
  0x85   : > { %s12107_s28 = smov 4   ;;  %s12108_s8 = smov 64  }
  0x86   : > { %9201 = dma.hbm_to_vmem [thread:$0]  (!%p10219_p6), %s12080_s6, 2048, %s355_s30, [#allocation9], %s12108_s8, %s12108_s8, %s12107_s28  }
  0x87   : > { %s9960_s11 = scalar_lea.hbm %s12083_s9, 4096 }
  0x88   : > { %p9961_p11 = scmp.ne.s32.totalorder %s12083_s9, %s9960_s11  ;;  %p9967_p12 = scmp.lt.u32.totalorder %s9960_s11, %s12083_s9 }
  0x8a   : > { %p9963_p1 = pnand %p9961_p11, %p10233_p8 }
  0x8c   : > { %p9964_p3 = pneg %p9963_p1 }
  0x8e   : > { %p9969_p13 = pnand %p9967_p12, %p9964_p3 }
  0x90   : > { %9972 = shalt.err (!%p9969_p13)
}
  0x91   : > { %s9973_s30 = scalar_lea.vmem %s10323_s15, 4096  ;;  %p9981_p7 = scmp.lt.s32.totalorder %s10323_s15, %s10323_s15 }
  0x92   : > { %p9974_p0 = scmp.ne.s32.totalorder %s10323_s15, %s9973_s30  ;;  %p9982_p9 = scmp.lt.s32.totalorder %s9973_s30, %s9973_s30 }
  0x94   : > { %p9976_p2 = pnand %p9974_p0, %p10233_p8  ;;  %p9983_p4 = por %p9982_p9, %p9981_p7 }
  0x96   : > { %p9977_p5 = pneg %p9976_p2 }
  0x98   : > { %p9984_p10 = pnand %p9983_p4, %p9977_p5 }
  0x9a   : > { %9987 = shalt.err (!%p9984_p10)
}
  0x9b   : > { %9207 = dma.hbm_to_vmem [thread:$0]  (!%p10219_p6), %s12083_s9, 4096, %s10323_s15, [#allocation12], %s12108_s8, %s12108_s8, %s12107_s28  }
  0x9c   : > { %s7919_s27 = sadd.s32 4294967294, %s10096_s20   ;;  %s10374_s14 = sadd.s32 1, %s10096_s20  }
  0x9d   : > { %s34_s12 = ssub.s32 %s10096_s20, %s10374_s14  ;;  %s37_s21 = sadd.s32 1, %s10092_s19 }
  0x9e   : > { %p35_p8 = scmp.eq.s32.totalorder %s34_s12, 0  ;;  %p44_p11 = scmp.ne.s32.totalorder %s10092_s19, %s10088_s18 }
  0x9f   : > { %p45_p1 = scmp.eq.s32.totalorder %s10096_s20, 0  ;;  %p50_p3 = scmp.ne.s32.totalorder %s10088_s18, %s10084_s17 }
  0xa0   : > { %s10385_s22 = scalar_select %p35_p8, %s10092_s19, %s37_s21  }
  0xa1   : > { %p10387_p12 = por %p45_p1, %p44_p11  ;;  %p12110_p13 = scmp.eq.s32.totalorder %s10203_s23, 0 }
  0xa2   : > { %p284_p0 = scmp.eq.s32.totalorder %s10203_s23, 1  ;;  %p290_p2 = scmp.eq.s32.totalorder %s7919_s27, 1 }
  0xa3   : > { %p10393_p6 = por %p12110_p13, %p50_p3  ;;  %p9222_p5 = scmp.lt.s32.totalorder %s10096_s20, 2 }
  0xa4   : > { %s400_s28 = sand.u32 1, %s10092_s19   ;;  %p10400_p7 = por %p284_p0, %p44_p11 }
  0xa5   : > { %p10404_p9 = por %p290_p2, %p50_p3  ;;  %s7928_s13 = sshll.u32 %s400_s28, 7 }
  0xa6   : > { %s12112_s8 = scalar_select %p10400_p7, 1, 0 }
  0xa7   : > { %s12113_s26 = scalar_select %p10404_p9, 1, 0 }
  0xa8   : > { %s8223_s29 = sshll.u32 %s10096_s20, 11  ;;  %s404_s25 = scalar_lea.vmem [#allocation2], %s7928_s13 }
  0xa9   : > { %s10412_s1 = scalar_lea.hbm %s12074_s0, %s8223_s29  ;;  %s412_s27 = sshll.u32 %s404_s25, 4  ;;  %s10414_s27 = int_to_ptr.vmem [resolvable:$true] %s412_s27 }
  0xaa   : > { %p10418_p4 = pnand %p9222_p5, %p10387_p12  ;;  %s10422_s21 = scalar_lea.sflag [#allocation3], %s400_s28 }
  0xab   : > { %s9988_s16 = scalar_lea.hbm %s10412_s1, 2048  ;;  %s9993_s11 = scalar_lea.hbm %s12074_s0, 4096 }
  0xac   : > { %p9989_p10 = scmp.ne.s32.totalorder %s10412_s1, %s9988_s16  ;;  %p9990_p8 = pneg %p10418_p4 }
  0xad   : > { %p9994_p3 = scmp.lt.u32.totalorder %s10412_s1, %s12074_s0  ;;  %p9995_p12 = scmp.lt.u32.totalorder %s9993_s11, %s9988_s16 }
  0xae   : > { %p9991_p11 = pnand %p9990_p8, %p9989_p10  ;;  %p9997_p0 = scmp.lt.u32.totalorder %s9988_s16, %s10412_s1 }
  0xaf   : > { %p9996_p13 = por %p9995_p12, %p9994_p3 }
  0xb0   : > { %p9992_p1 = pneg %p9991_p11 }
  0xb1   : > { %p9998_p2 = por %p9997_p0, %p9996_p13 }
  0xb3   : > { %p9999_p5 = pnand %p9998_p2, %p9992_p1 }
  0xb5   : > { %10002 = shalt.err (!%p9999_p5)
}
  0xb6   : > { %s10003_s28 = scalar_lea.vmem %s10414_s27, 2048  ;;  %s10110_s13 = smov [#allocation2]  }
  0xb7   : > { %p10004_p10 = scmp.ne.s32.totalorder %s10414_s27, %s10003_s28  ;;  %s10008_s29 = sshll.u32 %s10110_s13, 4  ;;  %s10009_s29 = int_to_ptr.vmem [resolvable:$false] %s10008_s29 }
  0xb8   : > { %s10010_s30 = scalar_lea.vmem %s10009_s29, 4096  ;;  %p10011_p7 = scmp.lt.s32.totalorder %s10414_s27, %s10009_s29 }
  0xb9   : > { %p10006_p11 = pnand %p10004_p10, %p9990_p8  ;;  %p10012_p3 = scmp.lt.s32.totalorder %s10010_s30, %s10003_s28 }
  0xbb   : > { %p10007_p9 = pneg %p10006_p11  ;;  %p10013_p12 = por %p10012_p3, %p10011_p7 }
  0xbd   : > { %p10014_p13 = pnand %p10013_p12, %p10007_p9 }
  0xbf   : > { %10017 = shalt.err (!%p10014_p13)
}
  0xc0   : > { %s10111_s16 = smov 256   ;;  %s10112_s11 = smov 16  }
  0xc1   : > { %9211 = dma.hbm_to_vmem [thread:$0]  (!%p10418_p4), %s10412_s1, 2048, %s10414_s27, %s10422_s21, %s10111_s16, %s10111_s16, %s10112_s11  }
  0xc2   : > { %p12115_p8 = scmp.ne.s32.totalorder %s12103_s24, 0 }
  0xc3   : > { %s10453_s25 = sand.u32 (!%p12115_p8), 1, %s10088_s18  }
  0xc4   : > { %424 = sbr.rel (%p12115_p8) target bundleno = 8534 (0x2156), region = 64  ;;  %s7933_s28 = sshll.u32 (!%p12115_p8), %s10453_s25, 7 }
  0xc5   : > { %s427_s13 = scalar_lea.sflag (!%p12115_p8), [#allocation3], %s10453_s25  ;;  %s10457_s29 = scalar_lea.vmem (!%p12115_p8), [#allocation2], %s7933_s28 }
  0xcb   : > { %10063 = dma.done.wait (%p10393_p6), %s427_s13, 2048  }
  0xcc   : > { %10065 = vsyncadd (%p10393_p6), %s427_s13, 4294965248  ;;  %p12116_p7 = scmp.eq.s32.totalorder %s10203_s23, 0 }
  0xce   : > { %10067 = dma.done.wait (%p12116_p7), [#allocation6], 5120   ;;  %p12117_p9 = pmov %p12116_p7 }
  0xcf   : > { %p12118_p4 = pmov %p12116_p7 }
  0xd0   : > { %10069 = vsyncadd (%p12117_p9), [#allocation6], 4294962176 }
  0xd1   : > { %10071 = dma.done.wait (%p12118_p4), [#allocation9], 8192   ;;  %p12119_p1 = pmov %p12118_p4 }
  0xd3   : > { %10073 = vsyncadd (%p12119_p1), [#allocation9], 4294959104  ;;  %p12120_p0 = pmov %p12119_p1 }
  0xd5   : > { %10075 = dma.done.wait (%p12120_p0), [#allocation12], 8192   ;;  %p12121_p2 = pmov %p12120_p0 }
  0xd6   : > { %v9284_v0 = vld [vmem:[#allocation5 + $0x40] sm:$0xff]   ;;  %v9288_v4 = vld [vmem:[#allocation5 + $0x48] sm:$0xff]   ;;  %v9292_v8 = vld [vmem:[#allocation5 + $0x50] sm:$0xff]   ;;  %vm10115_vm0 = vmmov 0   ;;  %vm1349_vm1 = vcmask 261120   ;;  %vm1546_vm2 = vcmask 130048  }
  0xd7   : > { %10077 = vsyncadd (%p12121_p2), [#allocation12], 4294959104  ;;  %v9285_v1 = vld [vmem:[#allocation5 + $0xc0] sm:$0xff]   ;;  %8225 = vmatprep.subr.bf16.mxu0 %v9284_v0  ;;  %v9289_v5 = vld [vmem:[#allocation5 + $0xc8] sm:$0xff]   ;;  %s10116_s12 = smov 96   ;;  %s10117_s21 = smov 64  }
  0xd8   : > { %v9286_v2 = vld [vmem:[#allocation5] sm:$0xff]   ;;  %8265 = vmatprep.subr.bf16.mxu1 %v9285_v1  ;;  %v9290_v6 = vld [vmem:[#allocation5 + $0x8] sm:$0xff]   ;;  %v9293_v9 = vld [vmem:[#allocation5 + $0xd0] sm:$0xff]   ;;  %s10118_s30 = smov 32   ;;  %s8224_s11 = sshll.u32 %s10203_s23, 10 }
  0xd9   : > { %v9287_v3 = vld [vmem:[#allocation5 + $0x80] sm:$0xff]   ;;  %8226 = vmatpush3.bf16.msra.mxu0 %v9286_v2  ;;  %v9291_v7 = vld [vmem:[#allocation5 + $0x88] sm:$0xff]   ;;  %v9294_v10 = vld [vmem:[#allocation5 + $0x10] sm:$0xff]   ;;  %s12132_s15 = sld [smem:[#allocation22_spill]]  ;;  %s7776_s23 = scalar_lea.sflag [#allocation4], %s10453_s25 }
  0xda   : > { %8266 = vmatpush3.bf16.msra.mxu1 %v9287_v3  ;;  %8227 = vmatprep.subr.bf16.mxu0 %v9288_v4  ;;  %v9295_v11 = vld [vmem:[#allocation5 + $0x90] sm:$0xff]   ;;  %v9296_v12 = vld [vmem:[#allocation5 + $0x58] sm:$0xff]   ;;  %v9300_v16 = vld [vmem:[#allocation5 + $0x60] sm:$0xff]   ;;  %p12133_p5 = scmp.ne.s32.totalorder %s12112_s8, 0 }
  0xdb   : > { %8267 = vmatprep.subr.bf16.mxu1 %v9289_v5  ;;  %v9297_v13 = vld [vmem:[#allocation5 + $0xd8] sm:$0xff]   ;;  %v9301_v17 = vld [vmem:[#allocation5 + $0xe0] sm:$0xff]   ;;  %v9304_v20 = vld [vmem:[#allocation5 + $0x68] sm:$0xff]  }
  0xdc   : > { %v9298_v14 = vld [vmem:[#allocation5 + $0x18] sm:$0xff]   ;;  %v9302_v18 = vld [vmem:[#allocation5 + $0x20] sm:$0xff]   ;;  %v9305_v21 = vld [vmem:[#allocation5 + $0xe8] sm:$0xff]  }
  0xdd   : > { %8228 = vmatpush3.bf16.msra.mxu0 %v9290_v6  ;;  %v9299_v15 = vld [vmem:[#allocation5 + $0x98] sm:$0xff]   ;;  %v9303_v19 = vld [vmem:[#allocation5 + $0xa0] sm:$0xff]   ;;  %v9306_v22 = vld [vmem:[#allocation5 + $0x28] sm:$0xff]  }
  0xde   : > { %8268 = vmatpush3.bf16.msra.mxu1 %v9291_v7  ;;  %8229 = vmatprep.subr.bf16.mxu0 %v9292_v8  ;;  %v9307_v23 = vld [vmem:[#allocation5 + $0xa8] sm:$0xff]   ;;  %v9308_v24 = vld [vmem:[#allocation5 + $0x70] sm:$0xff]   ;;  %v9312_v28 = vld [vmem:[#allocation5 + $0x78] sm:$0xff]   ;;  %v12095_v7 = vmov 0  }
  0xdf   : > { %8269 = vmatprep.subr.bf16.mxu1 %v9293_v9  ;;  %v9309_v25 = vld [vmem:[#allocation5 + $0xf0] sm:$0xff]   ;;  %v9313_v29 = vld [vmem:[#allocation5 + $0xf8] sm:$0xff]   ;;  %v9340_v42 = vld [vmem:[#allocation8] ss:$12 sps:$4 sm:$0xff]   ;;  %s12025_s1 = scalar_lea.hbm %s12132_s15, %s8224_s11 }
  0xe0   : > { %v9310_v26 = vld [vmem:[#allocation5 + $0x30] sm:$0xff]   ;;  %v9314_v30 = vld [vmem:[#allocation5 + $0x38] sm:$0xff]   ;;  %v9353_v52 = vld [vmem:[#allocation8 + $0x20] ss:$12 sps:$4 sm:$0xff]  }
  0xe1   : > { %8230 = vmatpush3.bf16.msra.mxu0 %v9294_v10  ;;  %v9311_v27 = vld [vmem:[#allocation5 + $0xb0] sm:$0xff]   ;;  %v9315_v31 = vld [vmem:[#allocation5 + $0xb8] sm:$0xff]   ;;  %v9354_v60 = vld [vmem:[#allocation8 + $0x60] ss:$12 sps:$4 sm:$0xff]  }
  0xe2   : > { %8270 = vmatpush3.bf16.msra.mxu1 %v9295_v11  ;;  %8231 = vmatprep.subr.bf16.mxu0 %v9296_v12  ;;  %v9316_v32 = vld [vmem:[%s10457_s29] ss:$16 sps:$4 sm:$0xff]   ;;  %v9318_v33 = vld [vmem:[%s10457_s29 + $0x4] ss:$16 sps:$4 sm:$0xff]   ;;  %v9319_v34 = vld [vmem:[%s10457_s29 + $0x8] ss:$16 sps:$4 sm:$0xff]  }
  0xe3   : > { %8271 = vmatprep.subr.bf16.mxu1 %v9297_v13  ;;  %v9321_v35 = vld [vmem:[%s10457_s29 + $0xc] ss:$16 sps:$4 sm:$0xff]   ;;  %887 = vmatprep.mubr.bf16.mxu0 %v9318_v33  ;;  %v9322_v36 = vld [vmem:[%s10457_s29 + $0x24] ss:$16 sps:$4 sm:$0xff]   ;;  %v9326_v38 = vld [vmem:[%s10457_s29 + $0x20] ss:$16 sps:$4 sm:$0xff]  }
  0xe4   : > { %952 = vmatprep.mubr.bf16.mxu1 %v9321_v35  ;;  %v9324_v37 = vld [vmem:[%s10457_s29 + $0x2c] ss:$16 sps:$4 sm:$0xff]   ;;  %v9327_v39 = vld [vmem:[%s10457_s29 + $0x28] ss:$16 sps:$4 sm:$0xff]   ;;  %v9328_v40 = vld [vmem:[%s10457_s29 + $0x44] ss:$16 sps:$4 sm:$0xff]  }
  0xe5   : > { %8232 = vmatpush3.bf16.msra.mxu0 %v9298_v14  ;;  %v9330_v41 = vld [vmem:[%s10457_s29 + $0x4c] ss:$16 sps:$4 sm:$0xff]   ;;  %v9342_v43 = vld [vmem:[#allocation8 + $0x4] ss:$12 sps:$4 sm:$0xff]   ;;  %v9333_v47 = vld [vmem:[%s10457_s29 + $0x48] ss:$16 sps:$4 sm:$0xff]  }
  0xe6   : > { %8272 = vmatpush3.bf16.msra.mxu1 %v9299_v15  ;;  %8233 = vmatprep.subr.bf16.mxu0 %v9300_v16  ;;  %v9345_v44 = vld [vmem:[#allocation8 + $0x1c] ss:$12 sps:$4 sm:$0xff]   ;;  %v9332_v45 = vld [vmem:[%s10457_s29 + $0x40] ss:$16 sps:$4 sm:$0xff]   ;;  %v9343_v46 = vld [vmem:[#allocation8 + $0x18] ss:$12 sps:$4 sm:$0xff]  }
  0xe7   : > { %8273 = vmatprep.subr.bf16.mxu1 %v9301_v17  ;;  %v9334_v48 = vld [vmem:[%s10457_s29 + $0x64] ss:$16 sps:$4 sm:$0xff]   ;;  %v9336_v50 = vld [vmem:[%s10457_s29 + $0x6c] ss:$16 sps:$4 sm:$0xff]   ;;  %v9338_v57 = vld [vmem:[%s10457_s29 + $0x60] ss:$16 sps:$4 sm:$0xff]  }
  0xe8   : > { %v9349_v49 = vld [vmem:[#allocation8 + $0x8] ss:$12 sps:$4 sm:$0xff]   ;;  %v9346_v53 = vld [vmem:[#allocation8 + $0x30] ss:$12 sps:$4 sm:$0xff]   ;;  %v9352_v54 = vld [vmem:[#allocation8 + $0x4c] ss:$12 sps:$4 sm:$0xff]  }
  0xe9   : > { %8234 = vmatpush3.bf16.msra.mxu0 %v9302_v18  ;;  %v9348_v51 = vld [vmem:[#allocation8 + $0x34] ss:$12 sps:$4 sm:$0xff]   ;;  %v9357_v55 = vld [vmem:[#allocation8 + $0x38] ss:$12 sps:$4 sm:$0xff]   ;;  %v9360_v61 = vld [vmem:[#allocation8 + $0x7c] ss:$12 sps:$4 sm:$0xff]  }
  0xea   : > { %8274 = vmatpush3.bf16.msra.mxu1 %v9303_v19  ;;  %8235 = vmatprep.subr.bf16.mxu0 %v9304_v20  ;;  %v9350_v56 = vld [vmem:[#allocation8 + $0x48] ss:$12 sps:$4 sm:$0xff]   ;;  %v9356_v58 = vld [vmem:[#allocation8 + $0x64] ss:$12 sps:$4 sm:$0xff]   ;;  %v9368_v3 = vld [vmem:[#allocation8 + $0xac] ss:$12 sps:$4 sm:$0xff]  }
  0xeb   : > { %8275 = vmatprep.subr.bf16.mxu1 %v9305_v21  ;;  %v9339_v59 = vld [vmem:[%s10457_s29 + $0x68] ss:$16 sps:$4 sm:$0xff]   ;;  %v9361_v62 = vld [vmem:[#allocation8 + $0x50] ss:$12 sps:$4 sm:$0xff]   ;;  %v9364_v0 = vld [vmem:[#allocation8 + $0x94] ss:$12 sps:$4 sm:$0xff]  }
  0xec   : > { %v9358_v63 = vld [vmem:[#allocation8 + $0x78] ss:$12 sps:$4 sm:$0xff]   ;;  %v9365_v1 = vld [vmem:[#allocation8 + $0x68] ss:$12 sps:$4 sm:$0xff]   ;;  %v9362_v2 = vld [vmem:[#allocation8 + $0x90] ss:$12 sps:$4 sm:$0xff]  }
  0xed   : > { %8236 = vmatpush3.bf16.msra.mxu0 %v9306_v22  ;;  %v9369_v4 = vld [vmem:[#allocation8 + $0x80] ss:$12 sps:$4 sm:$0xff]   ;;  %v9366_v5 = vld [vmem:[#allocation8 + $0xa8] ss:$12 sps:$4 sm:$0xff]   ;;  %v9370_v6 = vld [vmem:[#allocation8 + $0x98] ss:$12 sps:$4 sm:$0xff]  }
  0xee   : > { %8276 = vmatpush3.bf16.msra.mxu1 %v9307_v23  ;;  %8237 = vmatprep.subr.bf16.mxu0 %v9308_v24  ;;  %v9371_v8 = vld [vmem:[#allocation8 + $0xb0] ss:$12 sps:$4 sm:$0xff]   ;;  %v10495_v11 = vld [vmem:[%s12076_s2] ss:$0 sm:$0xff]  ;;  %s12125_s29 = sld [smem:[#allocation21_spill]] }
  0xef   : > { %8277 = vmatprep.subr.bf16.mxu1 %v9309_v25  ;;  %v985_v25 = vld [vmem:[#allocation7] sm:$0xff] }
  0xf1   : > { %8238 = vmatpush3.bf16.msra.mxu0 %v9310_v26  ;;  %v986_v26 = vld [vmem:[#allocation7 + $0x8] sm:$0xff] }
  0xf2   : > { %8278 = vmatpush3.bf16.msra.mxu1 %v9311_v27  ;;  %8239 = vmatprep.subr.bf16.mxu0 %v9312_v28 }
  0xf3   : > { %8279 = vmatprep.subr.bf16.mxu1 %v9313_v29 }
  0xf5   : > { %8240 = vmatpush3.bf16.msra.mxu0 %v9314_v30 }
  0xf6   : > { %8280 = vmatpush3.bf16.msra.mxu1 %v9315_v31  ;;  %1199 = vmatprep.subr.bf16.mxu0 %v9342_v43 }
  0xf7   : > { %8585 = vmatprep.subr.bf16.mxu1 %v9349_v49 }
  0xf8   : > { %888 = vmatmul.mubr.bf16.vlgmr.msra.gmra.mrb[0].mxu0 %v9316_v32 }
  0xf9   : > { %953 = vmatmul.mubr.bf16.vlgmr.msra.gmra.mrb[0].mxu1 %v9319_v34  ;;  %895 = vmatprep.mubr.bf16.mxu0 %v9322_v36 }
  0xfa   : > { %960 = vmatprep.mubr.bf16.mxu1 %v9324_v37  ;;  %1200 = vmatpush1.bf16.msra.mxu0 %v9340_v42 }
  0xfb   : > { %1201 = vmatprep.subr.bf16.mxu0 %v9345_v44  ;;  %8586 = vmatpush3.bf16.msra.mxu1 %v9349_v49 }
  0xfc   : > { %8587 = vmatprep.subr.bf16.mxu1 %v9353_v52 }
  0xfe   : > { %1202 = vmatpush1.bf16.msra.mxu0 %v9343_v46  ;;  %v987_v46 = vld [vmem:[#allocation7 + $0x10] sm:$0xff] }
  0xff   : > { %1203 = vmatprep.subr.bf16.mxu0 %v9348_v51  ;;  %8588 = vmatpush3.bf16.msra.mxu1 %v9353_v52 }
 0x100   : > { %896 = vmatmul.mubr.bf16.gmra.mrb[4].mxu0 %v9326_v38  ;;  %8589 = vmatprep.subr.bf16.mxu1 %v9357_v55 }
 0x101   : > { %961 = vmatmul.mubr.bf16.gmra.mrb[4].mxu1 %v9327_v39  ;;  %903 = vmatprep.mubr.bf16.mxu0 %v9328_v40 }
 0x102   : > { %968 = vmatprep.mubr.bf16.mxu1 %v9330_v41  ;;  %1204 = vmatpush1.bf16.msra.mxu0 %v9346_v53 }
 0x103   : > { %1205 = vmatprep.subr.bf16.mxu0 %v9352_v54  ;;  %8590 = vmatpush3.bf16.msra.mxu1 %v9357_v55 }
 0x104   : > { %8591 = vmatprep.subr.bf16.mxu1 %v9361_v62 }
 0x106   : > { %1206 = vmatpush1.bf16.msra.mxu0 %v9350_v56 }
 0x107   : > { %1207 = vmatprep.subr.bf16.mxu0 %v9356_v58  ;;  %8592 = vmatpush3.bf16.msra.mxu1 %v9361_v62 }
 0x108   : > { %904 = vmatmul.mubr.bf16.gmra.mrb[8].mxu0 %v9332_v45  ;;  %8593 = vmatprep.subr.bf16.mxu1 %v9365_v1 }
 0x109   : > { %969 = vmatmul.mubr.bf16.gmra.mrb[8].mxu1 %v9333_v47  ;;  %911 = vmatprep.mubr.bf16.mxu0 %v9334_v48  ;;  %v988_v47 = vld [vmem:[#allocation7 + $0x18] sm:$0xff] }
 0x10a   : > { %976 = vmatprep.mubr.bf16.mxu1 %v9336_v50  ;;  %1208 = vmatpush1.bf16.msra.mxu0 %v9354_v60 }
 0x10b   : > { %1209 = vmatprep.subr.bf16.mxu0 %v9360_v61  ;;  %8594 = vmatpush3.bf16.msra.mxu1 %v9365_v1 }
 0x10c   : > { %8595 = vmatprep.subr.bf16.mxu1 %v9369_v4 }
 0x10e   : > { %1210 = vmatpush1.bf16.msra.mxu0 %v9358_v63 }
 0x10f   : > { %1211 = vmatprep.subr.bf16.mxu0 %v9364_v0  ;;  %8596 = vmatpush3.bf16.msra.mxu1 %v9369_v4  ;;  %v990_v4 = vld [vmem:[#allocation7 + $0x28] sm:$0xff] }
 0x110   : > { %912 = vmatmul.mubr.bf16.gmra.mrb[12].mxu0 %v9338_v57  ;;  %8597 = vmatprep.subr.bf16.mxu1 %v9370_v6 }
 0x111   : > { %977 = vmatmul.mubr.bf16.gmra.mrb[12].mxu1 %v9339_v59  ;;  %1231 = vmatprep.mubr.bf16.mxu0 %v12095_v7 }
 0x112   : > { %1212 = vmatpush1.bf16.msra.mxu0 %v9362_v2 }
 0x113   : > { %1213 = vmatprep.subr.bf16.mxu0 %v9368_v3  ;;  %8598 = vmatpush3.bf16.msra.mxu1 %v9370_v6  ;;  %v989_v3 = vld [vmem:[#allocation7 + $0x20] sm:$0xff] }
 0x114   : > { %8599 = vmatprep.subr.bf16.mxu1 %v9371_v8 }
 0x116   : > { %1214 = vmatpush1.bf16.msra.mxu0 %v9366_v5 }
 0x117   : > { %8600 = vmatpush3.bf16.msra.mxu1 %v9371_v8 }
 0x1cb   : > { %v8241_v9 = vpop.f32.mrb[0].mxu0 }
 0x1cc   : > { %v8281_v10 = vpop.f32.mrb[0].mxu1  ;;  %v8242_v12 = vpop.f32.mrb[1].mxu0 }
 0x1cd   : > { %v8243_v13 = vadd.f32 %v8242_v12, %v8241_v9  ;;  %v8282_v14 = vpop.f32.mrb[1].mxu1  ;;  %v8244_v15 = vpop.f32.mrb[2].mxu0 }
 0x1ce   : > { %v8283_v16 = vadd.f32 %v8282_v14, %v8281_v10  ;;  %v8284_v17 = vpop.f32.mrb[2].mxu1  ;;  %v8245_v18 = vpop.f32.mrb[3].mxu0 }
 0x1cf   : > { %v890_v19 = vadd.f32 %v8243_v13, %v10495_v11  ;;  %v8246_v20 = vadd.f32 %v8245_v18, %v8244_v15  ;;  %v8285_v21 = vpop.f32.mrb[3].mxu1 }
 0x1d0   : > { %v8286_v22 = vadd.f32 %v8285_v21, %v8284_v17 }
 0x1d1   : > { %v955_v23 = vadd.f32 %v8283_v16, %v890_v19  ;;  %v893_v24 = vadd.f32 %v8246_v20, %v10495_v11 }
 0x1d3   : > { %v958_v27 = vadd.f32 %v8286_v22, %v893_v24  ;;  %v8247_v28 = vpop.f32.mrb[4].mxu0  ;;  %v10499_v31 = vadd.f32 %v985_v25, %v955_v23 }
 0x1d4   : > { %v8287_v29 = vpop.f32.mrb[4].mxu1  ;;  %v8248_v30 = vpop.f32.mrb[5].mxu0 }
 0x1d5   : > { %v10501_v32 = vadd.f32 %v986_v26, %v958_v27  ;;  %v8249_v33 = vadd.f32 %v8248_v30, %v8247_v28  ;;  %v8288_v34 = vpop.f32.mrb[5].mxu1  ;;  %v8250_v35 = vpop.f32.mrb[6].mxu0  ;;  %v991_v26 = vld [vmem:[#allocation7 + $0x30] sm:$0xff]  ;;  %v992_v27 = vld [vmem:[#allocation7 + $0x38] sm:$0xff] }
 0x1d6   : > { %v8289_v36 = vadd.f32 %v8288_v34, %v8287_v29  ;;  %v8290_v37 = vpop.f32.mrb[6].mxu1  ;;  %v8251_v38 = vpop.f32.mrb[7].mxu0  ;;  %v10114_v34 = vmov 0.0  }
 0x1d7   : > { %v1018_v39 = vpack.c.bf16 %v10501_v32, %v10499_v31  ;;  %v898_v40 = vadd.f32 %v8249_v33, %v10495_v11  ;;  %v8252_v41 = vadd.f32 %v8251_v38, %v8250_v35  ;;  %v8291_v42 = vpop.f32.mrb[7].mxu1  ;;  %8609 = vmatprep.subr.bf16.mxu1 %v10114_v34  ;;  %8621 = vmatprep.subr.bf16.mxu0 %v10114_v34 }
 0x1d8   : > { %v8292_v43 = vadd.f32 %v8291_v42, %v8290_v37  ;;  %v1054_v37 = vld [vmem:[%s12079_s5] sm:$0x7] }
 0x1d9   : > { %v963_v44 = vadd.f32 %v8289_v36, %v898_v40  ;;  %v901_v45 = vadd.f32 %v8252_v41, %v10495_v11  ;;  %1232 = vmatmul.mubr.bf16.vlgmr.msra.gmra.mrb[16].mxu0 %v1018_v39  ;;  %8601 = vmatprep.mubr.bf16.mxu1 %v1018_v39 }
 0x1da   : > { %1241 = vmatprep.mubr.bf16.mxu0 %v12095_v7 }
 0x1db   : > { %v966_v48 = vadd.f32 %v8292_v43, %v901_v45  ;;  %v8253_v49 = vpop.f32.mrb[8].mxu0  ;;  %v10508_v52 = vadd.f32 %v987_v46, %v963_v44 }
 0x1dc   : > { %v8293_v50 = vpop.f32.mrb[8].mxu1  ;;  %v8254_v51 = vpop.f32.mrb[9].mxu0 }
 0x1dd   : > { %v10510_v53 = vadd.f32 %v988_v47, %v966_v48  ;;  %v8255_v54 = vadd.f32 %v8254_v51, %v8253_v49  ;;  %v8294_v55 = vpop.f32.mrb[9].mxu1  ;;  %v8256_v56 = vpop.f32.mrb[10].mxu0 }
 0x1de   : > { %v8295_v57 = vadd.f32 %v8294_v55, %v8293_v50  ;;  %v8296_v58 = vpop.f32.mrb[10].mxu1  ;;  %v8257_v59 = vpop.f32.mrb[11].mxu0 }
 0x1df   : > { %v906_v60 = vadd.f32 %v8255_v54, %v10495_v11  ;;  %v8258_v61 = vadd.f32 %v8257_v59, %v8256_v56  ;;  %v8297_v62 = vpop.f32.mrb[11].mxu1  ;;  %v1019_v63 = vpack.c.bf16 %v10510_v53, %v10508_v52 }
 0x1e0   : > { %v8298_v0 = vadd.f32 %v8297_v62, %v8296_v58 }
 0x1e1   : > { %v971_v1 = vadd.f32 %v8295_v57, %v906_v60  ;;  %v909_v2 = vadd.f32 %v8258_v61, %v10495_v11  ;;  %1242 = vmatmul.mubr.bf16.gmra.mrb[20].mxu0 %v1019_v63  ;;  %8602 = vmatmul.mubr.bf16.vlgmr.msra.gmra.mrb[16].mxu1 %v1019_v63 }
 0x1e2   : > { %1251 = vmatprep.mubr.bf16.mxu0 %v12095_v7 }
 0x1e3   : > { %v974_v5 = vadd.f32 %v8298_v0, %v909_v2  ;;  %v8259_v6 = vpop.f32.mrb[12].mxu0  ;;  %v10517_v10 = vadd.f32 %v989_v3, %v971_v1 }
 0x1e4   : > { %v8299_v8 = vpop.f32.mrb[12].mxu1  ;;  %v8260_v9 = vpop.f32.mrb[13].mxu0 }
 0x1e5   : > { %v10519_v12 = vadd.f32 %v990_v4, %v974_v5  ;;  %v8261_v13 = vadd.f32 %v8260_v9, %v8259_v6  ;;  %v8300_v14 = vpop.f32.mrb[13].mxu1  ;;  %v8262_v15 = vpop.f32.mrb[14].mxu0 }
 0x1e6   : > { %v8301_v16 = vadd.f32 %v8300_v14, %v8299_v8  ;;  %v8302_v17 = vpop.f32.mrb[14].mxu1  ;;  %v8263_v18 = vpop.f32.mrb[15].mxu0 }
 0x1e7   : > { %v914_v19 = vadd.f32 %v8261_v13, %v10495_v11  ;;  %v8264_v20 = vadd.f32 %v8263_v18, %v8262_v15  ;;  %v8303_v21 = vpop.f32.mrb[15].mxu1  ;;  %v1020_v22 = vpack.c.bf16 %v10519_v12, %v10517_v10 }
 0x1e8   : > { %v8304_v23 = vadd.f32 %v8303_v21, %v8302_v17 }
 0x1e9   : > { %v979_v24 = vadd.f32 %v8301_v16, %v914_v19  ;;  %v917_v25 = vadd.f32 %v8264_v20, %v10495_v11  ;;  %1252 = vmatmul.mubr.bf16.gmra.mrb[24].mxu0 %v1020_v22  ;;  %8605 = vmatprep.mubr.bf16.mxu1 %v1020_v22  ;;  %v1056_v11 = vlaneseq }
 0x1ea   : > { %1261 = vmatprep.mubr.bf16.mxu0 %v12095_v7 }
 0x1eb   : > { %v982_v28 = vadd.f32 %v8304_v23, %v917_v25  ;;  %v10526_v29 = vadd.f32 %v991_v26, %v979_v24  ;;  %v10538_v35 = vshrl.u32 %v1056_v11, 7 }
 0x1ed   : > { %v10528_v30 = vadd.f32 %v992_v27, %v982_v28  ;;  %v10541_v36 = vsub.s32 0, %v10538_v35  ;;  %v10547_v38 = vsub.s32 1, %v10538_v35  ;;  %v10558_v47 = vsub.s32 2, %v10538_v35 }
 0x1ef   : > { %v1021_v33 = vpack.c.bf16 %v10528_v30, %v10526_v29  ;;  %v10550_v39 = vrot.slane %v1054_v37, %v10541_v36  ;;  %v10553_v41 = vrot.slane %v1054_v37, %v10547_v38  ;;  %v1067_v54 = vrot.slane %v1054_v37, %v10558_v47 }
 0x1f1   : > { %1262 = vmatmul.mubr.bf16.gmra.mrb[28].mxu0 %v1021_v33  ;;  %8606 = vmatmul.mubr.bf16.gmra.mrb[20].mxu1 %v1021_v33 }
 0x1f2   : > { %8611 = vmatprep.mubr.msk.bf16.mxu1 %vm10115_vm0, %v10114_v34  ;;  %8623 = vmatprep.mubr.msk.bf16.mxu0 %vm10115_vm0, %v10114_v34 }
 0x2ac   : > { %v1233_v40 = vpop.f32.mrb[16].mxu0 }
 0x2ad   : > { %v1235_v42 = vpop.f32.mrb[17].mxu0  ;;  %v1234_v44 = vadd.f32 %v1233_v40, %v10550_v39 }
 0x2ae   : > { %v1237_v43 = vpop.f32.mrb[18].mxu0  ;;  %v1236_v48 = vadd.f32 %v1235_v42, %v10553_v41 }
 0x2af   : > { %v1238_v45 = vadd.f32 %v1237_v43, %v10550_v39  ;;  %v1239_v46 = vpop.f32.mrb[19].mxu0 }
 0x2b0   : > { %v1240_v49 = vadd.f32 %v1239_v46, %v10553_v41 }
 0x2b1   : > { %v10562_v50 = vpack.c.bf16 %v1238_v45, %v1234_v44 }
 0x2b2   : > { %v10564_v51 = vpack.c.bf16 %v1240_v49, %v1236_v48 }
 0x2b4   : > { %v1243_v55 = vpop.f32.mrb[20].mxu0  ;;  %v8603_v56 = vpop.f32.mrb[16].mxu1  ;;  %v1354_v57 = vsel %vm1349_vm1, %v10564_v51, 0 }
 0x2b5   : > { %v1245_v58 = vpop.f32.mrb[21].mxu0  ;;  %v1306_v59 = vpop.f32.mrb[17].mxu1  ;;  %8610 = vmatpush3.bf16.xpose.msra.mxu1 %v1354_v57  ;;  %v1244_v62 = vadd.f32 %v1243_v55, %v10550_v39  ;;  %v1315_v63 = vadd.f32 %v8603_v56, %v1067_v54 }
 0x2b6   : > { %v1247_v60 = vpop.f32.mrb[22].mxu0  ;;  %v8604_v61 = vpop.f32.mrb[18].mxu1  ;;  %8615 = vmatprep.subr.bf16.mxu1 %v10114_v34  ;;  %v1246_v4 = vadd.f32 %v1245_v58, %v10553_v41  ;;  %v1307_v5 = vadd.f32 %v1306_v59, %v1067_v54 }
 0x2b7   : > { %v1248_v0 = vadd.f32 %v1247_v60, %v10550_v39  ;;  %v1318_v1 = vadd.f32 %v8604_v61, %v1067_v54  ;;  %v1249_v2 = vpop.f32.mrb[23].mxu0  ;;  %v1309_v3 = vpop.f32.mrb[19].mxu1 }
 0x2b8   : > { %v1250_v6 = vadd.f32 %v1249_v2, %v10553_v41  ;;  %v1310_v8 = vadd.f32 %v1309_v3, %v1067_v54 }
 0x2b9   : > { %v10574_v9 = vpack.c.bf16 %v1248_v0, %v1244_v62  ;;  %v10576_v13 = vpack.c.bf16 %v1318_v1, %v1315_v63 }
 0x2ba   : > { %v10578_v14 = vpack.c.bf16 %v1250_v6, %v1246_v4  ;;  %v10580_v15 = vpack.c.bf16 %v1310_v8, %v1307_v5 }
 0x2bc   : > { %v1253_v16 = vpop.f32.mrb[24].mxu0  ;;  %8612 = vmatmul.mubr.msk.bf16.vlgmr.msra.gmra.mrb[24].mxu1 %vm1349_vm1, %v10562_v50  ;;  %v1401_v17 = vsel %vm1349_vm1, %v10578_v14, 0 }
 0x2bd   : > { %v1255_v18 = vpop.f32.mrb[25].mxu0  ;;  %8616 = vmatpush3.bf16.xpose.msra.mxu1 %v1401_v17  ;;  %8617 = vmatprep.mubr.msk.bf16.mxu1 %vm10115_vm0, %v10114_v34  ;;  %v1254_v20 = vadd.f32 %v1253_v16, %v10550_v39 }
 0x2be   : > { %v1257_v19 = vpop.f32.mrb[26].mxu0  ;;  %8627 = vmatprep.subr.bf16.mxu1 %v10114_v34  ;;  %v1256_v23 = vadd.f32 %v1255_v18, %v10553_v41 }
 0x2bf   : > { %v1258_v21 = vadd.f32 %v1257_v19, %v10550_v39  ;;  %v1259_v22 = vpop.f32.mrb[27].mxu0 }
 0x2c0   : > { %v1260_v24 = vadd.f32 %v1259_v22, %v10553_v41 }
 0x2c1   : > { %v10593_v25 = vpack.c.bf16 %v1258_v21, %v1254_v20 }
 0x2c2   : > { %v10595_v26 = vpack.c.bf16 %v1260_v24, %v1256_v23 }
 0x2c4   : > { %v1263_v27 = vpop.f32.mrb[28].mxu0  ;;  %v8607_v28 = vpop.f32.mrb[20].mxu1  ;;  %8618 = vmatmul.mubr.msk.bf16.vlgmr.msra.gmra.mrb[28].mxu1 %vm1349_vm1, %v10574_v9  ;;  %v1448_v33 = vsel %vm1349_vm1, %v10595_v26, 0 }
 0x2c5   : > { %v1331_v11 = vadd.f32 %v8607_v28, %v1067_v54  ;;  %v1265_v37 = vpop.f32.mrb[29].mxu0  ;;  %v1322_v40 = vpop.f32.mrb[21].mxu1  ;;  %8622 = vmatpush3.bf16.xpose.msra.mxu0 %v1448_v33  ;;  %8629 = vmatprep.mubr.msk.bf16.mxu1 %vm10115_vm0, %v10114_v34  ;;  %v1264_v45 = vadd.f32 %v1263_v27, %v10550_v39 }
 0x2c6   : > { %v1323_v42 = vadd.f32 %v1322_v40, %v1067_v54  ;;  %v1267_v43 = vpop.f32.mrb[30].mxu0  ;;  %v8608_v44 = vpop.f32.mrb[22].mxu1  ;;  %8633 = vmatprep.subr.bf16.mxu0 %v10114_v34  ;;  %v1266_v56 = vadd.f32 %v1265_v37, %v10553_v41 }
 0x2c7   : > { %v1268_v46 = vadd.f32 %v1267_v43, %v10550_v39  ;;  %v1334_v48 = vadd.f32 %v8608_v44, %v1067_v54  ;;  %v1269_v49 = vpop.f32.mrb[31].mxu0  ;;  %v1325_v55 = vpop.f32.mrb[23].mxu1 }
 0x2c8   : > { %v1270_v57 = vadd.f32 %v1269_v49, %v10553_v41  ;;  %v1326_v58 = vadd.f32 %v1325_v55, %v1067_v54 }
 0x2c9   : > { %v10608_v59 = vpack.c.bf16 %v1268_v46, %v1264_v45  ;;  %v10610_v60 = vpack.c.bf16 %v1334_v48, %v1331_v11 }
 0x2ca   : > { %v10612_v61 = vpack.c.bf16 %v1270_v57, %v1266_v56  ;;  %v10614_v62 = vpack.c.bf16 %v1326_v58, %v1323_v42 }
 0x2cc   : > { %8624 = vmatmul.mubr.msk.bf16.vlgmr.msra.gmra.mrb[32].mxu0 %vm1349_vm1, %v10593_v25  ;;  %v1495_v39 = vsel %vm1349_vm1, %v10612_v61, 0 }
 0x2cd   : > { %8628 = vmatpush3.bf16.xpose.msra.mxu1 %v1495_v39  ;;  %8634 = vmatpush3.bf16.msra.mxu0 %v10580_v15 }
 0x2ce   : > { %8639 = vmatprep.subr.bf16.mxu1 %v10114_v34  ;;  %8635 = vmatprep.mubr.msk.bf16.mxu0 %vm10115_vm0, %v10114_v34 }
 0x2cf   : > { %8645 = vmatprep.subr.bf16.mxu0 %v10114_v34 }
 0x2d4   : > { %8630 = vmatmul.mubr.msk.bf16.vlgmr.msra.gmra.mrb[32].mxu1 %vm1349_vm1, %v10608_v59 }
 0x2d5   : > { %8640 = vmatpush3.bf16.msra.mxu1 %v10576_v13  ;;  %8641 = vmatprep.mubr.msk.bf16.mxu1 %vm10115_vm0, %v10114_v34 }
 0x2d6   : > { %8651 = vmatprep.subr.bf16.mxu1 %v10114_v34 }
 0x38f   : > { %v1390_v41 = vpop.f32.mrb[24].mxu1 }
 0x390   : > { %v8613_v54 = vpop.f32.mrb[25].mxu1 }
 0x391   : > { %v10631_v63 = vpop.f32.mrb[26].mxu1 }
 0x392   : > { %v8614_v0 = vpop.f32.mrb[27].mxu1 }
 0x397   : > { %v1437_v1 = vpop.f32.mrb[28].mxu1 }
 0x398   : > { %v1540_v2 = vmul.f32 0.17677669, %v1437_v1  ;;  %v8619_v3 = vpop.f32.mrb[29].mxu1 }
 0x399   : > { %v1440_v4 = vpop.f32.mrb[30].mxu1 }
 0x39a   : > { %v1541_v5 = vmul.f32 0.17677669, %v1440_v4  ;;  %v8620_v6 = vpop.f32.mrb[31].mxu1  ;;  %v1553_v8 = vsel %vm1546_vm2, %v1540_v2, -inf }
 0x39b   : > { %1554 = vmax.xlane.f32.xlu0 %v1553_v8 }
 0x39c   : > { %v1556_v16 = vsel %vm1546_vm2, %v1541_v5, -inf }
 0x39f   : > { %v1484_v17 = vpop.f32.mrb[32].mxu0  ;;  %1557 = vmax.xlane.f32.xlu0 %v1556_v16 }
 0x3a0   : > { %v8625_v18 = vpop.f32.mrb[33].mxu0  ;;  %v1542_v6 = vmul.f32 0.17677669, %v1484_v17 }
 0x3a1   : > { %v1487_v19 = vpop.f32.mrb[34].mxu0 }
 0x3a2   : > { %v8626_v20 = vpop.f32.mrb[35].mxu0  ;;  %v1543_v16 = vmul.f32 0.17677669, %v1487_v19  ;;  %v1559_v18 = vsel %vm1546_vm2, %v1542_v6, -inf }
 0x3a3   : > { %v1539_v20 = vmul.f32 0.17677669, %v10631_v63 }
 0x3a7   : > { %v1531_v21 = vpop.f32.mrb[32].mxu1 }
 0x3a8   : > { %v1544_v22 = vmul.f32 0.17677669, %v1531_v21  ;;  %v8631_v23 = vpop.f32.mrb[33].mxu1  ;;  %v1562_v21 = vsel %vm1546_vm2, %v1543_v16, -inf }
 0x3a9   : > { %v1534_v24 = vpop.f32.mrb[34].mxu1 }
 0x3aa   : > { %v1545_v27 = vmul.f32 0.17677669, %v1534_v24  ;;  %v8632_v28 = vpop.f32.mrb[35].mxu1  ;;  %v1565_v33 = vsel %vm1546_vm2, %v1544_v22, -inf }
 0x3ab   : > { %1566 = vmax.xlane.f32.xlu1 %v1565_v33 }
 0x3ac   : > { %v1568_v11 = vsel %vm1546_vm2, %v1545_v27, -inf }
 0x3af   : > { %1569 = vmax.xlane.f32.xlu1 %v1568_v11 }
 0x428   : > { %v1555_v37 = vpop.xlane.xlu0 %1554 }
 0x429   : > { %v1573_v40 = vsub.f32 %v1540_v2, %v1555_v37 }
 0x42b   : > { %v1583_v42 = vmul.f32 1.442695, %v1573_v40 }
 0x42c   : > { %v1558_v43 = vpop.xlane.xlu0 %1557 }
 0x42d   : > { %9500 = vpow2.f32 %v1583_v42  ;;  %v1574_v44 = vsub.f32 %v1541_v5, %v1558_v43  ;;  %v1538_v5 = vmul.f32 0.17677669, %v1390_v41 }
 0x42f   : > { %v1585_v45 = vmul.f32 1.442695, %v1574_v44  ;;  %v1547_v8 = vsel %vm1546_vm2, %v1538_v5, -inf }
 0x431   : > { %9502 = vpow2.f32 %v1585_v45 }
 0x437   : > { %v9501_v46 = vpop.eup %9500 }
 0x438   : > { %v1567_v48 = vpop.xlane.xlu1 %1566  ;;  %v1601_v49 = vsel %vm1546_vm2, %v9501_v46, 0.0 }
 0x439   : > { %v1577_v55 = vsub.f32 %v1544_v22, %v1567_v48  ;;  %1602 = vadd.xlane.f32.xlu0 %v1601_v49  ;;  %v1550_v22 = vsel %vm1546_vm2, %v1539_v20, -inf }
 0x43b   : > { %v9503_v56 = vpop.eup %9502  ;;  %v1591_v57 = vmul.f32 1.442695, %v1577_v55 }
 0x43c   : > { %v1570_v58 = vpop.xlane.xlu1 %1569  ;;  %v1604_v39 = vsel %vm1546_vm2, %v9503_v56, 0.0 }
 0x43d   : > { %9504 = vpow2.f32 %v1591_v57  ;;  %v1578_v54 = vsub.f32 %v1545_v27, %v1570_v58  ;;  %1605 = vadd.xlane.f32.xlu1 %v1604_v39 }
 0x43f   : > { %v1593_v0 = vmul.f32 1.442695, %v1578_v54 }
 0x441   : > { %9506 = vpow2.f32 %v1593_v0 }
 0x447   : > { %v9505_v1 = vpop.eup %9504 }
 0x448   : > { %v1613_v2 = vsel %vm1546_vm2, %v9505_v1, 0.0 }
 0x449   : > { %1614 = vadd.xlane.f32.xlu0 %v1613_v2 }
 0x44b   : > { %v9507_v3 = vpop.eup %9506 }
 0x44c   : > { %v1616_v4 = vsel %vm1546_vm2, %v9507_v3, 0.0 }
 0x44d   : > { %1617 = vadd.xlane.f32.xlu1 %v1616_v4 }
 0x45e   : > { %1873 = vrot.lane.b32.xlu1 %v10574_v9, %s10116_s12 }
 0x45f   : > { %1876 = vrot.lane.b32.xlu0 %v10578_v14, %s10116_s12 }
 0x462   : > { %1982 = vrot.lane.b32.xlu1 %v10612_v61, %s10116_s12 }
 0x466   : > { %1979 = vrot.lane.b32.xlu1 %v10608_v59, %s10116_s12 }
 0x47e   : > { %1548 = vmax.xlane.f32.xlu0 %v1547_v8 }
 0x482   : > { %1560 = vmax.xlane.f32.xlu0 %v1559_v18 }
 0x486   : > { %1563 = vmax.xlane.f32.xlu0 %v1562_v21 }
 0x48a   : > { %1551 = vmax.xlane.f32.xlu1 %v1550_v22 }
 0x4c6   : > { %v1603_v23 = vpop.xlane.xlu0 %1602 }
 0x4c7   : > { %9508 = vrcp.f32 %v1603_v23 }
 0x4ca   : > { %v1606_v24 = vpop.xlane.xlu1 %1605 }
 0x4cb   : > { %9510 = vrcp.f32 %v1606_v24 }
 0x4d1   : > { %v9509_v41 = vpop.eup %9508 }
 0x4d2   : > { %v1629_v27 = vmul.f32 %v9509_v41, %v9501_v46 }
 0x4d5   : > { %v9511_v17 = vpop.eup %9510 }
 0x4d6   : > { %v1630_v28 = vmul.f32 %v9511_v17, %v9503_v56  ;;  %v1615_v19 = vpop.xlane.xlu0 %1614 }
 0x4d7   : > { %9512 = vrcp.f32 %v1615_v19 }
 0x4d8   : > { %v1636_v33 = vpack.c.bf16 %v1630_v28, %v1629_v27 }
 0x4da   : > { %8642 = vmatmul.mubr.msk.bf16.vlgmr.msra.gmra.mrb[36].mxu1 %vm1546_vm2, %v1636_v33  ;;  %v1618_v63 = vpop.xlane.xlu1 %1617  ;;  %v1877_v43 = vpop.permute.xlu0 %1876 }
 0x4db   : > { %8652 = vmatpush3.bf16.msra.mxu1 %v10610_v60  ;;  %9514 = vrcp.f32 %v1618_v63  ;;  %8653 = vmatprep.mubr.msk.bf16.mxu1 %vm10115_vm0, %v10114_v34  ;;  %v1882_v46 = vsel %vm1349_vm1, %v1877_v43, 0 }
 0x4dc   : > { %8663 = vmatprep.subr.bf16.mxu1 %v10114_v34 }
 0x4de   : > { %v1874_v45 = vpop.permute.xlu1 %1873 }
 0x4e1   : > { %v9513_v11 = vpop.eup %9512 }
 0x4e2   : > { %v1633_v40 = vmul.f32 %v9513_v11, %v9505_v1  ;;  %v1983_v48 = vpop.permute.xlu1 %1982 }
 0x4e3   : > { %v1988_v49 = vsel %vm1349_vm1, %v1983_v48, 0 }
 0x4e5   : > { %v9515_v37 = vpop.eup %9514 }
 0x4e6   : > { %v1634_v42 = vmul.f32 %v9515_v37, %v9507_v3  ;;  %v1980_v55 = vpop.permute.xlu1 %1979 }
 0x4e8   : > { %v1638_v44 = vpack.c.bf16 %v1634_v42, %v1633_v40 }
 0x4ea   : > { %8654 = vmatmul.mubr.msk.bf16.vlgmr.msra.gmra.mrb[40].mxu1 %vm1546_vm2, %v1638_v44 }
 0x4eb   : > { %8664 = vmatpush3.bf16.xpose.msra.mxu1 %v1882_v46  ;;  %8665 = vmatprep.mubr.msk.bf16.mxu1 %vm10115_vm0, %v10114_v34 }
 0x4ec   : > { %8675 = vmatprep.subr.bf16.mxu1 %v10114_v34 }
 0x4f2   : > { %8666 = vmatmul.mubr.msk.bf16.vlgmr.msra.gmra.mrb[44].mxu1 %vm1349_vm1, %v1874_v45 }
 0x4f3   : > { %8676 = vmatpush3.bf16.xpose.msra.mxu1 %v1988_v49  ;;  %8677 = vmatprep.mubr.msk.bf16.mxu1 %vm10115_vm0, %v10114_v34 }
 0x4f4   : > { %8687 = vmatprep.subr.bf16.mxu1 %v10114_v34 }
 0x4fa   : > { %8678 = vmatmul.mubr.msk.bf16.vlgmr.msra.gmra.mrb[48].mxu1 %vm1349_vm1, %v1980_v55 }
 0x4fb   : > { %8689 = vmatprep.mubr.msk.bf16.mxu1 %vm10115_vm0, %v10114_v34 }
 0x50b   : > { %v1549_v56 = vpop.xlane.xlu0 %1548 }
 0x50c   : > { %v1571_v57 = vsub.f32 %v1538_v5, %v1549_v56 }
 0x50e   : > { %v1579_v58 = vmul.f32 1.442695, %v1571_v57 }
 0x50f   : > { %v1561_v39 = vpop.xlane.xlu0 %1560 }
 0x510   : > { %9516 = vpow2.f32 %v1579_v58  ;;  %v1575_v54 = vsub.f32 %v1542_v6, %v1561_v39 }
 0x512   : > { %v1587_v0 = vmul.f32 1.442695, %v1575_v54 }
 0x513   : > { %v1564_v1 = vpop.xlane.xlu0 %1563 }
 0x514   : > { %9518 = vpow2.f32 %v1587_v0  ;;  %v1576_v2 = vsub.f32 %v1543_v16, %v1564_v1 }
 0x516   : > { %v1589_v18 = vmul.f32 1.442695, %v1576_v2 }
 0x517   : > { %v1552_v3 = vpop.xlane.xlu1 %1551 }
 0x518   : > { %v1572_v4 = vsub.f32 %v1539_v20, %v1552_v3 }
 0x51a   : > { %v9517_v8 = vpop.eup %9516  ;;  %v1581_v21 = vmul.f32 1.442695, %v1572_v4 }
 0x51b   : > { %v1595_v22 = vsel %vm1546_vm2, %v9517_v8, 0.0 }
 0x51c   : > { %9520 = vpow2.f32 %v1581_v21  ;;  %1596 = vadd.xlane.f32.xlu0 %v1595_v22 }
 0x51d   : > { %9522 = vpow2.f32 %v1589_v18 }
 0x51e   : > { %v9519_v23 = vpop.eup %9518 }
 0x51f   : > { %v1607_v5 = vsel %vm1546_vm2, %v9519_v23, 0.0 }
 0x520   : > { %1608 = vadd.xlane.f32.xlu0 %v1607_v5 }
 0x526   : > { %v9521_v24 = vpop.eup %9520 }
 0x527   : > { %v1598_v6 = vsel %vm1546_vm2, %v9521_v24, 0.0  ;;  %v9523_v41 = vpop.eup %9522 }
 0x528   : > { %1599 = vadd.xlane.f32.xlu1 %v1598_v6  ;;  %v1610_v16 = vsel %vm1546_vm2, %v9523_v41, 0.0 }
 0x52c   : > { %1611 = vadd.xlane.f32.xlu1 %v1610_v16 }
 0x536   : > { %1823 = vrot.lane.b32.xlu0 %v10564_v51, %s10116_s12 }
 0x53d   : > { %1820 = vrot.lane.b32.xlu1 %v10562_v50, %s10116_s12 }
 0x541   : > { %1929 = vrot.lane.b32.xlu1 %v10595_v26, %s10116_s12 }
 0x545   : > { %1926 = vrot.lane.b32.xlu1 %v10593_v25, %s10116_s12 }
 0x5a9   : > { %v1597_v33 = vpop.xlane.xlu0 %1596 }
 0x5aa   : > { %9524 = vrcp.f32 %v1597_v33 }
 0x5ad   : > { %v10684_v20 = vpop.f32.mrb[36].mxu1  ;;  %v1609_v11 = vpop.xlane.xlu0 %1608 }
 0x5ae   : > { %v8643_v17 = vpop.f32.mrb[37].mxu1 }
 0x5af   : > { %v10686_v27 = vpop.f32.mrb[38].mxu1 }
 0x5b0   : > { %v1816_v28 = vpack.c.bf16 %v10686_v27, %v10684_v20  ;;  %v8644_v19 = vpop.f32.mrb[39].mxu1 }
 0x5b1   : > { %v1824_v22 = vpop.permute.xlu0 %1823 }
 0x5b4   : > { %v9525_v42 = vpop.eup %9524 }
 0x5b5   : > { %v1600_v63 = vpop.xlane.xlu1 %1599  ;;  %v1627_v49 = vmul.f32 %v9525_v42, %v9517_v8 }
 0x5b6   : > { %9526 = vrcp.f32 %v1600_v63 }
 0x5b9   : > { %v1612_v37 = vpop.xlane.xlu1 %1611 }
 0x5ba   : > { %9528 = vrcp.f32 %v1612_v37 }
 0x5bb   : > { %9530 = vrcp.f32 %v1609_v11 }
 0x5bd   : > { %v10690_v40 = vpop.f32.mrb[40].mxu1 }
 0x5be   : > { %v8655_v43 = vpop.f32.mrb[41].mxu1 }
 0x5bf   : > { %v10692_v44 = vpop.f32.mrb[42].mxu1 }
 0x5c0   : > { %v9527_v45 = vpop.eup %9526  ;;  %v8656_v48 = vpop.f32.mrb[43].mxu1 }
 0x5c1   : > { %v1628_v55 = vmul.f32 %v9527_v45, %v9521_v24  ;;  %v1821_v24 = vpop.permute.xlu1 %1820 }
 0x5c3   : > { %v1635_v56 = vpack.c.bf16 %v1628_v55, %v1627_v49 }
 0x5c4   : > { %v9529_v57 = vpop.eup %9528 }
 0x5c5   : > { %8636 = vmatmul.mubr.msk.bf16.vlgmr.msra.gmra.mrb[36].mxu0 %vm1546_vm2, %v1635_v56  ;;  %v1918_v58 = vpop.f32.mrb[44].mxu1  ;;  %v9531_v39 = vpop.eup %9530  ;;  %v1632_v1 = vmul.f32 %v9529_v57, %v9523_v41  ;;  %v1829_v41 = vsel %vm1349_vm1, %v1824_v22, 0 }
 0x5c6   : > { %8646 = vmatpush3.bf16.msra.mxu0 %v10614_v62  ;;  %v2033_v54 = vmul.f32 0.17677669, %v1918_v58  ;;  %v8667_v0 = vpop.f32.mrb[45].mxu1  ;;  %8647 = vmatprep.mubr.msk.bf16.mxu0 %vm10115_vm0, %v10114_v34  ;;  %v1631_v18 = vmul.f32 %v9531_v39, %v9519_v23  ;;  %v1930_v11 = vpop.permute.xlu1 %1929 }
 0x5c7   : > { %v1921_v2 = vpop.f32.mrb[46].mxu1  ;;  %8657 = vmatprep.subr.bf16.mxu0 %v10114_v34  ;;  %v1935_v42 = vsel %vm1349_vm1, %v1930_v11, 0 }
 0x5c8   : > { %v2034_v3 = vmul.f32 0.17677669, %v1921_v2  ;;  %v8668_v4 = vpop.f32.mrb[47].mxu1  ;;  %v2045_v8 = vsel %vm1546_vm2, %v2033_v54, -inf  ;;  %v1637_v5 = vpack.c.bf16 %v1632_v1, %v1631_v18 }
 0x5c9   : > { %2046 = vmax.xlane.f32.xlu0 %v2045_v8 }
 0x5ca   : > { %v2048_v21 = vsel %vm1546_vm2, %v2034_v3, -inf  ;;  %v1927_v43 = vpop.permute.xlu1 %1926 }
 0x5cb   : > { %2049 = vmax.xlane.f32.xlu1 %v2048_v21 }
 0x5cd   : > { %8648 = vmatmul.mubr.msk.bf16.vlgmr.msra.gmra.mrb[40].mxu0 %vm1546_vm2, %v1637_v5  ;;  %v2024_v6 = vpop.f32.mrb[48].mxu1 }
 0x5ce   : > { %v2037_v16 = vmul.f32 0.17677669, %v2024_v6  ;;  %v8679_v17 = vpop.f32.mrb[49].mxu1  ;;  %8659 = vmatprep.mubr.msk.bf16.mxu0 %vm10115_vm0, %v10114_v34 }
 0x5cf   : > { %8658 = vmatpush3.bf16.xpose.msra.mxu0 %v1829_v41  ;;  %v2027_v19 = vpop.f32.mrb[50].mxu1 }
 0x5d0   : > { %v2038_v23 = vmul.f32 0.17677669, %v2027_v19  ;;  %v8680_v33 = vpop.f32.mrb[51].mxu1  ;;  %v2057_v63 = vsel %vm1546_vm2, %v2037_v16, -inf  ;;  %8669 = vmatprep.subr.bf16.mxu0 %v10114_v34 }
 0x5d1   : > { %2058 = vmax.xlane.f32.xlu0 %v2057_v63 }
 0x5d2   : > { %v2060_v37 = vsel %vm1546_vm2, %v2038_v23, -inf }
 0x5d5   : > { %2061 = vmax.xlane.f32.xlu0 %v2060_v37 }
 0x5d6   : > { %8660 = vmatmul.mubr.msk.bf16.vlgmr.msra.gmra.mrb[44].mxu0 %vm1349_vm1, %v1821_v24 }
 0x5d7   : > { %8670 = vmatpush3.bf16.xpose.msra.mxu0 %v1935_v42  ;;  %8671 = vmatprep.mubr.msk.bf16.mxu0 %vm10115_vm0, %v10114_v34 }
 0x5d8   : > { %8681 = vmatprep.subr.bf16.mxu0 %v10114_v34 }
 0x5de   : > { %8672 = vmatmul.mubr.msk.bf16.vlgmr.msra.gmra.mrb[48].mxu0 %vm1349_vm1, %v1927_v43 }
 0x5df   : > { %8683 = vmatprep.mubr.msk.bf16.mxu0 %vm10115_vm0, %v10114_v34 }
 0x656   : > { %v2047_v45 = vpop.xlane.xlu0 %2046 }
 0x657   : > { %v2065_v48 = vsub.f32 %v2033_v54, %v2047_v45 }
 0x658   : > { %v2050_v49 = vpop.xlane.xlu1 %2049 }
 0x659   : > { %v2075_v55 = vmul.f32 1.442695, %v2065_v48  ;;  %v2066_v56 = vsub.f32 %v2034_v3, %v2050_v49 }
 0x65b   : > { %9532 = vpow2.f32 %v2075_v55  ;;  %v2077_v57 = vmul.f32 1.442695, %v2066_v56 }
 0x65d   : > { %9534 = vpow2.f32 %v2077_v57 }
 0x65e   : > { %v2059_v58 = vpop.xlane.xlu0 %2058 }
 0x65f   : > { %v2069_v39 = vsub.f32 %v2037_v16, %v2059_v58 }
 0x661   : > { %v2083_v0 = vmul.f32 1.442695, %v2069_v39 }
 0x662   : > { %v2062_v18 = vpop.xlane.xlu0 %2061 }
 0x663   : > { %9536 = vpow2.f32 %v2083_v0  ;;  %v2070_v21 = vsub.f32 %v2038_v23, %v2062_v18 }
 0x665   : > { %v10718_v1 = vpop.eup %9532  ;;  %v2085_v22 = vmul.f32 1.442695, %v2070_v21 }
 0x666   : > { %v2093_v2 = vsel %vm1546_vm2, %v10718_v1, 0.0 }
 0x667   : > { %v10722_v4 = vpop.eup %9534  ;;  %2094 = vadd.xlane.f32.xlu0 %v2093_v2  ;;  %9538 = vpow2.f32 %v2085_v22 }
 0x668   : > { %v2096_v54 = vsel %vm1546_vm2, %v10722_v4, 0.0 }
 0x669   : > { %2097 = vadd.xlane.f32.xlu1 %v2096_v54 }
 0x66d   : > { %v10726_v3 = vpop.eup %9536 }
 0x66e   : > { %v2105_v8 = vsel %vm1546_vm2, %v10726_v3, 0.0 }
 0x66f   : > { %2106 = vadd.xlane.f32.xlu0 %v2105_v8 }
 0x671   : > { %v9539_v6 = vpop.eup %9538 }
 0x672   : > { %v2108_v19 = vsel %vm1546_vm2, %v9539_v6, 0.0 }
 0x67a   : > { %2276 = vrot.lane.b32.xlu1 %v10610_v60, %s10116_s12 }
 0x685   : > { %2180 = vrot.lane.b32.xlu0 %v10576_v13, %s10116_s12 }
 0x689   : > { %2558 = vrot.lane.b32.xlu0 %v10578_v14, %s10117_s21 }
 0x68d   : > { %2609 = vrot.lane.b32.xlu0 %v10595_v26, %s10117_s21 }
 0x691   : > { %2660 = vrot.lane.b32.xlu0 %v10612_v61, %s10117_s21 }
 0x698   : > { %v10740_v5 = vpop.f32.mrb[36].mxu0 }
 0x699   : > { %v8637_v24 = vpop.f32.mrb[37].mxu0 }
 0x69a   : > { %v10742_v41 = vpop.f32.mrb[38].mxu0 }
 0x69b   : > { %v1815_v16 = vpack.c.bf16 %v10742_v41, %v10740_v5  ;;  %v8638_v17 = vpop.f32.mrb[39].mxu0 }
 0x69e   : > { %2109 = vadd.xlane.f32.xlu1 %v2108_v19 }
 0x6a0   : > { %v10747_v23 = vpop.f32.mrb[40].mxu0 }
 0x6a1   : > { %v8649_v33 = vpop.f32.mrb[41].mxu0 }
 0x6a2   : > { %v10749_v63 = vpop.f32.mrb[42].mxu0 }
 0x6a3   : > { %v8650_v37 = vpop.f32.mrb[43].mxu0 }
 0x6a9   : > { %v1865_v42 = vpop.f32.mrb[44].mxu0 }
 0x6aa   : > { %v8661_v43 = vpop.f32.mrb[45].mxu0  ;;  %v2031_v45 = vmul.f32 0.17677669, %v1865_v42 }
 0x6ab   : > { %v1868_v48 = vpop.f32.mrb[46].mxu0 }
 0x6ac   : > { %v8662_v49 = vpop.f32.mrb[47].mxu0  ;;  %v2039_v55 = vsel %vm1546_vm2, %v2031_v45, -inf  ;;  %v10769_v18 = vmul.f32 0.17677669, %v1868_v48 }
 0x6ae   : > { %v2042_v21 = vsel %vm1546_vm2, %v10769_v18, -inf }
 0x6af   : > { %2507 = vrot.lane.b32.xlu1 %v10564_v51, %s10117_s21 }
 0x6b0   : > { %2040 = vmax.xlane.f32.xlu0 %v2039_v55 }
 0x6b1   : > { %v1971_v56 = vpop.f32.mrb[48].mxu0 }
 0x6b2   : > { %v2035_v57 = vmul.f32 0.17677669, %v1971_v56  ;;  %v8673_v58 = vpop.f32.mrb[49].mxu0 }
 0x6b3   : > { %v1974_v39 = vpop.f32.mrb[50].mxu0  ;;  %2505 = vrot.lane.b32.xlu1 %v10562_v50, %s10117_s21 }
 0x6b4   : > { %v10758_v0 = vmul.f32 0.17677669, %v1974_v39  ;;  %v8674_v2 = vpop.f32.mrb[51].mxu0  ;;  %v2051_v54 = vsel %vm1546_vm2, %v2035_v57, -inf }
 0x6b5   : > { %2052 = vmax.xlane.f32.xlu0 %v2051_v54 }
 0x6b6   : > { %v2054_v8 = vsel %vm1546_vm2, %v10758_v0, -inf }
 0x6b7   : > { %2556 = vrot.lane.b32.xlu1 %v10574_v9, %s10117_s21 }
 0x6b9   : > { %2055 = vmax.xlane.f32.xlu0 %v2054_v8 }
 0x6bb   : > { %2607 = vrot.lane.b32.xlu1 %v10593_v25, %s10117_s21 }
 0x6bf   : > { %2658 = vrot.lane.b32.xlu1 %v10608_v59, %s10117_s21 }
 0x6e3   : > { %2043 = vmax.xlane.f32.xlu1 %v2042_v21 }
 0x6f4   : > { %v2095_v22 = vpop.xlane.xlu0 %2094 }
 0x6f5   : > { %9540 = vrcp.f32 %v2095_v22 }
 0x6f6   : > { %v2098_v24 = vpop.xlane.xlu1 %2097 }
 0x6f7   : > { %9542 = vrcp.f32 %v2098_v24 }
 0x6fa   : > { %v2277_v49 = vpop.permute.xlu1 %2276 }
 0x6fc   : > { %v2107_v17 = vpop.xlane.xlu0 %2106 }
 0x6fd   : > { %9544 = vrcp.f32 %v2107_v17 }
 0x6ff   : > { %v9541_v19 = vpop.eup %9540 }
 0x700   : > { %v2181_v33 = vpop.permute.xlu0 %2180  ;;  %v2121_v42 = vmul.f32 %v9541_v19, %v10718_v1 }
 0x701   : > { %v9543_v37 = vpop.eup %9542  ;;  %8688 = vmatpush3.bf16.msra.mxu1 %v2181_v33 }
 0x702   : > { %v2122_v43 = vmul.f32 %v9543_v37, %v10722_v4  ;;  %8699 = vmatprep.subr.bf16.mxu1 %v10114_v34 }
 0x704   : > { %v2128_v48 = vpack.c.bf16 %v2122_v43, %v2121_v42  ;;  %v2559_v56 = vpop.permute.xlu0 %2558 }
 0x706   : > { %8690 = vmatmul.mubr.msk.bf16.vlgmr.msra.gmra.mrb[52].mxu1 %vm1546_vm2, %v2128_v48 }
 0x707   : > { %8700 = vmatpush3.bf16.msra.mxu1 %v2277_v49  ;;  %8701 = vmatprep.mubr.msk.bf16.mxu1 %vm10115_vm0, %v10114_v34  ;;  %v9545_v1 = vpop.eup %9544 }
 0x708   : > { %8729 = vmatprep.subr.bf16.mxu1 %v10114_v34  ;;  %v2610_v58 = vpop.permute.xlu0 %2609  ;;  %v2125_v4 = vmul.f32 %v9545_v1, %v10726_v3 }
 0x70c   : > { %v2661_v8 = vpop.permute.xlu0 %2660 }
 0x72b   : > { %v2110_v55 = vpop.xlane.xlu1 %2109 }
 0x72c   : > { %9546 = vrcp.f32 %v2110_v55 }
 0x72f   : > { %v2508_v54 = vpop.permute.xlu1 %2507 }
 0x730   : > { %v2513_v22 = vsel %vm1349_vm1, %v2508_v54, 0 }
 0x733   : > { %v2506_v33 = vpop.permute.xlu1 %2505 }
 0x736   : > { %v9547_v39 = vpop.eup %9546 }
 0x737   : > { %v2126_v2 = vmul.f32 %v9547_v39, %v9539_v6  ;;  %v2564_v6 = vsel %vm1349_vm1, %v2559_v56, 0  ;;  %v2557_v43 = vpop.permute.xlu1 %2556 }
 0x739   : > { %v2130_v21 = vpack.c.bf16 %v2126_v2, %v2125_v4 }
 0x73b   : > { %8702 = vmatmul.mubr.msk.bf16.vlgmr.msra.gmra.mrb[56].mxu1 %vm1546_vm2, %v2130_v21  ;;  %v2608_v55 = vpop.permute.xlu1 %2607 }
 0x73c   : > { %8730 = vmatpush3.bf16.xpose.msra.mxu1 %v2513_v22  ;;  %8731 = vmatprep.mubr.msk.bf16.mxu1 %vm10115_vm0, %v10114_v34 }
 0x73d   : > { %v2041_v24 = vpop.xlane.xlu0 %2040  ;;  %8735 = vmatprep.subr.bf16.mxu1 %v10114_v34 }
 0x73e   : > { %v2063_v17 = vsub.f32 %v2031_v45, %v2041_v24  ;;  %v2615_v45 = vsel %vm1349_vm1, %v2610_v58, 0  ;;  %v2666_v58 = vsel %vm1349_vm1, %v2661_v8, 0 }
 0x73f   : > { %v2659_v1 = vpop.permute.xlu1 %2658 }
 0x740   : > { %v2071_v19 = vmul.f32 1.442695, %v2063_v17 }
 0x742   : > { %9548 = vpow2.f32 %v2071_v19  ;;  %v2053_v3 = vpop.xlane.xlu0 %2052 }
 0x743   : > { %v2067_v37 = vsub.f32 %v2035_v57, %v2053_v3  ;;  %8732 = vmatmul.mubr.msk.bf16.vlgmr.msra.gmra.mrb[60].mxu1 %vm1349_vm1, %v2506_v33 }
 0x744   : > { %8736 = vmatpush3.bf16.xpose.msra.mxu1 %v2564_v6  ;;  %8737 = vmatprep.mubr.msk.bf16.mxu1 %vm10115_vm0, %v10114_v34 }
 0x745   : > { %v2079_v42 = vmul.f32 1.442695, %v2067_v37  ;;  %8741 = vmatprep.subr.bf16.mxu1 %v10114_v34 }
 0x746   : > { %v2056_v39 = vpop.xlane.xlu0 %2055 }
 0x747   : > { %9550 = vpow2.f32 %v2079_v42  ;;  %v2068_v4 = vsub.f32 %v10758_v0, %v2056_v39 }
 0x749   : > { %v2081_v8 = vmul.f32 1.442695, %v2068_v4 }
 0x74b   : > { %8738 = vmatmul.mubr.msk.bf16.vlgmr.msra.gmra.mrb[64].mxu1 %vm1349_vm1, %v2557_v43 }
 0x74c   : > { %v10793_v48 = vpop.eup %9548  ;;  %8742 = vmatpush3.bf16.xpose.msra.mxu1 %v2615_v45  ;;  %8743 = vmatprep.mubr.msk.bf16.mxu1 %vm10115_vm0, %v10114_v34 }
 0x74d   : > { %v2087_v57 = vsel %vm1546_vm2, %v10793_v48, 0.0  ;;  %8747 = vmatprep.subr.bf16.mxu1 %v10114_v34 }
 0x74e   : > { %2088 = vadd.xlane.f32.xlu0 %v2087_v57 }
 0x751   : > { %v10800_v49 = vpop.eup %9550 }
 0x752   : > { %v2099_v56 = vsel %vm1546_vm2, %v10800_v49, 0.0 }
 0x753   : > { %2100 = vadd.xlane.f32.xlu0 %v2099_v56  ;;  %8744 = vmatmul.mubr.msk.bf16.vlgmr.msra.gmra.mrb[68].mxu1 %vm1349_vm1, %v2608_v55 }
 0x754   : > { %8748 = vmatpush3.bf16.xpose.msra.mxu1 %v2666_v58  ;;  %8749 = vmatprep.mubr.msk.bf16.mxu1 %vm10115_vm0, %v10114_v34 }
 0x755   : > { %8759 = vmatprep.subr.bf16.mxu1 %v10114_v34 }
 0x75b   : > { %8750 = vmatmul.mubr.msk.bf16.vlgmr.msra.gmra.mrb[72].mxu1 %vm1349_vm1, %v2659_v1 }
 0x75c   : > { %8761 = vmatprep.mubr.msk.bf16.mxu1 %vm10115_vm0, %v10114_v34 }
 0x769   : > { %2132 = vrot.lane.b32.xlu0 %v10580_v15, %s10116_s12 }
 0x770   : > { %v2044_v2 = vpop.xlane.xlu1 %2043 }
 0x771   : > { %v2064_v54 = vsub.f32 %v10769_v18, %v2044_v2 }
 0x773   : > { %v2073_v21 = vmul.f32 1.442695, %v2064_v54 }
 0x775   : > { %9552 = vpow2.f32 %v2073_v21 }
 0x776   : > { %9554 = vpow2.f32 %v2081_v8 }
 0x77f   : > { %v9553_v22 = vpop.eup %9552 }
 0x780   : > { %v2090_v24 = vsel %vm1546_vm2, %v9553_v22, 0.0  ;;  %v9555_v17 = vpop.eup %9554 }
 0x781   : > { %2091 = vadd.xlane.f32.xlu1 %v2090_v24  ;;  %v2102_v19 = vsel %vm1546_vm2, %v9555_v17, 0.0 }
 0x785   : > { %2103 = vadd.xlane.f32.xlu1 %v2102_v19 }
 0x796   : > { %2228 = vrot.lane.b32.xlu1 %v10614_v62, %s10116_s12 }
 0x7d9   : > { %v10820_v33 = vpop.f32.mrb[52].mxu1 }
 0x7da   : > { %v8691_v0 = vpop.f32.mrb[53].mxu1 }
 0x7db   : > { %v2089_v3 = vpop.xlane.xlu0 %2088  ;;  %v10822_v18 = vpop.f32.mrb[54].mxu1 }
 0x7dc   : > { %v2324_v6 = vpack.c.bf16 %v10822_v18, %v10820_v33  ;;  %v8692_v37 = vpop.f32.mrb[55].mxu1  ;;  %9556 = vrcp.f32 %v2089_v3  ;;  %v12122_v33 = vpack.c.bf16 %v10749_v63, %v10747_v23  ;;  %v12123_v18 = vpack.c.bf16 %v10692_v44, %v10690_v40 }
 0x7e0   : > { %v2101_v42 = vpop.xlane.xlu0 %2100 }
 0x7e4   : > { %v2133_v43 = vpop.permute.xlu0 %2132 }
 0x7e5   : > { %8682 = vmatpush3.bf16.msra.mxu0 %v2133_v43 }
 0x7e6   : > { %8693 = vmatprep.subr.bf16.mxu0 %v10114_v34  ;;  %v9557_v2 = vpop.eup %9556 }
 0x7e7   : > { %v2119_v37 = vmul.f32 %v9557_v2, %v10793_v48 }
 0x80e   : > { %v2092_v45 = vpop.xlane.xlu1 %2091  ;;  %v10827_v57 = vpop.f32.mrb[56].mxu1 }
 0x80f   : > { %9558 = vrcp.f32 %v2092_v45  ;;  %v8703_v55 = vpop.f32.mrb[57].mxu1 }
 0x810   : > { %v10829_v56 = vpop.f32.mrb[58].mxu1 }
 0x811   : > { %v2326_v58 = vpack.c.bf16 %v10829_v56, %v10827_v57  ;;  %v8704_v1 = vpop.f32.mrb[59].mxu1 }
 0x812   : > { %v2104_v39 = vpop.xlane.xlu1 %2103 }
 0x813   : > { %9560 = vrcp.f32 %v2104_v39 }
 0x814   : > { %9562 = vrcp.f32 %v2101_v42 }
 0x816   : > { %v2549_v4 = vpop.f32.mrb[60].mxu1  ;;  %v2229_v1 = vpop.permute.xlu1 %2228 }
 0x817   : > { %v10833_v54 = vmul.f32 0.17677669, %v2549_v4  ;;  %v8733_v8 = vpop.f32.mrb[61].mxu1 }
 0x818   : > { %v2552_v21 = vpop.f32.mrb[62].mxu1 }
 0x819   : > { %v9559_v24 = vpop.eup %9558  ;;  %v10835_v19 = vmul.f32 0.17677669, %v2552_v21  ;;  %v8734_v0 = vpop.f32.mrb[63].mxu1  ;;  %v2717_v3 = vsel %vm1546_vm2, %v10833_v54, -inf }
 0x81a   : > { %v2120_v43 = vmul.f32 %v9559_v24, %v9553_v22  ;;  %2718 = vmax.xlane.f32.xlu1 %v2717_v3 }
 0x81b   : > { %v2720_v42 = vsel %vm1546_vm2, %v10835_v19, -inf }
 0x81c   : > { %2721 = vmax.xlane.f32.xlu0 %v2720_v42  ;;  %v2127_v45 = vpack.c.bf16 %v2120_v43, %v2119_v37 }
 0x81d   : > { %v9561_v55 = vpop.eup %9560 }
 0x81e   : > { %8684 = vmatmul.mubr.msk.bf16.vlgmr.msra.gmra.mrb[52].mxu0 %vm1546_vm2, %v2127_v45  ;;  %v2600_v39 = vpop.f32.mrb[64].mxu1  ;;  %v9563_v4 = vpop.eup %9562  ;;  %v2124_v48 = vmul.f32 %v9561_v55, %v9555_v17 }
 0x81f   : > { %8694 = vmatpush3.bf16.msra.mxu0 %v2229_v1  ;;  %v2711_v8 = vmul.f32 0.17677669, %v2600_v39  ;;  %v8739_v21 = vpop.f32.mrb[65].mxu1  ;;  %8695 = vmatprep.mubr.msk.bf16.mxu0 %vm10115_vm0, %v10114_v34  ;;  %v2123_v3 = vmul.f32 %v9563_v4, %v10800_v49 }
 0x820   : > { %v2603_v22 = vpop.f32.mrb[66].mxu1 }
 0x821   : > { %v2712_v2 = vmul.f32 0.17677669, %v2603_v22  ;;  %v8740_v24 = vpop.f32.mrb[67].mxu1  ;;  %v2723_v0 = vsel %vm1546_vm2, %v2711_v8, -inf  ;;  %v2129_v43 = vpack.c.bf16 %v2124_v48, %v2123_v3 }
 0x822   : > { %2724 = vmax.xlane.f32.xlu0 %v2723_v0 }
 0x823   : > { %v2726_v37 = vsel %vm1546_vm2, %v2712_v2, -inf }
 0x824   : > { %2727 = vmax.xlane.f32.xlu1 %v2726_v37 }
 0x826   : > { %8696 = vmatmul.mubr.msk.bf16.vlgmr.msra.gmra.mrb[56].mxu0 %vm1546_vm2, %v2129_v43  ;;  %v2651_v42 = vpop.f32.mrb[68].mxu1 }
 0x827   : > { %v2713_v45 = vmul.f32 0.17677669, %v2651_v42  ;;  %v8745_v1 = vpop.f32.mrb[69].mxu1  ;;  %v9372_v42 = vld [vmem:[#allocation10 + $0x10] sm:$0xff]  }
 0x828   : > { %v2654_v39 = vpop.f32.mrb[70].mxu1  ;;  %8705 = vmatprep.subr.bf16.mxu0 %v9372_v42  ;;  %v9373_v1 = vld [vmem:[#allocation10 + $0x18] sm:$0xff]  }
 0x829   : > { %v2714_v21 = vmul.f32 0.17677669, %v2654_v39  ;;  %v8746_v17 = vpop.f32.mrb[71].mxu1  ;;  %v2729_v55 = vsel %vm1546_vm2, %v2713_v45, -inf  ;;  %8706 = vmatpush3.bf16.msra.mxu0 %v9372_v42  ;;  %v10856_v39 = vld [vmem:[#allocation10] sm:$0xff]  }
 0x82a   : > { %2730 = vmax.xlane.f32.xlu0 %v2729_v55  ;;  %8707 = vmatprep.subr.bf16.mxu0 %v9373_v1 }
 0x82b   : > { %v2732_v22 = vsel %vm1546_vm2, %v2714_v21, -inf }
 0x82c   : > { %2733 = vmax.xlane.f32.xlu1 %v2732_v22 }
 0x82d   : > { %8708 = vmatpush3.bf16.msra.mxu0 %v9373_v1 }
 0x82e   : > { %v2702_v49 = vpop.f32.mrb[72].mxu1  ;;  %8717 = vmatprep.subr.bf16.mxu0 %v10856_v39 }
 0x82f   : > { %v2715_v4 = vmul.f32 0.17677669, %v2702_v49  ;;  %v8751_v24 = vpop.f32.mrb[73].mxu1 }
 0x830   : > { %v2705_v0 = vpop.f32.mrb[74].mxu1 }
 0x831   : > { %v10851_v37 = vmul.f32 0.17677669, %v2705_v0  ;;  %v8752_v48 = vpop.f32.mrb[75].mxu1  ;;  %v2735_v3 = vsel %vm1546_vm2, %v2715_v4, -inf }
 0x832   : > { %2736 = vmax.xlane.f32.xlu0 %v2735_v3 }
 0x833   : > { %v2738_v43 = vsel %vm1546_vm2, %v10851_v37, -inf }
 0x834   : > { %2739 = vmax.xlane.f32.xlu1 %v2738_v43 }
 0x8a7   : > { %v2719_v17 = vpop.xlane.xlu1 %2718 }
 0x8a8   : > { %v2741_v55 = vsub.f32 %v10833_v54, %v2719_v17 }
 0x8a9   : > { %v2722_v22 = vpop.xlane.xlu0 %2721 }
 0x8aa   : > { %v2749_v49 = vmul.f32 1.442695, %v2741_v55  ;;  %v2742_v24 = vsub.f32 %v10835_v19, %v2722_v22 }
 0x8ac   : > { %9564 = vpow2.f32 %v2749_v49  ;;  %v2751_v0 = vmul.f32 1.442695, %v2742_v24 }
 0x8ae   : > { %9566 = vpow2.f32 %v2751_v0 }
 0x8af   : > { %v2725_v48 = vpop.xlane.xlu0 %2724 }
 0x8b0   : > { %v2743_v3 = vsub.f32 %v2711_v8, %v2725_v48 }
 0x8b1   : > { %v2728_v43 = vpop.xlane.xlu1 %2727 }
 0x8b2   : > { %v2753_v42 = vmul.f32 1.442695, %v2743_v3  ;;  %v2744_v7 = vsub.f32 %v2712_v2, %v2728_v43 }
 0x8b4   : > { %9568 = vpow2.f32 %v2753_v42  ;;  %v2755_v1 = vmul.f32 1.442695, %v2744_v7 }
 0x8b6   : > { %v10861_v46 = vpop.eup %9564  ;;  %9570 = vpow2.f32 %v2755_v1 }
 0x8b7   : > { %v2731_v11 = vpop.xlane.xlu0 %2730  ;;  %v2765_v54 = vsel %vm1546_vm2, %v10861_v46, 0.0 }
 0x8b8   : > { %v10865_v17 = vpop.eup %9566  ;;  %v2745_v19 = vsub.f32 %v2713_v45, %v2731_v11  ;;  %2766 = vadd.xlane.f32.xlu0 %v2765_v54 }
 0x8b9   : > { %v2734_v55 = vpop.xlane.xlu1 %2733  ;;  %v2768_v8 = vsel %vm1546_vm2, %v10865_v17, 0.0 }
 0x8ba   : > { %v2757_v22 = vmul.f32 1.442695, %v2745_v19  ;;  %v2746_v49 = vsub.f32 %v2714_v21, %v2734_v55  ;;  %2769 = vadd.xlane.f32.xlu1 %v2768_v8 }
 0x8bc   : > { %9572 = vpow2.f32 %v2757_v22  ;;  %v2759_v7 = vmul.f32 1.442695, %v2746_v49 }
 0x8be   : > { %v10869_v2 = vpop.eup %9568  ;;  %9574 = vpow2.f32 %v2759_v7 }
 0x8bf   : > { %v2737_v24 = vpop.xlane.xlu0 %2736  ;;  %v2771_v0 = vsel %vm1546_vm2, %v10869_v2, 0.0 }
 0x8c0   : > { %v10873_v48 = vpop.eup %9570  ;;  %v2747_v11 = vsub.f32 %v2715_v4, %v2737_v24  ;;  %2772 = vadd.xlane.f32.xlu0 %v2771_v0 }
 0x8c1   : > { %v2774_v45 = vsel %vm1546_vm2, %v10873_v48, 0.0  ;;  %v2740_v19 = vpop.xlane.xlu1 %2739 }
 0x8c2   : > { %v2761_v3 = vmul.f32 1.442695, %v2747_v11  ;;  %2775 = vadd.xlane.f32.xlu1 %v2774_v45  ;;  %v2748_v55 = vsub.f32 %v10851_v37, %v2740_v19  ;;  %v9375_v11 = vld [vmem:[#allocation10 + $0x8] sm:$0xff]  }
 0x8c4   : > { %9576 = vpow2.f32 %v2761_v3  ;;  %v2763_v8 = vmul.f32 1.442695, %v2748_v55 }
 0x8c6   : > { %v10877_v21 = vpop.eup %9572  ;;  %9578 = vpow2.f32 %v2763_v8 }
 0x8c7   : > { %v2777_v43 = vsel %vm1546_vm2, %v10877_v21, 0.0 }
 0x8c8   : > { %v10881_v42 = vpop.eup %9574  ;;  %2778 = vadd.xlane.f32.xlu0 %v2777_v43 }
 0x8c9   : > { %v2780_v1 = vsel %vm1546_vm2, %v10881_v42, 0.0 }
 0x8ca   : > { %2781 = vadd.xlane.f32.xlu1 %v2780_v1 }
 0x8ce   : > { %v10885_v4 = vpop.eup %9576 }
 0x8cf   : > { %v2783_v54 = vsel %vm1546_vm2, %v10885_v4, 0.0 }
 0x8d0   : > { %2784 = vadd.xlane.f32.xlu0 %v2783_v54  ;;  %v10912_v3 = vpop.eup %9578 }
 0x8db   : > { %2856 = vrot.lane.b32.xlu1 %v10576_v13, %s10117_s21 }
 0x8df   : > { %2903 = vrot.lane.b32.xlu1 %v10614_v62, %s10117_s21 }
 0x8e6   : > { %2809 = vrot.lane.b32.xlu0 %v10580_v15, %s10117_s21 }
 0x8ea   : > { %3100 = vrot.lane.b32.xlu0 %v10564_v51, %s10118_s30 }
 0x8ee   : > { %3151 = vrot.lane.b32.xlu0 %v10578_v14, %s10118_s30 }
 0x8f1   : > { %v2172_v22 = vpop.f32.mrb[52].mxu0 }
 0x8f2   : > { %v8685_v49 = vpop.f32.mrb[53].mxu0  ;;  %3202 = vrot.lane.b32.xlu0 %v10595_v26, %s10118_s30 }
 0x8f3   : > { %v2175_v7 = vpop.f32.mrb[54].mxu0 }
 0x8f4   : > { %v2323_v24 = vpack.c.bf16 %v2175_v7, %v2172_v22  ;;  %v8686_v0 = vpop.f32.mrb[55].mxu0 }
 0x8f6   : > { %8709 = vmatprep.mubr.msk.bf16.mxu0 %vm1349_vm1, %v2323_v24  ;;  %3200 = vrot.lane.b32.xlu0 %v10593_v25, %s10118_s30  ;;  %v2786_v25 = vsel %vm1546_vm2, %v10912_v3, 0.0 }
 0x8f7   : > { %8710 = vmatmul.mubr.msk.bf16.vlgmr.msra.gmra.mrb[60].mxu0 %vm1349_vm1, %v2324_v6 }
 0x8f8   : > { %8718 = vmatpush3.bf16.msra.mxu0 %v10856_v39 }
 0x8f9   : > { %v2268_v51 = vpop.f32.mrb[56].mxu0  ;;  %8719 = vmatprep.subr.bf16.mxu0 %v9375_v11 }
 0x8fa   : > { %v8697_v14 = vpop.f32.mrb[57].mxu0 }
 0x8fb   : > { %v2271_v26 = vpop.f32.mrb[58].mxu0 }
 0x8fc   : > { %v2325_v37 = vpack.c.bf16 %v2271_v26, %v2268_v51  ;;  %v8698_v45 = vpop.f32.mrb[59].mxu0  ;;  %8720 = vmatpush3.bf16.msra.mxu0 %v9375_v11 }
 0x8fd   : > { %8753 = vmatprep.subr.bf16.mxu0 %v10114_v34 }
 0x8fe   : > { %8713 = vmatprep.mubr.msk.bf16.mxu0 %vm1349_vm1, %v2325_v37  ;;  %v9377_v37 = vld [vmem:[#allocation10 + $0x28] sm:$0xff]  }
 0x8ff   : > { %8714 = vmatmul.mubr.msk.bf16.gmra.mrb[64].mxu0 %vm1349_vm1, %v2326_v58 }
 0x900   : > { %8721 = vmatprep.mubr.msk.bf16.mxu0 %vm1349_vm1, %v1815_v16 }
 0x903   : > { %2787 = vadd.xlane.f32.xlu1 %v2786_v25 }
 0x907   : > { %8722 = vmatmul.mubr.msk.bf16.vlgmr.msra.gmra.mrb[60].mxu0 %vm1349_vm1, %v1816_v28 }
 0x908   : > { %8725 = vmatprep.mubr.msk.bf16.mxu0 %vm1349_vm1, %v12122_v33 }
 0x90f   : > { %8726 = vmatmul.mubr.msk.bf16.gmra.mrb[64].mxu0 %vm1349_vm1, %v12123_v18 }
 0x910   : > { %8755 = vmatprep.mubr.msk.bf16.mxu0 %vm10115_vm0, %v10114_v34 }
 0x914   : > { %2950 = vrot.lane.b32.xlu1 %v10610_v60, %s10117_s21 }
 0x918   : > { %3098 = vrot.lane.b32.xlu1 %v10562_v50, %s10118_s30 }
 0x91c   : > { %3149 = vrot.lane.b32.xlu1 %v10574_v9, %s10118_s30 }
 0x920   : > { %3253 = vrot.lane.b32.xlu1 %v10612_v61, %s10118_s30 }
 0x924   : > { %3251 = vrot.lane.b32.xlu1 %v10608_v59, %s10118_s30 }
 0x945   : > { %v2767_v20 = vpop.xlane.xlu0 %2766 }
 0x947   : > { %v2770_v27 = vpop.xlane.xlu1 %2769 }
 0x94d   : > { %v2773_v28 = vpop.xlane.xlu0 %2772 }
 0x94e   : > { %9580 = vrcp.f32 %v2773_v28 }
 0x94f   : > { %v2776_v40 = vpop.xlane.xlu1 %2775 }
 0x950   : > { %9582 = vrcp.f32 %v2776_v40 }
 0x951   : > { %9584 = vrcp.f32 %v2770_v27 }
 0x952   : > { %9586 = vrcp.f32 %v2767_v20 }
 0x955   : > { %v2779_v50 = vpop.xlane.xlu0 %2778 }
 0x957   : > { %v2782_v44 = vpop.xlane.xlu1 %2781 }
 0x958   : > { %v9581_v5 = vpop.eup %9580  ;;  %9588 = vrcp.f32 %v2782_v44 }
 0x959   : > { %v2799_v9 = vmul.f32 %v9581_v5, %v10869_v2  ;;  %9590 = vrcp.f32 %v2779_v50  ;;  %v9376_v2 = vld [vmem:[#allocation10 + $0x20] sm:$0xff]  }
 0x95a   : > { %v9583_v41 = vpop.eup %9582 }
 0x95b   : > { %v2800_v61 = vmul.f32 %v9583_v41, %v10873_v48  ;;  %v2857_v16 = vpop.permute.xlu1 %2856  ;;  %v9585_v23 = vpop.eup %9584 }
 0x95c   : > { %8760 = vmatpush3.bf16.msra.mxu1 %v2857_v16  ;;  %v9587_v6 = vpop.eup %9586  ;;  %v2798_v57 = vmul.f32 %v9585_v23, %v10865_v17 }
 0x95d   : > { %v2785_v59 = vpop.xlane.xlu0 %2784  ;;  %v2806_v63 = vpack.c.bf16 %v2800_v61, %v2799_v9  ;;  %8771 = vmatprep.subr.bf16.mxu1 %v10114_v34  ;;  %v2797_v56 = vmul.f32 %v9587_v6, %v10861_v46 }
 0x95e   : > { %9592 = vrcp.f32 %v2785_v59 }
 0x95f   : > { %8762 = vmatmul.mubr.msk.bf16.vlgmr.msra.gmra.mrb[76].mxu1 %vm1546_vm2, %v2806_v63  ;;  %v2805_v39 = vpack.c.bf16 %v2798_v57, %v2797_v56  ;;  %v2904_v43 = vpop.permute.xlu1 %2903 }
 0x960   : > { %8773 = vmatprep.mubr.msk.bf16.mxu1 %vm10115_vm0, %v10114_v34 }
 0x961   : > { %v2810_v58 = vpop.permute.xlu0 %2809 }
 0x962   : > { %8754 = vmatpush3.bf16.msra.mxu0 %v2810_v58  ;;  %v9589_v48 = vpop.eup %9588 }
 0x963   : > { %8765 = vmatprep.subr.bf16.mxu0 %v10114_v34  ;;  %v9591_v1 = vpop.eup %9590  ;;  %v2802_v17 = vmul.f32 %v9589_v48, %v10881_v42 }
 0x964   : > { %v2801_v46 = vmul.f32 %v9591_v1, %v10877_v21 }
 0x965   : > { %8756 = vmatmul.mubr.msk.bf16.vlgmr.msra.gmra.mrb[68].mxu0 %vm1546_vm2, %v2805_v39  ;;  %v3101_v7 = vpop.permute.xlu0 %3100 }
 0x966   : > { %8766 = vmatpush3.bf16.msra.mxu0 %v2904_v43  ;;  %8767 = vmatprep.mubr.msk.bf16.mxu0 %vm10115_vm0, %v10114_v34  ;;  %v2807_v54 = vpack.c.bf16 %v2802_v17, %v2801_v46  ;;  %v3106_v21 = vsel %vm1349_vm1, %v3101_v7, 0 }
 0x967   : > { %8777 = vmatprep.subr.bf16.mxu0 %v9376_v2 }
 0x968   : > { %v9593_v8 = vpop.eup %9592 }
 0x969   : > { %v2803_v49 = vmul.f32 %v9593_v8, %v10885_v4  ;;  %v3152_v11 = vpop.permute.xlu0 %3151 }
 0x96a   : > { %v3157_v14 = vsel %vm1349_vm1, %v3152_v11, 0 }
 0x96d   : > { %8768 = vmatmul.mubr.msk.bf16.vlgmr.msra.gmra.mrb[72].mxu0 %vm1546_vm2, %v2807_v54  ;;  %v3203_v44 = vpop.permute.xlu0 %3202 }
 0x96e   : > { %8778 = vmatpush3.bf16.msra.mxu0 %v9376_v2  ;;  %v3208_v41 = vsel %vm1349_vm1, %v3203_v44, 0 }
 0x96f   : > { %8779 = vmatprep.subr.bf16.mxu0 %v9377_v37 }
 0x971   : > { %v3201_v54 = vpop.permute.xlu0 %3200 }
 0x972   : > { %8780 = vmatpush3.bf16.msra.mxu0 %v9377_v37 }
 0x973   : > { %8801 = vmatprep.subr.bf16.mxu0 %v10114_v34 }
 0x990   : > { %v2788_v19 = vpop.xlane.xlu1 %2787 }
 0x991   : > { %9594 = vrcp.f32 %v2788_v19 }
 0x994   : > { %v2951_v55 = vpop.permute.xlu1 %2950 }
 0x995   : > { %8772 = vmatpush3.bf16.msra.mxu1 %v2951_v55 }
 0x996   : > { %8789 = vmatprep.subr.bf16.mxu1 %v10114_v34 }
 0x998   : > { %v3099_v0 = vpop.permute.xlu1 %3098 }
 0x99b   : > { %v9595_v22 = vpop.eup %9594 }
 0x99c   : > { %v2804_v42 = vmul.f32 %v9595_v22, %v10912_v3  ;;  %v3150_v51 = vpop.permute.xlu1 %3149 }
 0x99e   : > { %v2808_v24 = vpack.c.bf16 %v2804_v42, %v2803_v49 }
 0x9a0   : > { %8774 = vmatmul.mubr.msk.bf16.vlgmr.msra.gmra.mrb[80].mxu1 %vm1546_vm2, %v2808_v24  ;;  %v3254_v4 = vpop.permute.xlu1 %3253 }
 0x9a1   : > { %8790 = vmatpush3.bf16.xpose.msra.mxu1 %v3106_v21  ;;  %8791 = vmatprep.mubr.msk.bf16.mxu1 %vm10115_vm0, %v10114_v34  ;;  %v3259_v26 = vsel %vm1349_vm1, %v3254_v4, 0 }
 0x9a2   : > { %8795 = vmatprep.subr.bf16.mxu1 %v10114_v34 }
 0x9a4   : > { %v3252_v45 = vpop.permute.xlu1 %3251 }
 0x9a8   : > { %8792 = vmatmul.mubr.msk.bf16.vlgmr.msra.gmra.mrb[84].mxu1 %vm1349_vm1, %v3099_v0 }
 0x9a9   : > { %8796 = vmatpush3.bf16.xpose.msra.mxu1 %v3157_v14  ;;  %8797 = vmatprep.mubr.msk.bf16.mxu1 %vm10115_vm0, %v10114_v34 }
 0x9aa   : > { %8807 = vmatprep.subr.bf16.mxu1 %v10114_v34 }
 0x9b0   : > { %8798 = vmatmul.mubr.msk.bf16.vlgmr.msra.gmra.mrb[88].mxu1 %vm1349_vm1, %v3150_v51 }
 0x9b1   : > { %8808 = vmatpush3.bf16.xpose.msra.mxu1 %v3259_v26  ;;  %8809 = vmatprep.mubr.msk.bf16.mxu1 %vm10115_vm0, %v10114_v34 }
 0x9b2   : > { %8819 = vmatprep.subr.bf16.mxu1 %v10114_v34 }
 0x9b8   : > { %8810 = vmatmul.mubr.msk.bf16.vlgmr.msra.gmra.mrb[92].mxu1 %vm1349_vm1, %v3252_v45 }
 0x9b9   : > { %8821 = vmatprep.mubr.msk.bf16.mxu1 %vm10115_vm0, %v10114_v34 }
 0xa32   : > { %v2896_v3 = vpop.f32.mrb[76].mxu1 }
 0xa33   : > { %v8763_v25 = vpop.f32.mrb[77].mxu1 }
 0xa34   : > { %v2899_v33 = vpop.f32.mrb[78].mxu1 }
 0xa35   : > { %v2998_v18 = vpack.c.bf16 %v2899_v33, %v2896_v3  ;;  %v8764_v20 = vpop.f32.mrb[79].mxu1 }
 0xa38   : > { %v2849_v27 = vpop.f32.mrb[68].mxu0 }
 0xa39   : > { %v8757_v28 = vpop.f32.mrb[69].mxu0 }
 0xa3a   : > { %v2852_v40 = vpop.f32.mrb[70].mxu0 }
 0xa3b   : > { %v2997_v5 = vpack.c.bf16 %v2852_v40, %v2849_v27  ;;  %v8758_v50 = vpop.f32.mrb[71].mxu0 }
 0xa3d   : > { %8781 = vmatprep.mubr.msk.bf16.mxu0 %vm1349_vm1, %v2997_v5 }
 0xa3e   : > { %8782 = vmatmul.mubr.msk.bf16.vlgmr.msra.gmra.mrb[60].mxu0 %vm1349_vm1, %v2998_v18 }
 0xa3f   : > { %8802 = vmatpush3.bf16.xpose.msra.mxu0 %v3208_v41 }
 0xa40   : > { %v2943_v9 = vpop.f32.mrb[72].mxu0  ;;  %8813 = vmatprep.subr.bf16.mxu0 %v10114_v34 }
 0xa41   : > { %v8769_v61 = vpop.f32.mrb[73].mxu0 }
 0xa42   : > { %v2946_v16 = vpop.f32.mrb[74].mxu0 }
 0xa43   : > { %v2999_v23 = vpack.c.bf16 %v2946_v16, %v2943_v9  ;;  %v8770_v59 = vpop.f32.mrb[75].mxu0 }
 0xa45   : > { %8785 = vmatprep.mubr.msk.bf16.mxu0 %vm1349_vm1, %v2999_v23 }
 0xa73   : > { %v2990_v63 = vpop.f32.mrb[80].mxu1 }
 0xa74   : > { %v8775_v6 = vpop.f32.mrb[81].mxu1 }
 0xa75   : > { %v2993_v57 = vpop.f32.mrb[82].mxu1 }
 0xa76   : > { %v3000_v56 = vpack.c.bf16 %v2993_v57, %v2990_v63  ;;  %v8776_v58 = vpop.f32.mrb[83].mxu1 }
 0xa78   : > { %8786 = vmatmul.mubr.msk.bf16.gmra.mrb[64].mxu0 %vm1349_vm1, %v3000_v56 }
 0xa79   : > { %8803 = vmatprep.mubr.msk.bf16.mxu0 %vm10115_vm0, %v10114_v34 }
 0xa7b   : > { %v3142_v39 = vpop.f32.mrb[84].mxu1 }
 0xa7c   : > { %v3302_v2 = vmul.f32 0.17677669, %v3142_v39  ;;  %v8793_v48 = vpop.f32.mrb[85].mxu1 }
 0xa7d   : > { %v3145_v43 = vpop.f32.mrb[86].mxu1 }
 0xa7e   : > { %v3303_v1 = vmul.f32 0.17677669, %v3145_v43  ;;  %v8794_v17 = vpop.f32.mrb[87].mxu1  ;;  %v3310_v46 = vsel %vm1546_vm2, %v3302_v2, -inf }
 0xa7f   : > { %3311 = vmax.xlane.f32.xlu0 %v3310_v46 }
 0xa80   : > { %8804 = vmatmul.mubr.msk.bf16.vlgmr.msra.gmra.mrb[76].mxu0 %vm1349_vm1, %v3201_v54  ;;  %v3313_v19 = vsel %vm1546_vm2, %v3303_v1, -inf }
 0xa81   : > { %3314 = vmax.xlane.f32.xlu1 %v3313_v19  ;;  %8815 = vmatprep.mubr.msk.bf16.mxu0 %vm10115_vm0, %v10114_v34 }
 0xa83   : > { %v3193_v55 = vpop.f32.mrb[88].mxu1 }
 0xa84   : > { %v3304_v8 = vmul.f32 0.17677669, %v3193_v55  ;;  %v8799_v22 = vpop.f32.mrb[89].mxu1 }
 0xa85   : > { %v3196_v49 = vpop.f32.mrb[90].mxu1 }
 0xa86   : > { %v3305_v42 = vmul.f32 0.17677669, %v3196_v49  ;;  %v8800_v7 = vpop.f32.mrb[91].mxu1  ;;  %v3316_v24 = vsel %vm1546_vm2, %v3304_v8, -inf }
 0xa87   : > { %3317 = vmax.xlane.f32.xlu0 %v3316_v24 }
 0xa88   : > { %v3319_v21 = vsel %vm1546_vm2, %v3305_v42, -inf }
 0xa8b   : > { %3320 = vmax.xlane.f32.xlu0 %v3319_v21  ;;  %v3295_v0 = vpop.f32.mrb[92].mxu1 }
 0xa8c   : > { %v8811_v11 = vpop.f32.mrb[93].mxu1  ;;  %v3308_v9 = vmul.f32 0.17677669, %v3295_v0 }
 0xa8d   : > { %v3298_v51 = vpop.f32.mrb[94].mxu1 }
 0xa8e   : > { %v8812_v14 = vpop.f32.mrb[95].mxu1  ;;  %v3309_v59 = vmul.f32 0.17677669, %v3298_v51  ;;  %v3328_v6 = vsel %vm1546_vm2, %v3308_v9, -inf }
 0xa90   : > { %v3331_v56 = vsel %vm1546_vm2, %v3309_v59, -inf }
 0xb0c   : > { %v3312_v4 = vpop.xlane.xlu0 %3311 }
 0xb0d   : > { %v3334_v45 = vsub.f32 %v3302_v2, %v3312_v4 }
 0xb0e   : > { %v3315_v37 = vpop.xlane.xlu1 %3314 }
 0xb0f   : > { %v3335_v3 = vsub.f32 %v3303_v1, %v3315_v37  ;;  %v3342_v33 = vmul.f32 1.442695, %v3334_v45 }
 0xb11   : > { %v3344_v20 = vmul.f32 1.442695, %v3335_v3  ;;  %9596 = vpow2.f32 %v3342_v33 }
 0xb13   : > { %9598 = vpow2.f32 %v3344_v20 }
 0xb14   : > { %v3318_v26 = vpop.xlane.xlu0 %3317 }
 0xb15   : > { %v3336_v18 = vsub.f32 %v3304_v8, %v3318_v26 }
 0xb17   : > { %v3346_v28 = vmul.f32 1.442695, %v3336_v18 }
 0xb18   : > { %v3321_v25 = vpop.xlane.xlu0 %3320 }
 0xb19   : > { %v3337_v27 = vsub.f32 %v3305_v42, %v3321_v25  ;;  %9600 = vpow2.f32 %v3346_v28 }
 0xb1b   : > { %v3348_v40 = vmul.f32 1.442695, %v3337_v27  ;;  %v11003_v57 = vpop.eup %9596 }
 0xb1c   : > { %v3358_v39 = vsel %vm1546_vm2, %v11003_v57, 0.0 }
 0xb1d   : > { %9602 = vpow2.f32 %v3348_v40  ;;  %v9599_v58 = vpop.eup %9598 }
 0xb1e   : > { %v3361_v48 = vsel %vm1546_vm2, %v9599_v58, 0.0 }
 0xb23   : > { %v9601_v2 = vpop.eup %9600 }
 0xb24   : > { %v3364_v1 = vsel %vm1546_vm2, %v9601_v2, 0.0 }
 0xb27   : > { %v9603_v43 = vpop.eup %9602 }
 0xb28   : > { %v3367_v17 = vsel %vm1546_vm2, %v9603_v43, 0.0 }
 0xb53   : > { %v3244_v44 = vpop.f32.mrb[76].mxu0 }
 0xb54   : > { %v3306_v5 = vmul.f32 0.17677669, %v3244_v44  ;;  %v8805_v50 = vpop.f32.mrb[77].mxu0 }
 0xb55   : > { %v3247_v41 = vpop.f32.mrb[78].mxu0 }
 0xb56   : > { %v3307_v61 = vmul.f32 0.17677669, %v3247_v41  ;;  %v8806_v16 = vpop.f32.mrb[79].mxu0  ;;  %v3322_v23 = vsel %vm1546_vm2, %v3306_v5, -inf }
 0xb57   : > { %3323 = vmax.xlane.f32.xlu0 %v3322_v23 }
 0xb58   : > { %v3325_v63 = vsel %vm1546_vm2, %v3307_v61, -inf }
 0xb59   : > { %3326 = vmax.xlane.f32.xlu1 %v3325_v63 }
 0xb5b   : > { %3329 = vmax.xlane.f32.xlu0 %v3328_v6 }
 0xb5d   : > { %3332 = vmax.xlane.f32.xlu1 %v3331_v56 }
 0xb5f   : > { %3359 = vadd.xlane.f32.xlu0 %v3358_v39 }
 0xb61   : > { %3362 = vadd.xlane.f32.xlu1 %v3361_v48 }
 0xb63   : > { %3365 = vadd.xlane.f32.xlu0 %v3364_v1 }
 0xb65   : > { %3368 = vadd.xlane.f32.xlu1 %v3367_v17 }
 0xbe4   : > { %v3324_v46 = vpop.xlane.xlu0 %3323 }
 0xbe5   : > { %v3338_v54 = vsub.f32 %v3306_v5, %v3324_v46 }
 0xbe6   : > { %v3327_v19 = vpop.xlane.xlu1 %3326 }
 0xbe7   : > { %v3350_v22 = vmul.f32 1.442695, %v3338_v54  ;;  %v3339_v26 = vsub.f32 %v3307_v61, %v3327_v19  ;;  %v9378_v19 = vld [vmem:[#allocation10 + $0x30] sm:$0xff]  }
 0xbe8   : > { %v3330_v55 = vpop.xlane.xlu0 %3329 }
 0xbe9   : > { %v3340_v8 = vsub.f32 %v3308_v9, %v3330_v55  ;;  %v3352_v37 = vmul.f32 1.442695, %v3339_v26  ;;  %v9379_v55 = vld [vmem:[#allocation10 + $0x38] sm:$0xff]  }
 0xbea   : > { %v3333_v49 = vpop.xlane.xlu1 %3332 }
 0xbeb   : > { %v3354_v42 = vmul.f32 1.442695, %v3340_v8  ;;  %v3341_v7 = vsub.f32 %v3309_v59, %v3333_v49 }
 0xbec   : > { %v3360_v33 = vpop.xlane.xlu0 %3359 }
 0xbed   : > { %9604 = vpow2.f32 %v3354_v42  ;;  %v3356_v24 = vmul.f32 1.442695, %v3341_v7 }
 0xbee   : > { %9606 = vpow2.f32 %v3350_v22  ;;  %v3363_v25 = vpop.xlane.xlu1 %3362 }
 0xbef   : > { %9608 = vpow2.f32 %v3356_v24 }
 0xbf0   : > { %9610 = vpow2.f32 %v3352_v37 }
 0xbf2   : > { %v3369_v18 = vpop.xlane.xlu1 %3368 }
 0xbf3   : > { %9612 = vrcp.f32 %v3369_v18 }
 0xbf4   : > { %9614 = vrcp.f32 %v3363_v25 }
 0xbf7   : > { %v9605_v21 = vpop.eup %9604 }
 0xbf8   : > { %v11011_v0 = vpop.eup %9606  ;;  %v3376_v11 = vsel %vm1546_vm2, %v9605_v21, 0.0 }
 0xbf9   : > { %v9609_v51 = vpop.eup %9608  ;;  %3377 = vadd.xlane.f32.xlu0 %v3376_v11  ;;  %v3370_v4 = vsel %vm1546_vm2, %v11011_v0, 0.0 }
 0xbfa   : > { %v3379_v14 = vsel %vm1546_vm2, %v9609_v51, 0.0  ;;  %v9611_v45 = vpop.eup %9610 }
 0xbfb   : > { %3380 = vadd.xlane.f32.xlu1 %v3379_v14  ;;  %v3373_v3 = vsel %vm1546_vm2, %v9611_v45, 0.0 }
 0xbfd   : > { %3371 = vadd.xlane.f32.xlu0 %v3370_v4 }
 0xc0c   : > { %3449 = vrot.lane.b32.xlu1 %v10576_v13, %s10118_s30  ;;  %v3366_v13 = vpop.xlane.xlu0 %3365 }
 0xc0d   : > { %9616 = vrcp.f32 %v3366_v13 }
 0xc0e   : > { %9618 = vrcp.f32 %v3360_v33 }
 0xc10   : > { %3496 = vrot.lane.b32.xlu1 %v10614_v62, %s10118_s30 }
 0xc13   : > { %3402 = vrot.lane.b32.xlu0 %v10580_v15, %s10118_s30  ;;  %v9613_v15 = vpop.eup %9612 }
 0xc14   : > { %v9615_v20 = vpop.eup %9614  ;;  %v3393_v40 = vmul.f32 %v9613_v15, %v9603_v43  ;;  %v12124_v43 = vmov 0  }
 0xc15   : > { %v3391_v50 = vmul.f32 %v9615_v20, %v9599_v58 }
 0xc17   : > { %v9617_v28 = vpop.eup %9616 }
 0xc18   : > { %v9619_v5 = vpop.eup %9618  ;;  %v3392_v41 = vmul.f32 %v9617_v28, %v9601_v2 }
 0xc1a   : > { %v3399_v16 = vpack.c.bf16 %v3393_v40, %v3392_v41 }
 0xc34   : > { %3374 = vadd.xlane.f32.xlu1 %v3373_v3 }
 0xc45   : > { %3543 = vrot.lane.b32.xlu1 %v10610_v60, %s10118_s30  ;;  %v3390_v60 = vmul.f32 %v9619_v5, %v11003_v57 }
 0xc47   : > { %v3398_v23 = vpack.c.bf16 %v3391_v50, %v3390_v60 }
 0xc86   : > { %v3378_v62 = vpop.xlane.xlu0 %3377 }
 0xc88   : > { %v3381_v27 = vpop.xlane.xlu1 %3380 }
 0xc89   : > { %9620 = vrcp.f32 %v3381_v27 }
 0xc8a   : > { %v3372_v44 = vpop.xlane.xlu0 %3371  ;;  %9622 = vrcp.f32 %v3378_v62  ;;  %v11046_v62 = vld [vmem:[%s12084_s10] sm:$0x3f] }
 0xc8b   : > { %9624 = vrcp.f32 %v3372_v44  ;;  %v11050_v15 = vrot.slane %v11046_v62, %v10541_v36 }
 0xc8c   : > { %v3450_v9 = vpop.permute.xlu1 %3449 }
 0xc8d   : > { %8820 = vmatpush3.bf16.msra.mxu1 %v3450_v9 }
 0xc8e   : > { %v3403_v61 = vpop.permute.xlu0 %3402  ;;  %8831 = vmatprep.subr.bf16.mxu1 %v10114_v34 }
 0xc8f   : > { %8814 = vmatpush3.bf16.msra.mxu0 %v3403_v61 }
 0xc90   : > { %8822 = vmatmul.mubr.msk.bf16.vlgmr.msra.gmra.mrb[96].mxu1 %vm1546_vm2, %v3399_v16  ;;  %8825 = vmatprep.subr.bf16.mxu0 %v10114_v34  ;;  %v3497_v59 = vpop.permute.xlu1 %3496 }
 0xc91   : > { %8833 = vmatprep.mubr.msk.bf16.mxu1 %vm10115_vm0, %v10114_v34 }
 0xc92   : > { %8816 = vmatmul.mubr.msk.bf16.vlgmr.msra.gmra.mrb[80].mxu0 %vm1546_vm2, %v3398_v23 }
 0xc93   : > { %8826 = vmatpush3.bf16.msra.mxu0 %v3497_v59  ;;  %8827 = vmatprep.mubr.msk.bf16.mxu0 %vm10115_vm0, %v10114_v34  ;;  %v9621_v63 = vpop.eup %9620  ;;  %v9382_v59 = vld [vmem:[#allocation11 + $0x4] ss:$8 sps:$4 sm:$0xff]  }
 0xc94   : > { %v9623_v57 = vpop.eup %9622  ;;  %v3397_v56 = vmul.f32 %v9621_v63, %v9609_v51  ;;  %8837 = vmatprep.subr.bf16.mxu0 %v9378_v19  ;;  %v9380_v63 = vld [vmem:[#allocation11] ss:$8 sps:$4 sm:$0xff]  }
 0xc95   : > { %v3396_v58 = vmul.f32 %v9623_v57, %v9605_v21  ;;  %v9625_v48 = vpop.eup %9624  ;;  %v9383_v57 = vld [vmem:[#allocation11 + $0x10] ss:$8 sps:$4 sm:$0xff]  }
 0xc96   : > { %v3394_v17 = vmul.f32 %v9625_v48, %v11011_v0  ;;  %v9392_v48 = vld [vmem:[#allocation11 + $0x40] ss:$8 sps:$4 sm:$0xff]  }
 0xc97   : > { %v3401_v2 = vpack.c.bf16 %v3397_v56, %v3396_v58  ;;  %v9388_v56 = vld [vmem:[#allocation11 + $0x24] ss:$8 sps:$4 sm:$0xff]   ;;  %v9386_v58 = vld [vmem:[#allocation11 + $0x20] ss:$8 sps:$4 sm:$0xff]  }
 0xcc1   : > { %v3375_v6 = vpop.xlane.xlu1 %3374 }
 0xcc2   : > { %9626 = vrcp.f32 %v3375_v6  ;;  %v9385_v6 = vld [vmem:[#allocation11 + $0x14] ss:$8 sps:$4 sm:$0xff]  }
 0xcc5   : > { %v3544_v39 = vpop.permute.xlu1 %3543 }
 0xcc6   : > { %8832 = vmatpush3.bf16.msra.mxu1 %v3544_v39  ;;  %v9389_v39 = vld [vmem:[#allocation11 + $0x30] ss:$8 sps:$4 sm:$0xff]  }
 0xcc7   : > { %3952 = vmatprep.subr.bf16.mxu1 %v9382_v59 }
 0xcc9   : > { %8834 = vmatmul.mubr.msk.bf16.vlgmr.msra.gmra.mrb[100].mxu1 %vm1546_vm2, %v3401_v2  ;;  %v9394_v2 = vld [vmem:[#allocation11 + $0x44] ss:$8 sps:$4 sm:$0xff]  }
 0xcca   : > { %3984 = vmatprep.mubr.bf16.mxu1 %v12124_v43  ;;  %3953 = vmatpush1.bf16.msra.mxu1 %v9380_v63 }
 0xccb   : > { %3954 = vmatprep.subr.bf16.mxu1 %v9385_v6 }
 0xccc   : > { %v9627_v1 = vpop.eup %9626 }
 0xccd   : > { %v3395_v46 = vmul.f32 %v9627_v1, %v9611_v45  ;;  %v9397_v1 = vld [vmem:[#allocation11 + $0x54] ss:$8 sps:$4 sm:$0xff]  }
 0xcce   : > { %3955 = vmatpush1.bf16.msra.mxu1 %v9383_v57 }
 0xccf   : > { %v3400_v54 = vpack.c.bf16 %v3395_v46, %v3394_v17  ;;  %3956 = vmatprep.subr.bf16.mxu1 %v9388_v56  ;;  %v9395_v17 = vld [vmem:[#allocation11 + $0x50] ss:$8 sps:$4 sm:$0xff]   ;;  %v9400_v46 = vld [vmem:[#allocation11 + $0x64] ss:$8 sps:$4 sm:$0xff]  }
 0xcd1   : > { %8828 = vmatmul.mubr.msk.bf16.vlgmr.msra.gmra.mrb[84].mxu0 %vm1546_vm2, %v3400_v54  ;;  %v9398_v54 = vld [vmem:[#allocation11 + $0x60] ss:$8 sps:$4 sm:$0xff]  }
 0xcd2   : > { %8838 = vmatpush3.bf16.msra.mxu0 %v9378_v19  ;;  %3957 = vmatpush1.bf16.msra.mxu1 %v9386_v58  ;;  %v9403_v19 = vld [vmem:[#allocation11 + $0x74] ss:$8 sps:$4 sm:$0xff]  }
 0xcd3   : > { %8839 = vmatprep.subr.bf16.mxu0 %v9379_v55 }
 0xcd6   : > { %8840 = vmatpush3.bf16.msra.mxu0 %v9379_v55  ;;  %v9401_v55 = vld [vmem:[#allocation11 + $0x70] ss:$8 sps:$4 sm:$0xff]  }
 0xd63   : > { %v3489_v8 = vpop.f32.mrb[96].mxu1 }
 0xd64   : > { %v8823_v22 = vpop.f32.mrb[97].mxu1 }
 0xd65   : > { %v3442_v49 = vpop.f32.mrb[80].mxu0  ;;  %v3492_v42 = vpop.f32.mrb[98].mxu1 }
 0xd66   : > { %v3591_v7 = vpack.c.bf16 %v3492_v42, %v3489_v8  ;;  %v8817_v24 = vpop.f32.mrb[81].mxu0  ;;  %v8824_v21 = vpop.f32.mrb[99].mxu1 }
 0xd67   : > { %v3445_v11 = vpop.f32.mrb[82].mxu0 }
 0xd68   : > { %v3590_v51 = vpack.c.bf16 %v3445_v11, %v3442_v49  ;;  %v8818_v0 = vpop.f32.mrb[83].mxu0 }
 0xd6a   : > { %8841 = vmatprep.mubr.msk.bf16.mxu0 %vm1349_vm1, %v3590_v51 }
 0xd6b   : > { %8842 = vmatmul.mubr.msk.bf16.vlgmr.msra.gmra.mrb[60].mxu0 %vm1349_vm1, %v3591_v7 }
 0xd9c   : > { %v3583_v14 = vpop.f32.mrb[100].mxu1 }
 0xd9d   : > { %v8835_v4 = vpop.f32.mrb[101].mxu1 }
 0xd9e   : > { %v3586_v26 = vpop.f32.mrb[102].mxu1 }
 0xd9f   : > { %v3593_v37 = vpack.c.bf16 %v3586_v26, %v3583_v14  ;;  %v8836_v45 = vpop.f32.mrb[103].mxu1 }
 0xda0   : > { %v9404_v45 = vld [vmem:[#allocation13 + $0x40] sm:$0xff]  }
 0xda1   : > { %8405 = vmatprep.subr.bf16.mxu0 %v9404_v45 }
 0xda4   : > { %v3536_v3 = vpop.f32.mrb[84].mxu0 }
 0xda5   : > { %v8829_v25 = vpop.f32.mrb[85].mxu0 }
 0xda6   : > { %v3539_v33 = vpop.f32.mrb[86].mxu0  ;;  %v9407_v25 = vld [vmem:[#allocation13 + $0x8] sm:$0xff]  }
 0xda7   : > { %v3592_v18 = vpack.c.bf16 %v3539_v33, %v3536_v3  ;;  %v8830_v13 = vpop.f32.mrb[87].mxu0  ;;  %v9405_v3 = vld [vmem:[#allocation13] sm:$0xff]   ;;  %v9409_v33 = vld [vmem:[#allocation13 + $0x10] sm:$0xff]  }
 0xda8   : > { %8406 = vmatpush3.bf16.msra.mxu0 %v9405_v3  ;;  %v9411_v13 = vld [vmem:[#allocation13 + $0x18] sm:$0xff]  }
 0xda9   : > { %8845 = vmatprep.mubr.msk.bf16.mxu0 %vm1349_vm1, %v3592_v18  ;;  %v9410_v18 = vld [vmem:[#allocation13 + $0x58] sm:$0xff]  }
 0xdaa   : > { %8846 = vmatmul.mubr.msk.bf16.gmra.mrb[64].mxu0 %vm1349_vm1, %v3593_v37 }
 0xe3e   : > { %v8843_v20 = vpop.f32.mrb[60].mxu0 }
 0xe3f   : > { %v3652_v27 = vpop.f32.mrb[61].mxu0 }
 0xe40   : > { %v3695_v28 = vadd.f32 %v11050_v15, %v3652_v27  ;;  %v8844_v40 = vpop.f32.mrb[62].mxu0  ;;  %v9414_v27 = vld [vmem:[#allocation13 + $0x68] sm:$0xff]  }
 0xe41   : > { %v3655_v44 = vpop.f32.mrb[63].mxu0  ;;  %v3698_v41 = vadd.f32 %v8844_v40, %v11050_v15 }
 0xe42   : > { %v11054_v5 = vadd.f32 %v3695_v28, %v10499_v31  ;;  %v3696_v50 = vadd.f32 %v11050_v15, %v3655_v44  ;;  %v3697_v31 = vadd.f32 %v8843_v20, %v11050_v15  ;;  %v9413_v20 = vld [vmem:[#allocation13 + $0x20] sm:$0xff]  }
 0xe43   : > { %v11066_v61 = vadd.f32 %v3698_v41, %v10510_v53 }
 0xe44   : > { %v11059_v9 = vadd.f32 %v3696_v50, %v10501_v32  ;;  %3711 = vadd.xlane.f32.xlu0 %v11054_v5  ;;  %v3736_v60 = vmul.f32 %v11054_v5, %v11054_v5  ;;  %v11075_v23 = vadd.f32 %v3697_v31, %v10508_v52  ;;  %v9391_v52 = vld [vmem:[#allocation11 + $0x34] ss:$8 sps:$4 sm:$0xff]  }
 0xe45   : > { %v3739_v32 = vmul.f32 %v11066_v61, %v11066_v61  ;;  %3958 = vmatprep.subr.bf16.mxu1 %v9391_v52 }
 0xe46   : > { %3713 = vadd.xlane.f32.xlu1 %v11059_v9  ;;  %v3737_v16 = vmul.f32 %v11059_v9, %v11059_v9  ;;  %v3738_v53 = vmul.f32 %v11075_v23, %v11075_v23  ;;  %3959 = vmatpush1.bf16.msra.mxu1 %v9389_v39 }
 0xe47   : > { %3960 = vmatprep.subr.bf16.mxu1 %v9394_v2 }
 0xe48   : > { %3744 = vadd.xlane.f32.xlu0 %v3736_v60 }
 0xe4a   : > { %3717 = vadd.xlane.f32.xlu1 %v11066_v61  ;;  %3961 = vmatpush1.bf16.msra.mxu1 %v9392_v48 }
 0xe4b   : > { %3962 = vmatprep.subr.bf16.mxu1 %v9397_v1 }
 0xe4c   : > { %3746 = vadd.xlane.f32.xlu0 %v3737_v16 }
 0xe4e   : > { %3750 = vadd.xlane.f32.xlu1 %v3739_v32  ;;  %3963 = vmatpush1.bf16.msra.mxu1 %v9395_v17 }
 0xe4f   : > { %3964 = vmatprep.subr.bf16.mxu1 %v9400_v46 }
 0xe50   : > { %3715 = vadd.xlane.f32.xlu0 %v11075_v23 }
 0xe52   : > { %3965 = vmatpush1.bf16.msra.mxu1 %v9398_v54 }
 0xe53   : > { %3966 = vmatprep.subr.bf16.mxu1 %v9403_v19 }
 0xe54   : > { %3748 = vadd.xlane.f32.xlu0 %v3738_v53 }
 0xe56   : > { %3967 = vmatpush1.bf16.msra.mxu1 %v9401_v55 }
 0xe7d   : > { %v8847_v8 = vpop.f32.mrb[64].mxu0 }
 0xe7e   : > { %v3668_v22 = vpop.f32.mrb[65].mxu0  ;;  %v3701_v51 = vadd.f32 %v8847_v8, %v11050_v15 }
 0xe7f   : > { %v3699_v49 = vadd.f32 %v11050_v15, %v3668_v22  ;;  %v8848_v42 = vpop.f32.mrb[66].mxu0 }
 0xe80   : > { %v3671_v7 = vpop.f32.mrb[67].mxu0  ;;  %v3702_v14 = vadd.f32 %v8848_v42, %v11050_v15  ;;  %v11097_v4 = vadd.f32 %v3701_v51, %v10526_v29  ;;  %v9406_v29 = vld [vmem:[#allocation13 + $0x48] sm:$0xff]   ;;  %v12099_v51 = vsub.s32 3, %v10538_v35 }
 0xe81   : > { %v11082_v24 = vadd.f32 %v3699_v49, %v10517_v10  ;;  %v3700_v21 = vadd.f32 %v11050_v15, %v3671_v7  ;;  %8407 = vmatprep.subr.bf16.mxu0 %v9406_v29  ;;  %v9412_v15 = vld [vmem:[#allocation13 + $0x60] sm:$0xff]  }
 0xe82   : > { %v3742_v26 = vmul.f32 %v11097_v4, %v11097_v4  ;;  %8408 = vmatpush3.bf16.msra.mxu0 %v9407_v25 }
 0xe83   : > { %v11086_v11 = vadd.f32 %v3700_v21, %v10519_v12  ;;  %3719 = vadd.xlane.f32.xlu0 %v11082_v24  ;;  %v3740_v0 = vmul.f32 %v11082_v24, %v11082_v24  ;;  %v11100_v12 = vadd.f32 %v3702_v14, %v10528_v30  ;;  %v9408_v30 = vld [vmem:[#allocation13 + $0x50] sm:$0xff]   ;;  %v11111_v21 = vrot.slane %v11046_v62, %v10558_v47 }
 0xe84   : > { %8409 = vmatprep.subr.bf16.mxu0 %v9408_v30 }
 0xe85   : > { %3721 = vadd.xlane.f32.xlu1 %v11086_v11  ;;  %v3741_v10 = vmul.f32 %v11086_v11, %v11086_v11  ;;  %v3743_v37 = vmul.f32 %v11100_v12, %v11100_v12 }
 0xe86   : > { %8410 = vmatpush3.bf16.msra.mxu0 %v9409_v33 }
 0xe87   : > { %3752 = vadd.xlane.f32.xlu0 %v3740_v0  ;;  %8411 = vmatprep.subr.bf16.mxu0 %v9410_v18 }
 0xe89   : > { %3754 = vadd.xlane.f32.xlu1 %v3741_v10 }
 0xe8a   : > { %8412 = vmatpush3.bf16.msra.mxu0 %v9411_v13 }
 0xe8b   : > { %3723 = vadd.xlane.f32.xlu0 %v11097_v4  ;;  %8413 = vmatprep.subr.bf16.mxu0 %v9412_v15 }
 0xe8d   : > { %3725 = vadd.xlane.f32.xlu1 %v11100_v12 }
 0xe8e   : > { %8414 = vmatpush3.bf16.msra.mxu0 %v9413_v20 }
 0xe8f   : > { %3756 = vadd.xlane.f32.xlu0 %v3742_v26  ;;  %8415 = vmatprep.subr.bf16.mxu0 %v9414_v27 }
 0xe91   : > { %3758 = vadd.xlane.f32.xlu1 %v3743_v37 }
 0xed1   : > { %v3712_v28 = vpop.xlane.xlu0 %3711 }
 0xed2   : > { %v3728_v40 = vmul.f32 0.0078125, %v3712_v28 }
 0xed3   : > { %v3714_v44 = vpop.xlane.xlu1 %3713 }
 0xed4   : > { %v3768_v41 = vmul.f32 %v3728_v40, %v3728_v40  ;;  %v3729_v60 = vmul.f32 0.0078125, %v3714_v44  ;;  %v3784_v22 = vsub.f32 %v11054_v5, %v3728_v40  ;;  %v11119_v5 = vrot.slane %v11046_v62, %v12099_v51 }
 0xed5   : > { %v3745_v50 = vpop.xlane.xlu0 %3744 }
 0xed6   : > { %v3760_v31 = vmul.f32 0.0078125, %v3745_v50  ;;  %v3769_v63 = vmul.f32 %v3729_v60, %v3729_v60  ;;  %v3785_v0 = vsub.f32 %v11059_v9, %v3729_v60 }
 0xed7   : > { %v3718_v16 = vpop.xlane.xlu1 %3717 }
 0xed8   : > { %v3776_v32 = vsub.f32 %v3760_v31, %v3768_v41  ;;  %v3731_v53 = vmul.f32 0.0078125, %v3718_v16 }
 0xed9   : > { %v3747_v59 = vpop.xlane.xlu0 %3746 }
 0xeda   : > { %v3792_v6 = vadd.f32 1e-05, %v3776_v32  ;;  %v3761_v57 = vmul.f32 0.0078125, %v3747_v59  ;;  %v3771_v58 = vmul.f32 %v3731_v53, %v3731_v53  ;;  %v3787_v45 = vsub.f32 %v11066_v61, %v3731_v53 }
 0xedb   : > { %v3751_v56 = vpop.xlane.xlu1 %3750 }
 0xedc   : > { %9628 = vrsqrt.f32 %v3792_v6  ;;  %v3777_v52 = vsub.f32 %v3761_v57, %v3769_v63  ;;  %v3763_v39 = vmul.f32 0.0078125, %v3751_v56 }
 0xedd   : > { %v3716_v2 = vpop.xlane.xlu0 %3715 }
 0xede   : > { %v3793_v48 = vadd.f32 1e-05, %v3777_v52  ;;  %v3779_v1 = vsub.f32 %v3763_v39, %v3771_v58  ;;  %v3730_v17 = vmul.f32 0.0078125, %v3716_v2 }
 0xee0   : > { %9630 = vrsqrt.f32 %v3793_v48  ;;  %v3795_v46 = vadd.f32 1e-05, %v3779_v1  ;;  %v3770_v19 = vmul.f32 %v3730_v17, %v3730_v17  ;;  %v3786_v30 = vsub.f32 %v11075_v23, %v3730_v17 }
 0xee1   : > { %v3749_v54 = vpop.xlane.xlu0 %3748 }
 0xee2   : > { %9632 = vrsqrt.f32 %v3795_v46  ;;  %v3762_v55 = vmul.f32 0.0078125, %v3749_v54 }
 0xee4   : > { %v3778_v8 = vsub.f32 %v3762_v55, %v3770_v19 }
 0xee6   : > { %v9629_v49 = vpop.eup %9628  ;;  %v3794_v42 = vadd.f32 1e-05, %v3778_v8 }
 0xee7   : > { %v3808_v7 = vmul.f32 %v9629_v49, %v3784_v22 }
 0xee8   : > { %9634 = vrsqrt.f32 %v3794_v42 }
 0xee9   : > { %v3820_v26 = vmul.f32 %v11111_v21, %v3808_v7 }
 0xeea   : > { %v9631_v14 = vpop.eup %9630 }
 0xeeb   : > { %v3809_v10 = vmul.f32 %v9631_v14, %v3785_v0  ;;  %v11124_v29 = vadd.f32 %v11119_v5, %v3820_v26 }
 0xeec   : > { %v9633_v37 = vpop.eup %9632 }
 0xeed   : > { %v3821_v3 = vmul.f32 %v11111_v21, %v3809_v10  ;;  %v3811_v9 = vmul.f32 %v9633_v37, %v3787_v45 }
 0xeef   : > { %v11127_v25 = vadd.f32 %v11119_v5, %v3821_v3  ;;  %v3823_v15 = vmul.f32 %v11111_v21, %v3811_v9 }
 0xef1   : > { %v3840_v33 = vpack.c.bf16 %v11127_v25, %v11124_v29  ;;  %v11139_v27 = vadd.f32 %v11119_v5, %v3823_v15 }
 0xef2   : > { %v9635_v18 = vpop.eup %9634 }
 0xef3   : > { %3985 = vmatmul.mubr.bf16.vlgmr.msra.gmra.mrb[104].mxu1 %v3840_v33  ;;  %v3810_v13 = vmul.f32 %v9635_v18, %v3786_v30 }
 0xef4   : > { %3994 = vmatprep.mubr.bf16.mxu1 %v12124_v43 }
 0xef5   : > { %v3822_v61 = vmul.f32 %v11111_v21, %v3810_v13 }
 0xef7   : > { %v11136_v20 = vadd.f32 %v11119_v5, %v3822_v61 }
 0xef9   : > { %v3841_v23 = vpack.c.bf16 %v11139_v27, %v11136_v20 }
 0xefb   : > { %3995 = vmatmul.mubr.bf16.gmra.mrb[108].mxu1 %v3841_v23 }
 0xefc   : > { %4004 = vmatprep.mubr.bf16.mxu1 %v12124_v43 }
 0xf10   : > { %v3720_v28 = vpop.xlane.xlu0 %3719 }
 0xf11   : > { %v3732_v40 = vmul.f32 0.0078125, %v3720_v28  ;;  %v9415_v28 = vld [vmem:[#allocation13 + $0x28] sm:$0xff]  }
 0xf12   : > { %v3722_v44 = vpop.xlane.xlu1 %3721  ;;  %8416 = vmatpush3.bf16.msra.mxu0 %v9415_v28 }
 0xf13   : > { %v3733_v50 = vmul.f32 0.0078125, %v3722_v44  ;;  %v3772_v60 = vmul.f32 %v3732_v40, %v3732_v40  ;;  %v3788_v49 = vsub.f32 %v11082_v24, %v3732_v40  ;;  %v9416_v40 = vld [vmem:[#allocation13 + $0x70] sm:$0xff]  }
 0xf14   : > { %v3753_v41 = vpop.xlane.xlu0 %3752  ;;  %v9417_v44 = vld [vmem:[#allocation13 + $0x30] sm:$0xff]   ;;  %8417 = vmatprep.subr.bf16.mxu0 %v9416_v40 }
 0xf15   : > { %v3764_v31 = vmul.f32 0.0078125, %v3753_v41  ;;  %v3773_v32 = vmul.f32 %v3733_v50, %v3733_v50  ;;  %v3789_v7 = vsub.f32 %v11086_v11, %v3733_v50  ;;  %v9418_v50 = vld [vmem:[#allocation13 + $0x78] sm:$0xff]  }
 0xf16   : > { %v3755_v16 = vpop.xlane.xlu1 %3754  ;;  %8418 = vmatpush3.bf16.msra.mxu0 %v9417_v44 }
 0xf17   : > { %v3780_v53 = vsub.f32 %v3764_v31, %v3772_v60  ;;  %v3765_v59 = vmul.f32 0.0078125, %v3755_v16  ;;  %8419 = vmatprep.subr.bf16.mxu0 %v9418_v50 }
 0xf18   : > { %v3724_v63 = vpop.xlane.xlu0 %3723 }
 0xf19   : > { %v3796_v6 = vadd.f32 1e-05, %v3780_v53  ;;  %v3781_v57 = vsub.f32 %v3765_v59, %v3773_v32  ;;  %v3734_v56 = vmul.f32 0.0078125, %v3724_v63 }
 0xf1a   : > { %v3726_v58 = vpop.xlane.xlu1 %3725 }
 0xf1b   : > { %9636 = vrsqrt.f32 %v3796_v6  ;;  %v3797_v52 = vadd.f32 1e-05, %v3781_v57  ;;  %v3735_v39 = vmul.f32 0.0078125, %v3726_v58  ;;  %v3774_v48 = vmul.f32 %v3734_v56, %v3734_v56 }
 0xf1c   : > { %v3757_v2 = vpop.xlane.xlu0 %3756  ;;  %v3790_v45 = vsub.f32 %v11097_v4, %v3734_v56 }
 0xf1d   : > { %9638 = vrsqrt.f32 %v3797_v52  ;;  %v3766_v1 = vmul.f32 0.0078125, %v3757_v2  ;;  %v3775_v46 = vmul.f32 %v3735_v39, %v3735_v39  ;;  %v3791_v30 = vsub.f32 %v11100_v12, %v3735_v39 }
 0xf1e   : > { %v3759_v17 = vpop.xlane.xlu1 %3758 }
 0xf1f   : > { %v3782_v54 = vsub.f32 %v3766_v1, %v3774_v48  ;;  %v3767_v19 = vmul.f32 0.0078125, %v3759_v17 }
 0xf21   : > { %v3798_v55 = vadd.f32 1e-05, %v3782_v54  ;;  %v3783_v8 = vsub.f32 %v3767_v19, %v3775_v46 }
 0xf23   : > { %9640 = vrsqrt.f32 %v3798_v55  ;;  %v3799_v22 = vadd.f32 1e-05, %v3783_v8 }
 0xf25   : > { %v9637_v42 = vpop.eup %9636  ;;  %9642 = vrsqrt.f32 %v3799_v22 }
 0xf26   : > { %v3812_v0 = vmul.f32 %v9637_v42, %v3788_v49 }
 0xf27   : > { %v9639_v14 = vpop.eup %9638 }
 0xf28   : > { %v3813_v10 = vmul.f32 %v9639_v14, %v3789_v7  ;;  %v3824_v26 = vmul.f32 %v11111_v21, %v3812_v0 }
 0xf2a   : > { %v3825_v37 = vmul.f32 %v11111_v21, %v3813_v10  ;;  %v11150_v3 = vadd.f32 %v11119_v5, %v3824_v26 }
 0xf2c   : > { %v11153_v9 = vadd.f32 %v11119_v5, %v3825_v37 }
 0xf2d   : > { %v9641_v24 = vpop.eup %9640 }
 0xf2e   : > { %v3842_v11 = vpack.c.bf16 %v11153_v9, %v11150_v3  ;;  %v3814_v33 = vmul.f32 %v9641_v24, %v3790_v45 }
 0xf2f   : > { %v9643_v18 = vpop.eup %9642 }
 0xf30   : > { %4005 = vmatmul.mubr.bf16.gmra.mrb[112].mxu1 %v3842_v11  ;;  %v3815_v13 = vmul.f32 %v9643_v18, %v3791_v30  ;;  %v3826_v15 = vmul.f32 %v11111_v21, %v3814_v33 }
 0xf31   : > { %4014 = vmatprep.mubr.bf16.mxu1 %v12124_v43 }
 0xf32   : > { %v3827_v4 = vmul.f32 %v11111_v21, %v3815_v13  ;;  %v11162_v61 = vadd.f32 %v11119_v5, %v3826_v15  ;;  %v9419_v21 = vld [vmem:[#allocation13 + $0x38] sm:$0xff]  }
 0xf33   : > { %8420 = vmatpush3.bf16.msra.mxu0 %v9419_v21 }
 0xf34   : > { %v11165_v23 = vadd.f32 %v11119_v5, %v3827_v4  ;;  %v3860_v5 = vld [vmem:[%s12125_s29] sm:$0x3] }
 0xf35   : > { %v3865_v41 = vrot.slane %v3860_v5, %v10541_v36  ;;  %v3869_v60 = vrot.slane %v3860_v5, %v10547_v38 }
 0xf36   : > { %v3843_v12 = vpack.c.bf16 %v11165_v23, %v11162_v61 }
 0xf38   : > { %4015 = vmatmul.mubr.bf16.gmra.mrb[116].mxu1 %v3843_v12 }
 0xf39   : > { %4616 = vmatprep.mubr.bf16.mxu1 %v12124_v43 }
 0xfc6   : > { %v3986_v31 = vpop.f32.mrb[104].mxu1 }
 0xfc7   : > { %v3987_v16 = vadd.f32 %v3986_v31, %v3865_v41  ;;  %v3988_v32 = vpop.f32.mrb[105].mxu1 }
 0xfc8   : > { %v3989_v53 = vadd.f32 %v3988_v32, %v3869_v60  ;;  %v3990_v59 = vpop.f32.mrb[106].mxu1 }
 0xfc9   : > { %v3991_v63 = vadd.f32 %v3990_v59, %v3865_v41  ;;  %v3992_v6 = vpop.f32.mrb[107].mxu1  ;;  %v4025_v56 = vmax.f32 %v3987_v16, 0.0 }
 0xfca   : > { %v3993_v57 = vadd.f32 %v3992_v6, %v3869_v60  ;;  %v4026_v52 = vmax.f32 %v3989_v53, 0.0 }
 0xfcb   : > { %v4027_v58 = vmax.f32 %v3991_v63, 0.0 }
 0xfcc   : > { %v4028_v39 = vmax.f32 %v3993_v57, 0.0 }
 0xfcd   : > { %v4041_v2 = vpack.c.bf16 %v4027_v58, %v4025_v56 }
 0xfce   : > { %v4042_v48 = vpack.c.bf16 %v4028_v39, %v4026_v52  ;;  %v3996_v1 = vpop.f32.mrb[108].mxu1  ;;  %v9420_v52 = vld [vmem:[#allocation8 + $0xc0] ss:$12 sps:$4 sm:$0xff]   ;;  %v9422_v39 = vld [vmem:[#allocation8 + $0xc4] ss:$12 sps:$4 sm:$0xff]  }
 0xfcf   : > { %v3997_v17 = vadd.f32 %v3996_v1, %v3865_v41  ;;  %v3998_v46 = vpop.f32.mrb[109].mxu1  ;;  %4584 = vmatprep.subr.bf16.mxu1 %v9422_v39 }
 0xfd0   : > { %v3999_v54 = vadd.f32 %v3998_v46, %v3869_v60  ;;  %v4000_v19 = vpop.f32.mrb[110].mxu1  ;;  %4213 = vmatprep.mubr.bf16.mxu0 %v4042_v48  ;;  %4585 = vmatpush1.bf16.msra.mxu1 %v9420_v52  ;;  %v11177_v48 = vrot.slane %v11046_v62, %v10547_v38 }
 0xfd1   : > { %v4001_v55 = vadd.f32 %v4000_v19, %v3865_v41  ;;  %v4002_v8 = vpop.f32.mrb[111].mxu1  ;;  %4214 = vmatmul.mubr.bf16.vlgmr.msra.gmra.mrb[88].mxu0 %v4041_v2  ;;  %v4029_v49 = vmax.f32 %v3997_v17, 0.0 }
 0xfd2   : > { %v4003_v22 = vadd.f32 %v4002_v8, %v3869_v60  ;;  %v4030_v7 = vmax.f32 %v3999_v54, 0.0 }
 0xfd3   : > { %v4031_v42 = vmax.f32 %v4001_v55, 0.0 }
 0xfd4   : > { %v4032_v0 = vmax.f32 %v4003_v22, 0.0 }
 0xfd5   : > { %v4043_v14 = vpack.c.bf16 %v4031_v42, %v4029_v49 }
 0xfd6   : > { %v4044_v10 = vpack.c.bf16 %v4032_v0, %v4030_v7 }
 0xfd8   : > { %4221 = vmatprep.mubr.bf16.mxu0 %v4044_v10 }
 0xfd9   : > { %4222 = vmatmul.mubr.bf16.gmra.mrb[92].mxu0 %v4043_v14 }
0x1003   : > { %v4006_v26 = vpop.f32.mrb[112].mxu1 }
0x1004   : > { %v4007_v37 = vadd.f32 %v4006_v26, %v3865_v41  ;;  %v4008_v45 = vpop.f32.mrb[113].mxu1 }
0x1005   : > { %v4009_v24 = vadd.f32 %v4008_v45, %v3869_v60  ;;  %v4010_v30 = vpop.f32.mrb[114].mxu1 }
0x1006   : > { %v4011_v11 = vadd.f32 %v4010_v30, %v3865_v41  ;;  %v4012_v33 = vpop.f32.mrb[115].mxu1  ;;  %v4033_v13 = vmax.f32 %v4007_v37, 0.0 }
0x1007   : > { %v4013_v18 = vadd.f32 %v4012_v33, %v3869_v60  ;;  %v4034_v4 = vmax.f32 %v4009_v24, 0.0  ;;  %v9423_v33 = vld [vmem:[#allocation8 + $0xd8] ss:$12 sps:$4 sm:$0xff]  }
0x1008   : > { %v4035_v15 = vmax.f32 %v4011_v11, 0.0  ;;  %v9425_v11 = vld [vmem:[#allocation8 + $0xdc] ss:$12 sps:$4 sm:$0xff]  }
0x1009   : > { %v4036_v12 = vmax.f32 %v4013_v18, 0.0  ;;  %4586 = vmatprep.subr.bf16.mxu1 %v9425_v11  ;;  %v9429_v18 = vld [vmem:[#allocation8 + $0xc8] ss:$12 sps:$4 sm:$0xff]  }
0x100a   : > { %v4045_v28 = vpack.c.bf16 %v4035_v15, %v4033_v13  ;;  %4587 = vmatpush1.bf16.msra.mxu1 %v9423_v33  ;;  %v9426_v13 = vld [vmem:[#allocation8 + $0xf0] ss:$12 sps:$4 sm:$0xff]   ;;  %8849 = vmatprep.subr.bf16.mxu0 %v9429_v18  ;;  %v9433_v15 = vld [vmem:[#allocation8 + $0xe0] ss:$12 sps:$4 sm:$0xff]  }
0x100b   : > { %v4046_v40 = vpack.c.bf16 %v4036_v12, %v4034_v4  ;;  %v4016_v44 = vpop.f32.mrb[116].mxu1  ;;  %8850 = vmatpush3.bf16.msra.mxu0 %v9429_v18  ;;  %v9430_v4 = vld [vmem:[#allocation8 + $0x108] ss:$12 sps:$4 sm:$0xff]   ;;  %v9436_v12 = vld [vmem:[#allocation8 + $0x124] ss:$12 sps:$4 sm:$0xff]  }
0x100c   : > { %v4017_v50 = vadd.f32 %v4016_v44, %v3865_v41  ;;  %v4018_v21 = vpop.f32.mrb[117].mxu1  ;;  %8851 = vmatprep.subr.bf16.mxu0 %v9433_v15  ;;  %v9440_v44 = vld [vmem:[#allocation8 + $0x13c] ss:$12 sps:$4 sm:$0xff]  }
0x100d   : > { %v4019_v5 = vadd.f32 %v4018_v21, %v3869_v60  ;;  %v4020_v31 = vpop.f32.mrb[118].mxu1  ;;  %4229 = vmatprep.mubr.bf16.mxu0 %v4046_v40  ;;  %v9434_v40 = vld [vmem:[#allocation8 + $0x120] ss:$12 sps:$4 sm:$0xff]   ;;  %v9438_v21 = vld [vmem:[#allocation8 + $0x138] ss:$12 sps:$4 sm:$0xff]  }
0x100e   : > { %v4021_v16 = vadd.f32 %v4020_v31, %v3865_v41  ;;  %v4022_v32 = vpop.f32.mrb[119].mxu1  ;;  %4230 = vmatmul.mubr.bf16.gmra.mrb[96].mxu0 %v4045_v28  ;;  %v4037_v59 = vmax.f32 %v4017_v50, 0.0  ;;  %v9437_v28 = vld [vmem:[#allocation8 + $0xf8] ss:$12 sps:$4 sm:$0xff]   ;;  %v9441_v50 = vld [vmem:[#allocation8 + $0x110] ss:$12 sps:$4 sm:$0xff]  }
0x100f   : > { %v4023_v53 = vadd.f32 %v4022_v32, %v3869_v60  ;;  %v4038_v6 = vmax.f32 %v4019_v5, 0.0  ;;  %8852 = vmatpush3.bf16.msra.mxu0 %v9433_v15  ;;  %v9444_v5 = vld [vmem:[#allocation8 + $0x154] ss:$12 sps:$4 sm:$0xff]   ;;  %v9448_v32 = vld [vmem:[#allocation8 + $0x16c] ss:$12 sps:$4 sm:$0xff]  }
0x1010   : > { %v4039_v63 = vmax.f32 %v4021_v16, 0.0  ;;  %8853 = vmatprep.subr.bf16.mxu0 %v9437_v28  ;;  %v9445_v31 = vld [vmem:[#allocation8 + $0x128] ss:$12 sps:$4 sm:$0xff]   ;;  %v9442_v16 = vld [vmem:[#allocation8 + $0x150] ss:$12 sps:$4 sm:$0xff]  }
0x1011   : > { %v4040_v57 = vmax.f32 %v4023_v53, 0.0  ;;  %v9449_v53 = vld [vmem:[#allocation8 + $0x140] ss:$12 sps:$4 sm:$0xff]  }
0x1012   : > { %v4047_v56 = vpack.c.bf16 %v4039_v63, %v4037_v59  ;;  %v9446_v59 = vld [vmem:[#allocation8 + $0x168] ss:$12 sps:$4 sm:$0xff]   ;;  %v9450_v63 = vld [vmem:[#allocation8 + $0x158] ss:$12 sps:$4 sm:$0xff]  }
0x1013   : > { %v4048_v58 = vpack.c.bf16 %v4040_v57, %v4038_v6  ;;  %8854 = vmatpush3.bf16.msra.mxu0 %v9437_v28  ;;  %v9451_v6 = vld [vmem:[#allocation8 + $0x170] ss:$12 sps:$4 sm:$0xff]  }
0x1014   : > { %8855 = vmatprep.subr.bf16.mxu0 %v9441_v50 }
0x1015   : > { %4237 = vmatprep.mubr.bf16.mxu0 %v4048_v58 }
0x1016   : > { %4238 = vmatmul.mubr.bf16.gmra.mrb[100].mxu0 %v4047_v56 }
0x1017   : > { %8856 = vmatpush3.bf16.msra.mxu0 %v9441_v50 }
0x1018   : > { %8857 = vmatprep.subr.bf16.mxu0 %v9445_v31 }
0x101b   : > { %8858 = vmatpush3.bf16.msra.mxu0 %v9445_v31 }
0x101c   : > { %8859 = vmatprep.subr.bf16.mxu0 %v9449_v53 }
0x101f   : > { %8860 = vmatpush3.bf16.msra.mxu0 %v9449_v53 }
0x1020   : > { %8861 = vmatprep.subr.bf16.mxu0 %v9450_v63 }
0x1023   : > { %8862 = vmatpush3.bf16.msra.mxu0 %v9450_v63 }
0x1024   : > { %8863 = vmatprep.subr.bf16.mxu0 %v9451_v6 }
0x1027   : > { %8864 = vmatpush3.bf16.msra.mxu0 %v9451_v6 }
0x1028   : > { %8873 = vmatprep.subr.bf16.mxu0 %v10114_v34 }
0x10a4   : > { %v8421_v2 = vpop.f32.mrb[88].mxu0 }
0x10a5   : > { %v8422_v41 = vpop.f32.mrb[89].mxu0 }
0x10a6   : > { %v8423_v1 = vadd.f32 %v8422_v41, %v8421_v2  ;;  %v8424_v60 = vpop.f32.mrb[90].mxu0 }
0x10a7   : > { %v8425_v17 = vpop.f32.mrb[91].mxu0 }
0x10a8   : > { %v4216_v46 = vadd.f32 %v8423_v1, %v11177_v48  ;;  %v8426_v54 = vadd.f32 %v8425_v17, %v8424_v60 }
0x10aa   : > { %v4219_v19 = vadd.f32 %v8426_v54, %v11177_v48  ;;  %v11182_v55 = vadd.f32 %v4216_v46, %v11124_v29 }
0x10ac   : > { %v8427_v8 = vpop.f32.mrb[92].mxu0  ;;  %4254 = vadd.xlane.f32.xlu0 %v11182_v55  ;;  %v11186_v22 = vadd.f32 %v4219_v19, %v11127_v25  ;;  %v4278_v0 = vmul.f32 %v11182_v55, %v11182_v55 }
0x10ad   : > { %v8428_v49 = vpop.f32.mrb[93].mxu0 }
0x10ae   : > { %v8429_v42 = vadd.f32 %v8428_v49, %v8427_v8  ;;  %v8430_v7 = vpop.f32.mrb[94].mxu0  ;;  %4256 = vadd.xlane.f32.xlu1 %v11186_v22  ;;  %v4279_v29 = vmul.f32 %v11186_v22, %v11186_v22 }
0x10af   : > { %v8431_v14 = vpop.f32.mrb[95].mxu0 }
0x10b0   : > { %v4224_v10 = vadd.f32 %v8429_v42, %v11177_v48  ;;  %v8432_v26 = vadd.f32 %v8431_v14, %v8430_v7  ;;  %4286 = vadd.xlane.f32.xlu0 %v4278_v0 }
0x10b2   : > { %v4227_v37 = vadd.f32 %v8432_v26, %v11177_v48  ;;  %4288 = vadd.xlane.f32.xlu1 %v4279_v29  ;;  %v11196_v25 = vadd.f32 %v4224_v10, %v11136_v20  ;;  %v9428_v20 = vld [vmem:[#allocation8 + $0xf4] ss:$12 sps:$4 sm:$0xff]  }
0x10b3   : > { %4588 = vmatprep.subr.bf16.mxu1 %v9428_v20 }
0x10b4   : > { %4258 = vadd.xlane.f32.xlu0 %v11196_v25  ;;  %v11200_v45 = vadd.f32 %v4227_v37, %v11139_v27  ;;  %v4280_v24 = vmul.f32 %v11196_v25, %v11196_v25  ;;  %4589 = vmatpush1.bf16.msra.mxu1 %v9426_v13  ;;  %v9432_v27 = vld [vmem:[#allocation8 + $0x10c] ss:$12 sps:$4 sm:$0xff]  }
0x10b5   : > { %4590 = vmatprep.subr.bf16.mxu1 %v9432_v27 }
0x10b6   : > { %4260 = vadd.xlane.f32.xlu1 %v11200_v45  ;;  %v4281_v30 = vmul.f32 %v11200_v45, %v11200_v45 }
0x10b8   : > { %4290 = vadd.xlane.f32.xlu0 %v4280_v24  ;;  %4591 = vmatpush1.bf16.msra.mxu1 %v9430_v4 }
0x10b9   : > { %4592 = vmatprep.subr.bf16.mxu1 %v9436_v12 }
0x10ba   : > { %4292 = vadd.xlane.f32.xlu1 %v4281_v30 }
0x10bc   : > { %4593 = vmatpush1.bf16.msra.mxu1 %v9434_v40 }
0x10bd   : > { %4594 = vmatprep.subr.bf16.mxu1 %v9440_v44 }
0x10c0   : > { %4595 = vmatpush1.bf16.msra.mxu1 %v9438_v21 }
0x10c1   : > { %4596 = vmatprep.subr.bf16.mxu1 %v9444_v5 }
0x10c4   : > { %4597 = vmatpush1.bf16.msra.mxu1 %v9442_v16 }
0x10c5   : > { %4598 = vmatprep.subr.bf16.mxu1 %v9448_v32 }
0x10c8   : > { %4599 = vmatpush1.bf16.msra.mxu1 %v9446_v59  ;;  %v12098_v59 = vsub.s32 4, %v10538_v35 }
0x10c9   : > { %8885 = vmatprep.subr.bf16.mxu1 %v10114_v34 }
0x10e1   : > { %v8433_v57 = vpop.f32.mrb[96].mxu0 }
0x10e2   : > { %v8434_v56 = vpop.f32.mrb[97].mxu0 }
0x10e3   : > { %v8435_v58 = vadd.f32 %v8434_v56, %v8433_v57  ;;  %v8436_v52 = vpop.f32.mrb[98].mxu0 }
0x10e4   : > { %v8437_v39 = vpop.f32.mrb[99].mxu0 }
0x10e5   : > { %v4232_v2 = vadd.f32 %v8435_v58, %v11177_v48  ;;  %v8438_v41 = vadd.f32 %v8437_v39, %v8436_v52  ;;  %v11242_v58 = vrot.slane %v11046_v62, %v12098_v59  ;;  %v12097_v52 = vsub.s32 5, %v10538_v35 }
0x10e7   : > { %v4235_v1 = vadd.f32 %v8438_v41, %v11177_v48  ;;  %v11212_v60 = vadd.f32 %v4232_v2, %v11150_v3 }
0x10e9   : > { %v8439_v17 = vpop.f32.mrb[100].mxu0  ;;  %4262 = vadd.xlane.f32.xlu0 %v11212_v60  ;;  %v11216_v46 = vadd.f32 %v4235_v1, %v11153_v9  ;;  %v4282_v49 = vmul.f32 %v11212_v60, %v11212_v60 }
0x10ea   : > { %v8440_v54 = vpop.f32.mrb[101].mxu0 }
0x10eb   : > { %v8441_v19 = vadd.f32 %v8440_v54, %v8439_v17  ;;  %v8442_v8 = vpop.f32.mrb[102].mxu0  ;;  %4264 = vadd.xlane.f32.xlu1 %v11216_v46  ;;  %v4283_v3 = vmul.f32 %v11216_v46, %v11216_v46 }
0x10ec   : > { %v8443_v42 = vpop.f32.mrb[103].mxu0 }
0x10ed   : > { %v4240_v7 = vadd.f32 %v8441_v19, %v11177_v48  ;;  %v8444_v0 = vadd.f32 %v8443_v42, %v8442_v8  ;;  %4294 = vadd.xlane.f32.xlu0 %v4282_v49 }
0x10ef   : > { %v4243_v14 = vadd.f32 %v8444_v0, %v11177_v48  ;;  %4296 = vadd.xlane.f32.xlu1 %v4283_v3  ;;  %v11226_v9 = vadd.f32 %v4240_v7, %v11162_v61 }
0x10f1   : > { %4266 = vadd.xlane.f32.xlu0 %v11226_v9  ;;  %v11230_v10 = vadd.f32 %v4243_v14, %v11165_v23  ;;  %v4284_v26 = vmul.f32 %v11226_v9, %v11226_v9 }
0x10f3   : > { %4268 = vadd.xlane.f32.xlu1 %v11230_v10  ;;  %v4285_v29 = vmul.f32 %v11230_v10, %v11230_v10 }
0x10f5   : > { %4298 = vadd.xlane.f32.xlu0 %v4284_v26 }
0x10f7   : > { %4300 = vadd.xlane.f32.xlu1 %v4285_v29 }
0x1139   : > { %v4255_v48 = vpop.xlane.xlu0 %4254 }
0x113a   : > { %v4270_v37 = vmul.f32 0.0078125, %v4255_v48 }
0x113b   : > { %v4257_v24 = vpop.xlane.xlu1 %4256 }
0x113c   : > { %v4271_v61 = vmul.f32 0.0078125, %v4257_v24  ;;  %v4310_v11 = vmul.f32 %v4270_v37, %v4270_v37  ;;  %v4326_v56 = vsub.f32 %v11182_v55, %v4270_v37  ;;  %v11250_v55 = vrot.slane %v11046_v62, %v12097_v52 }
0x113d   : > { %v4287_v30 = vpop.xlane.xlu0 %4286 }
0x113e   : > { %v4302_v33 = vmul.f32 0.0078125, %v4287_v30  ;;  %v4311_v23 = vmul.f32 %v4271_v61, %v4271_v61  ;;  %v4327_v2 = vsub.f32 %v11186_v22, %v4271_v61 }
0x113f   : > { %v4289_v20 = vpop.xlane.xlu1 %4288 }
0x1140   : > { %v4318_v18 = vsub.f32 %v4302_v33, %v4310_v11  ;;  %v4303_v13 = vmul.f32 0.0078125, %v4289_v20 }
0x1141   : > { %v4259_v27 = vpop.xlane.xlu0 %4258 }
0x1142   : > { %v4334_v15 = vadd.f32 1e-05, %v4318_v18  ;;  %v4319_v4 = vsub.f32 %v4303_v13, %v4311_v23  ;;  %v4272_v12 = vmul.f32 0.0078125, %v4259_v27 }
0x1143   : > { %v4261_v28 = vpop.xlane.xlu1 %4260 }
0x1144   : > { %9644 = vrsqrt.f32 %v4334_v15  ;;  %v4335_v40 = vadd.f32 1e-05, %v4319_v4  ;;  %v4273_v44 = vmul.f32 0.0078125, %v4261_v28  ;;  %v4312_v21 = vmul.f32 %v4272_v12, %v4272_v12 }
0x1145   : > { %v4291_v50 = vpop.xlane.xlu0 %4290  ;;  %v4328_v8 = vsub.f32 %v11196_v25, %v4272_v12 }
0x1146   : > { %9646 = vrsqrt.f32 %v4335_v40  ;;  %v4304_v5 = vmul.f32 0.0078125, %v4291_v50  ;;  %v4313_v16 = vmul.f32 %v4273_v44, %v4273_v44  ;;  %v4329_v7 = vsub.f32 %v11200_v45, %v4273_v44 }
0x1147   : > { %v4293_v31 = vpop.xlane.xlu1 %4292 }
0x1148   : > { %v4320_v32 = vsub.f32 %v4304_v5, %v4312_v21  ;;  %v4305_v53 = vmul.f32 0.0078125, %v4293_v31 }
0x114a   : > { %v4336_v63 = vadd.f32 1e-05, %v4320_v32  ;;  %v4321_v6 = vsub.f32 %v4305_v53, %v4313_v16 }
0x114c   : > { %9648 = vrsqrt.f32 %v4336_v63  ;;  %v4337_v57 = vadd.f32 1e-05, %v4321_v6 }
0x114e   : > { %v9645_v39 = vpop.eup %9644  ;;  %9650 = vrsqrt.f32 %v4337_v57 }
0x114f   : > { %v4350_v41 = vmul.f32 %v9645_v39, %v4326_v56 }
0x1150   : > { %v9647_v1 = vpop.eup %9646 }
0x1151   : > { %v4351_v17 = vmul.f32 %v9647_v1, %v4327_v2  ;;  %v4362_v54 = vmul.f32 %v11242_v58, %v4350_v41 }
0x1153   : > { %v4363_v19 = vmul.f32 %v11242_v58, %v4351_v17  ;;  %v11255_v49 = vadd.f32 %v11250_v55, %v4362_v54 }
0x1155   : > { %v11258_v42 = vadd.f32 %v11250_v55, %v4363_v19 }
0x1156   : > { %v9649_v22 = vpop.eup %9648 }
0x1157   : > { %v4401_v0 = vpack.c.bf16 %v11258_v42, %v11255_v49  ;;  %v4352_v3 = vmul.f32 %v9649_v22, %v4328_v8 }
0x1158   : > { %v9651_v14 = vpop.eup %9650 }
0x1159   : > { %4617 = vmatmul.mubr.bf16.vlgmr.msra.gmra.mrb[120].mxu1 %v4401_v0  ;;  %8865 = vmatprep.mubr.bf16.mxu0 %v4401_v0  ;;  %v4353_v62 = vmul.f32 %v9651_v14, %v4329_v7  ;;  %v4364_v26 = vmul.f32 %v11242_v58, %v4352_v3 }
0x115a   : > { %4626 = vmatprep.mubr.bf16.mxu1 %v12124_v43 }
0x115b   : > { %v4365_v25 = vmul.f32 %v11242_v58, %v4353_v62  ;;  %v11267_v29 = vadd.f32 %v11250_v55, %v4364_v26 }
0x115d   : > { %v11270_v48 = vadd.f32 %v11250_v55, %v4365_v25 }
0x115f   : > { %v4402_v45 = vpack.c.bf16 %v11270_v48, %v11267_v29 }
0x1161   : > { %4627 = vmatmul.mubr.bf16.gmra.mrb[124].mxu1 %v4402_v45  ;;  %8866 = vmatmul.mubr.bf16.vlgmr.msra.gmra.mrb[104].mxu0 %v4402_v45 }
0x1162   : > { %4636 = vmatprep.mubr.bf16.mxu1 %v12124_v43 }
0x1176   : > { %v4263_v37 = vpop.xlane.xlu0 %4262 }
0x1177   : > { %v4274_v24 = vmul.f32 0.0078125, %v4263_v37 }
0x1178   : > { %v4265_v61 = vpop.xlane.xlu1 %4264 }
0x1179   : > { %v4275_v30 = vmul.f32 0.0078125, %v4265_v61  ;;  %v4314_v33 = vmul.f32 %v4274_v24, %v4274_v24  ;;  %v4330_v39 = vsub.f32 %v11212_v60, %v4274_v24 }
0x117a   : > { %v4295_v11 = vpop.xlane.xlu0 %4294 }
0x117b   : > { %v4306_v20 = vmul.f32 0.0078125, %v4295_v11  ;;  %v4315_v18 = vmul.f32 %v4275_v30, %v4275_v30  ;;  %v4331_v41 = vsub.f32 %v11216_v46, %v4275_v30 }
0x117c   : > { %v4297_v23 = vpop.xlane.xlu1 %4296 }
0x117d   : > { %v4322_v13 = vsub.f32 %v4306_v20, %v4314_v33  ;;  %v4307_v27 = vmul.f32 0.0078125, %v4297_v23 }
0x117e   : > { %v4267_v15 = vpop.xlane.xlu0 %4266 }
0x117f   : > { %v4338_v4 = vadd.f32 1e-05, %v4322_v13  ;;  %v4323_v12 = vsub.f32 %v4307_v27, %v4315_v18  ;;  %v4276_v28 = vmul.f32 0.0078125, %v4267_v15 }
0x1180   : > { %v4269_v40 = vpop.xlane.xlu1 %4268 }
0x1181   : > { %9652 = vrsqrt.f32 %v4338_v4  ;;  %v4339_v44 = vadd.f32 1e-05, %v4323_v12  ;;  %v4277_v50 = vmul.f32 0.0078125, %v4269_v40  ;;  %v4316_v5 = vmul.f32 %v4276_v28, %v4276_v28 }
0x1182   : > { %v4299_v21 = vpop.xlane.xlu0 %4298  ;;  %v4332_v22 = vsub.f32 %v11226_v9, %v4276_v28 }
0x1183   : > { %9654 = vrsqrt.f32 %v4339_v44  ;;  %v4308_v31 = vmul.f32 0.0078125, %v4299_v21  ;;  %v4317_v32 = vmul.f32 %v4277_v50, %v4277_v50  ;;  %v4333_v3 = vsub.f32 %v11230_v10, %v4277_v50 }
0x1184   : > { %v4301_v16 = vpop.xlane.xlu1 %4300 }
0x1185   : > { %v4324_v53 = vsub.f32 %v4308_v31, %v4316_v5  ;;  %v4309_v63 = vmul.f32 0.0078125, %v4301_v16 }
0x1187   : > { %v4340_v6 = vadd.f32 1e-05, %v4324_v53  ;;  %v4325_v57 = vsub.f32 %v4309_v63, %v4317_v32 }
0x1189   : > { %9656 = vrsqrt.f32 %v4340_v6  ;;  %v4341_v56 = vadd.f32 1e-05, %v4325_v57 }
0x118b   : > { %v9653_v2 = vpop.eup %9652  ;;  %9658 = vrsqrt.f32 %v4341_v56 }
0x118c   : > { %v4354_v1 = vmul.f32 %v9653_v2, %v4330_v39 }
0x118d   : > { %v9655_v17 = vpop.eup %9654 }
0x118e   : > { %v4355_v54 = vmul.f32 %v9655_v17, %v4331_v41  ;;  %v4366_v19 = vmul.f32 %v11242_v58, %v4354_v1 }
0x1190   : > { %v4367_v8 = vmul.f32 %v11242_v58, %v4355_v54  ;;  %v11281_v7 = vadd.f32 %v11250_v55, %v4366_v19 }
0x1192   : > { %v11284_v0 = vadd.f32 %v11250_v55, %v4367_v8 }
0x1193   : > { %v9657_v60 = vpop.eup %9656 }
0x1194   : > { %v4403_v46 = vpack.c.bf16 %v11284_v0, %v11281_v7  ;;  %v4356_v14 = vmul.f32 %v9657_v60, %v4332_v22 }
0x1195   : > { %v9659_v62 = vpop.eup %9658 }
0x1196   : > { %4637 = vmatmul.mubr.bf16.gmra.mrb[128].mxu1 %v4403_v46  ;;  %8869 = vmatprep.mubr.bf16.mxu0 %v4403_v46  ;;  %v4357_v26 = vmul.f32 %v9659_v62, %v4333_v3  ;;  %v4368_v25 = vmul.f32 %v11242_v58, %v4356_v14 }
0x1197   : > { %4646 = vmatprep.mubr.bf16.mxu1 %v12124_v43 }
0x1198   : > { %v4369_v9 = vmul.f32 %v11242_v58, %v4357_v26  ;;  %v11293_v45 = vadd.f32 %v11250_v55, %v4368_v25  ;;  %v8103_v58 = vld [vmem:[%s12079_s5 + $0x3] sm:$0x7] }
0x1199   : > { %v11308_v24 = vrot.slane %v8103_v58, %v10541_v36  ;;  %v11311_v61 = vrot.slane %v8103_v58, %v10547_v38  ;;  %v4452_v4 = vrot.slane %v8103_v58, %v10558_v47 }
0x119a   : > { %v11296_v37 = vadd.f32 %v11250_v55, %v4369_v9 }
0x119c   : > { %v4404_v10 = vpack.c.bf16 %v11296_v37, %v11293_v45 }
0x119e   : > { %4647 = vmatmul.mubr.bf16.gmra.mrb[132].mxu1 %v4404_v10  ;;  %8870 = vmatmul.mubr.bf16.gmra.mrb[108].mxu0 %v4404_v10 }
0x119f   : > { %8875 = vmatprep.mubr.msk.bf16.mxu0 %vm10115_vm0, %v10114_v34  ;;  %8887 = vmatprep.mubr.msk.bf16.mxu1 %vm10115_vm0, %v10114_v34 }
0x122c   : > { %v4618_v55 = vpop.f32.mrb[120].mxu1 }
0x122d   : > { %v4620_v30 = vpop.f32.mrb[121].mxu1  ;;  %v4619_v33 = vadd.f32 %v4618_v55, %v11308_v24 }
0x122e   : > { %v4622_v11 = vpop.f32.mrb[122].mxu1  ;;  %v4621_v18 = vadd.f32 %v4620_v30, %v11311_v61 }
0x122f   : > { %v4623_v20 = vadd.f32 %v4622_v11, %v11308_v24  ;;  %v4624_v23 = vpop.f32.mrb[123].mxu1 }
0x1230   : > { %v4625_v13 = vadd.f32 %v4624_v23, %v11311_v61 }
0x1231   : > { %v11317_v27 = vpack.c.bf16 %v4623_v20, %v4619_v33 }
0x1232   : > { %v11319_v15 = vpack.c.bf16 %v4625_v13, %v4621_v18 }
0x1234   : > { %v4628_v12 = vpop.f32.mrb[124].mxu1  ;;  %v8867_v28 = vpop.f32.mrb[104].mxu0  ;;  %v4738_v40 = vsel %vm1349_vm1, %v11319_v15, 0 }
0x1235   : > { %v4630_v44 = vpop.f32.mrb[125].mxu1  ;;  %v4691_v50 = vpop.f32.mrb[105].mxu0  ;;  %8874 = vmatpush3.bf16.xpose.msra.mxu0 %v4738_v40  ;;  %v4629_v31 = vadd.f32 %v4628_v12, %v11308_v24  ;;  %v4700_v16 = vadd.f32 %v8867_v28, %v4452_v4 }
0x1236   : > { %v4632_v21 = vpop.f32.mrb[126].mxu1  ;;  %v8868_v5 = vpop.f32.mrb[106].mxu0  ;;  %8879 = vmatprep.subr.bf16.mxu0 %v10114_v34  ;;  %v4631_v57 = vadd.f32 %v4630_v44, %v11311_v61  ;;  %v4692_v56 = vadd.f32 %v4691_v50, %v4452_v4 }
0x1237   : > { %v4633_v32 = vadd.f32 %v4632_v21, %v11308_v24  ;;  %v4703_v53 = vadd.f32 %v8868_v5, %v4452_v4  ;;  %v4634_v63 = vpop.f32.mrb[127].mxu1  ;;  %v4694_v6 = vpop.f32.mrb[107].mxu0 }
0x1238   : > { %v4635_v39 = vadd.f32 %v4634_v63, %v11311_v61  ;;  %v4695_v2 = vadd.f32 %v4694_v6, %v4452_v4 }
0x1239   : > { %v11329_v41 = vpack.c.bf16 %v4633_v32, %v4629_v31  ;;  %v11331_v1 = vpack.c.bf16 %v4703_v53, %v4700_v16 }
0x123a   : > { %v11333_v17 = vpack.c.bf16 %v4635_v39, %v4631_v57  ;;  %v11335_v54 = vpack.c.bf16 %v4695_v2, %v4692_v56 }
0x123c   : > { %8876 = vmatmul.mubr.msk.bf16.vlgmr.msra.gmra.mrb[112].mxu0 %vm1349_vm1, %v11317_v27  ;;  %v4785_v19 = vsel %vm1349_vm1, %v11333_v17, 0 }
0x123d   : > { %8880 = vmatpush3.bf16.xpose.msra.mxu0 %v4785_v19  ;;  %8881 = vmatprep.mubr.msk.bf16.mxu0 %vm10115_vm0, %v10114_v34 }
0x123e   : > { %8891 = vmatprep.subr.bf16.mxu0 %v10114_v34 }
0x1244   : > { %8882 = vmatmul.mubr.msk.bf16.vlgmr.msra.gmra.mrb[116].mxu0 %vm1349_vm1, %v11329_v41 }
0x1245   : > { %8893 = vmatprep.mubr.msk.bf16.mxu0 %vm10115_vm0, %v10114_v34 }
0x1269   : > { %v4638_v8 = vpop.f32.mrb[128].mxu1 }
0x126a   : > { %v4640_v22 = vpop.f32.mrb[129].mxu1  ;;  %v4639_v3 = vadd.f32 %v4638_v8, %v11308_v24 }
0x126b   : > { %v4642_v60 = vpop.f32.mrb[130].mxu1  ;;  %v4641_v62 = vadd.f32 %v4640_v22, %v11311_v61 }
0x126c   : > { %v4643_v46 = vadd.f32 %v4642_v60, %v11308_v24  ;;  %v4644_v14 = vpop.f32.mrb[131].mxu1 }
0x126d   : > { %v4645_v26 = vadd.f32 %v4644_v14, %v11311_v61 }
0x126e   : > { %v11352_v25 = vpack.c.bf16 %v4643_v46, %v4639_v3 }
0x126f   : > { %v11354_v9 = vpack.c.bf16 %v4645_v26, %v4641_v62 }
0x1271   : > { %v4648_v10 = vpop.f32.mrb[132].mxu1  ;;  %v8871_v58 = vpop.f32.mrb[108].mxu0  ;;  %v4832_v55 = vsel %vm1349_vm1, %v11354_v9, 0 }
0x1272   : > { %v4716_v30 = vadd.f32 %v8871_v58, %v4452_v4  ;;  %v4650_v11 = vpop.f32.mrb[133].mxu1  ;;  %v4707_v33 = vpop.f32.mrb[109].mxu0  ;;  %8886 = vmatpush3.bf16.xpose.msra.mxu1 %v4832_v55  ;;  %v4649_v13 = vadd.f32 %v4648_v10, %v11308_v24 }
0x1273   : > { %v4708_v20 = vadd.f32 %v4707_v33, %v4452_v4  ;;  %v4652_v23 = vpop.f32.mrb[134].mxu1  ;;  %v8872_v18 = vpop.f32.mrb[110].mxu0  ;;  %8897 = vmatprep.subr.bf16.mxu1 %v10114_v34  ;;  %v4651_v50 = vadd.f32 %v4650_v11, %v11311_v61 }
0x1274   : > { %v4653_v12 = vadd.f32 %v4652_v23, %v11308_v24  ;;  %v4719_v28 = vadd.f32 %v8872_v18, %v4452_v4  ;;  %v4654_v40 = vpop.f32.mrb[135].mxu1  ;;  %v4710_v44 = vpop.f32.mrb[111].mxu0 }
0x1275   : > { %v4655_v21 = vadd.f32 %v4654_v40, %v11311_v61  ;;  %v4711_v5 = vadd.f32 %v4710_v44, %v4452_v4 }
0x1276   : > { %v11363_v31 = vpack.c.bf16 %v4653_v12, %v4649_v13  ;;  %v11365_v16 = vpack.c.bf16 %v4719_v28, %v4716_v30 }
0x1277   : > { %v11367_v32 = vpack.c.bf16 %v4655_v21, %v4651_v50  ;;  %v11369_v53 = vpack.c.bf16 %v4711_v5, %v4708_v20 }
0x1279   : > { %8888 = vmatmul.mubr.msk.bf16.vlgmr.msra.gmra.mrb[136].mxu1 %vm1349_vm1, %v11352_v25  ;;  %v4879_v24 = vsel %vm1349_vm1, %v11367_v32, 0 }
0x127a   : > { %8892 = vmatpush3.bf16.xpose.msra.mxu0 %v4879_v24  ;;  %8898 = vmatpush3.bf16.msra.mxu1 %v11335_v54 }
0x127b   : > { %8903 = vmatprep.subr.bf16.mxu0 %v10114_v34  ;;  %8899 = vmatprep.mubr.msk.bf16.mxu1 %vm10115_vm0, %v10114_v34 }
0x127c   : > { %8909 = vmatprep.subr.bf16.mxu1 %v10114_v34 }
0x1281   : > { %8894 = vmatmul.mubr.msk.bf16.vlgmr.msra.gmra.mrb[120].mxu0 %vm1349_vm1, %v11363_v31 }
0x1282   : > { %8904 = vmatpush3.bf16.msra.mxu0 %v11331_v1  ;;  %8905 = vmatprep.mubr.msk.bf16.mxu0 %vm10115_vm0, %v10114_v34 }
0x1283   : > { %8915 = vmatprep.subr.bf16.mxu0 %v10114_v34 }
0x130f   : > { %v4774_v61 = vpop.f32.mrb[112].mxu0 }
0x1310   : > { %v8877_v4 = vpop.f32.mrb[113].mxu0 }
0x1311   : > { %v11386_v63 = vpop.f32.mrb[114].mxu0 }
0x1312   : > { %v8878_v6 = vpop.f32.mrb[115].mxu0 }
0x1317   : > { %v4821_v57 = vpop.f32.mrb[116].mxu0 }
0x1318   : > { %v4924_v56 = vmul.f32 0.17677669, %v4821_v57  ;;  %v8883_v39 = vpop.f32.mrb[117].mxu0 }
0x1319   : > { %v4824_v2 = vpop.f32.mrb[118].mxu0 }
0x131a   : > { %v4925_v19 = vmul.f32 0.17677669, %v4824_v2  ;;  %v8884_v8 = vpop.f32.mrb[119].mxu0  ;;  %v4936_v22 = vsel %vm1546_vm2, %v4924_v56, -inf }
0x131b   : > { %4937 = vmax.xlane.f32.xlu0 %v4936_v22 }
0x131c   : > { %v4939_v60 = vsel %vm1546_vm2, %v4925_v19, -inf }
0x131d   : > { %4940 = vmax.xlane.f32.xlu1 %v4939_v60  ;;  %v4922_v60 = vmul.f32 0.17677669, %v4774_v61 }
0x134c   : > { %v4868_v3 = vpop.f32.mrb[136].mxu1 }
0x134d   : > { %v8889_v46 = vpop.f32.mrb[137].mxu1 }
0x134e   : > { %v4871_v14 = vpop.f32.mrb[138].mxu1  ;;  %v4926_v46 = vmul.f32 0.17677669, %v4868_v3 }
0x134f   : > { %v8890_v62 = vpop.f32.mrb[139].mxu1 }
0x1350   : > { %v4930_v62 = vsel %vm1546_vm2, %v4922_v60, -inf }
0x1354   : > { %v4915_v26 = vpop.f32.mrb[120].mxu0 }
0x1355   : > { %v4928_v10 = vmul.f32 0.17677669, %v4915_v26  ;;  %v8895_v58 = vpop.f32.mrb[121].mxu0  ;;  %v4927_v26 = vmul.f32 0.17677669, %v4871_v14 }
0x1356   : > { %v4918_v55 = vpop.f32.mrb[122].mxu0  ;;  %v4923_v58 = vmul.f32 0.17677669, %v11386_v63 }
0x1357   : > { %v4929_v30 = vmul.f32 0.17677669, %v4918_v55  ;;  %v8896_v11 = vpop.f32.mrb[123].mxu0  ;;  %v4948_v33 = vsel %vm1546_vm2, %v4928_v10, -inf  ;;  %v4945_v55 = vsel %vm1546_vm2, %v4927_v26, -inf }
0x1358   : > { %4949 = vmax.xlane.f32.xlu0 %v4948_v33 }
0x1359   : > { %v4951_v20 = vsel %vm1546_vm2, %v4929_v30, -inf }
0x135a   : > { %4952 = vmax.xlane.f32.xlu1 %v4951_v20 }
0x13a8   : > { %v4938_v23 = vpop.xlane.xlu0 %4937 }
0x13a9   : > { %v4956_v18 = vsub.f32 %v4924_v56, %v4938_v23 }
0x13aa   : > { %v4941_v13 = vpop.xlane.xlu1 %4940 }
0x13ab   : > { %v4966_v12 = vmul.f32 1.442695, %v4956_v18  ;;  %v4957_v28 = vsub.f32 %v4925_v19, %v4941_v13 }
0x13ad   : > { %9660 = vpow2.f32 %v4966_v12  ;;  %v4968_v40 = vmul.f32 1.442695, %v4957_v28 }
0x13af   : > { %9662 = vpow2.f32 %v4968_v40 }
0x13b7   : > { %v9661_v44 = vpop.eup %9660 }
0x13b8   : > { %v4984_v50 = vsel %vm1546_vm2, %v9661_v44, 0.0 }
0x13b9   : > { %v9663_v21 = vpop.eup %9662  ;;  %4985 = vadd.xlane.f32.xlu0 %v4984_v50 }
0x13ba   : > { %v4987_v5 = vsel %vm1546_vm2, %v9663_v21, 0.0 }
0x13bb   : > { %4988 = vadd.xlane.f32.xlu1 %v4987_v5 }
0x13e5   : > { %v4950_v24 = vpop.xlane.xlu0 %4949 }
0x13e6   : > { %v4960_v4 = vsub.f32 %v4928_v10, %v4950_v24  ;;  %v4942_v10 = vsel %vm1546_vm2, %v4926_v46, -inf }
0x13e7   : > { %v4953_v6 = vpop.xlane.xlu1 %4952 }
0x13e8   : > { %v4974_v57 = vmul.f32 1.442695, %v4960_v4  ;;  %v4961_v39 = vsub.f32 %v4929_v30, %v4953_v6  ;;  %v4933_v30 = vsel %vm1546_vm2, %v4923_v58, -inf }
0x13ea   : > { %9664 = vpow2.f32 %v4974_v57  ;;  %v4976_v56 = vmul.f32 1.442695, %v4961_v39 }
0x13ec   : > { %9666 = vpow2.f32 %v4976_v56 }
0x13f4   : > { %v9665_v2 = vpop.eup %9664 }
0x13f5   : > { %v4996_v19 = vsel %vm1546_vm2, %v9665_v2, 0.0 }
0x13f6   : > { %v9667_v8 = vpop.eup %9666  ;;  %4997 = vadd.xlane.f32.xlu0 %v4996_v19 }
0x13f7   : > { %v4999_v22 = vsel %vm1546_vm2, %v9667_v8, 0.0 }
0x13f8   : > { %5000 = vadd.xlane.f32.xlu1 %v4999_v22 }
0x1409   : > { %5256 = vrot.lane.b32.xlu1 %v11329_v41, %s10116_s12 }
0x140c   : > { %5259 = vrot.lane.b32.xlu0 %v11333_v17, %s10116_s12 }
0x140d   : > { %5365 = vrot.lane.b32.xlu1 %v11367_v32, %s10116_s12 }
0x1411   : > { %5362 = vrot.lane.b32.xlu1 %v11363_v31, %s10116_s12 }
0x142b   : > { %4931 = vmax.xlane.f32.xlu0 %v4930_v62 }
0x142f   : > { %4943 = vmax.xlane.f32.xlu0 %v4942_v10 }
0x1433   : > { %4946 = vmax.xlane.f32.xlu0 %v4945_v55 }
0x1435   : > { %4934 = vmax.xlane.f32.xlu1 %v4933_v30 }
0x1446   : > { %v4986_v11 = vpop.xlane.xlu0 %4985 }
0x1447   : > { %9668 = vrcp.f32 %v4986_v11 }
0x1448   : > { %v4989_v33 = vpop.xlane.xlu1 %4988 }
0x1449   : > { %9670 = vrcp.f32 %v4989_v33 }
0x1451   : > { %v9669_v61 = vpop.eup %9668 }
0x1452   : > { %v5012_v20 = vmul.f32 %v9669_v61, %v9661_v44 }
0x1453   : > { %v9671_v3 = vpop.eup %9670 }
0x1454   : > { %v5013_v23 = vmul.f32 %v9671_v3, %v9663_v21 }
0x1456   : > { %v5019_v14 = vpack.c.bf16 %v5013_v23, %v5012_v20 }
0x1458   : > { %8906 = vmatmul.mubr.msk.bf16.vlgmr.msra.gmra.mrb[124].mxu0 %vm1546_vm2, %v5019_v14 }
0x1459   : > { %8916 = vmatpush3.bf16.msra.mxu0 %v11365_v16  ;;  %8917 = vmatprep.mubr.msk.bf16.mxu0 %vm10115_vm0, %v10114_v34 }
0x145a   : > { %8927 = vmatprep.subr.bf16.mxu0 %v10114_v34 }
0x1483   : > { %v4998_v63 = vpop.xlane.xlu0 %4997 }
0x1484   : > { %9672 = vrcp.f32 %v4998_v63 }
0x1485   : > { %v5001_v18 = vpop.xlane.xlu1 %5000 }
0x1486   : > { %9674 = vrcp.f32 %v5001_v18 }
0x1487   : > { %v5260_v44 = vpop.permute.xlu0 %5259 }
0x1488   : > { %v5265_v5 = vsel %vm1349_vm1, %v5260_v44, 0 }
0x1489   : > { %v5257_v21 = vpop.permute.xlu1 %5256 }
0x148d   : > { %v5366_v24 = vpop.permute.xlu1 %5365 }
0x148e   : > { %v9673_v13 = vpop.eup %9672  ;;  %v5371_v4 = vsel %vm1349_vm1, %v5366_v24, 0 }
0x148f   : > { %v5016_v28 = vmul.f32 %v9673_v13, %v9665_v2 }
0x1490   : > { %v9675_v12 = vpop.eup %9674 }
0x1491   : > { %v5017_v40 = vmul.f32 %v9675_v12, %v9667_v8  ;;  %v5363_v6 = vpop.permute.xlu1 %5362 }
0x1493   : > { %v5021_v50 = vpack.c.bf16 %v5017_v40, %v5016_v28 }
0x1495   : > { %8918 = vmatmul.mubr.msk.bf16.vlgmr.msra.gmra.mrb[128].mxu0 %vm1546_vm2, %v5021_v50 }
0x1496   : > { %8928 = vmatpush3.bf16.xpose.msra.mxu0 %v5265_v5  ;;  %8929 = vmatprep.mubr.msk.bf16.mxu0 %vm10115_vm0, %v10114_v34 }
0x1497   : > { %8939 = vmatprep.subr.bf16.mxu0 %v10114_v34 }
0x149d   : > { %8930 = vmatmul.mubr.msk.bf16.vlgmr.msra.gmra.mrb[132].mxu0 %vm1349_vm1, %v5257_v21 }
0x149e   : > { %8940 = vmatpush3.bf16.xpose.msra.mxu0 %v5371_v4  ;;  %8941 = vmatprep.mubr.msk.bf16.mxu0 %vm10115_vm0, %v10114_v34 }
0x149f   : > { %8951 = vmatprep.subr.bf16.mxu0 %v10114_v34 }
0x14a5   : > { %8942 = vmatmul.mubr.msk.bf16.vlgmr.msra.gmra.mrb[136].mxu0 %vm1349_vm1, %v5363_v6 }
0x14a6   : > { %8953 = vmatprep.mubr.msk.bf16.mxu0 %vm10115_vm0, %v10114_v34 }
0x14b8   : > { %v4932_v57 = vpop.xlane.xlu0 %4931 }
0x14b9   : > { %v4954_v39 = vsub.f32 %v4922_v60, %v4932_v57 }
0x14bb   : > { %v4962_v56 = vmul.f32 1.442695, %v4954_v39 }
0x14bc   : > { %v4944_v2 = vpop.xlane.xlu0 %4943 }
0x14bd   : > { %9676 = vpow2.f32 %v4962_v56  ;;  %v4958_v19 = vsub.f32 %v4926_v46, %v4944_v2 }
0x14bf   : > { %v4970_v8 = vmul.f32 1.442695, %v4958_v19 }
0x14c0   : > { %v4947_v22 = vpop.xlane.xlu0 %4946 }
0x14c1   : > { %9678 = vpow2.f32 %v4970_v8  ;;  %v4959_v62 = vsub.f32 %v4927_v26, %v4947_v22 }
0x14c2   : > { %v4935_v10 = vpop.xlane.xlu1 %4934 }
0x14c3   : > { %v4955_v55 = vsub.f32 %v4923_v58, %v4935_v10  ;;  %v4972_v30 = vmul.f32 1.442695, %v4959_v62 }
0x14c5   : > { %v4964_v11 = vmul.f32 1.442695, %v4955_v55 }
0x14c7   : > { %v9677_v33 = vpop.eup %9676  ;;  %9680 = vpow2.f32 %v4964_v11 }
0x14c8   : > { %v4978_v61 = vsel %vm1546_vm2, %v9677_v33, 0.0  ;;  %9682 = vpow2.f32 %v4972_v30 }
0x14c9   : > { %4979 = vadd.xlane.f32.xlu0 %v4978_v61 }
0x14cb   : > { %v9679_v3 = vpop.eup %9678 }
0x14cc   : > { %v4990_v60 = vsel %vm1546_vm2, %v9679_v3, 0.0 }
0x14cd   : > { %4991 = vadd.xlane.f32.xlu0 %v4990_v60 }
0x14d1   : > { %v9681_v20 = vpop.eup %9680 }
0x14d2   : > { %v4981_v46 = vsel %vm1546_vm2, %v9681_v20, 0.0  ;;  %v9683_v23 = vpop.eup %9682 }
0x14d3   : > { %4982 = vadd.xlane.f32.xlu1 %v4981_v46  ;;  %v4993_v26 = vsel %vm1546_vm2, %v9683_v23, 0.0 }
0x14d7   : > { %4994 = vadd.xlane.f32.xlu1 %v4993_v26 }
0x14e3   : > { %5206 = vrot.lane.b32.xlu0 %v11319_v15, %s10116_s12 }
0x14e8   : > { %5203 = vrot.lane.b32.xlu1 %v11317_v27, %s10116_s12 }
0x14ec   : > { %5312 = vrot.lane.b32.xlu1 %v11354_v9, %s10116_s12 }
0x14f0   : > { %5309 = vrot.lane.b32.xlu1 %v11352_v25, %s10116_s12 }
0x152b   : > { %v11439_v58 = vpop.f32.mrb[124].mxu0 }
0x152c   : > { %v8907_v14 = vpop.f32.mrb[125].mxu0 }
0x152d   : > { %v11441_v63 = vpop.f32.mrb[126].mxu0 }
0x152e   : > { %v8908_v13 = vpop.f32.mrb[127].mxu0 }
0x1556   : > { %v4980_v12 = vpop.xlane.xlu0 %4979 }
0x1557   : > { %9684 = vrcp.f32 %v4980_v12 }
0x155a   : > { %v4992_v40 = vpop.xlane.xlu0 %4991 }
0x155e   : > { %v5207_v46 = vpop.permute.xlu0 %5206 }
0x1560   : > { %v4983_v28 = vpop.xlane.xlu1 %4982 }
0x1561   : > { %9686 = vrcp.f32 %v4983_v28  ;;  %v9685_v21 = vpop.eup %9684 }
0x1562   : > { %v5010_v39 = vmul.f32 %v9685_v21, %v9677_v33 }
0x1564   : > { %v4995_v44 = vpop.xlane.xlu1 %4994 }
0x1565   : > { %9688 = vrcp.f32 %v4995_v44 }
0x1566   : > { %9690 = vrcp.f32 %v4992_v40 }
0x1568   : > { %v11445_v50 = vpop.f32.mrb[128].mxu0  ;;  %v5204_v14 = vpop.permute.xlu1 %5203 }
0x1569   : > { %v8919_v5 = vpop.f32.mrb[129].mxu0 }
0x156a   : > { %v11447_v24 = vpop.f32.mrb[130].mxu0 }
0x156b   : > { %v9687_v4 = vpop.eup %9686  ;;  %v8920_v57 = vpop.f32.mrb[131].mxu0 }
0x156c   : > { %v5011_v56 = vmul.f32 %v9687_v4, %v9681_v20  ;;  %v5313_v5 = vpop.permute.xlu1 %5312 }
0x156d   : > { %v5318_v57 = vsel %vm1349_vm1, %v5313_v5, 0 }
0x156e   : > { %v5018_v2 = vpack.c.bf16 %v5011_v56, %v5010_v39 }
0x156f   : > { %v9689_v19 = vpop.eup %9688 }
0x1570   : > { %8900 = vmatmul.mubr.msk.bf16.vlgmr.msra.gmra.mrb[140].mxu1 %vm1546_vm2, %v5018_v2  ;;  %v5301_v8 = vpop.f32.mrb[132].mxu0  ;;  %v9691_v22 = vpop.eup %9690  ;;  %v5015_v55 = vmul.f32 %v9689_v19, %v9683_v23  ;;  %v5212_v23 = vsel %vm1349_vm1, %v5207_v46, 0 }
0x1571   : > { %8910 = vmatpush3.bf16.msra.mxu1 %v11369_v53  ;;  %v5416_v62 = vmul.f32 0.17677669, %v5301_v8  ;;  %v8931_v10 = vpop.f32.mrb[133].mxu0  ;;  %8911 = vmatprep.mubr.msk.bf16.mxu1 %vm10115_vm0, %v10114_v34  ;;  %v5014_v60 = vmul.f32 %v9691_v22, %v9679_v3  ;;  %v5310_v39 = vpop.permute.xlu1 %5309 }
0x1572   : > { %v5304_v30 = vpop.f32.mrb[134].mxu0  ;;  %8921 = vmatprep.subr.bf16.mxu1 %v10114_v34 }
0x1573   : > { %v5417_v11 = vmul.f32 0.17677669, %v5304_v30  ;;  %v8932_v33 = vpop.f32.mrb[135].mxu0  ;;  %v5428_v61 = vsel %vm1546_vm2, %v5416_v62, -inf  ;;  %v5020_v26 = vpack.c.bf16 %v5015_v55, %v5014_v60 }
0x1574   : > { %5429 = vmax.xlane.f32.xlu0 %v5428_v61 }
0x1575   : > { %v5431_v20 = vsel %vm1546_vm2, %v5417_v11, -inf }
0x1576   : > { %5432 = vmax.xlane.f32.xlu1 %v5431_v20 }
0x1578   : > { %8912 = vmatmul.mubr.msk.bf16.vlgmr.msra.gmra.mrb[144].mxu1 %vm1546_vm2, %v5020_v26  ;;  %v5407_v13 = vpop.f32.mrb[136].mxu0 }
0x1579   : > { %v5420_v12 = vmul.f32 0.17677669, %v5407_v13  ;;  %v8943_v28 = vpop.f32.mrb[137].mxu0  ;;  %8923 = vmatprep.mubr.msk.bf16.mxu1 %vm10115_vm0, %v10114_v34 }
0x157a   : > { %8922 = vmatpush3.bf16.xpose.msra.mxu1 %v5212_v23  ;;  %v5410_v40 = vpop.f32.mrb[138].mxu0 }
0x157b   : > { %v5421_v3 = vmul.f32 0.17677669, %v5410_v40  ;;  %v8944_v44 = vpop.f32.mrb[139].mxu0  ;;  %v5440_v21 = vsel %vm1546_vm2, %v5420_v12, -inf  ;;  %8933 = vmatprep.subr.bf16.mxu1 %v10114_v34 }
0x157c   : > { %5441 = vmax.xlane.f32.xlu0 %v5440_v21 }
0x157d   : > { %v5443_v4 = vsel %vm1546_vm2, %v5421_v3, -inf }
0x1580   : > { %5444 = vmax.xlane.f32.xlu0 %v5443_v4 }
0x1581   : > { %8924 = vmatmul.mubr.msk.bf16.vlgmr.msra.gmra.mrb[148].mxu1 %vm1349_vm1, %v5204_v14 }
0x1582   : > { %8934 = vmatpush3.bf16.xpose.msra.mxu1 %v5318_v57  ;;  %8935 = vmatprep.mubr.msk.bf16.mxu1 %vm10115_vm0, %v10114_v34 }
0x1583   : > { %8945 = vmatprep.subr.bf16.mxu1 %v10114_v34 }
0x1589   : > { %8936 = vmatmul.mubr.msk.bf16.vlgmr.msra.gmra.mrb[152].mxu1 %vm1349_vm1, %v5310_v39 }
0x158a   : > { %8947 = vmatprep.mubr.msk.bf16.mxu1 %vm10115_vm0, %v10114_v34 }
0x1601   : > { %v5430_v56 = vpop.xlane.xlu0 %5429 }
0x1602   : > { %v5448_v2 = vsub.f32 %v5416_v62, %v5430_v56 }
0x1603   : > { %v5433_v19 = vpop.xlane.xlu1 %5432 }
0x1604   : > { %v5458_v8 = vmul.f32 1.442695, %v5448_v2  ;;  %v5449_v22 = vsub.f32 %v5417_v11, %v5433_v19 }
0x1606   : > { %9692 = vpow2.f32 %v5458_v8  ;;  %v5460_v10 = vmul.f32 1.442695, %v5449_v22 }
0x1608   : > { %9694 = vpow2.f32 %v5460_v10 }
0x1609   : > { %v5442_v55 = vpop.xlane.xlu0 %5441 }
0x160a   : > { %v5452_v30 = vsub.f32 %v5420_v12, %v5442_v55 }
0x160c   : > { %v5466_v33 = vmul.f32 1.442695, %v5452_v30 }
0x160d   : > { %v5445_v26 = vpop.xlane.xlu0 %5444 }
0x160e   : > { %9696 = vpow2.f32 %v5466_v33  ;;  %v5453_v14 = vsub.f32 %v5421_v3, %v5445_v26 }
0x1610   : > { %v11473_v61 = vpop.eup %9692  ;;  %v5468_v13 = vmul.f32 1.442695, %v5453_v14 }
0x1611   : > { %v5476_v60 = vsel %vm1546_vm2, %v11473_v61, 0.0 }
0x1612   : > { %v11477_v20 = vpop.eup %9694  ;;  %5477 = vadd.xlane.f32.xlu0 %v5476_v60  ;;  %9698 = vpow2.f32 %v5468_v13 }
0x1613   : > { %v5479_v62 = vsel %vm1546_vm2, %v11477_v20, 0.0 }
0x1614   : > { %5480 = vadd.xlane.f32.xlu1 %v5479_v62 }
0x1618   : > { %v11481_v11 = vpop.eup %9696 }
0x1619   : > { %v5488_v46 = vsel %vm1546_vm2, %v11481_v11, 0.0 }
0x161a   : > { %5489 = vadd.xlane.f32.xlu0 %v5488_v46 }
0x161c   : > { %v9699_v28 = vpop.eup %9698 }
0x161d   : > { %v5491_v21 = vsel %vm1546_vm2, %v9699_v28, 0.0 }
0x1625   : > { %5659 = vrot.lane.b32.xlu1 %v11365_v16, %s10116_s12 }
0x1630   : > { %5563 = vrot.lane.b32.xlu0 %v11331_v1, %s10116_s12 }
0x1634   : > { %5941 = vrot.lane.b32.xlu0 %v11333_v17, %s10117_s21 }
0x1638   : > { %5992 = vrot.lane.b32.xlu0 %v11354_v9, %s10117_s21 }
0x163c   : > { %6043 = vrot.lane.b32.xlu0 %v11367_v32, %s10117_s21 }
0x1643   : > { %v11495_v23 = vpop.f32.mrb[140].mxu1 }
0x1644   : > { %v8901_v12 = vpop.f32.mrb[141].mxu1 }
0x1645   : > { %v11497_v40 = vpop.f32.mrb[142].mxu1 }
0x1646   : > { %v5198_v3 = vpack.c.bf16 %v11497_v40, %v11495_v23  ;;  %v8902_v44 = vpop.f32.mrb[143].mxu1 }
0x1649   : > { %5492 = vadd.xlane.f32.xlu1 %v5491_v21 }
0x164b   : > { %v11502_v5 = vpop.f32.mrb[144].mxu1 }
0x164c   : > { %v8913_v4 = vpop.f32.mrb[145].mxu1 }
0x164d   : > { %v11504_v57 = vpop.f32.mrb[146].mxu1 }
0x164e   : > { %v8914_v56 = vpop.f32.mrb[147].mxu1 }
0x1654   : > { %v5248_v2 = vpop.f32.mrb[148].mxu1 }
0x1655   : > { %v8925_v19 = vpop.f32.mrb[149].mxu1  ;;  %v5414_v8 = vmul.f32 0.17677669, %v5248_v2 }
0x1656   : > { %v5251_v22 = vpop.f32.mrb[150].mxu1 }
0x1657   : > { %v8926_v10 = vpop.f32.mrb[151].mxu1  ;;  %v5422_v55 = vsel %vm1546_vm2, %v5414_v8, -inf  ;;  %v11524_v12 = vmul.f32 0.17677669, %v5251_v22 }
0x1659   : > { %v5425_v44 = vsel %vm1546_vm2, %v11524_v12, -inf }
0x165a   : > { %5890 = vrot.lane.b32.xlu1 %v11319_v15, %s10117_s21 }
0x165b   : > { %5423 = vmax.xlane.f32.xlu0 %v5422_v55 }
0x165c   : > { %v5354_v30 = vpop.f32.mrb[152].mxu1 }
0x165d   : > { %v5418_v33 = vmul.f32 0.17677669, %v5354_v30  ;;  %v8937_v60 = vpop.f32.mrb[153].mxu1 }
0x165e   : > { %v5357_v62 = vpop.f32.mrb[154].mxu1  ;;  %5888 = vrot.lane.b32.xlu1 %v11317_v27, %s10117_s21 }
0x165f   : > { %v11513_v46 = vmul.f32 0.17677669, %v5357_v62  ;;  %v8938_v26 = vpop.f32.mrb[155].mxu1  ;;  %v5434_v14 = vsel %vm1546_vm2, %v5418_v33, -inf }
0x1660   : > { %5435 = vmax.xlane.f32.xlu0 %v5434_v14 }
0x1661   : > { %v5437_v13 = vsel %vm1546_vm2, %v11513_v46, -inf }
0x1662   : > { %5939 = vrot.lane.b32.xlu1 %v11329_v41, %s10117_s21 }
0x1664   : > { %5438 = vmax.xlane.f32.xlu0 %v5437_v13 }
0x1666   : > { %5990 = vrot.lane.b32.xlu1 %v11352_v25, %s10117_s21 }
0x166a   : > { %6041 = vrot.lane.b32.xlu1 %v11363_v31, %s10117_s21 }
0x168e   : > { %5426 = vmax.xlane.f32.xlu1 %v5425_v44 }
0x169f   : > { %v5478_v21 = vpop.xlane.xlu0 %5477 }
0x16a0   : > { %9700 = vrcp.f32 %v5478_v21 }
0x16a1   : > { %v5481_v4 = vpop.xlane.xlu1 %5480 }
0x16a2   : > { %9702 = vrcp.f32 %v5481_v4 }
0x16a5   : > { %v5660_v60 = vpop.permute.xlu1 %5659 }
0x16a7   : > { %v5490_v56 = vpop.xlane.xlu0 %5489 }
0x16a8   : > { %9704 = vrcp.f32 %v5490_v56 }
0x16aa   : > { %v9701_v2 = vpop.eup %9700 }
0x16ab   : > { %v5564_v19 = vpop.permute.xlu0 %5563  ;;  %v5504_v55 = vmul.f32 %v9701_v2, %v11473_v61 }
0x16ac   : > { %v9703_v10 = vpop.eup %9702  ;;  %8952 = vmatpush3.bf16.msra.mxu0 %v5564_v19 }
0x16ad   : > { %v5505_v30 = vmul.f32 %v9703_v10, %v11477_v20  ;;  %8963 = vmatprep.subr.bf16.mxu0 %v10114_v34 }
0x16af   : > { %v5511_v22 = vpack.c.bf16 %v5505_v30, %v5504_v55  ;;  %v5942_v26 = vpop.permute.xlu0 %5941 }
0x16b1   : > { %8954 = vmatmul.mubr.msk.bf16.vlgmr.msra.gmra.mrb[140].mxu0 %vm1546_vm2, %v5511_v22 }
0x16b2   : > { %8964 = vmatpush3.bf16.msra.mxu0 %v5660_v60  ;;  %8965 = vmatprep.mubr.msk.bf16.mxu0 %vm10115_vm0, %v10114_v34  ;;  %v9705_v61 = vpop.eup %9704 }
0x16b3   : > { %8993 = vmatprep.subr.bf16.mxu0 %v10114_v34  ;;  %v5993_v14 = vpop.permute.xlu0 %5992  ;;  %v5508_v20 = vmul.f32 %v9705_v61, %v11481_v11 }
0x16b7   : > { %v6044_v4 = vpop.permute.xlu0 %6043 }
0x16d6   : > { %v5493_v62 = vpop.xlane.xlu1 %5492 }
0x16d7   : > { %9706 = vrcp.f32 %v5493_v62 }
0x16da   : > { %v5891_v21 = vpop.permute.xlu1 %5890 }
0x16db   : > { %v5896_v19 = vsel %vm1349_vm1, %v5891_v21, 0 }
0x16de   : > { %v5889_v30 = vpop.permute.xlu1 %5888 }
0x16e1   : > { %v9707_v13 = vpop.eup %9706 }
0x16e2   : > { %v5509_v44 = vmul.f32 %v9707_v13, %v9699_v28  ;;  %v5947_v28 = vsel %vm1349_vm1, %v5942_v26, 0  ;;  %v5940_v62 = vpop.permute.xlu1 %5939 }
0x16e4   : > { %v5513_v2 = vpack.c.bf16 %v5509_v44, %v5508_v20  ;;  %v6049_v20 = vsel %vm1349_vm1, %v6044_v4, 0 }
0x16e6   : > { %8966 = vmatmul.mubr.msk.bf16.vlgmr.msra.gmra.mrb[144].mxu0 %vm1546_vm2, %v5513_v2  ;;  %v5991_v13 = vpop.permute.xlu1 %5990 }
0x16e7   : > { %8994 = vmatpush3.bf16.xpose.msra.mxu0 %v5896_v19  ;;  %8995 = vmatprep.mubr.msk.bf16.mxu0 %vm10115_vm0, %v10114_v34 }
0x16e8   : > { %v5424_v56 = vpop.xlane.xlu0 %5423  ;;  %8999 = vmatprep.subr.bf16.mxu0 %v10114_v34 }
0x16e9   : > { %v5446_v10 = vsub.f32 %v5414_v8, %v5424_v56  ;;  %v5998_v8 = vsel %vm1349_vm1, %v5993_v14, 0 }
0x16ea   : > { %v6042_v44 = vpop.permute.xlu1 %6041 }
0x16eb   : > { %v5454_v55 = vmul.f32 1.442695, %v5446_v10 }
0x16ed   : > { %9708 = vpow2.f32 %v5454_v55  ;;  %v5436_v11 = vpop.xlane.xlu0 %5435 }
0x16ee   : > { %v5450_v22 = vsub.f32 %v5418_v33, %v5436_v11  ;;  %8996 = vmatmul.mubr.msk.bf16.vlgmr.msra.gmra.mrb[148].mxu0 %vm1349_vm1, %v5889_v30 }
0x16ef   : > { %9000 = vmatpush3.bf16.xpose.msra.mxu0 %v5947_v28  ;;  %9001 = vmatprep.mubr.msk.bf16.mxu0 %vm10115_vm0, %v10114_v34 }
0x16f0   : > { %v5462_v60 = vmul.f32 1.442695, %v5450_v22  ;;  %9005 = vmatprep.subr.bf16.mxu0 %v10114_v34 }
0x16f1   : > { %v5439_v21 = vpop.xlane.xlu0 %5438 }
0x16f2   : > { %9710 = vpow2.f32 %v5462_v60  ;;  %v5451_v4 = vsub.f32 %v11513_v46, %v5439_v21 }
0x16f4   : > { %v5464_v56 = vmul.f32 1.442695, %v5451_v4 }
0x16f6   : > { %9002 = vmatmul.mubr.msk.bf16.vlgmr.msra.gmra.mrb[152].mxu0 %vm1349_vm1, %v5940_v62 }
0x16f7   : > { %v11548_v61 = vpop.eup %9708  ;;  %9006 = vmatpush3.bf16.xpose.msra.mxu0 %v5998_v8  ;;  %9007 = vmatprep.mubr.msk.bf16.mxu0 %vm10115_vm0, %v10114_v34 }
0x16f8   : > { %v5470_v33 = vsel %vm1546_vm2, %v11548_v61, 0.0  ;;  %9011 = vmatprep.subr.bf16.mxu0 %v10114_v34 }
0x16f9   : > { %5471 = vadd.xlane.f32.xlu0 %v5470_v33 }
0x16fc   : > { %v11555_v26 = vpop.eup %9710 }
0x16fd   : > { %v5482_v14 = vsel %vm1546_vm2, %v11555_v26, 0.0 }
0x16fe   : > { %5483 = vadd.xlane.f32.xlu0 %v5482_v14  ;;  %9008 = vmatmul.mubr.msk.bf16.vlgmr.msra.gmra.mrb[156].mxu0 %vm1349_vm1, %v5991_v13 }
0x16ff   : > { %9012 = vmatpush3.bf16.xpose.msra.mxu0 %v6049_v20  ;;  %9013 = vmatprep.mubr.msk.bf16.mxu0 %vm10115_vm0, %v10114_v34 }
0x1700   : > { %9023 = vmatprep.subr.bf16.mxu0 %v10114_v34 }
0x1706   : > { %9014 = vmatmul.mubr.msk.bf16.vlgmr.msra.gmra.mrb[160].mxu0 %vm1349_vm1, %v6042_v44 }
0x1707   : > { %9025 = vmatprep.mubr.msk.bf16.mxu0 %vm10115_vm0, %v10114_v34 }
0x1714   : > { %5515 = vrot.lane.b32.xlu0 %v11335_v54, %s10116_s12 }
0x171b   : > { %v5427_v2 = vpop.xlane.xlu1 %5426 }
0x171c   : > { %v5447_v19 = vsub.f32 %v11524_v12, %v5427_v2 }
0x171e   : > { %v5456_v10 = vmul.f32 1.442695, %v5447_v19 }
0x1720   : > { %9712 = vpow2.f32 %v5456_v10 }
0x1721   : > { %9714 = vpow2.f32 %v5464_v56 }
0x172a   : > { %v9713_v55 = vpop.eup %9712 }
0x172b   : > { %v5473_v30 = vsel %vm1546_vm2, %v9713_v55, 0.0  ;;  %v9715_v11 = vpop.eup %9714 }
0x172c   : > { %5474 = vadd.xlane.f32.xlu1 %v5473_v30  ;;  %v5485_v28 = vsel %vm1546_vm2, %v9715_v11, 0.0 }
0x1730   : > { %5486 = vadd.xlane.f32.xlu1 %v5485_v28 }
0x1741   : > { %5611 = vrot.lane.b32.xlu1 %v11369_v53, %s10116_s12  ;;  %s10119_s12 = smov [#allocation14]  }
0x1784   : > { %v11575_v22 = vpop.f32.mrb[140].mxu0 }
0x1785   : > { %v8955_v46 = vpop.f32.mrb[141].mxu0 }
0x1786   : > { %v5472_v60 = vpop.xlane.xlu0 %5471  ;;  %v11577_v12 = vpop.f32.mrb[142].mxu0 }
0x1787   : > { %v5707_v62 = vpack.c.bf16 %v11577_v12, %v11575_v22  ;;  %v8956_v8 = vpop.f32.mrb[143].mxu0  ;;  %9716 = vrcp.f32 %v5472_v60  ;;  %v12126_v22 = vpack.c.bf16 %v11441_v63, %v11439_v58  ;;  %v12127_v12 = vpack.c.bf16 %v11504_v57, %v11502_v5 }
0x178b   : > { %v5484_v33 = vpop.xlane.xlu0 %5483 }
0x178f   : > { %v5516_v13 = vpop.permute.xlu0 %5515 }
0x1790   : > { %8946 = vmatpush3.bf16.msra.mxu1 %v5516_v13 }
0x1791   : > { %8957 = vmatprep.subr.bf16.mxu1 %v10114_v34  ;;  %v9717_v10 = vpop.eup %9716 }
0x17b9   : > { %v5475_v14 = vpop.xlane.xlu1 %5474  ;;  %v11582_v20 = vpop.f32.mrb[144].mxu0 }
0x17ba   : > { %9718 = vrcp.f32 %v5475_v14  ;;  %v8967_v44 = vpop.f32.mrb[145].mxu0 }
0x17bb   : > { %v11584_v21 = vpop.f32.mrb[146].mxu0  ;;  %v5502_v44 = vmul.f32 %v9717_v10, %v11548_v61 }
0x17bc   : > { %v5709_v4 = vpack.c.bf16 %v11584_v21, %v11582_v20  ;;  %v8968_v2 = vpop.f32.mrb[147].mxu0 }
0x17bd   : > { %v5487_v19 = vpop.xlane.xlu1 %5486 }
0x17be   : > { %9720 = vrcp.f32 %v5487_v19 }
0x17bf   : > { %9722 = vrcp.f32 %v5484_v33 }
0x17c1   : > { %v5932_v56 = vpop.f32.mrb[148].mxu0 }
0x17c2   : > { %v11588_v30 = vmul.f32 0.17677669, %v5932_v56  ;;  %v8997_v28 = vpop.f32.mrb[149].mxu0  ;;  %v5612_v56 = vpop.permute.xlu1 %5611 }
0x17c3   : > { %v5935_v46 = vpop.f32.mrb[150].mxu0 }
0x17c4   : > { %v9719_v60 = vpop.eup %9718  ;;  %v11590_v8 = vmul.f32 0.17677669, %v5935_v46  ;;  %v8998_v13 = vpop.f32.mrb[151].mxu0  ;;  %v6100_v14 = vsel %vm1546_vm2, %v11588_v30, -inf }
0x17c5   : > { %v5503_v52 = vmul.f32 %v9719_v60, %v9713_v55  ;;  %6101 = vmax.xlane.f32.xlu1 %v6100_v14 }
0x17c6   : > { %v6103_v33 = vsel %vm1546_vm2, %v11590_v8, -inf }
0x17c7   : > { %6104 = vmax.xlane.f32.xlu0 %v6103_v33  ;;  %v5510_v2 = vpack.c.bf16 %v5503_v52, %v5502_v44 }
0x17c8   : > { %v9721_v19 = vpop.eup %9720 }
0x17c9   : > { %8948 = vmatmul.mubr.msk.bf16.vlgmr.msra.gmra.mrb[156].mxu1 %vm1546_vm2, %v5510_v2  ;;  %v5983_v28 = vpop.f32.mrb[152].mxu0  ;;  %v9723_v46 = vpop.eup %9722  ;;  %v5507_v61 = vmul.f32 %v9721_v19, %v9715_v11 }
0x17ca   : > { %8958 = vmatpush3.bf16.msra.mxu1 %v5612_v56  ;;  %v6094_v13 = vmul.f32 0.17677669, %v5983_v28  ;;  %v9003_v59 = vpop.f32.mrb[153].mxu0  ;;  %8959 = vmatprep.mubr.msk.bf16.mxu1 %vm10115_vm0, %v10114_v34  ;;  %v5506_v52 = vmul.f32 %v9723_v46, %v11555_v26 }
0x17cb   : > { %v5986_v55 = vpop.f32.mrb[154].mxu0 }
0x17cc   : > { %v6095_v10 = vmul.f32 0.17677669, %v5986_v55  ;;  %v9004_v60 = vpop.f32.mrb[155].mxu0  ;;  %v6106_v14 = vsel %vm1546_vm2, %v6094_v13, -inf  ;;  %v5512_v33 = vpack.c.bf16 %v5507_v61, %v5506_v52 }
0x17cd   : > { %6107 = vmax.xlane.f32.xlu0 %v6106_v14 }
0x17ce   : > { %v6109_v44 = vsel %vm1546_vm2, %v6095_v10, -inf }
0x17cf   : > { %6110 = vmax.xlane.f32.xlu1 %v6109_v44 }
0x17d1   : > { %8960 = vmatmul.mubr.msk.bf16.vlgmr.msra.gmra.mrb[160].mxu1 %vm1546_vm2, %v5512_v33  ;;  %v6034_v2 = vpop.f32.mrb[156].mxu0 }
0x17d2   : > { %v6096_v59 = vmul.f32 0.17677669, %v6034_v2  ;;  %v9009_v56 = vpop.f32.mrb[157].mxu0  ;;  %v9452_v2 = vld [vmem:[#allocation10 + $0x50] sm:$0xff]  }
0x17d3   : > { %v6037_v28 = vpop.f32.mrb[158].mxu0  ;;  %8969 = vmatprep.subr.bf16.mxu1 %v9452_v2  ;;  %v9453_v56 = vld [vmem:[#allocation10 + $0x58] sm:$0xff]  }
0x17d4   : > { %v6097_v51 = vmul.f32 0.17677669, %v6037_v28  ;;  %v9010_v11 = vpop.f32.mrb[159].mxu0  ;;  %v6112_v19 = vsel %vm1546_vm2, %v6096_v59, -inf  ;;  %8970 = vmatpush3.bf16.msra.mxu1 %v9452_v2  ;;  %v11611_v28 = vld [vmem:[#allocation10 + $0x40] sm:$0xff]  }
0x17d5   : > { %6113 = vmax.xlane.f32.xlu0 %v6112_v19  ;;  %8971 = vmatprep.subr.bf16.mxu1 %v9453_v56 }
0x17d6   : > { %v6115_v55 = vsel %vm1546_vm2, %v6097_v51, -inf }
0x17d7   : > { %6116 = vmax.xlane.f32.xlu1 %v6115_v55 }
0x17d8   : > { %8972 = vmatpush3.bf16.msra.mxu1 %v9453_v56 }
0x17d9   : > { %v6085_v26 = vpop.f32.mrb[160].mxu0  ;;  %8981 = vmatprep.subr.bf16.mxu1 %v11611_v28 }
0x17da   : > { %v6098_v46 = vmul.f32 0.17677669, %v6085_v26  ;;  %v9015_v60 = vpop.f32.mrb[161].mxu0 }
0x17db   : > { %v6088_v14 = vpop.f32.mrb[162].mxu0 }
0x17dc   : > { %v11606_v44 = vmul.f32 0.17677669, %v6088_v14  ;;  %v9016_v61 = vpop.f32.mrb[163].mxu0  ;;  %v6118_v52 = vsel %vm1546_vm2, %v6098_v46, -inf }
0x17dd   : > { %6119 = vmax.xlane.f32.xlu0 %v6118_v52 }
0x17de   : > { %v6121_v33 = vsel %vm1546_vm2, %v11606_v44, -inf }
0x17df   : > { %6122 = vmax.xlane.f32.xlu1 %v6121_v33 }
0x1852   : > { %v6102_v11 = vpop.xlane.xlu1 %6101 }
0x1853   : > { %v6124_v19 = vsub.f32 %v11588_v30, %v6102_v11 }
0x1854   : > { %v6105_v55 = vpop.xlane.xlu0 %6104 }
0x1855   : > { %v6132_v26 = vmul.f32 1.442695, %v6124_v19  ;;  %v6125_v60 = vsub.f32 %v11590_v8, %v6105_v55 }
0x1857   : > { %9724 = vpow2.f32 %v6132_v26  ;;  %v6134_v14 = vmul.f32 1.442695, %v6125_v60 }
0x1859   : > { %9726 = vpow2.f32 %v6134_v14 }
0x185a   : > { %v6108_v61 = vpop.xlane.xlu0 %6107 }
0x185b   : > { %v6126_v52 = vsub.f32 %v6094_v13, %v6108_v61 }
0x185c   : > { %v6111_v33 = vpop.xlane.xlu1 %6110 }
0x185d   : > { %v6136_v2 = vmul.f32 1.442695, %v6126_v52  ;;  %v6127_v6 = vsub.f32 %v6095_v10, %v6111_v33 }
0x185f   : > { %9728 = vpow2.f32 %v6136_v2  ;;  %v6138_v56 = vmul.f32 1.442695, %v6127_v6 }
0x1861   : > { %v11616_v39 = vpop.eup %9724  ;;  %9730 = vpow2.f32 %v6138_v56 }
0x1862   : > { %v6114_v18 = vpop.xlane.xlu0 %6113  ;;  %v6148_v30 = vsel %vm1546_vm2, %v11616_v39, 0.0 }
0x1863   : > { %v11620_v11 = vpop.eup %9726  ;;  %v6128_v8 = vsub.f32 %v6096_v59, %v6114_v18  ;;  %6149 = vadd.xlane.f32.xlu0 %v6148_v30 }
0x1864   : > { %v6117_v19 = vpop.xlane.xlu1 %6116  ;;  %v6151_v13 = vsel %vm1546_vm2, %v11620_v11, 0.0 }
0x1865   : > { %v6140_v55 = vmul.f32 1.442695, %v6128_v8  ;;  %v6129_v26 = vsub.f32 %v6097_v51, %v6117_v19  ;;  %6152 = vadd.xlane.f32.xlu1 %v6151_v13 }
0x1867   : > { %9732 = vpow2.f32 %v6140_v55  ;;  %v6142_v6 = vmul.f32 1.442695, %v6129_v26 }
0x1869   : > { %v11624_v10 = vpop.eup %9728  ;;  %9734 = vpow2.f32 %v6142_v6 }
0x186a   : > { %v6120_v60 = vpop.xlane.xlu0 %6119  ;;  %v6154_v14 = vsel %vm1546_vm2, %v11624_v10, 0.0 }
0x186b   : > { %v11628_v61 = vpop.eup %9730  ;;  %v6130_v18 = vsub.f32 %v6098_v46, %v6120_v60  ;;  %6155 = vadd.xlane.f32.xlu0 %v6154_v14 }
0x186c   : > { %v6157_v59 = vsel %vm1546_vm2, %v11628_v61, 0.0  ;;  %v6123_v8 = vpop.xlane.xlu1 %6122 }
0x186d   : > { %v6144_v52 = vmul.f32 1.442695, %v6130_v18  ;;  %6158 = vadd.xlane.f32.xlu1 %v6157_v59  ;;  %v6131_v19 = vsub.f32 %v11606_v44, %v6123_v8  ;;  %v9455_v18 = vld [vmem:[#allocation10 + $0x48] sm:$0xff]  }
0x186f   : > { %9736 = vpow2.f32 %v6144_v52  ;;  %v6146_v13 = vmul.f32 1.442695, %v6131_v19 }
0x1871   : > { %v11632_v51 = vpop.eup %9732  ;;  %9738 = vpow2.f32 %v6146_v13 }
0x1872   : > { %v6160_v33 = vsel %vm1546_vm2, %v11632_v51, 0.0 }
0x1873   : > { %v11636_v2 = vpop.eup %9734  ;;  %6161 = vadd.xlane.f32.xlu0 %v6160_v33  ;;  %v9456_v33 = vld [vmem:[#allocation10 + $0x60] sm:$0xff]  }
0x1874   : > { %v6163_v56 = vsel %vm1546_vm2, %v11636_v2, 0.0 }
0x1875   : > { %6164 = vadd.xlane.f32.xlu1 %v6163_v56 }
0x1879   : > { %v11640_v46 = vpop.eup %9736 }
0x187a   : > { %v6166_v30 = vsel %vm1546_vm2, %v11640_v46, 0.0 }
0x187b   : > { %6167 = vadd.xlane.f32.xlu0 %v6166_v30  ;;  %v11667_v52 = vpop.eup %9738 }
0x1886   : > { %6239 = vrot.lane.b32.xlu1 %v11331_v1, %s10117_s21 }
0x188a   : > { %6286 = vrot.lane.b32.xlu1 %v11369_v53, %s10117_s21 }
0x1891   : > { %6192 = vrot.lane.b32.xlu0 %v11335_v54, %s10117_s21 }
0x1895   : > { %6483 = vrot.lane.b32.xlu0 %v11319_v15, %s10118_s30 }
0x1899   : > { %6534 = vrot.lane.b32.xlu0 %v11333_v17, %s10118_s30 }
0x189c   : > { %v5555_v55 = vpop.f32.mrb[156].mxu1 }
0x189d   : > { %v8949_v26 = vpop.f32.mrb[157].mxu1  ;;  %6585 = vrot.lane.b32.xlu0 %v11354_v9, %s10118_s30 }
0x189e   : > { %v5558_v6 = vpop.f32.mrb[158].mxu1 }
0x189f   : > { %v5706_v60 = vpack.c.bf16 %v5558_v6, %v5555_v55  ;;  %v8950_v14 = vpop.f32.mrb[159].mxu1 }
0x18a1   : > { %8973 = vmatprep.mubr.msk.bf16.mxu1 %vm1349_vm1, %v5706_v60  ;;  %6583 = vrot.lane.b32.xlu0 %v11352_v25, %s10118_s30  ;;  %v6169_v25 = vsel %vm1546_vm2, %v11667_v52, 0.0 }
0x18a2   : > { %8974 = vmatmul.mubr.msk.bf16.vlgmr.msra.gmra.mrb[164].mxu1 %vm1349_vm1, %v5707_v62  ;;  %v12128_v62 = vpack.c.bf16 %v11447_v24, %v11445_v50 }
0x18a3   : > { %8982 = vmatpush3.bf16.msra.mxu1 %v11611_v28 }
0x18a4   : > { %v5651_v15 = vpop.f32.mrb[160].mxu1  ;;  %8983 = vmatprep.subr.bf16.mxu1 %v9455_v18 }
0x18a5   : > { %v8961_v17 = vpop.f32.mrb[161].mxu1 }
0x18a6   : > { %v5654_v9 = vpop.f32.mrb[162].mxu1 }
0x18a7   : > { %v5708_v44 = vpack.c.bf16 %v5654_v9, %v5651_v15  ;;  %v8962_v59 = vpop.f32.mrb[163].mxu1  ;;  %8984 = vmatpush3.bf16.msra.mxu1 %v9455_v18 }
0x18a8   : > { %9017 = vmatprep.subr.bf16.mxu1 %v10114_v34 }
0x18a9   : > { %8977 = vmatprep.mubr.msk.bf16.mxu1 %vm1349_vm1, %v5708_v44 }
0x18aa   : > { %8978 = vmatmul.mubr.msk.bf16.gmra.mrb[168].mxu1 %vm1349_vm1, %v5709_v4 }
0x18ab   : > { %8985 = vmatprep.mubr.msk.bf16.mxu1 %vm1349_vm1, %v5198_v3 }
0x18ae   : > { %6170 = vadd.xlane.f32.xlu1 %v6169_v25 }
0x18b2   : > { %8986 = vmatmul.mubr.msk.bf16.vlgmr.msra.gmra.mrb[164].mxu1 %vm1349_vm1, %v12126_v22 }
0x18b3   : > { %8989 = vmatprep.mubr.msk.bf16.mxu1 %vm1349_vm1, %v12127_v12 }
0x18ba   : > { %8990 = vmatmul.mubr.msk.bf16.gmra.mrb[168].mxu1 %vm1349_vm1, %v12128_v62 }
0x18bb   : > { %9019 = vmatprep.mubr.msk.bf16.mxu1 %vm10115_vm0, %v10114_v34 }
0x18bf   : > { %6333 = vrot.lane.b32.xlu1 %v11365_v16, %s10117_s21  ;;  %s10022_s21 = sshll.u32 %s10119_s12, 4  ;;  %s10023_s21 = int_to_ptr.vmem [resolvable:$false] %s10022_s21 }
0x18c3   : > { %6481 = vrot.lane.b32.xlu1 %v11317_v27, %s10118_s30 }
0x18c7   : > { %6532 = vrot.lane.b32.xlu1 %v11329_v41, %s10118_s30 }
0x18cb   : > { %6636 = vrot.lane.b32.xlu1 %v11367_v32, %s10118_s30 }
0x18cf   : > { %6634 = vrot.lane.b32.xlu1 %v11363_v31, %s10118_s30 }
0x18f0   : > { %v6150_v58 = vpop.xlane.xlu0 %6149 }
0x18f2   : > { %v6153_v63 = vpop.xlane.xlu1 %6152 }
0x18f8   : > { %v6156_v50 = vpop.xlane.xlu0 %6155 }
0x18f9   : > { %9740 = vrcp.f32 %v6156_v50 }
0x18fa   : > { %v6159_v24 = vpop.xlane.xlu1 %6158 }
0x18fb   : > { %9742 = vrcp.f32 %v6159_v24 }
0x18fc   : > { %9744 = vrcp.f32 %v6153_v63 }
0x18fd   : > { %9746 = vrcp.f32 %v6150_v58 }
0x1900   : > { %v6162_v27 = vpop.xlane.xlu0 %6161 }
0x1902   : > { %v6165_v23 = vpop.xlane.xlu1 %6164 }
0x1903   : > { %v9741_v40 = vpop.eup %9740  ;;  %9748 = vrcp.f32 %v6165_v23 }
0x1904   : > { %v6182_v41 = vmul.f32 %v9741_v40, %v11624_v10  ;;  %9750 = vrcp.f32 %v6162_v27 }
0x1905   : > { %v9743_v3 = vpop.eup %9742 }
0x1906   : > { %v6183_v32 = vmul.f32 %v9743_v3, %v11628_v61  ;;  %v6240_v5 = vpop.permute.xlu1 %6239  ;;  %v9745_v57 = vpop.eup %9744 }
0x1907   : > { %9024 = vmatpush3.bf16.msra.mxu0 %v6240_v5  ;;  %v9747_v21 = vpop.eup %9746  ;;  %v6181_v4 = vmul.f32 %v9745_v57, %v11620_v11 }
0x1908   : > { %v6168_v31 = vpop.xlane.xlu0 %6167  ;;  %v6189_v20 = vpack.c.bf16 %v6183_v32, %v6182_v41  ;;  %9035 = vmatprep.subr.bf16.mxu0 %v10114_v34  ;;  %v6180_v28 = vmul.f32 %v9747_v21, %v11616_v39 }
0x1909   : > { %9752 = vrcp.f32 %v6168_v31 }
0x190a   : > { %9026 = vmatmul.mubr.msk.bf16.vlgmr.msra.gmra.mrb[164].mxu0 %vm1546_vm2, %v6189_v20  ;;  %v6188_v61 = vpack.c.bf16 %v6181_v4, %v6180_v28  ;;  %v6287_v30 = vpop.permute.xlu1 %6286 }
0x190b   : > { %9037 = vmatprep.mubr.msk.bf16.mxu0 %vm10115_vm0, %v10114_v34 }
0x190c   : > { %v6193_v10 = vpop.permute.xlu0 %6192 }
0x190d   : > { %9018 = vmatpush3.bf16.msra.mxu1 %v6193_v10  ;;  %v9749_v56 = vpop.eup %9748 }
0x190e   : > { %9029 = vmatprep.subr.bf16.mxu1 %v10114_v34  ;;  %v9751_v8 = vpop.eup %9750  ;;  %v6185_v11 = vmul.f32 %v9749_v56, %v11636_v2 }
0x190f   : > { %v6184_v39 = vmul.f32 %v9751_v8, %v11632_v51 }
0x1910   : > { %9020 = vmatmul.mubr.msk.bf16.vlgmr.msra.gmra.mrb[172].mxu1 %vm1546_vm2, %v6188_v61  ;;  %v6484_v14 = vpop.permute.xlu0 %6483 }
0x1911   : > { %9030 = vmatpush3.bf16.msra.mxu1 %v6287_v30  ;;  %9031 = vmatprep.mubr.msk.bf16.mxu1 %vm10115_vm0, %v10114_v34  ;;  %v6190_v19 = vpack.c.bf16 %v6185_v11, %v6184_v39  ;;  %v6489_v51 = vsel %vm1349_vm1, %v6484_v14, 0 }
0x1912   : > { %9041 = vmatprep.subr.bf16.mxu1 %v9456_v33 }
0x1913   : > { %v9753_v26 = vpop.eup %9752 }
0x1914   : > { %v6186_v60 = vmul.f32 %v9753_v26, %v11640_v46  ;;  %v6535_v17 = vpop.permute.xlu0 %6534 }
0x1915   : > { %v6540_v44 = vsel %vm1349_vm1, %v6535_v17, 0 }
0x1918   : > { %9032 = vmatmul.mubr.msk.bf16.vlgmr.msra.gmra.mrb[176].mxu1 %vm1546_vm2, %v6190_v19  ;;  %v6586_v40 = vpop.permute.xlu0 %6585 }
0x1919   : > { %9042 = vmatpush3.bf16.msra.mxu1 %v9456_v33  ;;  %v6591_v41 = vsel %vm1349_vm1, %v6586_v40, 0 }
0x193b   : > { %v6171_v13 = vpop.xlane.xlu1 %6170 }
0x193c   : > { %9754 = vrcp.f32 %v6171_v13  ;;  %v6584_v13 = vpop.permute.xlu0 %6583 }
0x193f   : > { %v6334_v55 = vpop.permute.xlu1 %6333 }
0x1940   : > { %9036 = vmatpush3.bf16.msra.mxu0 %v6334_v55 }
0x1941   : > { %9053 = vmatprep.subr.bf16.mxu0 %v10114_v34 }
0x1943   : > { %v6482_v15 = vpop.permute.xlu1 %6481 }
0x1946   : > { %v9755_v6 = vpop.eup %9754 }
0x1947   : > { %v6187_v2 = vmul.f32 %v9755_v6, %v11667_v52  ;;  %v6533_v9 = vpop.permute.xlu1 %6532  ;;  %v9457_v52 = vld [vmem:[#allocation10 + $0x68] sm:$0xff]  }
0x1948   : > { %9043 = vmatprep.subr.bf16.mxu1 %v9457_v52 }
0x1949   : > { %v6191_v18 = vpack.c.bf16 %v6187_v2, %v6186_v60  ;;  %9044 = vmatpush3.bf16.msra.mxu1 %v9457_v52 }
0x194a   : > { %9065 = vmatprep.subr.bf16.mxu1 %v10114_v34 }
0x194b   : > { %9038 = vmatmul.mubr.msk.bf16.vlgmr.msra.gmra.mrb[168].mxu0 %vm1546_vm2, %v6191_v18  ;;  %v6637_v46 = vpop.permute.xlu1 %6636 }
0x194c   : > { %9054 = vmatpush3.bf16.xpose.msra.mxu0 %v6489_v51  ;;  %9055 = vmatprep.mubr.msk.bf16.mxu0 %vm10115_vm0, %v10114_v34  ;;  %v6642_v59 = vsel %vm1349_vm1, %v6637_v46, 0 }
0x194d   : > { %9059 = vmatprep.subr.bf16.mxu0 %v10114_v34 }
0x194f   : > { %v6635_v25 = vpop.permute.xlu1 %6634 }
0x1953   : > { %9056 = vmatmul.mubr.msk.bf16.vlgmr.msra.gmra.mrb[172].mxu0 %vm1349_vm1, %v6482_v15 }
0x1954   : > { %9060 = vmatpush3.bf16.xpose.msra.mxu0 %v6540_v44  ;;  %9061 = vmatprep.mubr.msk.bf16.mxu0 %vm10115_vm0, %v10114_v34 }
0x1955   : > { %9071 = vmatprep.subr.bf16.mxu0 %v10114_v34 }
0x195b   : > { %9062 = vmatmul.mubr.msk.bf16.vlgmr.msra.gmra.mrb[176].mxu0 %vm1349_vm1, %v6533_v9 }
0x195c   : > { %9072 = vmatpush3.bf16.xpose.msra.mxu0 %v6642_v59  ;;  %9073 = vmatprep.mubr.msk.bf16.mxu0 %vm10115_vm0, %v10114_v34 }
0x195d   : > { %9083 = vmatprep.subr.bf16.mxu0 %v10114_v34 }
0x1963   : > { %9074 = vmatmul.mubr.msk.bf16.vlgmr.msra.gmra.mrb[180].mxu0 %vm1349_vm1, %v6635_v25 }
0x1964   : > { %9085 = vmatprep.mubr.msk.bf16.mxu0 %vm10115_vm0, %v10114_v34 }
0x19dd   : > { %v6279_v22 = vpop.f32.mrb[164].mxu0 }
0x19de   : > { %v9027_v12 = vpop.f32.mrb[165].mxu0 }
0x19df   : > { %v6282_v62 = vpop.f32.mrb[166].mxu0 }
0x19e0   : > { %v6381_v58 = vpack.c.bf16 %v6282_v62, %v6279_v22  ;;  %v9028_v63 = vpop.f32.mrb[167].mxu0 }
0x19e3   : > { %v6232_v50 = vpop.f32.mrb[172].mxu1 }
0x19e4   : > { %v9021_v24 = vpop.f32.mrb[173].mxu1 }
0x19e5   : > { %v6235_v23 = vpop.f32.mrb[174].mxu1 }
0x19e6   : > { %v6380_v27 = vpack.c.bf16 %v6235_v23, %v6232_v50  ;;  %v9022_v3 = vpop.f32.mrb[175].mxu1 }
0x19e8   : > { %9045 = vmatprep.mubr.msk.bf16.mxu1 %vm1349_vm1, %v6380_v27 }
0x19e9   : > { %9046 = vmatmul.mubr.msk.bf16.vlgmr.msra.gmra.mrb[164].mxu1 %vm1349_vm1, %v6381_v58 }
0x19ea   : > { %9066 = vmatpush3.bf16.xpose.msra.mxu1 %v6591_v41 }
0x19eb   : > { %v6326_v32 = vpop.f32.mrb[176].mxu1  ;;  %9077 = vmatprep.subr.bf16.mxu1 %v10114_v34 }
0x19ec   : > { %v9033_v5 = vpop.f32.mrb[177].mxu1 }
0x19ed   : > { %v6329_v57 = vpop.f32.mrb[178].mxu1 }
0x19ee   : > { %v6382_v31 = vpack.c.bf16 %v6329_v57, %v6326_v32  ;;  %v9034_v20 = vpop.f32.mrb[179].mxu1 }
0x19f0   : > { %9049 = vmatprep.mubr.msk.bf16.mxu1 %vm1349_vm1, %v6382_v31 }
0x1a1e   : > { %v6373_v21 = vpop.f32.mrb[168].mxu0 }
0x1a1f   : > { %v9039_v4 = vpop.f32.mrb[169].mxu0 }
0x1a20   : > { %v6376_v28 = vpop.f32.mrb[170].mxu0 }
0x1a21   : > { %v6383_v10 = vpack.c.bf16 %v6376_v28, %v6373_v21  ;;  %v9040_v61 = vpop.f32.mrb[171].mxu0 }
0x1a23   : > { %9050 = vmatmul.mubr.msk.bf16.gmra.mrb[168].mxu1 %vm1349_vm1, %v6383_v10 }
0x1a24   : > { %9067 = vmatprep.mubr.msk.bf16.mxu1 %vm10115_vm0, %v10114_v34 }
0x1a26   : > { %v6525_v33 = vpop.f32.mrb[172].mxu0 }
0x1a27   : > { %v6685_v56 = vmul.f32 0.17677669, %v6525_v33  ;;  %v9057_v30 = vpop.f32.mrb[173].mxu0 }
0x1a28   : > { %v6528_v8 = vpop.f32.mrb[174].mxu0 }
0x1a29   : > { %v6686_v11 = vmul.f32 0.17677669, %v6528_v8  ;;  %v9058_v39 = vpop.f32.mrb[175].mxu0  ;;  %v6693_v19 = vsel %vm1546_vm2, %v6685_v56, -inf }
0x1a2a   : > { %6694 = vmax.xlane.f32.xlu0 %v6693_v19 }
0x1a2b   : > { %9068 = vmatmul.mubr.msk.bf16.vlgmr.msra.gmra.mrb[180].mxu1 %vm1349_vm1, %v6584_v13  ;;  %v6696_v55 = vsel %vm1546_vm2, %v6686_v11, -inf }
0x1a2c   : > { %6697 = vmax.xlane.f32.xlu1 %v6696_v55  ;;  %9079 = vmatprep.mubr.msk.bf16.mxu1 %vm10115_vm0, %v10114_v34 }
0x1a2e   : > { %v6576_v26 = vpop.f32.mrb[176].mxu0 }
0x1a2f   : > { %v6687_v6 = vmul.f32 0.17677669, %v6576_v26  ;;  %v9063_v60 = vpop.f32.mrb[177].mxu0 }
0x1a30   : > { %v6579_v2 = vpop.f32.mrb[178].mxu0 }
0x1a31   : > { %v6688_v14 = vmul.f32 0.17677669, %v6579_v2  ;;  %v9064_v18 = vpop.f32.mrb[179].mxu0  ;;  %v6699_v51 = vsel %vm1546_vm2, %v6687_v6, -inf }
0x1a32   : > { %6700 = vmax.xlane.f32.xlu0 %v6699_v51 }
0x1a33   : > { %v6702_v15 = vsel %vm1546_vm2, %v6688_v14, -inf }
0x1a36   : > { %6703 = vmax.xlane.f32.xlu0 %v6702_v15  ;;  %v6678_v17 = vpop.f32.mrb[180].mxu0 }
0x1a37   : > { %v9075_v9 = vpop.f32.mrb[181].mxu0  ;;  %v6691_v5 = vmul.f32 0.17677669, %v6678_v17 }
0x1a38   : > { %v6681_v44 = vpop.f32.mrb[182].mxu0 }
0x1a39   : > { %v9076_v46 = vpop.f32.mrb[183].mxu0  ;;  %v6692_v21 = vmul.f32 0.17677669, %v6681_v44  ;;  %v6711_v28 = vsel %vm1546_vm2, %v6691_v5, -inf }
0x1a3b   : > { %v6714_v61 = vsel %vm1546_vm2, %v6692_v21, -inf }
0x1ab7   : > { %v6695_v59 = vpop.xlane.xlu0 %6694 }
0x1ab8   : > { %v6717_v22 = vsub.f32 %v6685_v56, %v6695_v59 }
0x1ab9   : > { %v6698_v25 = vpop.xlane.xlu1 %6697 }
0x1aba   : > { %v6718_v12 = vsub.f32 %v6686_v11, %v6698_v25  ;;  %v6725_v58 = vmul.f32 1.442695, %v6717_v22 }
0x1abc   : > { %v6727_v50 = vmul.f32 1.442695, %v6718_v12  ;;  %9756 = vpow2.f32 %v6725_v58 }
0x1abe   : > { %9758 = vpow2.f32 %v6727_v50 }
0x1abf   : > { %v6701_v52 = vpop.xlane.xlu0 %6700 }
0x1ac0   : > { %v6719_v63 = vsub.f32 %v6687_v6, %v6701_v52 }
0x1ac2   : > { %v6729_v23 = vmul.f32 1.442695, %v6719_v63 }
0x1ac3   : > { %v6704_v62 = vpop.xlane.xlu0 %6703 }
0x1ac4   : > { %v6720_v24 = vsub.f32 %v6688_v14, %v6704_v62  ;;  %9760 = vpow2.f32 %v6729_v23 }
0x1ac6   : > { %v6731_v40 = vmul.f32 1.442695, %v6720_v24  ;;  %v11758_v10 = vpop.eup %9756 }
0x1ac7   : > { %v6741_v56 = vsel %vm1546_vm2, %v11758_v10, 0.0 }
0x1ac8   : > { %9762 = vpow2.f32 %v6731_v40  ;;  %v9759_v33 = vpop.eup %9758 }
0x1ac9   : > { %v6744_v8 = vsel %vm1546_vm2, %v9759_v33, 0.0 }
0x1ace   : > { %v9761_v30 = vpop.eup %9760 }
0x1acf   : > { %v6747_v39 = vsel %vm1546_vm2, %v9761_v30, 0.0 }
0x1ad2   : > { %v9763_v11 = vpop.eup %9762 }
0x1ad3   : > { %v6750_v19 = vsel %vm1546_vm2, %v9763_v11, 0.0 }
0x1afe   : > { %v6627_v27 = vpop.f32.mrb[180].mxu1 }
0x1aff   : > { %v6689_v3 = vmul.f32 0.17677669, %v6627_v27  ;;  %v9069_v41 = vpop.f32.mrb[181].mxu1 }
0x1b00   : > { %v6630_v32 = vpop.f32.mrb[182].mxu1 }
0x1b01   : > { %v6690_v57 = vmul.f32 0.17677669, %v6630_v32  ;;  %v9070_v31 = vpop.f32.mrb[183].mxu1  ;;  %v6705_v20 = vsel %vm1546_vm2, %v6689_v3, -inf }
0x1b02   : > { %6706 = vmax.xlane.f32.xlu0 %v6705_v20 }
0x1b03   : > { %v6708_v4 = vsel %vm1546_vm2, %v6690_v57, -inf }
0x1b04   : > { %6709 = vmax.xlane.f32.xlu1 %v6708_v4 }
0x1b06   : > { %6712 = vmax.xlane.f32.xlu0 %v6711_v28 }
0x1b08   : > { %6715 = vmax.xlane.f32.xlu1 %v6714_v61 }
0x1b0a   : > { %6742 = vadd.xlane.f32.xlu0 %v6741_v56 }
0x1b0c   : > { %6745 = vadd.xlane.f32.xlu1 %v6744_v8 }
0x1b0e   : > { %6748 = vadd.xlane.f32.xlu0 %v6747_v39 }
0x1b10   : > { %6751 = vadd.xlane.f32.xlu1 %v6750_v19 }
0x1b8f   : > { %v6707_v13 = vpop.xlane.xlu0 %6706 }
0x1b90   : > { %v6721_v55 = vsub.f32 %v6689_v3, %v6707_v13 }
0x1b91   : > { %v6710_v26 = vpop.xlane.xlu1 %6709 }
0x1b92   : > { %v6733_v2 = vmul.f32 1.442695, %v6721_v55  ;;  %v6722_v25 = vsub.f32 %v6690_v57, %v6710_v26  ;;  %v9458_v55 = vld [vmem:[#allocation10 + $0x70] sm:$0xff]   ;;  %v9459_v26 = vld [vmem:[#allocation10 + $0x78] sm:$0xff]  }
0x1b93   : > { %v6713_v6 = vpop.xlane.xlu0 %6712 }
0x1b94   : > { %v6723_v60 = vsub.f32 %v6691_v5, %v6713_v6  ;;  %v6735_v22 = vmul.f32 1.442695, %v6722_v25 }
0x1b95   : > { %v6716_v14 = vpop.xlane.xlu1 %6715 }
0x1b96   : > { %v6737_v18 = vmul.f32 1.442695, %v6723_v60  ;;  %v6724_v51 = vsub.f32 %v6692_v21, %v6716_v14 }
0x1b97   : > { %v6743_v63 = vpop.xlane.xlu0 %6742 }
0x1b98   : > { %9764 = vpow2.f32 %v6737_v18  ;;  %v6739_v15 = vmul.f32 1.442695, %v6724_v51 }
0x1b99   : > { %9766 = vpow2.f32 %v6733_v2  ;;  %v6746_v58 = vpop.xlane.xlu1 %6745 }
0x1b9a   : > { %9768 = vpow2.f32 %v6739_v15 }
0x1b9b   : > { %9770 = vpow2.f32 %v6735_v22 }
0x1b9d   : > { %v6752_v50 = vpop.xlane.xlu1 %6751 }
0x1b9e   : > { %9772 = vrcp.f32 %v6752_v50 }
0x1b9f   : > { %9774 = vrcp.f32 %v6746_v58 }
0x1ba2   : > { %v9765_v17 = vpop.eup %9764 }
0x1ba3   : > { %v11766_v9 = vpop.eup %9766  ;;  %v6759_v44 = vsel %vm1546_vm2, %v9765_v17, 0.0 }
0x1ba4   : > { %v9769_v46 = vpop.eup %9768  ;;  %6760 = vadd.xlane.f32.xlu0 %v6759_v44  ;;  %v6753_v52 = vsel %vm1546_vm2, %v11766_v9, 0.0 }
0x1ba5   : > { %v6762_v59 = vsel %vm1546_vm2, %v9769_v46, 0.0  ;;  %v9771_v12 = vpop.eup %9770 }
0x1ba6   : > { %6763 = vadd.xlane.f32.xlu1 %v6762_v59  ;;  %v6756_v62 = vsel %vm1546_vm2, %v9771_v12, 0.0 }
0x1ba8   : > { %6754 = vadd.xlane.f32.xlu0 %v6753_v52 }
0x1bb7   : > { %6832 = vrot.lane.b32.xlu1 %v11331_v1, %s10118_s30  ;;  %v6749_v1 = vpop.xlane.xlu0 %6748 }
0x1bb8   : > { %9776 = vrcp.f32 %v6749_v1  ;;  %v11801_v1 = vld [vmem:[%s12084_s10 + $0x8] sm:$0x3f] }
0x1bb9   : > { %9778 = vrcp.f32 %v6743_v63 }
0x1bbb   : > { %6879 = vrot.lane.b32.xlu1 %v11369_v53, %s10118_s30 }
0x1bbe   : > { %6785 = vrot.lane.b32.xlu0 %v11335_v54, %s10118_s30  ;;  %v9773_v54 = vpop.eup %9772 }
0x1bbf   : > { %v9775_v24 = vpop.eup %9774  ;;  %v6776_v27 = vmul.f32 %v9773_v54, %v9763_v11 }
0x1bc0   : > { %v6774_v32 = vmul.f32 %v9775_v24, %v9759_v33 }
0x1bc2   : > { %v9777_v40 = vpop.eup %9776 }
0x1bc3   : > { %v9779_v41 = vpop.eup %9778  ;;  %v6775_v5 = vmul.f32 %v9777_v40, %v9761_v30 }
0x1bc5   : > { %v6782_v20 = vpack.c.bf16 %v6776_v27, %v6775_v5 }
0x1bdf   : > { %6757 = vadd.xlane.f32.xlu1 %v6756_v62 }
0x1bf0   : > { %6926 = vrot.lane.b32.xlu1 %v11365_v16, %s10118_s30  ;;  %v6773_v16 = vmul.f32 %v9779_v41, %v11758_v10  ;;  %s7940_s30 = sshll.u32 %s10453_s25, 6 }
0x1bf1   : > { %s11994_s16 = scalar_lea.vmem [#allocation14], %s7940_s30  ;;  %s10024_s30 = scalar_lea.vmem %s10023_s21, 2048 }
0x1bf2   : > { %v6781_v21 = vpack.c.bf16 %v6774_v32, %v6773_v16  ;;  %s7789_s28 = sshll.u32 %s11994_s16, 4  ;;  %s12027_s28 = int_to_ptr.vmem [resolvable:$true] %s7789_s28 }
0x1bf3   : > { %s10018_s27 = scalar_lea.vmem %s12027_s28, 1024  ;;  %p10025_p3 = scmp.lt.s32.totalorder %s12027_s28, %s10023_s21 }
0x1bf4   : > { %p10019_p6 = scmp.ne.s32.totalorder %s12027_s28, %s10018_s27  ;;  %p10026_p12 = scmp.lt.s32.totalorder %s10024_s30, %s10018_s27 }
0x1bf6   : > { %p10020_p10 = pnand %p10019_p6, %p12133_p5  ;;  %p10027_p13 = por %p10026_p12, %p10025_p3 }
0x1bf8   : > { %p10021_p11 = pneg %p10020_p10 }
0x1bfa   : > { %p10028_p8 = pnand %p10027_p13, %p10021_p11 }
0x1c31   : > { %v6761_v53 = vpop.xlane.xlu0 %6760 }
0x1c33   : > { %v6764_v23 = vpop.xlane.xlu1 %6763 }
0x1c34   : > { %9780 = vrcp.f32 %v6764_v23 }
0x1c35   : > { %v6755_v3 = vpop.xlane.xlu0 %6754  ;;  %9782 = vrcp.f32 %v6761_v53  ;;  %v11805_v53 = vrot.slane %v11801_v1, %v10541_v36 }
0x1c36   : > { %9784 = vrcp.f32 %v6755_v3 }
0x1c37   : > { %v6833_v57 = vpop.permute.xlu1 %6832 }
0x1c38   : > { %9084 = vmatpush3.bf16.msra.mxu0 %v6833_v57 }
0x1c39   : > { %v6786_v31 = vpop.permute.xlu0 %6785  ;;  %9095 = vmatprep.subr.bf16.mxu0 %v10114_v34 }
0x1c3a   : > { %9078 = vmatpush3.bf16.msra.mxu1 %v6786_v31 }
0x1c3b   : > { %9086 = vmatmul.mubr.msk.bf16.vlgmr.msra.gmra.mrb[184].mxu0 %vm1546_vm2, %v6782_v20  ;;  %9089 = vmatprep.subr.bf16.mxu1 %v10114_v34  ;;  %v6880_v4 = vpop.permute.xlu1 %6879 }
0x1c3c   : > { %9097 = vmatprep.mubr.msk.bf16.mxu0 %vm10115_vm0, %v10114_v34 }
0x1c3d   : > { %9080 = vmatmul.mubr.msk.bf16.vlgmr.msra.gmra.mrb[184].mxu1 %vm1546_vm2, %v6781_v21  ;;  %v9462_v21 = vld [vmem:[#allocation11 + $0x84] ss:$8 sps:$4 sm:$0xff]  }
0x1c3e   : > { %9090 = vmatpush3.bf16.msra.mxu1 %v6880_v4  ;;  %9091 = vmatprep.mubr.msk.bf16.mxu1 %vm10115_vm0, %v10114_v34  ;;  %v9781_v28 = vpop.eup %9780  ;;  %v9460_v4 = vld [vmem:[#allocation11 + $0x80] ss:$8 sps:$4 sm:$0xff]  }
0x1c3f   : > { %v9783_v61 = vpop.eup %9782  ;;  %v6780_v33 = vmul.f32 %v9781_v28, %v9769_v46  ;;  %9101 = vmatprep.subr.bf16.mxu1 %v9458_v55  ;;  %v9465_v28 = vld [vmem:[#allocation11 + $0x94] ss:$8 sps:$4 sm:$0xff]  }
0x1c40   : > { %v6779_v56 = vmul.f32 %v9783_v61, %v9765_v17  ;;  %v9785_v11 = vpop.eup %9784  ;;  %v9468_v61 = vld [vmem:[#allocation11 + $0xa4] ss:$8 sps:$4 sm:$0xff]  }
0x1c41   : > { %v6777_v34 = vmul.f32 %v9785_v11, %v11766_v9  ;;  %v9477_v11 = vld [vmem:[#allocation11 + $0xd4] ss:$8 sps:$4 sm:$0xff]  }
0x1c42   : > { %v6784_v8 = vpack.c.bf16 %v6780_v33, %v6779_v56  ;;  %v9466_v33 = vld [vmem:[#allocation11 + $0xa0] ss:$8 sps:$4 sm:$0xff]   ;;  %v9469_v56 = vld [vmem:[#allocation11 + $0xb0] ss:$8 sps:$4 sm:$0xff]  }
0x1c6c   : > { %v6758_v10 = vpop.xlane.xlu1 %6757 }
0x1c6d   : > { %9786 = vrcp.f32 %v6758_v10  ;;  %v9463_v10 = vld [vmem:[#allocation11 + $0x90] ss:$8 sps:$4 sm:$0xff]  }
0x1c70   : > { %v6927_v30 = vpop.permute.xlu1 %6926 }
0x1c71   : > { %9096 = vmatpush3.bf16.msra.mxu0 %v6927_v30  ;;  %v9474_v30 = vld [vmem:[#allocation11 + $0xc4] ss:$8 sps:$4 sm:$0xff]  }
0x1c72   : > { %7336 = vmatprep.subr.bf16.mxu0 %v9462_v21 }
0x1c74   : > { %9098 = vmatmul.mubr.msk.bf16.vlgmr.msra.gmra.mrb[188].mxu0 %vm1546_vm2, %v6784_v8  ;;  %v9472_v8 = vld [vmem:[#allocation11 + $0xc0] ss:$8 sps:$4 sm:$0xff]  }
0x1c75   : > { %7368 = vmatprep.mubr.bf16.mxu0 %v12124_v43  ;;  %7337 = vmatpush1.bf16.msra.mxu0 %v9460_v4 }
0x1c76   : > { %7338 = vmatprep.subr.bf16.mxu0 %v9465_v28 }
0x1c77   : > { %v9787_v39 = vpop.eup %9786 }
0x1c78   : > { %v6778_v19 = vmul.f32 %v9787_v39, %v9771_v12  ;;  %v9475_v39 = vld [vmem:[#allocation11 + $0xd0] ss:$8 sps:$4 sm:$0xff]  }
0x1c79   : > { %7339 = vmatpush1.bf16.msra.mxu0 %v9463_v10 }
0x1c7a   : > { %v6783_v13 = vpack.c.bf16 %v6778_v19, %v6777_v34  ;;  %7340 = vmatprep.subr.bf16.mxu0 %v9468_v61  ;;  %v9480_v34 = vld [vmem:[#allocation11 + $0xe4] ss:$8 sps:$4 sm:$0xff]   ;;  %v9478_v19 = vld [vmem:[#allocation11 + $0xe0] ss:$8 sps:$4 sm:$0xff]  }
0x1c7c   : > { %9092 = vmatmul.mubr.msk.bf16.vlgmr.msra.gmra.mrb[188].mxu1 %vm1546_vm2, %v6783_v13  ;;  %v9483_v13 = vld [vmem:[#allocation11 + $0xf4] ss:$8 sps:$4 sm:$0xff]  }
0x1c7d   : > { %9102 = vmatpush3.bf16.msra.mxu1 %v9458_v55  ;;  %7341 = vmatpush1.bf16.msra.mxu0 %v9466_v33  ;;  %v9481_v55 = vld [vmem:[#allocation11 + $0xf0] ss:$8 sps:$4 sm:$0xff]  }
0x1c7e   : > { %9103 = vmatprep.subr.bf16.mxu1 %v9459_v26 }
0x1c81   : > { %9104 = vmatpush3.bf16.msra.mxu1 %v9459_v26 }
0x1d0e   : > { %v6872_v6 = vpop.f32.mrb[184].mxu0 }
0x1d0f   : > { %v9087_v60 = vpop.f32.mrb[185].mxu0 }
0x1d10   : > { %v6825_v2 = vpop.f32.mrb[184].mxu1  ;;  %v6875_v14 = vpop.f32.mrb[186].mxu0 }
0x1d11   : > { %v6974_v18 = vpack.c.bf16 %v6875_v14, %v6872_v6  ;;  %v9081_v51 = vpop.f32.mrb[185].mxu1  ;;  %v9088_v15 = vpop.f32.mrb[187].mxu0 }
0x1d12   : > { %v6828_v17 = vpop.f32.mrb[186].mxu1 }
0x1d13   : > { %v6973_v44 = vpack.c.bf16 %v6828_v17, %v6825_v2  ;;  %v9082_v9 = vpop.f32.mrb[187].mxu1 }
0x1d15   : > { %9105 = vmatprep.mubr.msk.bf16.mxu1 %vm1349_vm1, %v6973_v44 }
0x1d16   : > { %9106 = vmatmul.mubr.msk.bf16.vlgmr.msra.gmra.mrb[164].mxu1 %vm1349_vm1, %v6974_v18 }
0x1d47   : > { %v6966_v46 = vpop.f32.mrb[188].mxu0 }
0x1d48   : > { %v9099_v59 = vpop.f32.mrb[189].mxu0 }
0x1d49   : > { %v6969_v52 = vpop.f32.mrb[190].mxu0 }
0x1d4a   : > { %v6976_v25 = vpack.c.bf16 %v6969_v52, %v6966_v46  ;;  %v9100_v22 = vpop.f32.mrb[191].mxu0 }
0x1d4b   : > { %v9485_v22 = vld [vmem:[#allocation13 + $0x80] sm:$0xff]  }
0x1d4f   : > { %v6919_v12 = vpop.f32.mrb[188].mxu1 }
0x1d50   : > { %v9093_v62 = vpop.f32.mrb[189].mxu1 }
0x1d51   : > { %v6922_v58 = vpop.f32.mrb[190].mxu1  ;;  %v9489_v62 = vld [vmem:[#allocation13 + $0x90] sm:$0xff]  }
0x1d52   : > { %v6975_v63 = vpack.c.bf16 %v6922_v58, %v6919_v12  ;;  %v9094_v50 = vpop.f32.mrb[191].mxu1  ;;  %v9487_v12 = vld [vmem:[#allocation13 + $0x88] sm:$0xff]   ;;  %v9490_v58 = vld [vmem:[#allocation13 + $0xd8] sm:$0xff]  }
0x1d53   : > { %v9492_v50 = vld [vmem:[#allocation13 + $0xe0] sm:$0xff]  }
0x1d54   : > { %9109 = vmatprep.mubr.msk.bf16.mxu1 %vm1349_vm1, %v6975_v63  ;;  %v9491_v63 = vld [vmem:[#allocation13 + $0x98] sm:$0xff]  }
0x1d55   : > { %9110 = vmatmul.mubr.msk.bf16.gmra.mrb[168].mxu1 %vm1349_vm1, %v6976_v25  ;;  %v9484_v25 = vld [vmem:[#allocation13 + $0xc0] sm:$0xff]  }
0x1d56   : > { %8545 = vmatprep.subr.bf16.mxu1 %v9484_v25 }
0x1d57   : > { %8546 = vmatpush3.bf16.msra.mxu1 %v9485_v22 }
0x1de9   : > { %v9107_v54 = vpop.f32.mrb[164].mxu1 }
0x1dea   : > { %v7035_v24 = vpop.f32.mrb[165].mxu1 }
0x1deb   : > { %v7078_v23 = vadd.f32 %v11805_v53, %v7035_v24  ;;  %v9108_v40 = vpop.f32.mrb[166].mxu1 }
0x1dec   : > { %v7038_v27 = vpop.f32.mrb[167].mxu1  ;;  %v7081_v32 = vadd.f32 %v9108_v40, %v11805_v53 }
0x1ded   : > { %v11809_v3 = vadd.f32 %v7078_v23, %v11255_v49  ;;  %v7079_v41 = vadd.f32 %v11805_v53, %v7038_v27  ;;  %v7080_v49 = vadd.f32 %v9107_v54, %v11805_v53  ;;  %v9494_v54 = vld [vmem:[#allocation13 + $0xe8] sm:$0xff]  }
0x1dee   : > { %v11821_v16 = vadd.f32 %v7081_v32, %v11270_v48 }
0x1def   : > { %v11814_v5 = vadd.f32 %v7079_v41, %v11258_v42  ;;  %7094 = vadd.xlane.f32.xlu0 %v11809_v3  ;;  %v7118_v57 = vmul.f32 %v11809_v3, %v11809_v3  ;;  %v11830_v20 = vadd.f32 %v7080_v49, %v11267_v29  ;;  %v9471_v29 = vld [vmem:[#allocation11 + $0xb4] ss:$8 sps:$4 sm:$0xff]  }
0x1df0   : > { %v7121_v42 = vmul.f32 %v11821_v16, %v11821_v16  ;;  %7342 = vmatprep.subr.bf16.mxu0 %v9471_v29 }
0x1df1   : > { %7096 = vadd.xlane.f32.xlu1 %v11814_v5  ;;  %v7119_v31 = vmul.f32 %v11814_v5, %v11814_v5  ;;  %v7120_v48 = vmul.f32 %v11830_v20, %v11830_v20  ;;  %7343 = vmatpush1.bf16.msra.mxu0 %v9469_v56 }
0x1df2   : > { %7344 = vmatprep.subr.bf16.mxu0 %v9474_v30 }
0x1df3   : > { %7126 = vadd.xlane.f32.xlu0 %v7118_v57 }
0x1df5   : > { %7100 = vadd.xlane.f32.xlu1 %v11821_v16  ;;  %7345 = vmatpush1.bf16.msra.mxu0 %v9472_v8 }
0x1df6   : > { %7346 = vmatprep.subr.bf16.mxu0 %v9477_v11 }
0x1df7   : > { %7128 = vadd.xlane.f32.xlu0 %v7119_v31 }
0x1df9   : > { %7132 = vadd.xlane.f32.xlu1 %v7121_v42  ;;  %7347 = vmatpush1.bf16.msra.mxu0 %v9475_v39 }
0x1dfa   : > { %7348 = vmatprep.subr.bf16.mxu0 %v9480_v34 }
0x1dfb   : > { %7098 = vadd.xlane.f32.xlu0 %v11830_v20 }
0x1dfd   : > { %7349 = vmatpush1.bf16.msra.mxu0 %v9478_v19 }
0x1dfe   : > { %7350 = vmatprep.subr.bf16.mxu0 %v9483_v13 }
0x1dff   : > { %7130 = vadd.xlane.f32.xlu0 %v7120_v48 }
0x1e01   : > { %7351 = vmatpush1.bf16.msra.mxu0 %v9481_v55 }
0x1e28   : > { %v9111_v26 = vpop.f32.mrb[168].mxu1 }
0x1e29   : > { %v7051_v6 = vpop.f32.mrb[169].mxu1  ;;  %v7084_v17 = vadd.f32 %v9111_v26, %v11805_v53 }
0x1e2a   : > { %v7082_v60 = vadd.f32 %v11805_v53, %v7051_v6  ;;  %v9112_v2 = vpop.f32.mrb[170].mxu1 }
0x1e2b   : > { %v7054_v14 = vpop.f32.mrb[171].mxu1  ;;  %v7085_v9 = vadd.f32 %v9112_v2, %v11805_v53  ;;  %v11852_v46 = vadd.f32 %v7084_v17, %v11293_v45  ;;  %v9486_v45 = vld [vmem:[#allocation13 + $0xc8] sm:$0xff]  }
0x1e2c   : > { %v11837_v18 = vadd.f32 %v7082_v60, %v11281_v7  ;;  %v7083_v51 = vadd.f32 %v11805_v53, %v7054_v14  ;;  %8547 = vmatprep.subr.bf16.mxu1 %v9486_v45  ;;  %v9493_v53 = vld [vmem:[#allocation13 + $0xa0] sm:$0xff]   ;;  %v11866_v14 = vrot.slane %v11801_v1, %v10558_v47 }
0x1e2d   : > { %v7124_v59 = vmul.f32 %v11852_v46, %v11852_v46  ;;  %8548 = vmatpush3.bf16.msra.mxu1 %v9487_v12 }
0x1e2e   : > { %v11841_v15 = vadd.f32 %v7083_v51, %v11284_v0  ;;  %7102 = vadd.xlane.f32.xlu0 %v11837_v18  ;;  %v7122_v44 = vmul.f32 %v11837_v18, %v11837_v18  ;;  %v11855_v0 = vadd.f32 %v7085_v9, %v11296_v37  ;;  %v9488_v37 = vld [vmem:[#allocation13 + $0xd0] sm:$0xff]  }
0x1e2f   : > { %8549 = vmatprep.subr.bf16.mxu1 %v9488_v37 }
0x1e30   : > { %7104 = vadd.xlane.f32.xlu1 %v11841_v15  ;;  %v7123_v7 = vmul.f32 %v11841_v15, %v11841_v15  ;;  %v7125_v52 = vmul.f32 %v11855_v0, %v11855_v0 }
0x1e31   : > { %8550 = vmatpush3.bf16.msra.mxu1 %v9489_v62 }
0x1e32   : > { %7134 = vadd.xlane.f32.xlu0 %v7122_v44  ;;  %8551 = vmatprep.subr.bf16.mxu1 %v9490_v58 }
0x1e34   : > { %7136 = vadd.xlane.f32.xlu1 %v7123_v7  ;;  %v12129_v7 = vsub.s32 3, %v10538_v35 }
0x1e35   : > { %8552 = vmatpush3.bf16.msra.mxu1 %v9491_v63 }
0x1e36   : > { %7106 = vadd.xlane.f32.xlu0 %v11852_v46  ;;  %8553 = vmatprep.subr.bf16.mxu1 %v9492_v50 }
0x1e38   : > { %7108 = vadd.xlane.f32.xlu1 %v11855_v0 }
0x1e39   : > { %8554 = vmatpush3.bf16.msra.mxu1 %v9493_v53 }
0x1e3a   : > { %7138 = vadd.xlane.f32.xlu0 %v7124_v59  ;;  %8555 = vmatprep.subr.bf16.mxu1 %v9494_v54  ;;  %v11873_v59 = vrot.slane %v11801_v1, %v12129_v7 }
0x1e3c   : > { %7140 = vadd.xlane.f32.xlu1 %v7125_v52 }
0x1e7c   : > { %v7095_v24 = vpop.xlane.xlu0 %7094 }
0x1e7d   : > { %v7110_v23 = vmul.f32 0.0078125, %v7095_v24 }
0x1e7e   : > { %v7097_v40 = vpop.xlane.xlu1 %7096 }
0x1e7f   : > { %v7150_v41 = vmul.f32 %v7110_v23, %v7110_v23  ;;  %v7111_v32 = vmul.f32 0.0078125, %v7097_v40  ;;  %v7166_v26 = vsub.f32 %v11809_v3, %v7110_v23 }
0x1e80   : > { %v7127_v27 = vpop.xlane.xlu0 %7126 }
0x1e81   : > { %v7142_v57 = vmul.f32 0.0078125, %v7127_v27  ;;  %v7151_v21 = vmul.f32 %v7111_v32, %v7111_v32  ;;  %v7167_v51 = vsub.f32 %v11814_v5, %v7111_v32 }
0x1e82   : > { %v7101_v49 = vpop.xlane.xlu1 %7100 }
0x1e83   : > { %v7158_v31 = vsub.f32 %v7142_v57, %v7150_v41  ;;  %v7113_v42 = vmul.f32 0.0078125, %v7101_v49 }
0x1e84   : > { %v7129_v48 = vpop.xlane.xlu0 %7128 }
0x1e85   : > { %v7174_v4 = vadd.f32 1e-05, %v7158_v31  ;;  %v7143_v28 = vmul.f32 0.0078125, %v7129_v48  ;;  %v7153_v61 = vmul.f32 %v7113_v42, %v7113_v42  ;;  %v7169_v52 = vsub.f32 %v11821_v16, %v7113_v42 }
0x1e86   : > { %v7133_v10 = vpop.xlane.xlu1 %7132 }
0x1e87   : > { %9788 = vrsqrt.f32 %v7174_v4  ;;  %v7159_v33 = vsub.f32 %v7143_v28, %v7151_v21  ;;  %v7145_v29 = vmul.f32 0.0078125, %v7133_v10 }
0x1e88   : > { %v7099_v56 = vpop.xlane.xlu0 %7098 }
0x1e89   : > { %v7175_v30 = vadd.f32 1e-05, %v7159_v33  ;;  %v7161_v8 = vsub.f32 %v7145_v29, %v7153_v61  ;;  %v7112_v11 = vmul.f32 0.0078125, %v7099_v56 }
0x1e8b   : > { %9790 = vrsqrt.f32 %v7175_v30  ;;  %v7177_v39 = vadd.f32 1e-05, %v7161_v8  ;;  %v7152_v19 = vmul.f32 %v7112_v11, %v7112_v11  ;;  %v7168_v45 = vsub.f32 %v11830_v20, %v7112_v11 }
0x1e8c   : > { %v7131_v34 = vpop.xlane.xlu0 %7130 }
0x1e8d   : > { %9792 = vrsqrt.f32 %v7177_v39  ;;  %v7144_v13 = vmul.f32 0.0078125, %v7131_v34 }
0x1e8f   : > { %v7160_v55 = vsub.f32 %v7144_v13, %v7152_v19 }
0x1e91   : > { %v9789_v6 = vpop.eup %9788  ;;  %v7176_v60 = vadd.f32 1e-05, %v7160_v55 }
0x1e92   : > { %v7190_v2 = vmul.f32 %v9789_v6, %v7166_v26 }
0x1e93   : > { %9794 = vrsqrt.f32 %v7176_v60 }
0x1e94   : > { %v7202_v9 = vmul.f32 %v11866_v14, %v7190_v2 }
0x1e95   : > { %v9791_v17 = vpop.eup %9790 }
0x1e96   : > { %v7191_v44 = vmul.f32 %v9791_v17, %v7167_v51  ;;  %v11878_v47 = vadd.f32 %v11873_v59, %v7202_v9 }
0x1e97   : > { %v9793_v3 = vpop.eup %9792 }
0x1e98   : > { %v7203_v25 = vmul.f32 %v11866_v14, %v7191_v44  ;;  %v7193_v5 = vmul.f32 %v9793_v3, %v7169_v52 }
0x1e9a   : > { %v11881_v22 = vadd.f32 %v11873_v59, %v7203_v25  ;;  %v7205_v58 = vmul.f32 %v11866_v14, %v7193_v5 }
0x1e9c   : > { %v7222_v12 = vpack.c.bf16 %v11881_v22, %v11878_v47  ;;  %v11893_v50 = vadd.f32 %v11873_v59, %v7205_v58  ;;  %v9495_v58 = vld [vmem:[#allocation13 + $0xa8] sm:$0xff]  }
0x1e9d   : > { %v9795_v37 = vpop.eup %9794  ;;  %8556 = vmatpush3.bf16.msra.mxu1 %v9495_v58 }
0x1e9e   : > { %7369 = vmatmul.mubr.bf16.vlgmr.msra.gmra.mrb[192].mxu0 %v7222_v12  ;;  %v7192_v62 = vmul.f32 %v9795_v37, %v7168_v45 }
0x1e9f   : > { %7378 = vmatprep.mubr.bf16.mxu0 %v12124_v43 }
0x1ea0   : > { %v7204_v16 = vmul.f32 %v11866_v14, %v7192_v62 }
0x1ea2   : > { %v11890_v63 = vadd.f32 %v11873_v59, %v7204_v16  ;;  %v9496_v16 = vld [vmem:[#allocation13 + $0xf0] sm:$0xff]  }
0x1ea3   : > { %8557 = vmatprep.subr.bf16.mxu1 %v9496_v16 }
0x1ea4   : > { %v7223_v20 = vpack.c.bf16 %v11893_v50, %v11890_v63 }
0x1ea6   : > { %7379 = vmatmul.mubr.bf16.gmra.mrb[196].mxu0 %v7223_v20  ;;  %v9497_v20 = vld [vmem:[#allocation13 + $0xb0] sm:$0xff]  }
0x1ea7   : > { %7388 = vmatprep.mubr.bf16.mxu0 %v12124_v43  ;;  %8558 = vmatpush3.bf16.msra.mxu1 %v9497_v20 }
0x1ebb   : > { %v7103_v53 = vpop.xlane.xlu0 %7102 }
0x1ebc   : > { %v7114_v54 = vmul.f32 0.0078125, %v7103_v53  ;;  %v9498_v53 = vld [vmem:[#allocation13 + $0xf8] sm:$0xff]  }
0x1ebd   : > { %v7105_v24 = vpop.xlane.xlu1 %7104  ;;  %8559 = vmatprep.subr.bf16.mxu1 %v9498_v53 }
0x1ebe   : > { %v7115_v23 = vmul.f32 0.0078125, %v7105_v24  ;;  %v7154_v27 = vmul.f32 %v7114_v54, %v7114_v54  ;;  %v7170_v55 = vsub.f32 %v11837_v18, %v7114_v54 }
0x1ebf   : > { %v7135_v40 = vpop.xlane.xlu0 %7134 }
0x1ec0   : > { %v7146_v41 = vmul.f32 0.0078125, %v7135_v40  ;;  %v7155_v57 = vmul.f32 %v7115_v23, %v7115_v23  ;;  %v7171_v6 = vsub.f32 %v11841_v15, %v7115_v23 }
0x1ec1   : > { %v7137_v32 = vpop.xlane.xlu1 %7136 }
0x1ec2   : > { %v7162_v49 = vsub.f32 %v7146_v41, %v7154_v27  ;;  %v7147_v31 = vmul.f32 0.0078125, %v7137_v32 }
0x1ec3   : > { %v7107_v42 = vpop.xlane.xlu0 %7106 }
0x1ec4   : > { %v7178_v48 = vadd.f32 1e-05, %v7162_v49  ;;  %v7163_v21 = vsub.f32 %v7147_v31, %v7155_v57  ;;  %v7116_v4 = vmul.f32 0.0078125, %v7107_v42 }
0x1ec5   : > { %v7109_v28 = vpop.xlane.xlu1 %7108 }
0x1ec6   : > { %9796 = vrsqrt.f32 %v7178_v48  ;;  %v7179_v10 = vadd.f32 1e-05, %v7163_v21  ;;  %v7117_v61 = vmul.f32 0.0078125, %v7109_v28  ;;  %v7156_v29 = vmul.f32 %v7116_v4, %v7116_v4 }
0x1ec7   : > { %v7139_v33 = vpop.xlane.xlu0 %7138  ;;  %v7172_v9 = vsub.f32 %v11852_v46, %v7116_v4 }
0x1ec8   : > { %9798 = vrsqrt.f32 %v7179_v10  ;;  %v7148_v56 = vmul.f32 0.0078125, %v7139_v33  ;;  %v7157_v8 = vmul.f32 %v7117_v61, %v7117_v61  ;;  %v7173_v52 = vsub.f32 %v11855_v0, %v7117_v61 }
0x1ec9   : > { %v7141_v30 = vpop.xlane.xlu1 %7140 }
0x1eca   : > { %v7164_v11 = vsub.f32 %v7148_v56, %v7156_v29  ;;  %v7149_v39 = vmul.f32 0.0078125, %v7141_v30 }
0x1ecc   : > { %v7180_v34 = vadd.f32 1e-05, %v7164_v11  ;;  %v7165_v19 = vsub.f32 %v7149_v39, %v7157_v8 }
0x1ece   : > { %9800 = vrsqrt.f32 %v7180_v34  ;;  %v7181_v13 = vadd.f32 1e-05, %v7165_v19 }
0x1ed0   : > { %v9797_v26 = vpop.eup %9796  ;;  %9802 = vrsqrt.f32 %v7181_v13 }
0x1ed1   : > { %v7194_v60 = vmul.f32 %v9797_v26, %v7170_v55 }
0x1ed2   : > { %v9799_v2 = vpop.eup %9798 }
0x1ed3   : > { %v7195_v51 = vmul.f32 %v9799_v2, %v7171_v6  ;;  %v7206_v17 = vmul.f32 %v11866_v14, %v7194_v60 }
0x1ed5   : > { %v7207_v44 = vmul.f32 %v11866_v14, %v7195_v51  ;;  %v11904_v7 = vadd.f32 %v11873_v59, %v7206_v17 }
0x1ed7   : > { %v11907_v3 = vadd.f32 %v11873_v59, %v7207_v44 }
0x1ed8   : > { %v9801_v18 = vpop.eup %9800 }
0x1ed9   : > { %v7224_v15 = vpack.c.bf16 %v11907_v3, %v11904_v7  ;;  %v7196_v25 = vmul.f32 %v9801_v18, %v7172_v9 }
0x1eda   : > { %v9803_v5 = vpop.eup %9802 }
0x1edb   : > { %7389 = vmatmul.mubr.bf16.gmra.mrb[200].mxu0 %v7224_v15  ;;  %v7197_v45 = vmul.f32 %v9803_v5, %v7173_v52  ;;  %v7208_v12 = vmul.f32 %v11866_v14, %v7196_v25 }
0x1edc   : > { %7398 = vmatprep.mubr.bf16.mxu0 %v12124_v43  ;;  %v9499_v43 = vld [vmem:[#allocation13 + $0xb8] sm:$0xff]  }
0x1edd   : > { %v7209_v46 = vmul.f32 %v11866_v14, %v7197_v45  ;;  %v11916_v37 = vadd.f32 %v11873_v59, %v7208_v12  ;;  %8560 = vmatpush3.bf16.msra.mxu1 %v9499_v43  ;;  %v8184_v14 = vld [vmem:[%s12125_s29 + $0x2] sm:$0x3] }
0x1ede   : > { %v7253_v54 = vrot.slane %v8184_v14, %v10547_v38 }
0x1edf   : > { %v11919_v62 = vadd.f32 %v11873_v59, %v7209_v46  ;;  %v7249_v59 = vrot.slane %v8184_v14, %v10541_v36 }
0x1ee1   : > { %v7225_v0 = vpack.c.bf16 %v11919_v62, %v11916_v37 }
0x1ee3   : > { %7399 = vmatmul.mubr.bf16.gmra.mrb[204].mxu0 %v7225_v0 }
0x1f71   : > { %v7370_v24 = vpop.f32.mrb[192].mxu0 }
0x1f72   : > { %v7371_v23 = vadd.f32 %v7370_v24, %v7249_v59  ;;  %v7372_v40 = vpop.f32.mrb[193].mxu0 }
0x1f73   : > { %v7373_v27 = vadd.f32 %v7372_v40, %v7253_v54  ;;  %v7374_v41 = vpop.f32.mrb[194].mxu0 }
0x1f74   : > { %v7375_v32 = vadd.f32 %v7374_v41, %v7249_v59  ;;  %v7376_v57 = vpop.f32.mrb[195].mxu0  ;;  %v7409_v31 = vmax.f32 %v7371_v23, 0.0 }
0x1f75   : > { %v7377_v49 = vadd.f32 %v7376_v57, %v7253_v54  ;;  %v7410_v48 = vmax.f32 %v7373_v27, 0.0  ;;  %v7469_v57 = vrot.slane %v11801_v1, %v10547_v38 }
0x1f76   : > { %v7411_v42 = vmax.f32 %v7375_v32, 0.0 }
0x1f77   : > { %v7412_v21 = vmax.f32 %v7377_v49, 0.0 }
0x1f78   : > { %v7425_v4 = vpack.c.bf16 %v7411_v42, %v7409_v31 }
0x1f79   : > { %v7426_v28 = vpack.c.bf16 %v7412_v21, %v7410_v48  ;;  %v7380_v10 = vpop.f32.mrb[196].mxu0 }
0x1f7a   : > { %v7381_v61 = vadd.f32 %v7380_v10, %v7249_v59  ;;  %v7382_v33 = vpop.f32.mrb[197].mxu0 }
0x1f7b   : > { %v7383_v36 = vadd.f32 %v7382_v33, %v7253_v54  ;;  %v7384_v29 = vpop.f32.mrb[198].mxu0  ;;  %7598 = vmatprep.mubr.bf16.mxu1 %v7426_v28 }
0x1f7c   : > { %v7385_v56 = vadd.f32 %v7384_v29, %v7249_v59  ;;  %v7386_v30 = vpop.f32.mrb[199].mxu0  ;;  %7599 = vmatmul.mubr.bf16.vlgmr.msra.gmra.mrb[192].mxu1 %v7425_v4  ;;  %v7413_v11 = vmax.f32 %v7381_v61, 0.0 }
0x1f7d   : > { %v7387_v8 = vadd.f32 %v7386_v30, %v7253_v54  ;;  %v7414_v34 = vmax.f32 %v7383_v36, 0.0 }
0x1f7e   : > { %v7415_v39 = vmax.f32 %v7385_v56, 0.0 }
0x1f7f   : > { %v7416_v19 = vmax.f32 %v7387_v8, 0.0 }
0x1f80   : > { %v7427_v13 = vpack.c.bf16 %v7415_v39, %v7413_v11 }
0x1f81   : > { %v7428_v55 = vpack.c.bf16 %v7416_v19, %v7414_v34 }
0x1f83   : > { %7606 = vmatprep.mubr.bf16.mxu1 %v7428_v55 }
0x1f84   : > { %7607 = vmatmul.mubr.bf16.gmra.mrb[196].mxu1 %v7427_v13 }
0x1fae   : > { %v7390_v26 = vpop.f32.mrb[200].mxu0 }
0x1faf   : > { %v7391_v6 = vadd.f32 %v7390_v26, %v7249_v59  ;;  %v7392_v60 = vpop.f32.mrb[201].mxu0 }
0x1fb0   : > { %v7393_v2 = vadd.f32 %v7392_v60, %v7253_v54  ;;  %v7394_v51 = vpop.f32.mrb[202].mxu0 }
0x1fb1   : > { %v7395_v17 = vadd.f32 %v7394_v51, %v7249_v59  ;;  %v7396_v44 = vpop.f32.mrb[203].mxu0  ;;  %v7417_v18 = vmax.f32 %v7391_v6, 0.0 }
0x1fb2   : > { %v7397_v9 = vadd.f32 %v7396_v44, %v7253_v54  ;;  %v7418_v15 = vmax.f32 %v7393_v2, 0.0 }
0x1fb3   : > { %v7419_v52 = vmax.f32 %v7395_v17, 0.0 }
0x1fb4   : > { %v7420_v25 = vmax.f32 %v7397_v9, 0.0 }
0x1fb5   : > { %v7429_v5 = vpack.c.bf16 %v7419_v52, %v7417_v18 }
0x1fb6   : > { %v7430_v45 = vpack.c.bf16 %v7420_v25, %v7418_v15  ;;  %v7400_v12 = vpop.f32.mrb[204].mxu0 }
0x1fb7   : > { %v7401_v46 = vadd.f32 %v7400_v12, %v7249_v59  ;;  %v7402_v0 = vpop.f32.mrb[205].mxu0 }
0x1fb8   : > { %v7403_v58 = vadd.f32 %v7402_v0, %v7253_v54  ;;  %v7404_v16 = vpop.f32.mrb[206].mxu0  ;;  %7614 = vmatprep.mubr.bf16.mxu1 %v7430_v45 }
0x1fb9   : > { %v7405_v20 = vadd.f32 %v7404_v16, %v7249_v59  ;;  %v7406_v53 = vpop.f32.mrb[207].mxu0  ;;  %7615 = vmatmul.mubr.bf16.gmra.mrb[200].mxu1 %v7429_v5  ;;  %v7421_v14 = vmax.f32 %v7401_v46, 0.0 }
0x1fba   : > { %v7407_v43 = vadd.f32 %v7406_v53, %v7253_v54  ;;  %v7422_v23 = vmax.f32 %v7403_v58, 0.0 }
0x1fbb   : > { %v7423_v24 = vmax.f32 %v7405_v20, 0.0 }
0x1fbc   : > { %v7424_v40 = vmax.f32 %v7407_v43, 0.0 }
0x1fbd   : > { %v7431_v27 = vpack.c.bf16 %v7423_v24, %v7421_v14 }
0x1fbe   : > { %v7432_v41 = vpack.c.bf16 %v7424_v40, %v7422_v23 }
0x1fc0   : > { %7622 = vmatprep.mubr.bf16.mxu1 %v7432_v41 }
0x1fc1   : > { %7623 = vmatmul.mubr.bf16.gmra.mrb[204].mxu1 %v7431_v27 }
0x204f   : > { %v8561_v32 = vpop.f32.mrb[192].mxu1 }
0x2050   : > { %v8562_v49 = vpop.f32.mrb[193].mxu1 }
0x2051   : > { %v8563_v31 = vadd.f32 %v8562_v49, %v8561_v32  ;;  %v8564_v42 = vpop.f32.mrb[194].mxu1 }
0x2052   : > { %v8565_v48 = vpop.f32.mrb[195].mxu1 }
0x2053   : > { %v7601_v59 = vadd.f32 %v8563_v31, %v7469_v57  ;;  %v8566_v21 = vadd.f32 %v8565_v48, %v8564_v42 }
0x2055   : > { %v7604_v4 = vadd.f32 %v8566_v21, %v7469_v57  ;;  %v11931_v54 = vadd.f32 %v7601_v59, %v11878_v47 }
0x2057   : > { %v8567_v28 = vpop.f32.mrb[196].mxu1  ;;  %7639 = vadd.xlane.f32.xlu0 %v11931_v54  ;;  %v11935_v10 = vadd.f32 %v7604_v4, %v11881_v22  ;;  %v7663_v38 = vmul.f32 %v11931_v54, %v11931_v54 }
0x2058   : > { %v8568_v61 = vpop.f32.mrb[197].mxu1 }
0x2059   : > { %v8569_v33 = vadd.f32 %v8568_v61, %v8567_v28  ;;  %v8570_v36 = vpop.f32.mrb[198].mxu1  ;;  %7641 = vadd.xlane.f32.xlu1 %v11935_v10  ;;  %v7664_v47 = vmul.f32 %v11935_v10, %v11935_v10 }
0x205a   : > { %v8571_v29 = vpop.f32.mrb[199].mxu1 }
0x205b   : > { %v7609_v56 = vadd.f32 %v8569_v33, %v7469_v57  ;;  %v8572_v30 = vadd.f32 %v8571_v29, %v8570_v36  ;;  %7671 = vadd.xlane.f32.xlu0 %v7663_v38 }
0x205d   : > { %v7612_v8 = vadd.f32 %v8572_v30, %v7469_v57  ;;  %7673 = vadd.xlane.f32.xlu1 %v7664_v47  ;;  %v11943_v22 = vadd.f32 %v7609_v56, %v11890_v63  ;;  %v12130_v30 = vsub.s32 4, %v10538_v35 }
0x205f   : > { %7643 = vadd.xlane.f32.xlu0 %v11943_v22  ;;  %v11947_v11 = vadd.f32 %v7612_v8, %v11893_v50  ;;  %v7665_v39 = vmul.f32 %v11943_v22, %v11943_v22  ;;  %v11982_v47 = vrot.slane %v11801_v1, %v12130_v30 }
0x2061   : > { %7645 = vadd.xlane.f32.xlu1 %v11947_v11  ;;  %v7666_v34 = vmul.f32 %v11947_v11, %v11947_v11 }
0x2063   : > { %7675 = vadd.xlane.f32.xlu0 %v7665_v39 }
0x2065   : > { %7677 = vadd.xlane.f32.xlu1 %v7666_v34  ;;  %v12131_v34 = vsub.s32 5, %v10538_v35 }
0x208c   : > { %v8573_v19 = vpop.f32.mrb[200].mxu1 }
0x208d   : > { %v8574_v13 = vpop.f32.mrb[201].mxu1 }
0x208e   : > { %v8575_v55 = vadd.f32 %v8574_v13, %v8573_v19  ;;  %v8576_v63 = vpop.f32.mrb[202].mxu1  ;;  %v11989_v19 = vrot.slane %v11801_v1, %v12131_v34 }
0x208f   : > { %v8577_v26 = vpop.f32.mrb[203].mxu1 }
0x2090   : > { %v7617_v6 = vadd.f32 %v8575_v55, %v7469_v57  ;;  %v8578_v60 = vadd.f32 %v8577_v26, %v8576_v63 }
0x2092   : > { %v7620_v2 = vadd.f32 %v8578_v60, %v7469_v57  ;;  %v11955_v50 = vadd.f32 %v7617_v6, %v11904_v7 }
0x2094   : > { %v8579_v51 = vpop.f32.mrb[204].mxu1  ;;  %7647 = vadd.xlane.f32.xlu0 %v11955_v50  ;;  %v11959_v17 = vadd.f32 %v7620_v2, %v11907_v3  ;;  %v7667_v52 = vmul.f32 %v11955_v50, %v11955_v50 }
0x2095   : > { %v8580_v44 = vpop.f32.mrb[205].mxu1 }
0x2096   : > { %v8581_v9 = vadd.f32 %v8580_v44, %v8579_v51  ;;  %v8582_v18 = vpop.f32.mrb[206].mxu1  ;;  %7649 = vadd.xlane.f32.xlu1 %v11959_v17  ;;  %v7668_v7 = vmul.f32 %v11959_v17, %v11959_v17 }
0x2097   : > { %v8583_v15 = vpop.f32.mrb[207].mxu1 }
0x2098   : > { %v7625_v25 = vadd.f32 %v8581_v9, %v7469_v57  ;;  %v8584_v5 = vadd.f32 %v8583_v15, %v8582_v18  ;;  %7679 = vadd.xlane.f32.xlu0 %v7667_v52 }
0x209a   : > { %v7628_v45 = vadd.f32 %v8584_v5, %v7469_v57  ;;  %7681 = vadd.xlane.f32.xlu1 %v7668_v7  ;;  %v11967_v3 = vadd.f32 %v7625_v25, %v11916_v37 }
0x209c   : > { %7651 = vadd.xlane.f32.xlu0 %v11967_v3  ;;  %v11971_v12 = vadd.f32 %v7628_v45, %v11919_v62  ;;  %v7669_v46 = vmul.f32 %v11967_v3, %v11967_v3 }
0x209e   : > { %7653 = vadd.xlane.f32.xlu1 %v11971_v12  ;;  %v7670_v0 = vmul.f32 %v11971_v12, %v11971_v12 }
0x20a0   : > { %7683 = vadd.xlane.f32.xlu0 %v7669_v46 }
0x20a2   : > { %7685 = vadd.xlane.f32.xlu1 %v7670_v0 }
0x20e4   : > { %v7640_v58 = vpop.xlane.xlu0 %7639 }
0x20e5   : > { %v7655_v16 = vmul.f32 0.0078125, %v7640_v58 }
0x20e6   : > { %v7642_v20 = vpop.xlane.xlu1 %7641 }
0x20e7   : > { %v7656_v37 = vmul.f32 0.0078125, %v7642_v20  ;;  %v7695_v43 = vmul.f32 %v7655_v16, %v7655_v16  ;;  %v7711_v56 = vsub.f32 %v11931_v54, %v7655_v16 }
0x20e8   : > { %v7672_v53 = vpop.xlane.xlu0 %7671 }
0x20e9   : > { %v7687_v14 = vmul.f32 0.0078125, %v7672_v53  ;;  %v7696_v62 = vmul.f32 %v7656_v37, %v7656_v37  ;;  %v7712_v39 = vsub.f32 %v11935_v10, %v7656_v37 }
0x20ea   : > { %v7674_v24 = vpop.xlane.xlu1 %7673 }
0x20eb   : > { %v7703_v23 = vsub.f32 %v7687_v14, %v7695_v43  ;;  %v7688_v40 = vmul.f32 0.0078125, %v7674_v24 }
0x20ec   : > { %v7644_v27 = vpop.xlane.xlu0 %7643 }
0x20ed   : > { %v7719_v41 = vadd.f32 1e-05, %v7703_v23  ;;  %v7704_v32 = vsub.f32 %v7688_v40, %v7696_v62  ;;  %v7657_v57 = vmul.f32 0.0078125, %v7644_v27 }
0x20ee   : > { %v7646_v49 = vpop.xlane.xlu1 %7645 }
0x20ef   : > { %9804 = vrsqrt.f32 %v7719_v41  ;;  %v7720_v31 = vadd.f32 1e-05, %v7704_v32  ;;  %v7658_v42 = vmul.f32 0.0078125, %v7646_v49  ;;  %v7697_v59 = vmul.f32 %v7657_v57, %v7657_v57 }
0x20f0   : > { %v7676_v48 = vpop.xlane.xlu0 %7675  ;;  %v7713_v1 = vsub.f32 %v11943_v22, %v7657_v57 }
0x20f1   : > { %9806 = vrsqrt.f32 %v7720_v31  ;;  %v7689_v21 = vmul.f32 0.0078125, %v7676_v48  ;;  %v7698_v28 = vmul.f32 %v7658_v42, %v7658_v42  ;;  %v7714_v60 = vsub.f32 %v11947_v11, %v7658_v42 }
0x20f2   : > { %v7678_v4 = vpop.xlane.xlu1 %7677 }
0x20f3   : > { %v7705_v61 = vsub.f32 %v7689_v21, %v7697_v59  ;;  %v7690_v33 = vmul.f32 0.0078125, %v7678_v4 }
0x20f5   : > { %v7721_v36 = vadd.f32 1e-05, %v7705_v61  ;;  %v7706_v38 = vsub.f32 %v7690_v33, %v7698_v28 }
0x20f7   : > { %9808 = vrsqrt.f32 %v7721_v36  ;;  %v7722_v29 = vadd.f32 1e-05, %v7706_v38 }
0x20f9   : > { %v9805_v8 = vpop.eup %9804  ;;  %9810 = vrsqrt.f32 %v7722_v29 }
0x20fa   : > { %v7735_v13 = vmul.f32 %v9805_v8, %v7711_v56 }
0x20fb   : > { %v9807_v55 = vpop.eup %9806 }
0x20fc   : > { %v7747_v63 = vmul.f32 %v11982_v47, %v7735_v13  ;;  %v7736_v54 = vmul.f32 %v9807_v55, %v7712_v39 }
0x20fe   : > { %v7759_v26 = vadd.f32 %v11989_v19, %v7747_v63  ;;  %v7748_v6 = vmul.f32 %v11982_v47, %v7736_v54 }
0x2100   : > { %7767 = vst [vmem:[%s11994_s16] sm:$0xff] %v7759_v26  ;;  %v7760_v35 = vadd.f32 %v11989_v19, %v7748_v6 }
0x2101   : > { %v9809_v10 = vpop.eup %9808 }
0x2102   : > { %7768 = vst [vmem:[%s11994_s16 + $0x8] sm:$0xff] %v7760_v35  ;;  %v7737_v2 = vmul.f32 %v9809_v10, %v7713_v1 }
0x2103   : > { %v9811_v51 = vpop.eup %9810 }
0x2104   : > { %v7749_v44 = vmul.f32 %v11982_v47, %v7737_v2  ;;  %v7738_v9 = vmul.f32 %v9811_v51, %v7714_v60 }
0x2106   : > { %v7761_v18 = vadd.f32 %v11989_v19, %v7749_v44  ;;  %v7750_v52 = vmul.f32 %v11982_v47, %v7738_v9 }
0x2108   : > { %7769 = vst [vmem:[%s11994_s16 + $0x10] sm:$0xff] %v7761_v18  ;;  %v7762_v15 = vadd.f32 %v11989_v19, %v7750_v52 }
0x210a   : > { %7770 = vst [vmem:[%s11994_s16 + $0x18] sm:$0xff] %v7762_v15 }
0x2121   : > { %v7648_v25 = vpop.xlane.xlu0 %7647 }
0x2122   : > { %v7659_v5 = vmul.f32 0.0078125, %v7648_v25 }
0x2123   : > { %v7650_v22 = vpop.xlane.xlu1 %7649 }
0x2124   : > { %v7660_v7 = vmul.f32 0.0078125, %v7650_v22  ;;  %v7699_v46 = vmul.f32 %v7659_v5, %v7659_v5  ;;  %v7715_v21 = vsub.f32 %v11955_v50, %v7659_v5 }
0x2125   : > { %v7680_v45 = vpop.xlane.xlu0 %7679 }
0x2126   : > { %v7691_v11 = vmul.f32 0.0078125, %v7680_v45  ;;  %v7700_v58 = vmul.f32 %v7660_v7, %v7660_v7  ;;  %v7716_v28 = vsub.f32 %v11959_v17, %v7660_v7 }
0x2127   : > { %v7682_v0 = vpop.xlane.xlu1 %7681 }
0x2128   : > { %v7707_v16 = vsub.f32 %v7691_v11, %v7699_v46  ;;  %v7692_v20 = vmul.f32 0.0078125, %v7682_v0 }
0x2129   : > { %v7652_v37 = vpop.xlane.xlu0 %7651 }
0x212a   : > { %v7723_v53 = vadd.f32 1e-05, %v7707_v16  ;;  %v7708_v43 = vsub.f32 %v7692_v20, %v7700_v58  ;;  %v7661_v14 = vmul.f32 0.0078125, %v7652_v37 }
0x212b   : > { %v7654_v24 = vpop.xlane.xlu1 %7653 }
0x212c   : > { %9812 = vrsqrt.f32 %v7723_v53  ;;  %v7724_v62 = vadd.f32 1e-05, %v7708_v43  ;;  %v7662_v23 = vmul.f32 0.0078125, %v7654_v24  ;;  %v7701_v27 = vmul.f32 %v7661_v14, %v7661_v14 }
0x212d   : > { %v7684_v40 = vpop.xlane.xlu0 %7683  ;;  %v7717_v50 = vsub.f32 %v11967_v3, %v7661_v14 }
0x212e   : > { %9814 = vrsqrt.f32 %v7724_v62  ;;  %v7693_v41 = vmul.f32 0.0078125, %v7684_v40  ;;  %v7702_v57 = vmul.f32 %v7662_v23, %v7662_v23  ;;  %v7718_v17 = vsub.f32 %v11971_v12, %v7662_v23 }
0x212f   : > { %v7686_v32 = vpop.xlane.xlu1 %7685 }
0x2130   : > { %v7709_v49 = vsub.f32 %v7693_v41, %v7701_v27  ;;  %v7694_v31 = vmul.f32 0.0078125, %v7686_v32 }
0x2132   : > { %v7725_v42 = vadd.f32 1e-05, %v7709_v49  ;;  %v7710_v48 = vsub.f32 %v7694_v31, %v7702_v57 }
0x2134   : > { %9816 = vrsqrt.f32 %v7725_v42  ;;  %v7726_v59 = vadd.f32 1e-05, %v7710_v48 }
0x2136   : > { %v9813_v4 = vpop.eup %9812  ;;  %9818 = vrsqrt.f32 %v7726_v59 }
0x2137   : > { %v7739_v61 = vmul.f32 %v9813_v4, %v7715_v21 }
0x2138   : > { %v9815_v33 = vpop.eup %9814 }
0x2139   : > { %v7751_v36 = vmul.f32 %v11982_v47, %v7739_v61  ;;  %v7740_v38 = vmul.f32 %v9815_v33, %v7716_v28 }
0x213b   : > { %v7763_v29 = vadd.f32 %v11989_v19, %v7751_v36  ;;  %v7752_v56 = vmul.f32 %v11982_v47, %v7740_v38 }
0x213d   : > { %7771 = vst [vmem:[%s11994_s16 + $0x20] sm:$0xff] %v7763_v29  ;;  %v7764_v30 = vadd.f32 %v11989_v19, %v7752_v56 }
0x213e   : > { %v9817_v8 = vpop.eup %9816 }
0x213f   : > { %7772 = vst [vmem:[%s11994_s16 + $0x28] sm:$0xff] %v7764_v30  ;;  %v7741_v39 = vmul.f32 %v9817_v8, %v7717_v50 }
0x2140   : > { %v9819_v34 = vpop.eup %9818 }
0x2141   : > { %v7753_v13 = vmul.f32 %v11982_v47, %v7741_v39  ;;  %v7742_v55 = vmul.f32 %v9819_v34, %v7718_v17 }
0x2143   : > { %v7765_v63 = vadd.f32 %v11989_v19, %v7753_v13  ;;  %v7754_v54 = vmul.f32 %v11982_v47, %v7742_v55 }
0x2145   : > { %7773 = vst [vmem:[%s11994_s16 + $0x30] sm:$0xff] %v7765_v63  ;;  %v7766_v3 = vadd.f32 %v11989_v19, %v7754_v54 }
0x2147   : > { %7774 = vst [vmem:[%s11994_s16 + $0x38] sm:$0xff] %v7766_v3 }
0x2148   : > { %10031 = shalt.err (!%p10028_p8)
}
0x2149   : > { %s10032_s16 = scalar_lea.hbm %s12025_s1, 1024  ;;  %s10036_s24 = scalar_lea.hbm %s12132_s15, 2048 }
0x214a   : > { %p10033_p7 = scmp.ne.s32.totalorder %s12025_s1, %s10032_s16  ;;  %p10037_p1 = scmp.lt.u32.totalorder %s12025_s1, %s12132_s15 }
0x214b   : > { %p10038_p0 = scmp.lt.u32.totalorder %s10036_s24, %s10032_s16  ;;  %p10040_p6 = scmp.lt.u32.totalorder %s10032_s16, %s12025_s1 }
0x214c   : > { %p10034_p9 = pnand %p10033_p7, %p12133_p5 }
0x214d   : > { %p10039_p2 = por %p10038_p0, %p10037_p1 }
0x214e   : > { %p10035_p4 = pneg %p10034_p9 }
0x214f   : > { %p10041_p10 = por %p10040_p6, %p10039_p2 }
0x2151   : > { %p10042_p11 = pnand %p10041_p10, %p10035_p4 }
0x2153   : > { %10045 = shalt.err (!%p10042_p11)
}
0x2154   : > { %s10120_s27 = smov 128   ;;  %s10121_s30 = smov 8  }
0x2155   : > { %9187 = dma.vmem_to_hbm [thread:$0]  (%p12133_p5), %s12027_s28, 1024, %s12025_s1, %s7776_s23, %s10120_s27, %s10120_s27, %s10121_s30  }
0x2156 PF: > { %s7804_s11 = sand.u32 1, %s10084_s17   ;;  %p12134_p3 = scmp.ne.s32.totalorder %s12113_s26, 0 }
0x2157   : > { %p12135_p12 = scmp.ge.s32.totalorder %s10096_s20, 2  ;;  %s7805_s16 = scalar_lea.sflag [#allocation4], %s7804_s11 }
0x2159   : > { %p9213_p13 = pnand %p12135_p12, %p12134_p3 }
0x215b   : > { %10079 = dma.done.wait (!%p9213_p13), %s7805_s16, 1024  }
0x215c   : > { %10081 = vsyncadd (!%p9213_p13), %s7805_s16, 4294966272  ;;  %p27_p8 = scmp.ge.s32.totalorder %s10374_s14, 4   ;;  %s12136_s17 = smov %s10088_s18 }
0x215d   : > { %s12137_s18 = smov %s10092_s19  ;;  %s12138_s19 = smov %s10385_s22 }
0x215e   : > { %s12139_s20 = smov %s10374_s14  ;;  %29 = sbr.rel (!%p27_p8) target bundleno = 12 (0xc), region = 140 }
0x2165   :  { %7810 = vsyncpa [#allocation3], 1 }
0x2166   :  { %7812 = vsyncpa [#allocation3 + $0x1], 1 }
0x2167   :  { %7813 = vsyncpa [#allocation6], 1 }
0x2168   :  { %7814 = vsyncpa [#allocation9], 1 }
0x2169   :  { %7815 = vsyncpa [#allocation12], 1 }
0x216a   :  { %7816 = vsyncpa [#allocation4], 1 }
0x216b   :  { %7818 = vsyncpa [#allocation4 + $0x1], 1 }

</bundles_post_ra>
